<compile_context>
chip_gen: v7x
topology: tpu7x:2x2x1
jax: 0.10.0
libtpu: 0.0.40
codegen_flags: <defaults>
</compile_context>

<pallas_src>
import functools

import jax
import jax.numpy as jnp
from jax.experimental import pallas as pl
from jax.experimental.pallas import tpu as pltpu

_VMEM_LIMIT = 32 * 1024 * 1024  # explicit scoped-VMEM budget (safe on v5e/v6e/v7x)


# ----------------------------------------------------------------------------
# Host-side packing helpers (cheap XLA reshapes / transposes, no data blow-up)
# ----------------------------------------------------------------------------
def _space_to_depth2(x):
    """[B, H, W, C] (H, W even) -> [B, H//2, W//2, 4*C], channel order (p, q, c)."""
    b, h, w, c = x.shape
    x = x.reshape(b, h // 2, 2, w // 2, 2, c)
    x = jnp.transpose(x, (0, 1, 3, 2, 4, 5))
    return x.reshape(b, h // 2, w // 2, 4 * c)


def _build_conv1_s2d_weights(w_hwio, bn_scale, cout_pad=128):
    """Fold BN scale into the 7x7 weights and rewrite the stride-2 conv as 16
    offset-matmuls over the space-to-depth input.  Returns [16, 4*cin, cout_pad] bf16."""
    kh, kw, cin, cout = w_hwio.shape
    w = w_hwio * bn_scale.reshape(1, 1, 1, cout)
    w = jnp.pad(w, ((0, 8 - kh), (0, 8 - kw), (0, 0), (0, 0)))  # taps 7 -> 8 (zeros)
    w = w.reshape(4, 2, 4, 2, cin, cout)                         # [di, p, dj, q, c, o]
    w = jnp.transpose(w, (0, 2, 1, 3, 4, 5))                     # [di, dj, p, q, c, o]
    w = w.reshape(16, 4 * cin, cout)
    w = jnp.pad(w, ((0, 0), (0, 0), (0, cout_pad - cout)))
    return w.astype(jnp.bfloat16)


# ----------------------------------------------------------------------------
# Kernel A: conv1 (7x7 s2 p3) + folded BN + ReLU, via space-to-depth
# ----------------------------------------------------------------------------
def _conv1_kernel(x_ref, w_ref, b_ref, o_ref, *, th, wo):
    # x_ref: [1, Hh, Wh, Cs]  space-to-depth padded input (whole image resident in VMEM)
    # w_ref: [16, Cs, Cout]   b_ref: [1, Cout]   o_ref: [1, th*wo, Cout]
    r0 = pl.program_id(1) * th
    cs = x_ref.shape[-1]
    acc = None
    for t in range(16):                      # 4x4 spatial offsets of the s2d conv
        di, dj = t // 4, t % 4
        patch = x_ref[0, pl.ds(r0 + di, th), dj:dj + wo, :]      # [th, wo, Cs] bf16
        part = jnp.dot(patch.reshape(th * wo, cs), w_ref[t],
                       preferred_element_type=jnp.float32)       # bf16 MXU, f32 acc
        acc = part if acc is None else acc + part
    y = jnp.maximum(acc + b_ref[...], 0.0)                       # folded BN bias + ReLU
    o_ref[0] = y.astype(o_ref.dtype)


def conv1_forward(x_nhwc, w_hwio, bn_scale, bn_bias, cout_pad=128):
    """Returns [B, Ho, Wo, cout_pad] bf16 (channels >= real cout are zeros)."""
    b, h, w, _ = x_nhwc.shape
    pad = 3
    ho = (h + 2 * pad - 7) // 2 + 1
    wo = (w + 2 * pad - 7) // 2 + 1
    hp2 = (h + 2 * pad) + ((h + 2 * pad) % 2)
    wp2 = (w + 2 * pad) + ((w + 2 * pad) % 2)
    xp = jnp.pad(x_nhwc, ((0, 0), (pad, hp2 - h - pad), (pad, wp2 - w - pad), (0, 0)))
    xs2d = _space_to_depth2(xp).astype(jnp.bfloat16)             # [B, Hh, Wh, 4*cin]
    wc = _build_conv1_s2d_weights(w_hwio, bn_scale, cout_pad)    # [16, 4*cin, 128]
    bias = jnp.pad(bn_bias, (0, cout_pad - bn_bias.shape[0]))
    bias = bias.reshape(1, cout_pad).astype(jnp.float32)

    hh, wh, cs = xs2d.shape[1], xs2d.shape[2], xs2d.shape[3]
    th = ho                                   # row tile over the output rows
    if ho > 64:
        for cand in (64, 32, 16, 8):
            if ho % cand == 0:
                th = cand
                break
    n_rt = ho // th

    out = pl.pallas_call(
        functools.partial(_conv1_kernel, th=th, wo=wo),
        out_shape=jax.ShapeDtypeStruct((b, ho * wo, cout_pad), jnp.bfloat16),
        grid=(b, n_rt),
        in_specs=[
            # whole (small) s2d image held resident across the row-tile axis
            pl.BlockSpec((1, hh, wh, cs), lambda i, r: (i, 0, 0, 0)),
            pl.BlockSpec((16, cs, cout_pad), lambda i, r: (0, 0, 0)),
            pl.BlockSpec((1, cout_pad), lambda i, r: (0, 0)),
        ],
        out_specs=pl.BlockSpec((1, th * wo, cout_pad), lambda i, r: (i, r, 0)),
        compiler_params=pltpu.CompilerParams(
            dimension_semantics=("parallel", "arbitrary"),
            vmem_limit_bytes=_VMEM_LIMIT),
    )(xs2d, wc, bias)
    return out.reshape(b, ho, wo, cout_pad)


# ----------------------------------------------------------------------------
# Kernel B: fused tail = maxpool(3,2,1) -> layer1 -> layer2 -> layer3 (+ReLU)
# ----------------------------------------------------------------------------
def _tail_kernel(ph_ref, w4_ref, w8_ref, w1_ref, w2_ref, w3_ref,
                 o0_ref, o1_ref, o2_ref, *, hm, wm):
    # --- maxpool 3x3 s2 p1 from the 2x2-phase layout of conv1's output (static slices) ---
    m = None
    for i in range(3):
        for j in range(3):
            c0 = ((i % 2) * 2 + (j % 2)) * 128
            tap = ph_ref[0, (i // 2):(i // 2) + hm, (j // 2):(j // 2) + wm, c0:c0 + 128]
            m = tap if m is None else jnp.maximum(m, tap)
    m = m.reshape(hm * wm, 128)

    w1 = w1_ref[...]
    w2 = w2_ref[...]
    w3 = w3_ref[...]

    def mlp(h, mats):  # chained 1x1 convs (= matmuls) + ReLU, bf16 MXU / f32 accumulate
        for wmat in mats:
            h = jnp.maximum(
                jnp.dot(h.astype(wmat.dtype), wmat, preferred_element_type=jnp.float32),
                0.0)
        return h

    # layer1  -> '0' (stride 4)
    o0_ref[0] = mlp(m, [w1]).astype(o0_ref.dtype)

    # layer2  -> '1' (stride 8): maxpool sampled at even positions, then layer1 -> layer2
    m2 = w4_ref[0, 0]
    for t in range(1, 9):
        m2 = jnp.maximum(m2, w4_ref[0, t])
    o1_ref[0] = mlp(m2, [w1, w2]).astype(o1_ref.dtype)

    # layer3  -> '2' (stride 16): maxpool sampled at stride-4 positions, then layer1->2->3
    m4 = w8_ref[0, 0]
    for t in range(1, 9):
        m4 = jnp.maximum(m4, w8_ref[0, t])
    o2_ref[0] = mlp(m4, [w1, w2, w3]).astype(o2_ref.dtype)


def tail_forward(y1, w1p, w2p, w3p):
    """y1: [B, Ho, Wo, 128] bf16 (conv1 output, zero-padded channels past 64).
    Returns NHWC f32 features for layer1 ('0'), layer2 ('1'), layer3 ('2')."""
    b, ho, wo, cp = y1.shape
    hm, wm = (ho - 1) // 2 + 1, (wo - 1) // 2 + 1          # maxpool output (3,2,pad 1)
    h1, w1s = -(-hm // 2), -(-wm // 2)                      # layer2 output spatial
    h2, w2s = -(-h1 // 2), -(-w1s // 2)                     # layer3 output spatial

    # 1-pad (zeros are fine: post-ReLU activations >= 0) + pad to even for the phase split.
    hp2 = (ho + 2) + ((ho + 2) % 2)
    wp2 = (wo + 2) + ((wo + 2) % 2)
    y1p = jnp.pad(y1, ((0, 0), (1, hp2 - ho - 1), (1, wp2 - wo - 1), (0, 0)))
    ph2 = _space_to_depth2(y1p)                             # [B, hp2//2, wp2//2, 4*cp]

    # Tiny explicit max-pool windows for the strided '1'/'2' paths only.
    def windows(stride, nr, nc):
        taps = []
        for i in range(3):
            for j in range(3):
                taps.append(y1p[:, i:i + stride * (nr - 1) + 1:stride,
                                j:j + stride * (nc - 1) + 1:stride, :])
        return jnp.stack(taps, axis=1).reshape(b, 9, nr * nc, cp)

    w4 = windows(4, h1, w1s)
    w8 = windows(8, h2, w2s)

    m0, m1, m2 = hm * wm, h1 * w1s, h2 * w2s
    hh2, wh2, cph = ph2.shape[1], ph2.shape[2], ph2.shape[3]
    cout3 = w3p.shape[1]

    # TODO(synk): for DETR-scale inputs, additionally tile this kernel spatially
    # (here one image's tail comfortably fits in VMEM).
    o0, o1, o2 = pl.pallas_call(
        functools.partial(_tail_kernel, hm=hm, wm=wm),
        out_shape=(jax.ShapeDtypeStruct((b, m0, 128), jnp.float32),
                   jax.ShapeDtypeStruct((b, m1, 128), jnp.float32),
                   jax.ShapeDtypeStruct((b, m2, cout3), jnp.float32)),
        grid=(b,),
        in_specs=[
            pl.BlockSpec((1, hh2, wh2, cph), lambda i: (i, 0, 0, 0)),
            pl.BlockSpec((1, 9, m1, cp), lambda i: (i, 0, 0, 0)),
            pl.BlockSpec((1, 9, m2, cp), lambda i: (i, 0, 0, 0)),
            pl.BlockSpec((128, 128), lambda i: (0, 0)),
            pl.BlockSpec((128, 128), lambda i: (0, 0)),
            pl.BlockSpec((128, cout3), lambda i: (0, 0)),
        ],
        out_specs=(pl.BlockSpec((1, m0, 128), lambda i: (i, 0, 0)),
                   pl.BlockSpec((1, m1, 128), lambda i: (i, 0, 0)),
                   pl.BlockSpec((1, m2, cout3), lambda i: (i, 0, 0))),
        compiler_params=pltpu.CompilerParams(
            dimension_semantics=("parallel",),
            vmem_limit_bytes=_VMEM_LIMIT),
    )(ph2, w4, w8, w1p, w2p, w3p)

    return (o0.reshape(b, hm, wm, 128),
            o1.reshape(b, h1, w1s, 128),
            o2.reshape(b, h2, w2s, cout3))


# ----------------------------------------------------------------------------
# Plain-JAX glue
# ----------------------------------------------------------------------------
def interpolate_mask_nearest(mask, out_h, out_w):
    # Matches F.interpolate(mode='nearest'): src = floor(dst * in/out).
    # TODO(synk): this nearest-neighbor mask resize is a tiny gather; kept in plain JAX.
    _, h, w = mask.shape
    hi = jnp.floor(jnp.arange(out_h) * (h / out_h)).astype(jnp.int32)
    wi = jnp.floor(jnp.arange(out_w) * (w / out_w)).astype(jnp.int32)
    return mask[:, hi][:, :, wi].astype(bool)


# ----------------------------------------------------------------------------
# BackboneBase
# ----------------------------------------------------------------------------
def init_params(key):
    ks = jax.random.split(key, 8)
    p = {}
    p["conv1_w"] = jax.random.normal(ks[0], (7, 7, 3, 64), jnp.float32) * 0.05
    p["fg_w"] = jax.random.normal(ks[1], (7, 7, 1, 64), jnp.float32) * 0.05
    p["bg_w"] = jax.random.normal(ks[2], (7, 7, 1, 64), jnp.float32) * 0.05
    # bn1: eval-mode batchnorm folded to a per-channel affine (scale/bias).
    gamma = 1.0 + 0.1 * jax.random.normal(ks[3], (64,), jnp.float32)
    beta = 0.1 * jax.random.normal(ks[4], (64,), jnp.float32)
    mean = jnp.zeros((64,), jnp.float32)
    var = jnp.ones((64,), jnp.float32)
    eps = 1e-5
    p["bn1_scale"] = gamma / jnp.sqrt(var + eps)
    p["bn1_bias"] = beta - mean * p["bn1_scale"]
    p["layer1_w"] = jax.random.normal(ks[5], (1, 1, 64, 64), jnp.float32) * 0.1
    p["layer2_w"] = jax.random.normal(ks[6], (1, 1, 64, 128), jnp.float32) * 0.1
    p["layer3_w"] = jax.random.normal(ks[7], (1, 1, 128, 256), jnp.float32) * 0.1
    return p


class BackboneBase:
    def __init__(self, params, return_interm_layers=True):
        self.p = params
        if return_interm_layers:
            self.return_layers = {"layer1": "0", "layer2": "1", "layer3": "2"}
            self.strides = [4, 8, 16]
            self.num_channels = [64, 128, 256]
        else:
            self.return_layers = {"layer3": "0"}
            self.strides = [16]
            self.num_channels = [256]
        # Pre-pack the 1x1-conv weights once: bf16, zero-padded to a lane-dense 128.
        p = params
        self.w1p = jnp.pad(p["layer1_w"].reshape(64, 64), ((0, 64), (0, 64))).astype(jnp.bfloat16)
        self.w2p = jnp.pad(p["layer2_w"].reshape(64, 128), ((0, 64), (0, 0))).astype(jnp.bfloat16)
        self.w3p = p["layer3_w"].reshape(128, 256).astype(jnp.bfloat16)

    def __call__(self, tensors, mask):
        # tensors: [B, C, H, W] (NCHW, PyTorch convention); mask: [B, H, W] bool.
        p = self.p
        x = jnp.transpose(tensors, (0, 2, 3, 1))  # -> NHWC

        if x.shape[-1] == 4:
            # conv1(rgb) + fg_conv(m) + bg_conv(1 - m) fused as ONE conv over 5 channels.
            rgb, m = x[..., :3], x[..., 3:4]
            x_in = jnp.concatenate([rgb, m, 1.0 - m], axis=-1)
            w_in = jnp.concatenate([p["conv1_w"], p["fg_w"], p["bg_w"]], axis=2)  # [7,7,5,64]
        else:
            x_in, w_in = x, p["conv1_w"]

        y1 = conv1_forward(x_in, w_in, p["bn1_scale"], p["bn1_bias"])  # [B,Ho,Wo,128] bf16
        f1, f2, f3 = tail_forward(y1, self.w1p, self.w2p, self.w3p)
        feats = {"layer1": f1[..., :64], "layer2": f2, "layer3": f3}

        out = {}
        for lname, oname in self.return_layers.items():
            f = feats[lname]
            ho, wo = f.shape[1], f.shape[2]
            m_ds = interpolate_mask_nearest(mask, ho, wo)  # NestedTensor.mask analogue
            out[oname] = (jnp.transpose(f, (0, 3, 1, 2)), m_ds)  # back to NCHW
        return out


if __name__ == "__main__":
    key = jax.random.PRNGKey(0)
    kp, kx, km = jax.random.split(key, 3)
    params = init_params(kp)

    B, H, W = 2, 32, 32
    tensors = jax.random.normal(kx, (B, 4, H, W), jnp.float32)  # RGB + matte channel
    mask = jax.random.uniform(km, (B, H, W)) > 0.5

    model = BackboneBase(params, return_interm_layers=True)
    out = model(tensors, mask)

    expected = {"0": (B, 64, 8, 8), "1": (B, 128, 4, 4), "2": (B, 256, 2, 2)}
    for name, (f, m) in out.items():
        f = jax.block_until_ready(f)
        m = jax.block_until_ready(m)
        assert f.shape == expected[name], (name, f.shape)
        assert m.shape == (B,) + expected[name][2:], (name, m.shape)
        assert m.dtype == jnp.bool_
    print("KERNEL_OK")
</pallas_src>

<mosaic_0001>
module attributes {stable_mosaic.version = 11 : i64} {
  func.func @_conv1_kernel(%arg0: i32, %arg1: i32, %arg2: memref<1x19x19x20xbf16, #tpu.memory_space<vmem>>, %arg3: memref<16x20x128xbf16, #tpu.memory_space<vmem>>, %arg4: memref<1x128xf32, #tpu.memory_space<vmem>>, %arg5: memref<1x256x128xbf16, #tpu.memory_space<vmem>>) attributes {dimension_semantics = [#tpu.dimension_semantics<parallel>, #tpu.dimension_semantics<arbitrary>], iteration_bounds = array<i64: 2, 1>, scalar_prefetch = 0 : i64, scratch_operands = 0 : i64, tpu.core_type = #tpu.core_type<tc>, window_params = [{transform_indices = @transform_0, window_bounds = array<i64: 1, 19, 19, 20>}, {pipeline_mode = #tpu.pipeline_mode<synchronous>, transform_indices = @transform_1, window_bounds = array<i64: 16, 20, 128>}, {pipeline_mode = #tpu.pipeline_mode<synchronous>, transform_indices = @transform_2, window_bounds = array<i64: 1, 128>}, {transform_indices = @transform_3, window_bounds = array<i64: 1, 256, 128>}]} {
    %c16_i32 = arith.constant 16 : i32
    %0 = arith.muli %arg1, %c16_i32 : i32
    %c0_i32 = arith.constant 0 : i32
    %1 = arith.addi %0, %c0_i32 : i32
    %c0 = arith.constant 0 : index
    %2 = arith.index_cast %1 : i32 to index
    %c0_0 = arith.constant 0 : index
    %c0_1 = arith.constant 0 : index
    %3 = vector.load %arg2[%c0, %2, %c0_0, %c0_1] : memref<1x19x19x20xbf16, #tpu.memory_space<vmem>>, vector<1x16x16x20xbf16>
    %4 = vector.shape_cast %3 : vector<1x16x16x20xbf16> to vector<16x16x20xbf16>
    %5 = vector.shape_cast %4 : vector<16x16x20xbf16> to vector<256x20xbf16>
    %c0_2 = arith.constant 0 : index
    %c0_3 = arith.constant 0 : index
    %c0_4 = arith.constant 0 : index
    %6 = vector.load %arg3[%c0_2, %c0_3, %c0_4] : memref<16x20x128xbf16, #tpu.memory_space<vmem>>, vector<1x20x128xbf16>
    %7 = vector.shape_cast %6 : vector<1x20x128xbf16> to vector<20x128xbf16>
    %cst = arith.constant dense<0.000000e+00> : vector<256x128xf32>
    %8 = tpu.matmul %5, %7, %cst {dimension_numbers = #tpu.dot_dimension_numbers<[1], [0], [0], [1], [0, 0, 1, 1], [], []>} : vector<256x20xbf16>, vector<20x128xbf16>, vector<256x128xf32> -> vector<256x128xf32>
    %c0_i32_5 = arith.constant 0 : i32
    %9 = arith.addi %0, %c0_i32_5 : i32
    %c0_6 = arith.constant 0 : index
    %10 = arith.index_cast %9 : i32 to index
    %c1 = arith.constant 1 : index
    %c0_7 = arith.constant 0 : index
    %11 = vector.load %arg2[%c0_6, %10, %c1, %c0_7] : memref<1x19x19x20xbf16, #tpu.memory_space<vmem>>, vector<1x16x16x20xbf16>
    %12 = vector.shape_cast %11 : vector<1x16x16x20xbf16> to vector<16x16x20xbf16>
    %13 = vector.shape_cast %12 : vector<16x16x20xbf16> to vector<256x20xbf16>
    %c1_8 = arith.constant 1 : index
    %c0_9 = arith.constant 0 : index
    %c0_10 = arith.constant 0 : index
    %14 = vector.load %arg3[%c1_8, %c0_9, %c0_10] : memref<16x20x128xbf16, #tpu.memory_space<vmem>>, vector<1x20x128xbf16>
    %15 = vector.shape_cast %14 : vector<1x20x128xbf16> to vector<20x128xbf16>
    %cst_11 = arith.constant dense<0.000000e+00> : vector<256x128xf32>
    %16 = tpu.matmul %13, %15, %cst_11 {dimension_numbers = #tpu.dot_dimension_numbers<[1], [0], [0], [1], [0, 0, 1, 1], [], []>} : vector<256x20xbf16>, vector<20x128xbf16>, vector<256x128xf32> -> vector<256x128xf32>
    %17 = arith.addf %8, %16 : vector<256x128xf32>
    %c0_i32_12 = arith.constant 0 : i32
    %18 = arith.addi %0, %c0_i32_12 : i32
    %c0_13 = arith.constant 0 : index
    %19 = arith.index_cast %18 : i32 to index
    %c2 = arith.constant 2 : index
    %c0_14 = arith.constant 0 : index
    %20 = vector.load %arg2[%c0_13, %19, %c2, %c0_14] : memref<1x19x19x20xbf16, #tpu.memory_space<vmem>>, vector<1x16x16x20xbf16>
    %21 = vector.shape_cast %20 : vector<1x16x16x20xbf16> to vector<16x16x20xbf16>
    %22 = vector.shape_cast %21 : vector<16x16x20xbf16> to vector<256x20xbf16>
    %c2_15 = arith.constant 2 : index
    %c0_16 = arith.constant 0 : index
    %c0_17 = arith.constant 0 : index
    %23 = vector.load %arg3[%c2_15, %c0_16, %c0_17] : memref<16x20x128xbf16, #tpu.memory_space<vmem>>, vector<1x20x128xbf16>
    %24 = vector.shape_cast %23 : vector<1x20x128xbf16> to vector<20x128xbf16>
    %cst_18 = arith.constant dense<0.000000e+00> : vector<256x128xf32>
    %25 = tpu.matmul %22, %24, %cst_18 {dimension_numbers = #tpu.dot_dimension_numbers<[1], [0], [0], [1], [0, 0, 1, 1], [], []>} : vector<256x20xbf16>, vector<20x128xbf16>, vector<256x128xf32> -> vector<256x128xf32>
    %26 = arith.addf %17, %25 : vector<256x128xf32>
    %c0_i32_19 = arith.constant 0 : i32
    %27 = arith.addi %0, %c0_i32_19 : i32
    %c0_20 = arith.constant 0 : index
    %28 = arith.index_cast %27 : i32 to index
    %c3 = arith.constant 3 : index
    %c0_21 = arith.constant 0 : index
    %29 = vector.load %arg2[%c0_20, %28, %c3, %c0_21] : memref<1x19x19x20xbf16, #tpu.memory_space<vmem>>, vector<1x16x16x20xbf16>
    %30 = vector.shape_cast %29 : vector<1x16x16x20xbf16> to vector<16x16x20xbf16>
    %31 = vector.shape_cast %30 : vector<16x16x20xbf16> to vector<256x20xbf16>
    %c3_22 = arith.constant 3 : index
    %c0_23 = arith.constant 0 : index
    %c0_24 = arith.constant 0 : index
    %32 = vector.load %arg3[%c3_22, %c0_23, %c0_24] : memref<16x20x128xbf16, #tpu.memory_space<vmem>>, vector<1x20x128xbf16>
    %33 = vector.shape_cast %32 : vector<1x20x128xbf16> to vector<20x128xbf16>
    %cst_25 = arith.constant dense<0.000000e+00> : vector<256x128xf32>
    %34 = tpu.matmul %31, %33, %cst_25 {dimension_numbers = #tpu.dot_dimension_numbers<[1], [0], [0], [1], [0, 0, 1, 1], [], []>} : vector<256x20xbf16>, vector<20x128xbf16>, vector<256x128xf32> -> vector<256x128xf32>
    %35 = arith.addf %26, %34 : vector<256x128xf32>
    %c1_i32 = arith.constant 1 : i32
    %36 = arith.addi %0, %c1_i32 : i32
    %c0_26 = arith.constant 0 : index
    %37 = arith.index_cast %36 : i32 to index
    %c0_27 = arith.constant 0 : index
    %c0_28 = arith.constant 0 : index
    %38 = vector.load %arg2[%c0_26, %37, %c0_27, %c0_28] : memref<1x19x19x20xbf16, #tpu.memory_space<vmem>>, vector<1x16x16x20xbf16>
    %39 = vector.shape_cast %38 : vector<1x16x16x20xbf16> to vector<16x16x20xbf16>
    %40 = vector.shape_cast %39 : vector<16x16x20xbf16> to vector<256x20xbf16>
    %c4 = arith.constant 4 : index
    %c0_29 = arith.constant 0 : index
    %c0_30 = arith.constant 0 : index
    %41 = vector.load %arg3[%c4, %c0_29, %c0_30] : memref<16x20x128xbf16, #tpu.memory_space<vmem>>, vector<1x20x128xbf16>
    %42 = vector.shape_cast %41 : vector<1x20x128xbf16> to vector<20x128xbf16>
    %cst_31 = arith.constant dense<0.000000e+00> : vector<256x128xf32>
    %43 = tpu.matmul %40, %42, %cst_31 {dimension_numbers = #tpu.dot_dimension_numbers<[1], [0], [0], [1], [0, 0, 1, 1], [], []>} : vector<256x20xbf16>, vector<20x128xbf16>, vector<256x128xf32> -> vector<256x128xf32>
    %44 = arith.addf %35, %43 : vector<256x128xf32>
    %c1_i32_32 = arith.constant 1 : i32
    %45 = arith.addi %0, %c1_i32_32 : i32
    %c0_33 = arith.constant 0 : index
    %46 = arith.index_cast %45 : i32 to index
    %c1_34 = arith.constant 1 : index
    %c0_35 = arith.constant 0 : index
    %47 = vector.load %arg2[%c0_33, %46, %c1_34, %c0_35] : memref<1x19x19x20xbf16, #tpu.memory_space<vmem>>, vector<1x16x16x20xbf16>
    %48 = vector.shape_cast %47 : vector<1x16x16x20xbf16> to vector<16x16x20xbf16>
    %49 = vector.shape_cast %48 : vector<16x16x20xbf16> to vector<256x20xbf16>
    %c5 = arith.constant 5 : index
    %c0_36 = arith.constant 0 : index
    %c0_37 = arith.constant 0 : index
    %50 = vector.load %arg3[%c5, %c0_36, %c0_37] : memref<16x20x128xbf16, #tpu.memory_space<vmem>>, vector<1x20x128xbf16>
    %51 = vector.shape_cast %50 : vector<1x20x128xbf16> to vector<20x128xbf16>
    %cst_38 = arith.constant dense<0.000000e+00> : vector<256x128xf32>
    %52 = tpu.matmul %49, %51, %cst_38 {dimension_numbers = #tpu.dot_dimension_numbers<[1], [0], [0], [1], [0, 0, 1, 1], [], []>} : vector<256x20xbf16>, vector<20x128xbf16>, vector<256x128xf32> -> vector<256x128xf32>
    %53 = arith.addf %44, %52 : vector<256x128xf32>
    %c1_i32_39 = arith.constant 1 : i32
    %54 = arith.addi %0, %c1_i32_39 : i32
    %c0_40 = arith.constant 0 : index
    %55 = arith.index_cast %54 : i32 to index
    %c2_41 = arith.constant 2 : index
    %c0_42 = arith.constant 0 : index
    %56 = vector.load %arg2[%c0_40, %55, %c2_41, %c0_42] : memref<1x19x19x20xbf16, #tpu.memory_space<vmem>>, vector<1x16x16x20xbf16>
    %57 = vector.shape_cast %56 : vector<1x16x16x20xbf16> to vector<16x16x20xbf16>
    %58 = vector.shape_cast %57 : vector<16x16x20xbf16> to vector<256x20xbf16>
    %c6 = arith.constant 6 : index
    %c0_43 = arith.constant 0 : index
    %c0_44 = arith.constant 0 : index
    %59 = vector.load %arg3[%c6, %c0_43, %c0_44] : memref<16x20x128xbf16, #tpu.memory_space<vmem>>, vector<1x20x128xbf16>
    %60 = vector.shape_cast %59 : vector<1x20x128xbf16> to vector<20x128xbf16>
    %cst_45 = arith.constant dense<0.000000e+00> : vector<256x128xf32>
    %61 = tpu.matmul %58, %60, %cst_45 {dimension_numbers = #tpu.dot_dimension_numbers<[1], [0], [0], [1], [0, 0, 1, 1], [], []>} : vector<256x20xbf16>, vector<20x128xbf16>, vector<256x128xf32> -> vector<256x128xf32>
    %62 = arith.addf %53, %61 : vector<256x128xf32>
    %c1_i32_46 = arith.constant 1 : i32
    %63 = arith.addi %0, %c1_i32_46 : i32
    %c0_47 = arith.constant 0 : index
    %64 = arith.index_cast %63 : i32 to index
    %c3_48 = arith.constant 3 : index
    %c0_49 = arith.constant 0 : index
    %65 = vector.load %arg2[%c0_47, %64, %c3_48, %c0_49] : memref<1x19x19x20xbf16, #tpu.memory_space<vmem>>, vector<1x16x16x20xbf16>
    %66 = vector.shape_cast %65 : vector<1x16x16x20xbf16> to vector<16x16x20xbf16>
    %67 = vector.shape_cast %66 : vector<16x16x20xbf16> to vector<256x20xbf16>
    %c7 = arith.constant 7 : index
    %c0_50 = arith.constant 0 : index
    %c0_51 = arith.constant 0 : index
    %68 = vector.load %arg3[%c7, %c0_50, %c0_51] : memref<16x20x128xbf16, #tpu.memory_space<vmem>>, vector<1x20x128xbf16>
    %69 = vector.shape_cast %68 : vector<1x20x128xbf16> to vector<20x128xbf16>
    %cst_52 = arith.constant dense<0.000000e+00> : vector<256x128xf32>
    %70 = tpu.matmul %67, %69, %cst_52 {dimension_numbers = #tpu.dot_dimension_numbers<[1], [0], [0], [1], [0, 0, 1, 1], [], []>} : vector<256x20xbf16>, vector<20x128xbf16>, vector<256x128xf32> -> vector<256x128xf32>
    %71 = arith.addf %62, %70 : vector<256x128xf32>
    %c2_i32 = arith.constant 2 : i32
    %72 = arith.addi %0, %c2_i32 : i32
    %c0_53 = arith.constant 0 : index
    %73 = arith.index_cast %72 : i32 to index
    %c0_54 = arith.constant 0 : index
    %c0_55 = arith.constant 0 : index
    %74 = vector.load %arg2[%c0_53, %73, %c0_54, %c0_55] : memref<1x19x19x20xbf16, #tpu.memory_space<vmem>>, vector<1x16x16x20xbf16>
    %75 = vector.shape_cast %74 : vector<1x16x16x20xbf16> to vector<16x16x20xbf16>
    %76 = vector.shape_cast %75 : vector<16x16x20xbf16> to vector<256x20xbf16>
    %c8 = arith.constant 8 : index
    %c0_56 = arith.constant 0 : index
    %c0_57 = arith.constant 0 : index
    %77 = vector.load %arg3[%c8, %c0_56, %c0_57] : memref<16x20x128xbf16, #tpu.memory_space<vmem>>, vector<1x20x128xbf16>
    %78 = vector.shape_cast %77 : vector<1x20x128xbf16> to vector<20x128xbf16>
    %cst_58 = arith.constant dense<0.000000e+00> : vector<256x128xf32>
    %79 = tpu.matmul %76, %78, %cst_58 {dimension_numbers = #tpu.dot_dimension_numbers<[1], [0], [0], [1], [0, 0, 1, 1], [], []>} : vector<256x20xbf16>, vector<20x128xbf16>, vector<256x128xf32> -> vector<256x128xf32>
    %80 = arith.addf %71, %79 : vector<256x128xf32>
    %c2_i32_59 = arith.constant 2 : i32
    %81 = arith.addi %0, %c2_i32_59 : i32
    %c0_60 = arith.constant 0 : index
    %82 = arith.index_cast %81 : i32 to index
    %c1_61 = arith.constant 1 : index
    %c0_62 = arith.constant 0 : index
    %83 = vector.load %arg2[%c0_60, %82, %c1_61, %c0_62] : memref<1x19x19x20xbf16, #tpu.memory_space<vmem>>, vector<1x16x16x20xbf16>
    %84 = vector.shape_cast %83 : vector<1x16x16x20xbf16> to vector<16x16x20xbf16>
    %85 = vector.shape_cast %84 : vector<16x16x20xbf16> to vector<256x20xbf16>
    %c9 = arith.constant 9 : index
    %c0_63 = arith.constant 0 : index
    %c0_64 = arith.constant 0 : index
    %86 = vector.load %arg3[%c9, %c0_63, %c0_64] : memref<16x20x128xbf16, #tpu.memory_space<vmem>>, vector<1x20x128xbf16>
    %87 = vector.shape_cast %86 : vector<1x20x128xbf16> to vector<20x128xbf16>
    %cst_65 = arith.constant dense<0.000000e+00> : vector<256x128xf32>
    %88 = tpu.matmul %85, %87, %cst_65 {dimension_numbers = #tpu.dot_dimension_numbers<[1], [0], [0], [1], [0, 0, 1, 1], [], []>} : vector<256x20xbf16>, vector<20x128xbf16>, vector<256x128xf32> -> vector<256x128xf32>
    %89 = arith.addf %80, %88 : vector<256x128xf32>
    %c2_i32_66 = arith.constant 2 : i32
    %90 = arith.addi %0, %c2_i32_66 : i32
    %c0_67 = arith.constant 0 : index
    %91 = arith.index_cast %90 : i32 to index
    %c2_68 = arith.constant 2 : index
    %c0_69 = arith.constant 0 : index
    %92 = vector.load %arg2[%c0_67, %91, %c2_68, %c0_69] : memref<1x19x19x20xbf16, #tpu.memory_space<vmem>>, vector<1x16x16x20xbf16>
    %93 = vector.shape_cast %92 : vector<1x16x16x20xbf16> to vector<16x16x20xbf16>
    %94 = vector.shape_cast %93 : vector<16x16x20xbf16> to vector<256x20xbf16>
    %c10 = arith.constant 10 : index
    %c0_70 = arith.constant 0 : index
    %c0_71 = arith.constant 0 : index
    %95 = vector.load %arg3[%c10, %c0_70, %c0_71] : memref<16x20x128xbf16, #tpu.memory_space<vmem>>, vector<1x20x128xbf16>
    %96 = vector.shape_cast %95 : vector<1x20x128xbf16> to vector<20x128xbf16>
    %cst_72 = arith.constant dense<0.000000e+00> : vector<256x128xf32>
    %97 = tpu.matmul %94, %96, %cst_72 {dimension_numbers = #tpu.dot_dimension_numbers<[1], [0], [0], [1], [0, 0, 1, 1], [], []>} : vector<256x20xbf16>, vector<20x128xbf16>, vector<256x128xf32> -> vector<256x128xf32>
    %98 = arith.addf %89, %97 : vector<256x128xf32>
    %c2_i32_73 = arith.constant 2 : i32
    %99 = arith.addi %0, %c2_i32_73 : i32
    %c0_74 = arith.constant 0 : index
    %100 = arith.index_cast %99 : i32 to index
    %c3_75 = arith.constant 3 : index
    %c0_76 = arith.constant 0 : index
    %101 = vector.load %arg2[%c0_74, %100, %c3_75, %c0_76] : memref<1x19x19x20xbf16, #tpu.memory_space<vmem>>, vector<1x16x16x20xbf16>
    %102 = vector.shape_cast %101 : vector<1x16x16x20xbf16> to vector<16x16x20xbf16>
    %103 = vector.shape_cast %102 : vector<16x16x20xbf16> to vector<256x20xbf16>
    %c11 = arith.constant 11 : index
    %c0_77 = arith.constant 0 : index
    %c0_78 = arith.constant 0 : index
    %104 = vector.load %arg3[%c11, %c0_77, %c0_78] : memref<16x20x128xbf16, #tpu.memory_space<vmem>>, vector<1x20x128xbf16>
    %105 = vector.shape_cast %104 : vector<1x20x128xbf16> to vector<20x128xbf16>
    %cst_79 = arith.constant dense<0.000000e+00> : vector<256x128xf32>
    %106 = tpu.matmul %103, %105, %cst_79 {dimension_numbers = #tpu.dot_dimension_numbers<[1], [0], [0], [1], [0, 0, 1, 1], [], []>} : vector<256x20xbf16>, vector<20x128xbf16>, vector<256x128xf32> -> vector<256x128xf32>
    %107 = arith.addf %98, %106 : vector<256x128xf32>
    %c3_i32 = arith.constant 3 : i32
    %108 = arith.addi %0, %c3_i32 : i32
    %c0_80 = arith.constant 0 : index
    %109 = arith.index_cast %108 : i32 to index
    %c0_81 = arith.constant 0 : index
    %c0_82 = arith.constant 0 : index
    %110 = vector.load %arg2[%c0_80, %109, %c0_81, %c0_82] : memref<1x19x19x20xbf16, #tpu.memory_space<vmem>>, vector<1x16x16x20xbf16>
    %111 = vector.shape_cast %110 : vector<1x16x16x20xbf16> to vector<16x16x20xbf16>
    %112 = vector.shape_cast %111 : vector<16x16x20xbf16> to vector<256x20xbf16>
    %c12 = arith.constant 12 : index
    %c0_83 = arith.constant 0 : index
    %c0_84 = arith.constant 0 : index
    %113 = vector.load %arg3[%c12, %c0_83, %c0_84] : memref<16x20x128xbf16, #tpu.memory_space<vmem>>, vector<1x20x128xbf16>
    %114 = vector.shape_cast %113 : vector<1x20x128xbf16> to vector<20x128xbf16>
    %cst_85 = arith.constant dense<0.000000e+00> : vector<256x128xf32>
    %115 = tpu.matmul %112, %114, %cst_85 {dimension_numbers = #tpu.dot_dimension_numbers<[1], [0], [0], [1], [0, 0, 1, 1], [], []>} : vector<256x20xbf16>, vector<20x128xbf16>, vector<256x128xf32> -> vector<256x128xf32>
    %116 = arith.addf %107, %115 : vector<256x128xf32>
    %c3_i32_86 = arith.constant 3 : i32
    %117 = arith.addi %0, %c3_i32_86 : i32
    %c0_87 = arith.constant 0 : index
    %118 = arith.index_cast %117 : i32 to index
    %c1_88 = arith.constant 1 : index
    %c0_89 = arith.constant 0 : index
    %119 = vector.load %arg2[%c0_87, %118, %c1_88, %c0_89] : memref<1x19x19x20xbf16, #tpu.memory_space<vmem>>, vector<1x16x16x20xbf16>
    %120 = vector.shape_cast %119 : vector<1x16x16x20xbf16> to vector<16x16x20xbf16>
    %121 = vector.shape_cast %120 : vector<16x16x20xbf16> to vector<256x20xbf16>
    %c13 = arith.constant 13 : index
    %c0_90 = arith.constant 0 : index
    %c0_91 = arith.constant 0 : index
    %122 = vector.load %arg3[%c13, %c0_90, %c0_91] : memref<16x20x128xbf16, #tpu.memory_space<vmem>>, vector<1x20x128xbf16>
    %123 = vector.shape_cast %122 : vector<1x20x128xbf16> to vector<20x128xbf16>
    %cst_92 = arith.constant dense<0.000000e+00> : vector<256x128xf32>
    %124 = tpu.matmul %121, %123, %cst_92 {dimension_numbers = #tpu.dot_dimension_numbers<[1], [0], [0], [1], [0, 0, 1, 1], [], []>} : vector<256x20xbf16>, vector<20x128xbf16>, vector<256x128xf32> -> vector<256x128xf32>
    %125 = arith.addf %116, %124 : vector<256x128xf32>
    %c3_i32_93 = arith.constant 3 : i32
    %126 = arith.addi %0, %c3_i32_93 : i32
    %c0_94 = arith.constant 0 : index
    %127 = arith.index_cast %126 : i32 to index
    %c2_95 = arith.constant 2 : index
    %c0_96 = arith.constant 0 : index
    %128 = vector.load %arg2[%c0_94, %127, %c2_95, %c0_96] : memref<1x19x19x20xbf16, #tpu.memory_space<vmem>>, vector<1x16x16x20xbf16>
    %129 = vector.shape_cast %128 : vector<1x16x16x20xbf16> to vector<16x16x20xbf16>
    %130 = vector.shape_cast %129 : vector<16x16x20xbf16> to vector<256x20xbf16>
    %c14 = arith.constant 14 : index
    %c0_97 = arith.constant 0 : index
    %c0_98 = arith.constant 0 : index
    %131 = vector.load %arg3[%c14, %c0_97, %c0_98] : memref<16x20x128xbf16, #tpu.memory_space<vmem>>, vector<1x20x128xbf16>
    %132 = vector.shape_cast %131 : vector<1x20x128xbf16> to vector<20x128xbf16>
    %cst_99 = arith.constant dense<0.000000e+00> : vector<256x128xf32>
    %133 = tpu.matmul %130, %132, %cst_99 {dimension_numbers = #tpu.dot_dimension_numbers<[1], [0], [0], [1], [0, 0, 1, 1], [], []>} : vector<256x20xbf16>, vector<20x128xbf16>, vector<256x128xf32> -> vector<256x128xf32>
    %134 = arith.addf %125, %133 : vector<256x128xf32>
    %c3_i32_100 = arith.constant 3 : i32
    %135 = arith.addi %0, %c3_i32_100 : i32
    %c0_101 = arith.constant 0 : index
    %136 = arith.index_cast %135 : i32 to index
    %c3_102 = arith.constant 3 : index
    %c0_103 = arith.constant 0 : index
    %137 = vector.load %arg2[%c0_101, %136, %c3_102, %c0_103] : memref<1x19x19x20xbf16, #tpu.memory_space<vmem>>, vector<1x16x16x20xbf16>
    %138 = vector.shape_cast %137 : vector<1x16x16x20xbf16> to vector<16x16x20xbf16>
    %139 = vector.shape_cast %138 : vector<16x16x20xbf16> to vector<256x20xbf16>
    %c15 = arith.constant 15 : index
    %c0_104 = arith.constant 0 : index
    %c0_105 = arith.constant 0 : index
    %140 = vector.load %arg3[%c15, %c0_104, %c0_105] : memref<16x20x128xbf16, #tpu.memory_space<vmem>>, vector<1x20x128xbf16>
    %141 = vector.shape_cast %140 : vector<1x20x128xbf16> to vector<20x128xbf16>
    %cst_106 = arith.constant dense<0.000000e+00> : vector<256x128xf32>
    %142 = tpu.matmul %139, %141, %cst_106 {dimension_numbers = #tpu.dot_dimension_numbers<[1], [0], [0], [1], [0, 0, 1, 1], [], []>} : vector<256x20xbf16>, vector<20x128xbf16>, vector<256x128xf32> -> vector<256x128xf32>
    %143 = arith.addf %134, %142 : vector<256x128xf32>
    %c0_107 = arith.constant 0 : index
    %c0_108 = arith.constant 0 : index
    %144 = vector.load %arg4[%c0_107, %c0_108] : memref<1x128xf32, #tpu.memory_space<vmem>>, vector<1x128xf32>
    %145 = vector.broadcast %144 : vector<1x128xf32> to vector<256x128xf32>
    %146 = arith.addf %143, %145 : vector<256x128xf32>
    %cst_109 = arith.constant 0.000000e+00 : f32
    %147 = vector.broadcast %cst_109 : f32 to vector<256x128xf32>
    %148 = arith.maximumf %146, %147 : vector<256x128xf32>
    %149 = arith.truncf %148 : vector<256x128xf32> to vector<256x128xbf16>
    %c0_110 = arith.constant 0 : index
    %c0_111 = arith.constant 0 : index
    %c0_112 = arith.constant 0 : index
    %150 = vector.load %arg5[%c0_110, %c0_111, %c0_112] : memref<1x256x128xbf16, #tpu.memory_space<vmem>>, vector<1x256x128xbf16>
    %151 = vector.shape_cast %150 : vector<1x256x128xbf16> to vector<256x128xbf16>
    %152 = vector.shape_cast %149 : vector<256x128xbf16> to vector<1x256x128xbf16>
    tpu.vector_store %arg5[%c0_110, %c0_111, %c0_112], %152 {strides = array<i32>} : memref<1x256x128xbf16, #tpu.memory_space<vmem>>, vector<1x256x128xbf16>,
    return
  }
  func.func @transform_0(%arg0: i32, %arg1: i32) -> (i32, i32, i32, i32) {
    %c0_i32 = arith.constant 0 : i32
    %c0_i32_0 = arith.constant 0 : i32
    %c0_i32_1 = arith.constant 0 : i32
    %c0_i32_2 = arith.constant 0 : i32
    return %arg0, %c0_i32, %c0_i32_0, %c0_i32_1 : i32, i32, i32, i32
  }
  func.func @transform_1(%arg0: i32, %arg1: i32) -> (i32, i32, i32) {
    %c0_i32 = arith.constant 0 : i32
    %c0_i32_0 = arith.constant 0 : i32
    %c0_i32_1 = arith.constant 0 : i32
    %c0_i32_2 = arith.constant 0 : i32
    return %c0_i32, %c0_i32_0, %c0_i32_1 : i32, i32, i32
  }
  func.func @transform_2(%arg0: i32, %arg1: i32) -> (i32, i32) {
    %c0_i32 = arith.constant 0 : i32
    %c0_i32_0 = arith.constant 0 : i32
    %c0_i32_1 = arith.constant 0 : i32
    return %c0_i32, %c0_i32_0 : i32, i32
  }
  func.func @transform_3(%arg0: i32, %arg1: i32) -> (i32, i32, i32) {
    %c0_i32 = arith.constant 0 : i32
    %c0_i32_0 = arith.constant 0 : i32
    return %arg0, %arg1, %c0_i32 : i32, i32, i32
  }
}

</mosaic_0001>

<bundles_post_ra>
// kernel: tpu_custom_call.1
= control target key start
LH: loop header
LB: loop body
LE: loop exit
PB: predicated region body
PF: predicated region fallthrough
CT: control target
= control target key end

     0   :  { %8 = vsyncpa [#allocation3], 0  ;;  %s15693_s0 = inlined_call_operand.vmem [shape: bf16[2,19,19,20], index: 0, kind: input, shape index: {}]   ;;  %s15694_s1 = inlined_call_operand.vmem [shape: bf16[16,20,128], index: 1, kind: input, shape index: {}]   ;;  %s15695_s2 = inlined_call_operand.vmem [shape: f32[1,128], index: 2, kind: input, shape index: {}]   ;;  %s15696_s3 = inlined_call_operand.hbm [shape: bf16[2,256,128], index: 3, kind: output, shape index: {}]  }
   0x1   :  { %10 = vsyncpa [#allocation3 + $0x1], 0  ;;  %s12411_s12 = smov 0   ;;  %s12413_s13 = smov 0  }
   0x2   :  { %s12415_s14 = smov 0   ;;  %s12417_s15 = smov 0  }
   0x3   :  { %s12419_s16 = smov 0   ;;  %s12421_s17 = smov 0  }
   0x4 LB: > { %s9537_s18 = sadd.s32 4294967295, %s12386_s17   ;;  %s9538_s19 = sadd.s32 4294967294, %s12386_s17   ;;  %s12386_s17 = sphi %s12421_s17, %s16_s17   ;;  %s12382_s16 = sphi %s12419_s16, %s16163_s16   ;;  %s12378_s15 = sphi %s12417_s15, %s16162_s15   ;;  %s12374_s14 = sphi %s12415_s14, %s16161_s14   ;;  %s12370_s13 = sphi %s12413_s13, %s16160_s13   ;;  %s12366_s12 = sphi %s12411_s12, %s16159_s12  }
   0x5   : > { %s28_s20 = sadd.s32 1, %s12382_s16  ;;  %s105_s21 = sadd.s32 1, %s12374_s14 }
   0x6   : > { %p30_p0 = scmp.ge.s32.totalorder %s28_s20, 2  ;;  %p115_p1 = scmp.ne.s32.totalorder %s12374_s14, %s12370_s13 }
   0x7   : > { %p116_p2 = scmp.eq.s32.totalorder %s9537_s18, 1  ;;  %p121_p3 = scmp.ne.s32.totalorder %s12370_s13, %s12366_s12 }
   0x8   : > { %s16165_s20 = smov (%p30_p0, %s28_s20), 0  ;;  %p122_p5 = scmp.eq.s32.totalorder %s9538_s19, 1 }
   0x9   : > { %p12451_p4 = por %p116_p2, %p115_p1  ;;  %s100_s23 = ssub.s32 %s12382_s16, %s16165_s20 }
   0xa   : > { %p9541_p6 = scmp.ge.s32.totalorder %s12386_s17, 1  ;;  %p103_p7 = scmp.eq.s32.totalorder %s100_s23, 0 }
   0xb   : > { %p12458_p8 = por %p122_p5, %p121_p3  ;;  %p154_p9 = scmp.lt.s32.totalorder %s12386_s17, 3 }
   0xc   : > { %s12464_s25 = scalar_select %p103_p7, %s12374_s14, %s105_s21  }
   0xd   : > { %p155_p10 = pnand %p9541_p6, %p154_p9 }
   0xf   : > { %158 = sbr.rel (%p155_p10) target bundleno = 990 (0x3de), region = 32 }
  0x16   : > { %v12117_v0 = vld [vmem:[%s15694_s1 + $0x60] sm:$0xff]   ;;  %vm737_vm0 = vcmask 1041408   ;;  %v12118_v1 = vld [vmem:[%s15694_s1 + $0x68] ss:$0 sps:$4 sm:$0x33]   ;;  %p178_p11 = scmp.lt.s32.totalorder %s12378_s15, 1 }
  0x17   : > { %11275 = vmatprep.subr.bf16.mxu0 %v12117_v0  ;;  %v12120_v2 = vld [vmem:[%s15694_s1 + $0xc] sm:$0xff]   ;;  %v4821_v3 = vsel %vm737_vm0, %v12118_v1, 0  ;;  %v12122_v4 = vld [vmem:[%s15694_s1 + $0x14] ss:$0 sps:$4 sm:$0x33]   ;;  %v12485_v5 = vld [vmem:[%s15694_s1] sm:$0xff]  }
  0x18   : > { %11276 = vmatpush3.bf16.msra.mxu0 %v12117_v0  ;;  %s179_s5 = scalar_select %p178_p11, %s12378_s15, 1  ;;  %10987 = vmatprep.subr.bf16.mxu1 %v12120_v2  ;;  %v739_v6 = vsel %vm737_vm0, %v12122_v4, 0  ;;  %vm240_vm1 = vsmask.f32 3328  ;;  %vm241_vm2 = vsmask.f32 7440 }
  0x19   : > { %12051 = vmatprep.subr.msk.bf16.mxu0 %vm737_vm0, %v12118_v1  ;;  %10988 = vmatpush3.bf16.msra.mxu1 %v12120_v2  ;;  %v12126_v7 = vld [vmem:[%s15694_s1 + $0x6c] sm:$0xff]   ;;  %vm688_vm3 = vcmask 162816   ;;  %v12500_v8 = vld [vmem:[%s15694_s1 + $0x8] ss:$0 sps:$4 sm:$0x33]   ;;  %vm12550_vm4 = vmor %vm240_vm1, %vm241_vm2  ;;  %v15921_v40 = vmov 0 }
  0x1a   : > { %s12059_s8 = smul.u32 228, %s179_s5  ;;  %12043 = vmatprep.subr.msk.bf16.mxu1 %vm737_vm0, %v12122_v4  ;;  %v12527_v22 = vsel %vm737_vm0, %v12500_v8, 0  ;;  %v15922_v40 = vsel %vm12550_vm4, 4294967295, %v15921_v40  ;;  %vm1251_vm5 = vcmask 1042432   ;;  %vm1252_vm6 = vcmask 1046532   ;;  %s175_s4 = sand.u32 1, %s12370_s13  }
  0x1b   : > { %15923 = vst [vmem:[#allocation9_spill] sm:$0xff] %v15922_v40  ;;  %vm13277_vm7 = vmor %vm1251_vm5, %vm1252_vm6  ;;  %vm1687_vm8 = vsmask.f32 2304  ;;  %vm1688_vm9 = vsmask.f32 6416  ;;  %s9542_s5 = sshll.u32 %s175_s4, 7 }
  0x1c   : > { %11278 = vmatpush3.bf16.msra.mxu0 %v4821_v3  ;;  %s12495_s23 = scalar_lea.vmem %s15693_s0, %s12059_s8  ;;  %vm13712_vm10 = vmor %vm1687_vm8, %vm1688_vm9  ;;  %s15590_s6 = scalar_lea.vmem [#allocation2], %s9542_s5 }
  0x1d   : > { %v12119_v9 = vld [vmem:[%s12495_s23 + $0x18] sm:$0xff]   ;;  %11311 = vmatprep.subr.bf16.mxu0 %v12126_v7  ;;  %v12121_v10 = vld [vmem:[%s12495_s23 + $0x24] sm:$0xff]   ;;  %10990 = vmatpush3.bf16.msra.mxu1 %v739_v6  ;;  %v12123_v11 = vld [vmem:[%s12495_s23 + $0x30] sm:$0xff]   ;;  %s10603_s7 = sshll.u32 %s12378_s15, 11  ;;  %s9450_s8 = sshll.u32 %s15590_s6, 4  ;;  %s15641_s8 = int_to_ptr.vmem [resolvable:$true] %s9450_s8 }
  0x1e   : > { %11279 = vmatprep.mubr.msk.bf16.mxu0 %vm688_vm3, %v12119_v9  ;;  %11023 = vmatprep.subr.bf16.mxu1 %v12485_v5  ;;  %v12509_v12 = vld [vmem:[%s12495_s23] sm:$0xf]  ;;  %v12512_v13 = vld [vmem:[%s12495_s23 + $0x4] sm:$0xf]  ;;  %v12515_v14 = vld [vmem:[%s12495_s23 + $0x8] sm:$0x1]  ;;  %s15639_s11 = scalar_lea.hbm %s15696_s3, %s10603_s7 }
  0x1f   : > { %11280 = vmatmul.mubr.msk.bf16.vlgmr.msra.gmra.mrb[0].mxu0 %vm688_vm3, %v12121_v10  ;;  %15917 = vst [vmem:[#allocation5_spill] sm:$0xff] %v12515_v14  ;;  %v244_v15 = vshrl.u32 %v12509_v12, 16  ;;  %v247_v16 = vshll.u32 %v12509_v12, 16  ;;  %v253_v17 = vshll.u32 %v12512_v13, 16  ;;  %v257_v18 = vshrl.u32 %v12512_v13, 16  ;;  %v12125_v21 = vld [vmem:[%s12495_s23 + $0x3c] sm:$0xff]  }
  0x20   : > { %11283 = vmatprep.mubr.msk.bf16.mxu0 %vm688_vm3, %v12123_v11  ;;  %11312 = vmatpush3.bf16.msra.mxu0 %v12126_v7  ;;  %v263_v19 = vshll.u32 %v12515_v14, 16  ;;  %v12532_v28 = vld [vmem:[%s12495_s23 + $0xc] sm:$0xf]  ;;  %v12540_v33 = vld [vmem:[%s12495_s23 + $0x10] sm:$0xf]  ;;  %v12128_v0 = vld [vmem:[%s12495_s23 + $0x54] sm:$0xff]  }
  0x21   : > { %v246_v24 = vrot.slane %v244_v15, 4  ;;  %v249_v25 = vrot.slane %v247_v16, 5  ;;  %v255_v26 = vrot.slane %v253_v17, 5  ;;  %v259_v27 = vrot.slane %v257_v18, 4  ;;  %v12127_v29 = vld [vmem:[%s12495_s23 + $0x48] sm:$0xff]   ;;  %s15647_s15 = scalar_lea.sflag [#allocation3], %s175_s4 }
  0x22   : > { %v265_v30 = vrot.slane %v263_v19, 5  ;;  %v12535_v31 = vrot.slane %v257_v18, 5  ;;  %v12537_v32 = vrot.slane %v253_v17, 6  ;;  %v268_v34 = vshrl.u32 %v12532_v28, 16  ;;  %v12544_v37 = vld [vmem:[%s12495_s23 + $0x14] sm:$0x1] }
  0x23   : > { %v250_v35 = vor.u32 %v249_v25, %v246_v24  ;;  %v260_v36 = vor.u32 %v259_v27, %v255_v26  ;;  %15920 = vst [vmem:[#allocation8_spill] sm:$0xff] %v12544_v37  ;;  %v271_v38 = vshll.u32 %v12532_v28, 16  ;;  %v277_v39 = vshll.u32 %v12540_v33, 16  ;;  %v12558_v49 = vld [vmem:[%s12495_s23 + $0x18] sm:$0xf]  ;;  %v12129_v24 = vld [vmem:[%s12495_s23 + $0x60] sm:$0xff]  }
  0x24   : > { %15918 = vst [vmem:[#allocation6_spill] sm:$0xff] %v12535_v31  ;;  %15919 = vst [vmem:[#allocation7_spill] sm:$0xff] %v12537_v32  ;;  %v270_v41 = vrot.slane %v268_v34, 4  ;;  %v281_v42 = vshrl.u32 %v12540_v33, 16  ;;  %v287_v43 = vshll.u32 %v12544_v37, 16  ;;  %v292_v59 = vshrl.u32 %v12558_v49, 16 }
  0x25   : > { %v251_v45 = vrot.slane %v250_v35, 4  ;;  %v261_v46 = vrot.slane %v260_v36, 4  ;;  %v273_v47 = vrot.slane %v271_v38, 5  ;;  %v279_v48 = vrot.slane %v277_v39, 5  ;;  %v12562_v54 = vld [vmem:[%s12495_s23 + $0x1c] sm:$0xf] }
  0x26   : > { %v283_v50 = vrot.slane %v281_v42, 4  ;;  %v289_v51 = vrot.slane %v287_v43, 5  ;;  %v1722_v52 = vrot.slane %v281_v42, 5  ;;  %v1723_v53 = vrot.slane %v277_v39, 6  ;;  %15924 = vst [vmem:[#allocation10_spill] sm:$0xff] %v12562_v54  ;;  %s12308_s18 = scalar_lea.vmem %s15641_s8, 2048 }
  0x27   : > { %11284 = vmatmul.mubr.msk.bf16.gmra.mrb[4].mxu0 %vm688_vm3, %v12125_v21  ;;  %v256_v55 = vsel %vm12550_vm4, %v251_v45, %v255_v26  ;;  %v266_v56 = vsel %vm12550_vm4, %v261_v46, %v265_v30  ;;  %v274_v57 = vor.u32 %v273_v47, %v270_v41  ;;  %v226_v58 = vld [vmem:[%s12495_s23 + $0x20] sm:$0x1]  ;;  %v295_v63 = vshll.u32 %v12558_v49, 16  ;;  %v12576_v1 = vld [vmem:[%s12495_s23 + $0x24] sm:$0xf]  ;;  %p12309_p12 = scmp.ne.s32.totalorder %s15641_s8, %s12308_s18  ;;  %s12388_s19 = smov [#allocation2]  }
  0x28   : > { %11287 = vmatprep.mubr.msk.bf16.mxu0 %vm688_vm3, %v12127_v29  ;;  %v9547_v60 = vcombine.low %v256_v55, %v266_v56  ;;  %v284_v61 = vor.u32 %v283_v50, %v279_v48  ;;  %v12571_v62 = vor.u32 %v1723_v53, %v1722_v52  ;;  %v294_v3 = vrot.slane %v292_v59, 4  ;;  %v12581_v7 = vld [vmem:[%s12495_s23 + $0x28] sm:$0xf]  ;;  %v227_v16 = vld [vmem:[%s12495_s23 + $0x2c] sm:$0x1]  ;;  %s12312_s21 = sshll.u32 %s12388_s19, 4  ;;  %s12313_s21 = int_to_ptr.vmem [resolvable:$false] %s12312_s21 }
  0x29   : > { %v275_v2 = vrot.slane %v274_v57, 4  ;;  %v15717_v4 = vshll.u32 %v12562_v54, 16  ;;  %v15720_v6 = vshrl.u32 %v12562_v54, 16  ;;  %15926 = vst [vmem:[#allocation12_spill] sm:$0xff] %v12581_v7  ;;  %v297_v11 = vrot.slane %v295_v63, 5  ;;  %v12130_v63 = vld [vmem:[%s12495_s23 + $0x6c] sm:$0xff]   ;;  %p12310_p13 = pnand %p12309_p12, %p12451_p4  ;;  %p12315_p1 = scmp.lt.s32.totalorder %s15641_s8, %s12313_s21 }
  0x2a   : > { %15925 = vst [vmem:[#allocation11_spill] sm:$0xff] %v12571_v62  ;;  %10991 = vmatprep.mubr.msk.bf16.mxu1 %vm688_vm3, %v9547_v60  ;;  %v285_v9 = vrot.slane %v284_v61, 4  ;;  %v311_v15 = vshll.u32 %v226_v58, 16  ;;  %v316_v21 = vshrl.u32 %v12576_v1, 16  ;;  %v319_v29 = vshll.u32 %v12576_v1, 16  ;;  %s12314_s26 = scalar_lea.vmem %s12313_s21, 4096 }
  0x2b   : > { %v280_v17 = vsel %vm12550_vm4, %v275_v2, %v279_v48  ;;  %v303_v18 = vrot.slane %v15717_v4, 5  ;;  %v307_v19 = vrot.slane %v15720_v6, 4  ;;  %v298_v26 = vor.u32 %v297_v11, %v294_v3  ;;  %v12598_v30 = vld [vmem:[%s12495_s23 + $0x30] sm:$0xf]  ;;  %v12602_v39 = vld [vmem:[%s12495_s23 + $0x34] sm:$0xf]  ;;  %p12311_p0 = pneg %p12310_p13  ;;  %p12316_p2 = scmp.lt.s32.totalorder %s12314_s26, %s12308_s18 }
  0x2c   : > { %v290_v25 = vsel %vm12550_vm4, %v285_v9, %v289_v51  ;;  %v313_v27 = vrot.slane %v311_v15, 5  ;;  %v318_v36 = vrot.slane %v316_v21, 4  ;;  %v15713_v38 = vshll.u32 %v12581_v7, 16  ;;  %15927 = vst [vmem:[#allocation13_spill] sm:$0xff] %v12602_v39  ;;  %v12615_v51 = vld [vmem:[%s15694_s1 + $0x18] sm:$0xff]  }
  0x2d   : > { %v9548_v34 = vcombine.low %v280_v17, %v290_v25  ;;  %v308_v35 = vor.u32 %v307_v19, %v303_v18  ;;  %v299_v41 = vrot.slane %v298_v26, 4  ;;  %v321_v42 = vrot.slane %v319_v29, 5  ;;  %v228_v57 = vld [vmem:[%s12495_s23 + $0x38] sm:$0x1]  ;;  %v12624_v58 = vld [vmem:[%s12495_s23 + $0x3c] sm:$0xf]  ;;  %p12317_p3 = por %p12316_p2, %p12315_p1 }
  0x2e   : > { %v15715_v43 = vshrl.u32 %v12581_v7, 16  ;;  %v335_v45 = vshll.u32 %v227_v16, 16  ;;  %v327_v47 = vrot.slane %v15713_v38, 5  ;;  %v340_v48 = vshrl.u32 %v12598_v30, 16  ;;  %v12131_v21 = vld [vmem:[%s12495_s23 + $0x78] sm:$0xff]  }
  0x2f   : > { %11288 = vmatmul.mubr.msk.bf16.gmra.mrb[8].mxu0 %vm688_vm3, %v12128_v0  ;;  %10992 = vmatmul.mubr.msk.bf16.vlgmr.msra.gmra.mrb[0].mxu1 %vm688_vm3, %v9548_v34  ;;  %v309_v46 = vrot.slane %v308_v35, 4  ;;  %v343_v50 = vshll.u32 %v12598_v30, 16  ;;  %v304_v52 = vsel %vm12550_vm4, %v299_v41, %v303_v18  ;;  %v322_v53 = vor.u32 %v321_v42, %v318_v36  ;;  %v12631_v0 = vld [vmem:[%s12495_s23 + $0x40] sm:$0xf]  ;;  %v229_v18 = vld [vmem:[%s12495_s23 + $0x44] sm:$0x1]  ;;  %p12318_p5 = pnand %p12317_p3, %p12311_p0 }
  0x30   : > { %11291 = vmatprep.mubr.msk.bf16.mxu0 %vm688_vm3, %v12129_v24  ;;  %11024 = vmatpush3.bf16.msra.mxu1 %v12485_v5  ;;  %v331_v55 = vrot.slane %v15715_v43, 4  ;;  %v337_v56 = vrot.slane %v335_v45, 5  ;;  %v342_v60 = vrot.slane %v340_v48, 4  ;;  %v15709_v5 = vshll.u32 %v12602_v39, 16  ;;  %15928 = vst [vmem:[#allocation14_spill] sm:$0xff] %v12631_v0 }
  0x31   : > { %v314_v59 = vsel %vm12550_vm4, %v309_v46, %v313_v27  ;;  %v345_v61 = vrot.slane %v343_v50, 5  ;;  %12044 = vmatprep.subr.msk.bf16.mxu1 %vm737_vm0, %v12500_v8  ;;  %v323_v3 = vrot.slane %v322_v53, 4  ;;  %v15710_v11 = vshrl.u32 %v12602_v39, 16  ;;  %v12648_v27 = vld [vmem:[%s12495_s23 + $0x48] sm:$0xf] }
  0x32   : > { %v9549_v2 = vcombine.low %v304_v52, %v314_v59  ;;  %v332_v9 = vor.u32 %v331_v55, %v327_v47  ;;  %v351_v16 = vrot.slane %v15709_v5, 5  ;;  %v359_v17 = vshll.u32 %v228_v57, 16  ;;  %v12653_v41 = vld [vmem:[%s12495_s23 + $0x4c] sm:$0xf]  ;;  %v230_v53 = vld [vmem:[%s12495_s23 + $0x50] sm:$0x1] }
  0x33   : > { %v346_v15 = vor.u32 %v345_v61, %v342_v60  ;;  %v364_v19 = vshrl.u32 %v12624_v58, 16  ;;  %v328_v8 = vsel %vm12550_vm4, %v323_v3, %v327_v47  ;;  %v355_v25 = vrot.slane %v15710_v11, 4  ;;  %15929 = vst [vmem:[#allocation15_spill] sm:$0xff] %v12653_v41  ;;  %v12132_v60 = vld [vmem:[%s12495_s23 + $0x84] sm:$0xff]   ;;  %v12671_v61 = vld [vmem:[%s12495_s23 + $0x54] sm:$0xf] }
  0x34   : > { %10995 = vmatprep.mubr.msk.bf16.mxu1 %vm688_vm3, %v9549_v2  ;;  %v333_v24 = vrot.slane %v332_v9, 4  ;;  %v367_v26 = vshll.u32 %v12624_v58, 16  ;;  %11026 = vmatpush3.bf16.msra.mxu1 %v12527_v22  ;;  %v361_v34 = vrot.slane %v359_v17, 5  ;;  %v15705_v36 = vshll.u32 %v12631_v0, 16  ;;  %v12849_v4 = vld [vmem:[%s12495_s23 + $0x20] sm:$0x1] }
  0x35   : > { %v347_v29 = vrot.slane %v346_v15, 4  ;;  %v366_v35 = vrot.slane %v364_v19, 4  ;;  %11059 = vmatprep.subr.bf16.mxu1 %v12615_v51  ;;  %v356_v45 = vor.u32 %v355_v25, %v351_v16  ;;  %v15706_v22 = vshrl.u32 %v12631_v0, 16  ;;  %v12680_v19 = vld [vmem:[%s12495_s23 + $0x58] sm:$0xf] }
  0x36   : > { %v338_v42 = vsel %vm12550_vm4, %v333_v24, %v337_v56  ;;  %v369_v46 = vrot.slane %v367_v26, 5  ;;  %v375_v50 = vrot.slane %v15705_v36, 5  ;;  %v383_v52 = vshll.u32 %v229_v18, 16  ;;  %15930 = vst [vmem:[#allocation16_spill] sm:$0xff] %v12680_v19  ;;  %v231_v26 = vld [vmem:[%s12495_s23 + $0x5c] sm:$0x1] }
  0x37   : > { %11292 = vmatmul.mubr.msk.bf16.gmra.mrb[12].mxu0 %vm688_vm3, %v12130_v63  ;;  %v9550_v47 = vcombine.low %v328_v8, %v338_v42  ;;  %v352_v48 = vsel %vm12550_vm4, %v347_v29, %v351_v16  ;;  %v357_v55 = vrot.slane %v356_v45, 4  ;;  %v379_v57 = vrot.slane %v15706_v22, 4  ;;  %v12133_v29 = vld [vmem:[%s12495_s23 + $0x90] sm:$0xff]   ;;  %v235_v36 = vld [vmem:[%s12495_s23 + $0x8c] sm:$0x1] }
  0x38   : > { %11295 = vmatprep.mubr.msk.bf16.mxu0 %vm688_vm3, %v12131_v21  ;;  %v370_v56 = vor.u32 %v369_v46, %v366_v35  ;;  %v388_v59 = vshrl.u32 %v12648_v27, 16  ;;  %v385_v63 = vrot.slane %v383_v52, 5  ;;  %v391_v2 = vshll.u32 %v12648_v27, 16  ;;  %v12692_v46 = vld [vmem:[%s12495_s23 + $0x60] sm:$0xf] }
  0x39   : > { %10996 = vmatmul.mubr.msk.bf16.gmra.mrb[4].mxu1 %vm688_vm3, %v9550_v47  ;;  %v15699_v3 = vshll.u32 %v12653_v41, 16  ;;  %v15704_v9 = vshrl.u32 %v12653_v41, 16  ;;  %v362_v15 = vsel %vm12550_vm4, %v357_v55, %v361_v34  ;;  %v380_v17 = vor.u32 %v379_v57, %v375_v50  ;;  %v238_v6 = vld [vmem:[%s12495_s23 + $0xb0] sm:$0x1]  ;;  %v10053_v10 = vld [vmem:[%s12495_s23 + $0x24] sm:$0xf] }
  0x3a   : > { %v371_v16 = vrot.slane %v370_v56, 4  ;;  %v390_v18 = vrot.slane %v388_v59, 4  ;;  %v9551_v21 = vcombine.low %v352_v48, %v362_v15  ;;  %v393_v8 = vrot.slane %v391_v2, 5  ;;  %v12890_v32 = vld [vmem:[%s12495_s23 + $0x2c] sm:$0x1] }
  0x3b   : > { %v399_v24 = vrot.slane %v15699_v3, 5  ;;  %v403_v25 = vrot.slane %v15704_v9, 4  ;;  %v381_v42 = vrot.slane %v380_v17, 4  ;;  %v407_v34 = vshll.u32 %v230_v53, 16  ;;  %v12958_v14 = vld [vmem:[%s12495_s23 + $0x4c] sm:$0xf] }
  0x3c   : > { %v376_v35 = vsel %vm12550_vm4, %v371_v16, %v375_v50  ;;  %v412_v45 = vshrl.u32 %v12671_v61, 16  ;;  %10999 = vmatprep.mubr.msk.bf16.mxu1 %vm688_vm3, %v9551_v21  ;;  %v394_v47 = vor.u32 %v393_v8, %v390_v18  ;;  %v415_v52 = vshll.u32 %v12671_v61, 16  ;;  %v12710_v21 = vld [vmem:[%s12495_s23 + $0x64] sm:$0xf] }
  0x3d   : > { %v404_v48 = vor.u32 %v403_v25, %v399_v24  ;;  %v15697_v55 = vshll.u32 %v12680_v19, 16  ;;  %v386_v56 = vsel %vm12550_vm4, %v381_v42, %v385_v63  ;;  %v409_v50 = vrot.slane %v407_v34, 5  ;;  %v12136_v63 = vld [vmem:[%s15694_s1 + $0x74] ss:$0 sps:$4 sm:$0x33]   ;;  %15931 = vst [vmem:[#allocation17_spill] sm:$0xff] %v12710_v21 }
  0x3e   : > { %v414_v53 = vrot.slane %v412_v45, 4  ;;  %v15698_v57 = vshrl.u32 %v12680_v19, 16  ;;  %v9552_v59 = vcombine.low %v376_v35, %v386_v56  ;;  %v395_v2 = vrot.slane %v394_v47, 4  ;;  %v12135_v25 = vld [vmem:[%s12495_s23 + $0x9c] sm:$0xff]   ;;  %v232_v34 = vld [vmem:[%s12495_s23 + $0x68] sm:$0x1]  ;;  %12052 = vmatprep.subr.msk.bf16.mxu0 %vm737_vm0, %v12136_v63 }
  0x3f   : > { %11296 = vmatmul.mubr.msk.bf16.gmra.mrb[16].mxu0 %vm688_vm3, %v12132_v60  ;;  %v405_v15 = vrot.slane %v404_v48, 4  ;;  %v417_v16 = vrot.slane %v415_v52, 5  ;;  %v423_v17 = vrot.slane %v15697_v55, 5  ;;  %v431_v18 = vshll.u32 %v231_v26, 16  ;;  %v12723_v26 = vld [vmem:[%s12495_s23 + $0x6c] sm:$0xf] }
  0x40   : > { %11299 = vmatprep.mubr.msk.bf16.mxu0 %vm688_vm3, %v12133_v29  ;;  %v427_v60 = vrot.slane %v15698_v57, 4  ;;  %v436_v8 = vshrl.u32 %v12692_v46, 16  ;;  %v400_v29 = vsel %vm12550_vm4, %v395_v2, %v399_v24  ;;  %v439_v45 = vshll.u32 %v12692_v46, 16  ;;  %v12137_v47 = vld [vmem:[%s12495_s23 + $0xa8] sm:$0xff]   ;;  %v233_v57 = vld [vmem:[%s12495_s23 + $0x74] sm:$0x1] }
  0x41   : > { %11000 = vmatmul.mubr.msk.bf16.gmra.mrb[8].mxu1 %vm688_vm3, %v9552_v59  ;;  %v410_v35 = vsel %vm12550_vm4, %v405_v15, %v409_v50  ;;  %v418_v42 = vor.u32 %v417_v16, %v414_v53  ;;  %v433_v56 = vrot.slane %v431_v18, 5  ;;  %v15700_v55 = vshll.u32 %v12710_v21, 16  ;;  %v12729_v53 = vld [vmem:[%s12495_s23 + $0x70] sm:$0xf] }
  0x42   : > { %v9553_v48 = vcombine.low %v400_v29, %v410_v35  ;;  %v428_v52 = vor.u32 %v427_v60, %v423_v17  ;;  %v438_v59 = vrot.slane %v436_v8, 4  ;;  %v441_v2 = vrot.slane %v439_v45, 5  ;;  %15932 = vst [vmem:[#allocation18_spill] sm:$0xff] %v12729_v53 }
  0x43   : > { %v419_v24 = vrot.slane %v418_v42, 4  ;;  %v15701_v50 = vshrl.u32 %v12710_v21, 16  ;;  %v455_v16 = vshll.u32 %v232_v34, 16  ;;  %v460_v3 = vshrl.u32 %v12723_v26, 16  ;;  %v12742_v42 = vld [vmem:[%s12495_s23 + $0x78] sm:$0xf] }
  0x44   : > { %11003 = vmatprep.mubr.msk.bf16.mxu1 %vm688_vm3, %v9553_v48  ;;  %v429_v15 = vrot.slane %v428_v52, 4  ;;  %v463_v60 = vshll.u32 %v12723_v26, 16  ;;  %v442_v8 = vor.u32 %v441_v2, %v438_v59  ;;  %v447_v29 = vrot.slane %v15700_v55, 5  ;;  %v12750_v52 = vld [vmem:[%s15694_s1 + $0x78] sm:$0xff]  }
  0x45   : > { %v424_v18 = vsel %vm12550_vm4, %v419_v24, %v423_v17  ;;  %v451_v35 = vrot.slane %v15701_v50, 4  ;;  %v457_v45 = vrot.slane %v455_v16, 5  ;;  %v462_v48 = vrot.slane %v460_v3, 4  ;;  %v12761_v50 = vld [vmem:[%s12495_s23 + $0x84] sm:$0xf] }
  0x46   : > { %v434_v34 = vsel %vm12550_vm4, %v429_v15, %v433_v56  ;;  %v465_v17 = vrot.slane %v463_v60, 5  ;;  %v443_v24 = vrot.slane %v442_v8, 4  ;;  %v15702_v55 = vshll.u32 %v12729_v53, 16  ;;  %v12755_v56 = vld [vmem:[%s12495_s23 + $0x7c] sm:$0xf] }
  0x47   : > { %11300 = vmatmul.mubr.msk.bf16.gmra.mrb[20].mxu0 %vm688_vm3, %v12135_v25  ;;  %v9554_v59 = vcombine.low %v424_v18, %v434_v34  ;;  %v452_v2 = vor.u32 %v451_v35, %v447_v29  ;;  %15933 = vst [vmem:[#allocation19_spill] sm:$0xff] %v12755_v56  ;;  %v15703_v25 = vshrl.u32 %v12729_v53, 16  ;;  %v479_v3 = vshll.u32 %v233_v57, 16  ;;  %v234_v60 = vld [vmem:[%s12495_s23 + $0x80] sm:$0x1]  ;;  %v12138_v57 = vld [vmem:[%s12495_s23 + $0xb4] sm:$0xff]  }
  0x48   : > { %11303 = vmatprep.mubr.msk.bf16.mxu0 %vm688_vm3, %v12137_v47  ;;  %v466_v15 = vor.u32 %v465_v17, %v462_v48  ;;  %v5558_v16 = vsel %vm737_vm0, %v12136_v63, 0  ;;  %v448_v18 = vsel %vm12550_vm4, %v443_v24, %v447_v29  ;;  %v471_v47 = vrot.slane %v15702_v55, 5  ;;  %v12139_v55 = vld [vmem:[%s12495_s23 + $0xc0] sm:$0xff]  }
  0x49   : > { %11004 = vmatmul.mubr.msk.bf16.gmra.mrb[12].mxu1 %vm688_vm3, %v9554_v59  ;;  %v453_v8 = vrot.slane %v452_v2, 4  ;;  %11314 = vmatpush3.bf16.msra.mxu0 %v5558_v16  ;;  %v484_v35 = vshrl.u32 %v12742_v42, 16  ;;  %v475_v34 = vrot.slane %v15703_v25, 4  ;;  %v481_v48 = vrot.slane %v479_v3, 5  ;;  %v12779_v16 = vld [vmem:[%s12495_s23 + $0x88] sm:$0xf] }
  0x4a   : > { %v467_v63 = vrot.slane %v466_v15, 4  ;;  %v487_v17 = vshll.u32 %v12742_v42, 16  ;;  %11347 = vmatprep.subr.bf16.mxu0 %v12750_v52  ;;  %v15707_v24 = vshll.u32 %v12755_v56, 16  ;;  %v15708_v2 = vshrl.u32 %v12755_v56, 16  ;;  %15934 = vst [vmem:[#allocation20_spill] sm:$0xff] %v12779_v16 }
  0x4b   : > { %v458_v29 = vsel %vm12550_vm4, %v453_v8, %v457_v45  ;;  %v486_v59 = vrot.slane %v484_v35, 4  ;;  %v476_v3 = vor.u32 %v475_v34, %v471_v47  ;;  %v503_v8 = vshll.u32 %v234_v60, 16  ;;  %v12797_v60 = vld [vmem:[%s12495_s23 + $0x90] sm:$0xf] }
  0x4c   : > { %v9555_v15 = vcombine.low %v448_v18, %v458_v29  ;;  %v472_v25 = vsel %vm12550_vm4, %v467_v63, %v471_v47  ;;  %v489_v9 = vrot.slane %v487_v17, 5  ;;  %v495_v22 = vrot.slane %v15707_v24, 5 }
  0x4d   : > { %v499_v45 = vrot.slane %v15708_v2, 4  ;;  %v508_v35 = vshrl.u32 %v12761_v50, 16  ;;  %v477_v18 = vrot.slane %v476_v3, 4  ;;  %v511_v47 = vshll.u32 %v12761_v50, 16  ;;  %v12804_v3 = vld [vmem:[%s12495_s23 + $0x94] sm:$0xf] }
  0x4e   : > { %11007 = vmatprep.mubr.msk.bf16.mxu1 %vm688_vm3, %v9555_v15  ;;  %v490_v29 = vor.u32 %v489_v9, %v486_v59  ;;  %v15711_v63 = vshll.u32 %v12779_v16, 16  ;;  %v505_v17 = vrot.slane %v503_v8, 5  ;;  %v15712_v2 = vshrl.u32 %v12779_v16, 16  ;;  %15935 = vst [vmem:[#allocation21_spill] sm:$0xff] %v12804_v3 }
  0x4f   : > { %11304 = vmatmul.mubr.msk.bf16.gmra.mrb[24].mxu0 %vm688_vm3, %v12138_v57  ;;  %v500_v34 = vor.u32 %v499_v45, %v495_v22  ;;  %v510_v24 = vrot.slane %v508_v35, 4  ;;  %v482_v9 = vsel %vm12550_vm4, %v477_v18, %v481_v48  ;;  %v513_v57 = vrot.slane %v511_v47, 5  ;;  %v236_v48 = vld [vmem:[%s12495_s23 + $0x98] sm:$0x1]  ;;  %v12140_v47 = vld [vmem:[%s12495_s23 + $0xcc] sm:$0xff]  }
  0x50   : > { %11307 = vmatprep.mubr.msk.bf16.mxu0 %vm688_vm3, %v12139_v55  ;;  %v491_v59 = vrot.slane %v490_v29, 4  ;;  %v519_v15 = vrot.slane %v15711_v63, 5  ;;  %v9556_v45 = vcombine.low %v472_v25, %v482_v9  ;;  %v523_v35 = vrot.slane %v15712_v2, 4  ;;  %v12819_v63 = vld [vmem:[%s12495_s23 + $0x9c] sm:$0xf] }
  0x51   : > { %v501_v8 = vrot.slane %v500_v34, 4  ;;  %v527_v55 = vshll.u32 %v235_v36, 16  ;;  %v514_v11 = vor.u32 %v513_v57, %v510_v24  ;;  %v532_v18 = vshrl.u32 %v12797_v60, 16  ;;  %v12822_v2 = vld [vmem:[%s12495_s23 + $0xa0] sm:$0xf] }
  0x52   : > { %v496_v5 = vsel %vm12550_vm4, %v491_v59, %v495_v22  ;;  %v535_v29 = vshll.u32 %v12797_v60, 16  ;;  %11008 = vmatmul.mubr.msk.bf16.gmra.mrb[16].mxu1 %vm688_vm3, %v9556_v45  ;;  %v524_v34 = vor.u32 %v523_v35, %v519_v15  ;;  %v15714_v36 = vshll.u32 %v12804_v3, 16  ;;  %15936 = vst [vmem:[#allocation22_spill] sm:$0xff] %v12822_v2 }
  0x53   : > { %v506_v25 = vsel %vm12550_vm4, %v501_v8, %v505_v17  ;;  %v529_v9 = vrot.slane %v527_v55, 5  ;;  %v515_v24 = vrot.slane %v514_v11, 4  ;;  %v534_v59 = vrot.slane %v532_v18, 4  ;;  %v237_v11 = vld [vmem:[%s12495_s23 + $0xa4] sm:$0x1] }
  0x54   : > { %v9557_v22 = vcombine.low %v496_v5, %v506_v25  ;;  %v537_v57 = vrot.slane %v535_v29, 5  ;;  %v525_v38 = vrot.slane %v524_v34, 4  ;;  %v543_v45 = vrot.slane %v15714_v36, 5 }
  0x55   : > { %v15716_v17 = vshrl.u32 %v12804_v3, 16  ;;  %v551_v8 = vshll.u32 %v236_v48, 16  ;;  %v520_v35 = vsel %vm12550_vm4, %v515_v24, %v519_v15  ;;  %v556_v55 = vshrl.u32 %v12819_v63, 16 }
  0x56   : > { %11011 = vmatprep.mubr.msk.bf16.mxu1 %vm688_vm3, %v9557_v22  ;;  %v538_v5 = vor.u32 %v537_v57, %v534_v59  ;;  %v559_v18 = vshll.u32 %v12819_v63, 16  ;;  %v530_v29 = vsel %vm12550_vm4, %v525_v38, %v529_v9  ;;  %v15718_v34 = vshll.u32 %v12822_v2, 16  ;;  %v10050_v22 = vld [vmem:[%s12495_s23 + $0x18] sm:$0xf]  ;;  %v12841_v57 = vld [vmem:[%s12495_s23 + $0x1c] sm:$0xf] }
  0x57   : > { %11308 = vmatmul.mubr.msk.bf16.gmra.mrb[28].mxu0 %vm688_vm3, %v12140_v47  ;;  %v547_v48 = vrot.slane %v15716_v17, 4  ;;  %v553_v25 = vrot.slane %v551_v8, 5  ;;  %v9558_v15 = vcombine.low %v520_v35, %v530_v29  ;;  %v558_v59 = vrot.slane %v556_v55, 4 }
  0x58   : > { %v539_v24 = vrot.slane %v538_v5, 4  ;;  %v561_v47 = vrot.slane %v559_v18, 5  ;;  %v567_v43 = vrot.slane %v15718_v34, 5  ;;  %v15719_v38 = vshrl.u32 %v12822_v2, 16 }
  0x59   : > { %v548_v36 = vor.u32 %v547_v48, %v543_v45  ;;  %v575_v9 = vshll.u32 %v237_v11, 16  ;;  %v5065_v35 = vshrl.u32 %v10050_v22, 16  ;;  %v5068_v5 = vshll.u32 %v10050_v22, 16  ;;  %v12856_v11 = vld [vmem:[%s12495_s23 + $0xa8] sm:$0xf] }
  0x5a   : > { %v544_v8 = vsel %vm12550_vm4, %v539_v24, %v543_v45  ;;  %v562_v17 = vor.u32 %v561_v47, %v558_v59  ;;  %11012 = vmatmul.mubr.msk.bf16.gmra.mrb[20].mxu1 %vm688_vm3, %v9558_v15  ;;  %v571_v18 = vrot.slane %v15719_v38, 4  ;;  %v15721_v48 = vshll.u32 %v12841_v57, 16  ;;  %v12860_v22 = vld [vmem:[%s12495_s23 + $0xac] sm:$0xf] }
  0x5b   : > { %v549_v55 = vrot.slane %v548_v36, 4  ;;  %v577_v29 = vrot.slane %v575_v9, 5  ;;  %v5067_v45 = vrot.slane %v5065_v35, 4  ;;  %v5070_v24 = vrot.slane %v5068_v5, 5  ;;  %15937 = vst [vmem:[#allocation23_spill] sm:$0xff] %v12860_v22 }
  0x5c   : > { %v563_v34 = vrot.slane %v562_v17, 4  ;;  %v15722_v59 = vshrl.u32 %v12841_v57, 16  ;;  %v572_v15 = vor.u32 %v571_v18, %v567_v43  ;;  %v5076_v47 = vrot.slane %v15721_v48, 5  ;;  %v12876_v18 = vld [vmem:[%s12495_s23 + $0x28] sm:$0xf] }
  0x5d   : > { %v554_v36 = vsel %vm12550_vm4, %v549_v55, %v553_v25  ;;  %v5084_v9 = vshll.u32 %v12849_v4, 16  ;;  %v5071_v35 = vor.u32 %v5070_v24, %v5067_v45  ;;  %v580_v25 = vshrl.u32 %v12856_v11, 16 }
  0x5e   : > { %v9559_v38 = vcombine.low %v544_v8, %v554_v36  ;;  %v568_v17 = vsel %vm12550_vm4, %v563_v34, %v567_v43  ;;  %v5080_v5 = vrot.slane %v15722_v59, 4  ;;  %v573_v44 = vrot.slane %v572_v15, 4 }
  0x5f   : > { %v5086_v20 = vrot.slane %v5084_v9, 5  ;;  %v583_v55 = vshll.u32 %v12856_v11, 16  ;;  %v5072_v8 = vrot.slane %v5071_v35, 4  ;;  %v15725_v43 = vshll.u32 %v12860_v22, 16 }
  0x60   : > { %11015 = vmatprep.mubr.msk.bf16.mxu1 %vm688_vm3, %v9559_v38  ;;  %v5081_v36 = vor.u32 %v5080_v5, %v5076_v47  ;;  %v15726_v34 = vshrl.u32 %v12860_v22, 16  ;;  %v578_v45 = vsel %vm12550_vm4, %v573_v44, %v577_v29  ;;  %v582_v24 = vrot.slane %v580_v25, 4  ;;  %v12898_v25 = vld [vmem:[%s12495_s23 + $0xb4] sm:$0xf] }
  0x61   : > { %v585_v15 = vrot.slane %v583_v55, 5  ;;  %v599_v9 = vshll.u32 %v238_v6, 16  ;;  %v9560_v48 = vcombine.low %v568_v17, %v578_v45  ;;  %v5077_v59 = vsel %vm12550_vm4, %v5072_v8, %v5076_v47 }
  0x62   : > { %v5082_v23 = vrot.slane %v5081_v36, 4  ;;  %v591_v38 = vrot.slane %v15725_v43, 5  ;;  %v595_v5 = vrot.slane %v15726_v34, 4  ;;  %v5089_v44 = vshrl.u32 %v10053_v10, 16  ;;  %v10056_v34 = vld [vmem:[%s12495_s23 + $0x30] sm:$0xf] }
  0x63   : > { %v586_v35 = vor.u32 %v585_v15, %v582_v24  ;;  %v601_v62 = vrot.slane %v599_v9, 5  ;;  %11016 = vmatmul.mubr.msk.bf16.gmra.mrb[24].mxu1 %vm688_vm3, %v9560_v48  ;;  %v5092_v29 = vshll.u32 %v10053_v10, 16  ;;  %v15727_v47 = vshll.u32 %v12876_v18, 16  ;;  %v12901_v24 = vld [vmem:[%s12495_s23 + $0xb8] sm:$0xf] }
  0x64   : > { %v5087_v6 = vsel %vm12550_vm4, %v5082_v23, %v5086_v20  ;;  %v15728_v17 = vshrl.u32 %v12876_v18, 16  ;;  %v596_v36 = vor.u32 %v595_v5, %v591_v38  ;;  %v5091_v45 = vrot.slane %v5089_v44, 4  ;;  %15938 = vst [vmem:[#allocation24_spill] sm:$0xff] %v12901_v24 }
  0x65   : > { %v10101_v55 = vcombine.low %v5077_v59, %v5087_v6  ;;  %v587_v8 = vrot.slane %v586_v35, 4  ;;  %v5094_v15 = vrot.slane %v5092_v29, 5  ;;  %v5100_v48 = vrot.slane %v15727_v47, 5  ;;  %v239_v29 = vld [vmem:[%s12495_s23 + $0xbc] sm:$0x1] }
  0x66   : > { %v5104_v20 = vrot.slane %v15728_v17, 4  ;;  %v5108_v23 = vshll.u32 %v12890_v32, 16  ;;  %v597_v59 = vrot.slane %v596_v36, 4  ;;  %v604_v9 = vshrl.u32 %v12898_v25, 16 }
  0x67   : > { %11315 = vmatprep.mubr.msk.bf16.mxu0 %vm688_vm3, %v10101_v55  ;;  %v592_v10 = vsel %vm12550_vm4, %v587_v8, %v591_v38  ;;  %v607_v35 = vshll.u32 %v12898_v25, 16  ;;  %v5095_v5 = vor.u32 %v5094_v15, %v5091_v45  ;;  %v15729_v43 = vshll.u32 %v12901_v24, 16  ;;  %v12920_v8 = vld [vmem:[%s12495_s23 + $0x34] sm:$0xf] }
  0x68   : > { %v5105_v44 = vor.u32 %v5104_v20, %v5100_v48  ;;  %v5110_v6 = vrot.slane %v5108_v23, 5  ;;  %v602_v47 = vsel %vm12550_vm4, %v597_v59, %v601_v62  ;;  %v606_v55 = vrot.slane %v604_v9, 4 }
  0x69   : > { %v609_v17 = vrot.slane %v607_v35, 5  ;;  %v15730_v38 = vshrl.u32 %v12901_v24, 16  ;;  %v9561_v36 = vcombine.low %v592_v10, %v602_v47  ;;  %v5096_v31 = vrot.slane %v5095_v5, 4  ;;  %v12932_v10 = vld [vmem:[%s12495_s23 + $0x38] sm:$0x1] }
  0x6a   : > { %v5106_v45 = vrot.slane %v5105_v44, 4  ;;  %v615_v15 = vrot.slane %v15729_v43, 5  ;;  %v623_v62 = vshll.u32 %v239_v29, 16  ;;  %v5113_v59 = vshrl.u32 %v10056_v34, 16  ;;  %v10059_v44 = vld [vmem:[%s12495_s23 + $0x3c] sm:$0xf] }
  0x6b   : > { %v610_v20 = vor.u32 %v609_v17, %v606_v55  ;;  %v619_v23 = vrot.slane %v15730_v38, 4  ;;  %11019 = vmatprep.mubr.msk.bf16.mxu1 %vm688_vm3, %v9561_v36  ;;  %v5101_v9 = vsel %vm12550_vm4, %v5096_v31, %v5100_v48  ;;  %v5116_v35 = vshll.u32 %v10056_v34, 16  ;;  %v12937_v38 = vld [vmem:[%s12495_s23 + $0x40] sm:$0xf] }
  0x6c   : > { %v5111_v47 = vsel %vm12550_vm4, %v5106_v45, %v5110_v6  ;;  %v15732_v5 = vshll.u32 %v12920_v8, 16  ;;  %v625_v29 = vrot.slane %v623_v62, 5  ;;  %v5115_v36 = vrot.slane %v5113_v59, 4  ;;  %v12949_v59 = vld [vmem:[%s12495_s23 + $0x44] sm:$0x1] }
  0x6d   : > { %v10102_v17 = vcombine.low %v5101_v9, %v5111_v47  ;;  %v611_v55 = vrot.slane %v610_v20, 4  ;;  %v620_v43 = vor.u32 %v619_v23, %v615_v15  ;;  %v5118_v37 = vrot.slane %v5116_v35, 5 }
  0x6e   : > { %v5124_v31 = vrot.slane %v15732_v5, 5  ;;  %v15733_v48 = vshrl.u32 %v12920_v8, 16  ;;  %v5132_v45 = vshll.u32 %v12932_v10, 16  ;;  %v5137_v20 = vshrl.u32 %v10059_v44, 16 }
  0x6f   : > { %11316 = vmatmul.mubr.msk.bf16.vlgmr.msra.gmra.mrb[0].mxu0 %vm688_vm3, %v10102_v17  ;;  %v616_v34 = vsel %vm12550_vm4, %v611_v55, %v615_v15  ;;  %v621_v6 = vrot.slane %v620_v43, 4  ;;  %v5119_v23 = vor.u32 %v5118_v37, %v5115_v36  ;;  %v5140_v9 = vshll.u32 %v10059_v44, 16  ;;  %v10062_v55 = vld [vmem:[%s12495_s23 + $0x48] sm:$0xf] }
  0x70   : > { %v5128_v62 = vrot.slane %v15733_v48, 4  ;;  %v15735_v47 = vshll.u32 %v12937_v38, 16  ;;  %11348 = vmatpush3.bf16.msra.mxu0 %v12750_v52  ;;  %v5134_v15 = vrot.slane %v5132_v45, 5  ;;  %v5139_v43 = vrot.slane %v5137_v20, 4 }
  0x71   : > { %v626_v35 = vsel %vm12550_vm4, %v621_v6, %v625_v29  ;;  %v15736_v17 = vshrl.u32 %v12937_v38, 16  ;;  %v5120_v36 = vrot.slane %v5119_v23, 4  ;;  %v5142_v48 = vrot.slane %v5140_v9, 5  ;;  %v12971_v23 = vld [vmem:[%s12495_s23 + $0x50] sm:$0x1] }
  0x72   : > { %v9562_v37 = vcombine.low %v616_v34, %v626_v35  ;;  %v5129_v5 = vor.u32 %v5128_v62, %v5124_v31  ;;  %v5148_v44 = vrot.slane %v15735_v47, 5  ;;  %v5156_v29 = vshll.u32 %v12949_v59, 16  ;;  %v10065_v9 = vld [vmem:[%s12495_s23 + $0x54] sm:$0xf] }
  0x73   : > { %v5152_v52 = vrot.slane %v15736_v17, 4  ;;  %v9582_v6 = vcombine.low %v12532_v28, %v12540_v33  ;;  %v5125_v34 = vsel %vm12550_vm4, %v5120_v36, %v5124_v31  ;;  %v5143_v20 = vor.u32 %v5142_v48, %v5139_v43 }
  0x74   : > { %11020 = vmatmul.mubr.msk.bf16.gmra.mrb[28].mxu1 %vm688_vm3, %v9562_v37  ;;  %v5130_v45 = vrot.slane %v5129_v5, 4  ;;  %v5161_v62 = vshrl.u32 %v10062_v55, 16  ;;  %v15939_v35 = vcombine.low %v12509_v12, %v12512_v13  ;;  %v5158_v17 = vrot.slane %v5156_v29, 5  ;;  %v12985_v37 = vld [vmem:[%s15694_s1 + $0x80] ss:$0 sps:$4 sm:$0x33]  }
  0x75   : > { %v5153_v47 = vor.u32 %v5152_v52, %v5148_v44  ;;  %v5164_v28 = vshll.u32 %v10062_v55, 16  ;;  %v15737_v33 = vshll.u32 %v12958_v14, 16  ;;  %v5144_v5 = vrot.slane %v5143_v20, 4  ;;  %v12990_v52 = vld [vmem:[%s12495_s23 + $0x58] sm:$0xf]  ;;  %12053 = vmatprep.subr.msk.bf16.mxu0 %vm737_vm0, %v12985_v37 }
  0x76   : > { %11027 = vmatprep.mubr.msk.bf16.mxu1 %vm688_vm3, %v15939_v35  ;;  %v5135_v31 = vsel %vm12550_vm4, %v5130_v45, %v5134_v15  ;;  %v5163_v48 = vrot.slane %v5161_v62, 4  ;;  %v15738_v43 = vshrl.u32 %v12958_v14, 16  ;;  %v5180_v45 = vshll.u32 %v12971_v23, 16  ;;  %v13005_v62 = vld [vmem:[%s12495_s23 + $0x5c] sm:$0x1] }
  0x77   : > { %v10103_v12 = vcombine.low %v5125_v34, %v5135_v31  ;;  %v5154_v13 = vrot.slane %v5153_v47, 4  ;;  %v5166_v36 = vrot.slane %v5164_v28, 5  ;;  %v5172_v55 = vrot.slane %v15737_v33, 5  ;;  %15940 = vst [vmem:[#allocation25_spill] sm:$0xff] %v13005_v62  ;;  %v10068_v28 = vld [vmem:[%s12495_s23 + $0x60] sm:$0xf] }
  0x78   : > { %v5149_v15 = vsel %vm12550_vm4, %v5144_v5, %v5148_v44  ;;  %v5176_v29 = vrot.slane %v15738_v43, 4  ;;  %v9583_v20 = vcombine.low %v12558_v49, %v12562_v54  ;;  %v5185_v44 = vshrl.u32 %v10065_v9, 16  ;;  %v13012_v43 = vld [vmem:[%s15694_s1 + $0x20] ss:$0 sps:$4 sm:$0x33]  }
  0x79   : > { %11319 = vmatprep.mubr.msk.bf16.mxu0 %vm688_vm3, %v10103_v12  ;;  %v5159_v47 = vsel %vm12550_vm4, %v5154_v13, %v5158_v17  ;;  %v5167_v34 = vor.u32 %v5166_v36, %v5163_v48  ;;  %v5188_v35 = vshll.u32 %v10065_v9, 16  ;;  %v5182_v33 = vrot.slane %v5180_v45, 5  ;;  %v13016_v13 = vld [vmem:[%s12495_s23 + $0x64] sm:$0xf] }
  0x7a   : > { %v10104_v31 = vcombine.low %v5149_v15, %v5159_v47  ;;  %v5177_v5 = vor.u32 %v5176_v29, %v5172_v55  ;;  %v15741_v49 = vshll.u32 %v12990_v52, 16  ;;  %v5187_v54 = vrot.slane %v5185_v44, 4  ;;  %15941 = vst [vmem:[#allocation26_spill] sm:$0xff] %v13016_v13 }
  0x7b   : > { %v5168_v12 = vrot.slane %v5167_v34, 4  ;;  %v5190_v17 = vrot.slane %v5188_v35, 5  ;;  %v15742_v48 = vshrl.u32 %v12990_v52, 16  ;;  %v5204_v15 = vshll.u32 %v13005_v62, 16  ;;  %v13032_v34 = vld [vmem:[%s12495_s23 + $0x68] sm:$0x1] }
  0x7c   : > { %11320 = vmatmul.mubr.msk.bf16.gmra.mrb[4].mxu0 %vm688_vm3, %v10104_v31  ;;  %11028 = vmatmul.mubr.msk.bf16.vlgmr.msra.gmra.mrb[0].mxu1 %vm688_vm3, %v9582_v6  ;;  %v5178_v9 = vrot.slane %v5177_v5, 4  ;;  %v5196_v36 = vrot.slane %v15741_v49, 5  ;;  %v9584_v29 = vcombine.low %v12576_v1, %v12581_v7  ;;  %15942 = vst [vmem:[#allocation27_spill] sm:$0xff] %v13032_v34  ;;  %v5209_v44 = vshrl.u32 %v10068_v28, 16  ;;  %v10071_v5 = vld [vmem:[%s12495_s23 + $0x6c] sm:$0xf] }
  0x7d   : > { %11060 = vmatpush3.bf16.msra.mxu1 %v12615_v51  ;;  %v5173_v45 = vsel %vm12550_vm4, %v5168_v12, %v5172_v55  ;;  %11031 = vmatprep.mubr.msk.bf16.mxu1 %vm688_vm3, %v9583_v20  ;;  %v5191_v47 = vor.u32 %v5190_v17, %v5187_v54  ;;  %v5200_v6 = vrot.slane %v15742_v48, 4  ;;  %v5206_v1 = vrot.slane %v5204_v15, 5  ;;  %v13041_v17 = vld [vmem:[%s12495_s23 + $0x70] sm:$0xf] }
  0x7e   : > { %v5183_v35 = vsel %vm12550_vm4, %v5178_v9, %v5182_v33  ;;  %v5212_v31 = vshll.u32 %v10068_v28, 16  ;;  %v15743_v51 = vshll.u32 %v13016_v13, 16  ;;  %12045 = vmatprep.subr.msk.bf16.mxu1 %vm737_vm0, %v13012_v43  ;;  %v5211_v12 = vrot.slane %v5209_v44, 4  ;;  %v13048_v9 = vld [vmem:[%s12495_s23 + $0x74] sm:$0x1] }
  0x7f   : > { %v10105_v54 = vcombine.low %v5173_v45, %v5183_v35  ;;  %v5192_v55 = vrot.slane %v5191_v47, 4  ;;  %v5201_v20 = vor.u32 %v5200_v6, %v5196_v36  ;;  %v15750_v33 = vshrl.u32 %v13016_v13, 16  ;;  %v10074_v44 = vld [vmem:[%s12495_s23 + $0x78] sm:$0xf] }
  0x80   : > { %v5214_v49 = vrot.slane %v5212_v31, 5  ;;  %v5220_v48 = vrot.slane %v15743_v51, 5  ;;  %v5228_v28 = vshll.u32 %v13032_v34, 16  ;;  %v9585_v47 = vcombine.low %v12598_v30, %v12602_v39  ;;  %v12220_v39 = vld [vmem:[%s12495_s23 + $0x38] sm:$0x1] }
  0x81   : > { %11323 = vmatprep.mubr.msk.bf16.mxu0 %vm688_vm3, %v10105_v54  ;;  %v5197_v15 = vsel %vm12550_vm4, %v5192_v55, %v5196_v36  ;;  %v5202_v45 = vrot.slane %v5201_v20, 4  ;;  %v5233_v6 = vshrl.u32 %v10071_v5, 16  ;;  %v5224_v31 = vrot.slane %v15750_v33, 4  ;;  %v13063_v55 = vld [vmem:[%s12495_s23 + $0x7c] sm:$0xf] }
  0x82   : > { %v5215_v35 = vor.u32 %v5214_v49, %v5211_v12  ;;  %v5230_v51 = vrot.slane %v5228_v28, 5  ;;  %v5236_v7 = vshll.u32 %v10071_v5, 16  ;;  %v15748_v54 = vshll.u32 %v13041_v17, 16 }
  0x83   : > { %v5207_v34 = vsel %vm12550_vm4, %v5202_v45, %v5206_v1  ;;  %v5235_v62 = vrot.slane %v5233_v6, 4  ;;  %v15749_v36 = vshrl.u32 %v13041_v17, 16  ;;  %v5225_v49 = vor.u32 %v5224_v31, %v5220_v48 }
  0x84   : > { %v10106_v20 = vcombine.low %v5197_v15, %v5207_v34  ;;  %11032 = vmatmul.mubr.msk.bf16.gmra.mrb[4].mxu1 %vm688_vm3, %v9584_v29  ;;  %v5216_v30 = vrot.slane %v5215_v35, 4  ;;  %v5238_v12 = vrot.slane %v5236_v7, 5  ;;  %v5244_v5 = vrot.slane %v15748_v54, 5  ;;  %v13078_v35 = vld [vmem:[%s12495_s23 + $0x80] sm:$0x1] }
  0x85   : > { %11035 = vmatprep.mubr.msk.bf16.mxu1 %vm688_vm3, %v9585_v47  ;;  %v5248_v1 = vrot.slane %v15749_v36, 4  ;;  %v5252_v28 = vshll.u32 %v13048_v9, 16  ;;  %v9586_v34 = vcombine.low %v12624_v58, %v12631_v0  ;;  %v5226_v7 = vrot.slane %v5225_v49, 4  ;;  %v13133_v0 = vld [vmem:[%s12495_s23 + $0xa0] sm:$0xf] }
  0x86   : > { %11324 = vmatmul.mubr.msk.bf16.gmra.mrb[8].mxu0 %vm688_vm3, %v10106_v20  ;;  %v5221_v29 = vsel %vm12550_vm4, %v5216_v30, %v5220_v48  ;;  %v5239_v15 = vor.u32 %v5238_v12, %v5235_v62  ;;  %v5257_v45 = vshrl.u32 %v10074_v44, 16  ;;  %v5260_v31 = vshll.u32 %v10074_v44, 16  ;;  %v10077_v48 = vld [vmem:[%s12495_s23 + $0x84] sm:$0xf] }
  0x87   : > { %v5249_v47 = vor.u32 %v5248_v1, %v5244_v5  ;;  %v5254_v6 = vrot.slane %v5252_v28, 5  ;;  %v15751_v54 = vshll.u32 %v13063_v55, 16  ;;  %v5231_v36 = vsel %vm12550_vm4, %v5226_v7, %v5230_v51  ;;  %v13088_v1 = vld [vmem:[%s12495_s23 + $0x88] sm:$0xf] }
  0x88   : > { %v5240_v58 = vrot.slane %v5239_v15, 4  ;;  %v5259_v20 = vrot.slane %v5257_v45, 4  ;;  %v15752_v33 = vshrl.u32 %v13063_v55, 16  ;;  %v10107_v30 = vcombine.low %v5221_v29, %v5231_v36  ;;  %v13101_v15 = vld [vmem:[%s12495_s23 + $0x8c] sm:$0x1] }
  0x89   : > { %v5250_v62 = vrot.slane %v5249_v47, 4  ;;  %v5262_v49 = vrot.slane %v5260_v31, 5  ;;  %v5268_v12 = vrot.slane %v15751_v54, 5  ;;  %v5276_v28 = vshll.u32 %v13078_v35, 16 }
  0x8a   : > { %v5245_v44 = vsel %vm12550_vm4, %v5240_v58, %v5244_v5  ;;  %v5272_v51 = vrot.slane %v15752_v33, 4  ;;  %v9587_v7 = vcombine.low %v12648_v27, %v12653_v41  ;;  %11327 = vmatprep.mubr.msk.bf16.mxu0 %vm688_vm3, %v10107_v30  ;;  %v5281_v45 = vshrl.u32 %v10077_v48, 16  ;;  %v10080_v27 = vld [vmem:[%s12495_s23 + $0x90] sm:$0xf] }
  0x8b   : > { %v5255_v36 = vsel %vm12550_vm4, %v5250_v62, %v5254_v6  ;;  %v5263_v29 = vor.u32 %v5262_v49, %v5259_v20  ;;  %v5284_v47 = vshll.u32 %v10077_v48, 16  ;;  %v5278_v58 = vrot.slane %v5276_v28, 5  ;;  %v13109_v62 = vld [vmem:[%s12495_s23 + $0x94] sm:$0xf] }
  0x8c   : > { %v10108_v5 = vcombine.low %v5245_v44, %v5255_v36  ;;  %11036 = vmatmul.mubr.msk.bf16.gmra.mrb[8].mxu1 %vm688_vm3, %v9586_v34  ;;  %v5273_v31 = vor.u32 %v5272_v51, %v5268_v12  ;;  %v15753_v54 = vshll.u32 %v13088_v1, 16  ;;  %v5283_v30 = vrot.slane %v5281_v45, 4  ;;  %v13122_v36 = vld [vmem:[%s12495_s23 + $0x98] sm:$0x1] }
  0x8d   : > { %v5264_v33 = vrot.slane %v5263_v29, 4  ;;  %11039 = vmatprep.mubr.msk.bf16.mxu1 %vm688_vm3, %v9587_v7  ;;  %v5286_v6 = vrot.slane %v5284_v47, 5  ;;  %v15758_v20 = vshrl.u32 %v13088_v1, 16  ;;  %v5300_v49 = vshll.u32 %v13101_v15, 16 }
  0x8e   : > { %11328 = vmatmul.mubr.msk.bf16.gmra.mrb[12].mxu0 %vm688_vm3, %v10108_v5  ;;  %v5274_v48 = vrot.slane %v5273_v31, 4  ;;  %v5292_v34 = vrot.slane %v15753_v54, 5  ;;  %v9588_v44 = vcombine.low %v12671_v61, %v12680_v19  ;;  %v5305_v29 = vshrl.u32 %v10080_v27, 16  ;;  %v10083_v54 = vld [vmem:[%s12495_s23 + $0x9c] sm:$0xf] }
  0x8f   : > { %v5269_v51 = vsel %vm12550_vm4, %v5264_v33, %v5268_v12  ;;  %v5287_v28 = vor.u32 %v5286_v6, %v5283_v30  ;;  %v5296_v7 = vrot.slane %v15758_v20, 4  ;;  %v5302_v47 = vrot.slane %v5300_v49, 5 }
  0x90   : > { %v5279_v45 = vsel %vm12550_vm4, %v5274_v48, %v5278_v58  ;;  %v5308_v5 = vshll.u32 %v10080_v27, 16  ;;  %v15763_v31 = vshll.u32 %v13109_v62, 16  ;;  %v5307_v33 = vrot.slane %v5305_v29, 4  ;;  %v13144_v29 = vld [vmem:[%s12495_s23 + $0xa4] sm:$0x1] }
  0x91   : > { %v10109_v61 = vcombine.low %v5269_v51, %v5279_v45  ;;  %v5288_v19 = vrot.slane %v5287_v28, 4  ;;  %v5297_v41 = vor.u32 %v5296_v7, %v5292_v34  ;;  %v15764_v6 = vshrl.u32 %v13109_v62, 16 }
  0x92   : > { %v5310_v12 = vrot.slane %v5308_v5, 5  ;;  %v5316_v30 = vrot.slane %v15763_v31, 5  ;;  %v5324_v20 = vshll.u32 %v13122_v36, 16  ;;  %v9589_v48 = vcombine.low %v12692_v46, %v12710_v21  ;;  %v13180_v31 = vld [vmem:[%s12495_s23 + $0xb0] sm:$0x1] }
  0x93   : > { %11331 = vmatprep.mubr.msk.bf16.mxu0 %vm688_vm3, %v10109_v61  ;;  %v5293_v58 = vsel %vm12550_vm4, %v5288_v19, %v5292_v34  ;;  %v5298_v27 = vrot.slane %v5297_v41, 4  ;;  %v5329_v49 = vshrl.u32 %v10083_v54, 16  ;;  %v5320_v28 = vrot.slane %v15764_v6, 4 }
  0x94   : > { %11040 = vmatmul.mubr.msk.bf16.gmra.mrb[12].mxu1 %vm688_vm3, %v9588_v44  ;;  %v5311_v51 = vor.u32 %v5310_v12, %v5307_v33  ;;  %v5326_v7 = vrot.slane %v5324_v20, 5  ;;  %v5332_v45 = vshll.u32 %v10083_v54, 16  ;;  %v15761_v46 = vshll.u32 %v13133_v0, 16  ;;  %v10086_v12 = vld [vmem:[%s12495_s23 + $0xa8] sm:$0xf] }
  0x95   : > { %v5303_v19 = vsel %vm12550_vm4, %v5298_v27, %v5302_v47  ;;  %11043 = vmatprep.mubr.msk.bf16.mxu1 %vm688_vm3, %v9589_v48  ;;  %v5331_v41 = vrot.slane %v5329_v49, 4  ;;  %v15762_v34 = vshrl.u32 %v13133_v0, 16  ;;  %v5321_v61 = vor.u32 %v5320_v28, %v5316_v30  ;;  %v13155_v54 = vld [vmem:[%s15694_s1 + $0x24] sm:$0xff]   ;;  %v13165_v48 = vld [vmem:[%s12495_s23 + $0xac] sm:$0xf] }
  0x96   : > { %v10110_v44 = vcombine.low %v5293_v58, %v5303_v19  ;;  %v5312_v5 = vrot.slane %v5311_v51, 4  ;;  %v5334_v33 = vrot.slane %v5332_v45, 5  ;;  %v5340_v20 = vrot.slane %v15761_v46, 5  ;;  %v13170_v49 = vld [vmem:[%s15694_s1 + $0x84] sm:$0xff]  }
  0x97   : > { %v5344_v47 = vrot.slane %v15762_v34, 4  ;;  %v5348_v27 = vshll.u32 %v13144_v29, 16  ;;  %v9590_v58 = vcombine.low %v12723_v26, %v12729_v53  ;;  %v5322_v28 = vrot.slane %v5321_v61, 4 }
  0x98   : > { %11332 = vmatmul.mubr.msk.bf16.gmra.mrb[16].mxu0 %vm688_vm3, %v10110_v44  ;;  %v5317_v51 = vsel %vm12550_vm4, %v5312_v5, %v5316_v30  ;;  %v5335_v45 = vor.u32 %v5334_v33, %v5331_v41  ;;  %v1476_v19 = vsel %vm737_vm0, %v13012_v43, 0  ;;  %v6039_v34 = vsel %vm737_vm0, %v12985_v37, 0  ;;  %v10089_v5 = vld [vmem:[%s12495_s23 + $0xb4] sm:$0xf] }
  0x99   : > { %v5345_v46 = vor.u32 %v5344_v47, %v5340_v20  ;;  %v5350_v26 = vrot.slane %v5348_v27, 5  ;;  %11062 = vmatpush3.bf16.msra.mxu1 %v1476_v19  ;;  %v5353_v6 = vshrl.u32 %v10086_v12, 16  ;;  %v5327_v44 = vsel %vm12550_vm4, %v5322_v28, %v5326_v7  ;;  %11350 = vmatpush3.bf16.msra.mxu0 %v6039_v34  ;;  %v13196_v27 = vld [vmem:[%s12495_s23 + $0xb8] sm:$0xf] }
  0x9a   : > { %v5336_v53 = vrot.slane %v5335_v45, 4  ;;  %v5356_v30 = vshll.u32 %v10086_v12, 16  ;;  %v15767_v41 = vshll.u32 %v13165_v48, 16  ;;  %11095 = vmatprep.subr.bf16.mxu1 %v13155_v54  ;;  %v10111_v43 = vcombine.low %v5317_v51, %v5327_v44  ;;  %11383 = vmatprep.subr.bf16.mxu0 %v13170_v49  ;;  %v10092_v44 = vld [vmem:[%s12495_s23 + $0xc0] sm:$0xf] }
  0x9b   : > { %v5346_v61 = vrot.slane %v5345_v46, 4  ;;  %v5355_v33 = vrot.slane %v5353_v6, 4  ;;  %v15768_v37 = vshrl.u32 %v13165_v48, 16  ;;  %v5372_v47 = vshll.u32 %v13180_v31, 16 }
  0x9c   : > { %v5341_v7 = vsel %vm12550_vm4, %v5336_v53, %v5340_v20  ;;  %11044 = vmatmul.mubr.msk.bf16.gmra.mrb[16].mxu1 %vm688_vm3, %v9590_v58  ;;  %v5358_v34 = vrot.slane %v5356_v30, 5  ;;  %v5364_v12 = vrot.slane %v15767_v41, 5  ;;  %11335 = vmatprep.mubr.msk.bf16.mxu0 %vm688_vm3, %v10111_v43  ;;  %v9591_v53 = vcombine.low %v12742_v42, %v12755_v56  ;;  %v13206_v20 = vld [vmem:[%s12495_s23 + $0xbc] sm:$0x1] }
  0x9d   : > { %v5351_v6 = vsel %vm12550_vm4, %v5346_v61, %v5350_v26  ;;  %v5368_v46 = vrot.slane %v15768_v37, 4  ;;  %v5377_v58 = vshrl.u32 %v10089_v5, 16  ;;  %v5374_v45 = vrot.slane %v5372_v47, 5 }
  0x9e   : > { %v10112_v51 = vcombine.low %v5341_v7, %v5351_v6  ;;  %v5359_v28 = vor.u32 %v5358_v34, %v5355_v33  ;;  %v5380_v19 = vshll.u32 %v10089_v5, 16  ;;  %11047 = vmatprep.mubr.msk.bf16.mxu1 %vm688_vm3, %v9591_v53  ;;  %v15769_v26 = vshll.u32 %v13196_v27, 16  ;;  %v13217_v33 = vld [vmem:[%s12495_s23 + $0xc4] sm:$0xf] }
  0x9f   : > { %v5369_v30 = vor.u32 %v5368_v46, %v5364_v12  ;;  %v5379_v43 = vrot.slane %v5377_v58, 4  ;;  %v15772_v61 = vshrl.u32 %v13196_v27, 16  ;;  %v5396_v37 = vshll.u32 %v13206_v20, 16 }
  0xa0   : > { %11336 = vmatmul.mubr.msk.bf16.gmra.mrb[20].mxu0 %vm688_vm3, %v10112_v51  ;;  %v5360_v42 = vrot.slane %v5359_v28, 4  ;;  %v5382_v41 = vrot.slane %v5380_v19, 5  ;;  %v9592_v5 = vcombine.low %v12761_v50, %v12779_v16  ;;  %v5388_v34 = vrot.slane %v15769_v26, 5  ;;  %v13226_v51 = vld [vmem:[%s12495_s23 + $0xc8] sm:$0x1] }
  0xa1   : > { %v5370_v7 = vrot.slane %v5369_v30, 4  ;;  %v5392_v47 = vrot.slane %v15772_v61, 4  ;;  %v5401_v6 = vshrl.u32 %v10092_v44, 16  ;;  %v5398_v58 = vrot.slane %v5396_v37, 5  ;;  %v10095_v16 = vld [vmem:[%s12495_s23 + $0xcc] sm:$0xf] }
  0xa2   : > { %v5365_v46 = vsel %vm12550_vm4, %v5360_v42, %v5364_v12  ;;  %v5383_v53 = vor.u32 %v5382_v41, %v5379_v43  ;;  %v5404_v28 = vshll.u32 %v10092_v44, 16  ;;  %v15779_v26 = vshll.u32 %v13217_v33, 16  ;;  %v13235_v37 = vld [vmem:[%s12495_s23 + $0xd0] sm:$0xf] }
  0xa3   : > { %v5375_v50 = vsel %vm12550_vm4, %v5370_v7, %v5374_v45  ;;  %v5393_v19 = vor.u32 %v5392_v47, %v5388_v34  ;;  %v5403_v30 = vrot.slane %v5401_v6, 4  ;;  %v15780_v41 = vshrl.u32 %v13217_v33, 16  ;;  %v13248_v47 = vld [vmem:[%s12495_s23 + $0xd4] sm:$0x1] }
  0xa4   : > { %v10113_v61 = vcombine.low %v5365_v46, %v5375_v50  ;;  %v5384_v56 = vrot.slane %v5383_v53, 4  ;;  %11048 = vmatmul.mubr.msk.bf16.gmra.mrb[20].mxu1 %vm688_vm3, %v9592_v5  ;;  %v5406_v21 = vrot.slane %v5404_v28, 5  ;;  %v5412_v44 = vrot.slane %v15779_v26, 5 }
  0xa5   : > { %v5394_v12 = vrot.slane %v5393_v19, 4  ;;  %v5420_v45 = vshll.u32 %v13226_v51, 16  ;;  %v9593_v43 = vcombine.low %v12797_v60, %v12804_v3  ;;  %v5416_v7 = vrot.slane %v15780_v41, 4 }
  0xa6   : > { %11339 = vmatprep.mubr.msk.bf16.mxu0 %vm688_vm3, %v10113_v61  ;;  %v5389_v42 = vsel %vm12550_vm4, %v5384_v56, %v5388_v34  ;;  %v5407_v5 = vor.u32 %v5406_v21, %v5403_v30  ;;  %v5425_v6 = vshrl.u32 %v10095_v16, 16  ;;  %v5428_v60 = vshll.u32 %v10095_v16, 16 }
  0xa7   : > { %v5399_v46 = vsel %vm12550_vm4, %v5394_v12, %v5398_v58  ;;  %v5422_v53 = vrot.slane %v5420_v45, 5  ;;  %11051 = vmatprep.mubr.msk.bf16.mxu1 %vm688_vm3, %v9593_v43  ;;  %v15777_v61 = vshll.u32 %v13235_v37, 16  ;;  %v5417_v21 = vor.u32 %v5416_v7, %v5412_v44  ;;  %v13259_v12 = vld [vmem:[%s12495_s23 + $0x18] sm:$0xe] }
  0xa8   : > { %v10114_v28 = vcombine.low %v5389_v42, %v5399_v46  ;;  %v5408_v56 = vrot.slane %v5407_v5, 4  ;;  %v5427_v34 = vrot.slane %v5425_v6, 4  ;;  %v5430_v50 = vrot.slane %v5428_v60, 5  ;;  %v13267_v42 = vld [vmem:[%s12495_s23 + $0x24] sm:$0xe] }
  0xa9   : > { %v5436_v19 = vrot.slane %v15777_v61, 5  ;;  %v15778_v30 = vshrl.u32 %v13235_v37, 16  ;;  %v5444_v58 = vshll.u32 %v13248_v47, 16  ;;  %v5418_v45 = vrot.slane %v5417_v21, 4  ;;  %v13272_v46 = vld [vmem:[%s12495_s23 + $0x30] sm:$0xe] }
  0xaa   : > { %11340 = vmatmul.mubr.msk.bf16.gmra.mrb[24].mxu0 %vm688_vm3, %v10114_v28  ;;  %v5413_v16 = vsel %vm12550_vm4, %v5408_v56, %v5412_v44  ;;  %v9594_v43 = vcombine.low %v12819_v63, %v12822_v2  ;;  %v5431_v5 = vor.u32 %v5430_v50, %v5427_v34  ;;  %v10151_v63 = vrot.slane %v13259_v12, 9  ;;  %v15950_v2 = vld [vmem:[#allocation25_spill] sm:$0xff] }
  0xab   : > { %v5440_v7 = vrot.slane %v15778_v30, 4  ;;  %v5446_v6 = vrot.slane %v5444_v58, 5  ;;  %v5423_v60 = vsel %vm12550_vm4, %v5418_v45, %v5422_v53  ;;  %v5819_v28 = vrot.slane %v12841_v57, 5  ;;  %v13287_v53 = vld [vmem:[%s12495_s23] sm:$0xe] }
  0xac   : > { %11052 = vmatmul.mubr.msk.bf16.gmra.mrb[24].mxu1 %vm688_vm3, %v9594_v43  ;;  %v5822_v56 = vrot.slane %v12849_v4, 5  ;;  %v10115_v21 = vcombine.low %v5413_v16, %v5423_v60  ;;  %v5432_v34 = vrot.slane %v5431_v5, 4  ;;  %v9595_v58 = vcombine.low %v12856_v11, %v12860_v22 }
  0xad   : > { %v5441_v50 = vor.u32 %v5440_v7, %v5436_v19  ;;  %v5820_v45 = vsel %vm13277_vm7, %v10151_v63, %v5819_v28  ;;  %v5821_v43 = vrot.slane %v5819_v28, 4  ;;  %v10152_v61 = vrot.slane %v13267_v42, 9  ;;  %v13301_v7 = vld [vmem:[%s12495_s23 + $0x3c] sm:$0xe] }
  0xae   : > { %v5826_v30 = vrot.slane %v12876_v18, 5  ;;  %11343 = vmatprep.mubr.msk.bf16.mxu0 %vm688_vm3, %v10115_v21  ;;  %v5437_v4 = vsel %vm12550_vm4, %v5432_v34, %v5436_v19  ;;  %11055 = vmatprep.mubr.msk.bf16.mxu1 %vm688_vm3, %v9595_v58  ;;  %v5829_v11 = vrot.slane %v12890_v32, 5  ;;  %v9596_v5 = vcombine.low %v12898_v25, %v12901_v24  ;;  %v13311_v21 = vld [vmem:[%s12495_s23 + $0xc] sm:$0xe]  ;;  %v13314_v32 = vld [vmem:[%s12495_s23 + $0x48] sm:$0xe] }
  0xaf   : > { %v5442_v16 = vrot.slane %v5441_v50, 4  ;;  %v5823_v60 = vsel %vm13277_vm7, %v5821_v43, %v5822_v56  ;;  %v10153_v19 = vrot.slane %v13272_v46, 9  ;;  %v5833_v50 = vrot.slane %v12920_v8, 5  ;;  %v12213_v43 = vld [vmem:[%s12495_s23 + $0x4] sm:$0xf] }
  0xb0   : > { %v13307_v63 = vsel %vm13277_vm7, %v10152_v61, %v5826_v30  ;;  %v5828_v28 = vrot.slane %v5826_v30, 4  ;;  %v10170_v34 = vcombine.low %v5820_v45, %v5823_v60  ;;  %v5836_v56 = vrot.slane %v12932_v10, 5  ;;  %v12216_v24 = vld [vmem:[%s12495_s23 + $0x20] sm:$0x1] }
  0xb1   : > { %v5447_v25 = vsel %vm12550_vm4, %v5442_v16, %v5446_v6  ;;  %v9615_v30 = vrot.slane %v13287_v53, 9  ;;  %v1256_v26 = vrot.slane %v12213_v43, 5  ;;  %v5834_v40 = vsel %vm13277_vm7, %v10153_v19, %v5833_v50  ;;  %v13329_v16 = vld [vmem:[%s12495_s23 + $0x18] sm:$0xe]  ;;  %v12214_v19 = vld [vmem:[%s12495_s23 + $0x10] sm:$0xf] }
  0xb2   : > { %v10116_v58 = vcombine.low %v5437_v4, %v5447_v25  ;;  %v5830_v61 = vsel %vm13277_vm7, %v5828_v28, %v5829_v11  ;;  %v5835_v6 = vrot.slane %v5833_v50, 4  ;;  %v10154_v45 = vrot.slane %v13301_v7, 9 }
  0xb3   : > { %v10171_v41 = vcombine.low %v13307_v63, %v5830_v61  ;;  %v1257_v10 = vsel %vm13277_vm7, %v9615_v30, %v1256_v26  ;;  %v1258_v4 = vrot.slane %v1256_v26, 4  ;;  %v5840_v11 = vrot.slane %v12937_v38, 5  ;;  %v13352_v30 = vld [vmem:[%s12495_s23 + $0x54] sm:$0xe] }
  0xb4   : > { %11344 = vmatmul.mubr.msk.bf16.gmra.mrb[28].mxu0 %vm688_vm3, %v10116_v58  ;;  %11056 = vmatmul.mubr.msk.bf16.gmra.mrb[28].mxu1 %vm688_vm3, %v9596_v5  ;;  %v5843_v60 = vrot.slane %v12949_v59, 5  ;;  %v5837_v63 = vsel %vm13277_vm7, %v5835_v6, %v5836_v56  ;;  %v9616_v28 = vrot.slane %v13311_v21, 9  ;;  %v1263_v25 = vrot.slane %v12214_v19, 5  ;;  %v15945_v58 = vld [vmem:[#allocation5_spill] sm:$0xff] }
  0xb5   : > { %11351 = vmatprep.mubr.msk.bf16.mxu0 %vm688_vm3, %v10170_v34  ;;  %v10155_v5 = vrot.slane %v13314_v32, 9  ;;  %v10172_v50 = vcombine.low %v5834_v40, %v5837_v63  ;;  %v15946_v26 = vrot.slane %v15945_v58, 5  ;;  %v13349_v59 = vsel %vm13277_vm7, %v10154_v45, %v5840_v11  ;;  %v13358_v63 = vld [vmem:[%s12495_s23 + $0x24] sm:$0xe] }
  0xb6   : > { %v5842_v34 = vrot.slane %v5840_v11, 4  ;;  %v1264_v43 = vsel %vm13277_vm7, %v9616_v28, %v1263_v25  ;;  %v1265_v6 = vrot.slane %v1263_v25, 4  ;;  %v5847_v40 = vrot.slane %v12958_v14, 5  ;;  %v13370_v28 = vld [vmem:[%s15694_s1 + $0x2c] ss:$0 sps:$4 sm:$0x33]  }
  0xb7   : > { %v1260_v61 = vsel %vm13277_vm7, %v1258_v4, %v15946_v26  ;;  %v5850_v45 = vrot.slane %v12971_v23, 5  ;;  %v9617_v11 = vrot.slane %v13329_v16, 9  ;;  %v5854_v22 = vrot.slane %v12990_v52, 5 }
  0xb8   : > { %v9634_v56 = vcombine.low %v1257_v10, %v1260_v61  ;;  %v13362_v4 = vsel %vm13277_vm7, %v5842_v34, %v5843_v60  ;;  %v12215_v10 = vld [vmem:[%s12495_s23 + $0x1c] sm:$0xf]  ;;  %v13381_v26 = vsel %vm13277_vm7, %v10155_v5, %v5847_v40  ;;  %v5849_v61 = vrot.slane %v5847_v40, 4  ;;  %v13384_v34 = vld [vmem:[%s12495_s23 + $0x60] sm:$0xe] }
  0xb9   : > { %v1270_v19 = vrot.slane %v12215_v10, 5  ;;  %v15947_v60 = vld [vmem:[#allocation8_spill] sm:$0xff]  ;;  %v13389_v10 = vld [vmem:[%s15694_s1 + $0x8c] ss:$0 sps:$4 sm:$0x33]   ;;  %v10156_v40 = vrot.slane %v13352_v30, 9 }
  0xba   : > { %11063 = vmatprep.mubr.msk.bf16.mxu1 %vm688_vm3, %v9634_v56  ;;  %v15948_v58 = vrot.slane %v15947_v60, 5  ;;  %v5851_v5 = vsel %vm13277_vm7, %v5849_v61, %v5850_v45  ;;  %v5857_v3 = vrot.slane %v15950_v2, 5  ;;  %v12217_v45 = vld [vmem:[%s12495_s23 + $0x28] sm:$0xf] }
  0xbb   : > { %v1271_v60 = vsel %vm13277_vm7, %v9617_v11, %v1270_v19  ;;  %v1272_v25 = vrot.slane %v1270_v19, 4  ;;  %v9618_v11 = vrot.slane %v13358_v63, 9  ;;  %v1277_v19 = vrot.slane %v12217_v45, 5 }
  0xbc   : > { %v1267_v23 = vsel %vm13277_vm7, %v1265_v6, %v15948_v58  ;;  %v1273_v6 = vrot.slane %v12216_v24, 5  ;;  %v13395_v58 = vld [vmem:[%s12495_s23 + $0x30] sm:$0xe]  ;;  %11352 = vmatmul.mubr.msk.bf16.vlgmr.msra.gmra.mrb[0].mxu0 %vm688_vm3, %v10171_v41  ;;  %v13413_v2 = vsel %vm13277_vm7, %v10156_v40, %v5854_v22  ;;  %v5856_v41 = vrot.slane %v5854_v22, 4 }
  0xbd   : > { %v9635_v56 = vcombine.low %v1264_v43, %v1267_v23  ;;  %15949 = vst [vmem:[#allocation5_spill] sm:$0xff] %v13395_v58  ;;  %v10174_v43 = vcombine.low %v13381_v26, %v5851_v5  ;;  %11355 = vmatprep.mubr.msk.bf16.mxu0 %vm688_vm3, %v10172_v50  ;;  %v12218_v26 = vld [vmem:[%s12495_s23 + $0x2c] sm:$0x1]  ;;  %11384 = vmatpush3.bf16.msra.mxu0 %v13170_v49  ;;  %v5861_v50 = vrot.slane %v13016_v13, 5  ;;  %v15951_v49 = vld [vmem:[#allocation27_spill] sm:$0xff]  ;;  %v9619_v40 = vrot.slane %v13395_v58, 9 }
  0xbe   : > { %v1274_v24 = vsel %vm13277_vm7, %v1272_v25, %v1273_v6  ;;  %v1280_v61 = vrot.slane %v12218_v26, 5  ;;  %v1278_v25 = vsel %vm13277_vm7, %v9618_v11, %v1277_v19  ;;  %v1279_v6 = vrot.slane %v1277_v19, 4  ;;  %12054 = vmatprep.subr.msk.bf16.mxu0 %vm737_vm0, %v13389_v10  ;;  %v1209_v13 = vld [vmem:[%s12495_s23 + $0x48] sm:$0xe] }
  0xbf   : > { %11064 = vmatmul.mubr.msk.bf16.vlgmr.msra.gmra.mrb[0].mxu1 %vm688_vm3, %v9635_v56  ;;  %v9636_v23 = vcombine.low %v1271_v60, %v1274_v24  ;;  %v13417_v56 = vld [vmem:[%s12495_s23 + $0x6c] sm:$0xe]  ;;  %v1208_v60 = vld [vmem:[%s12495_s23 + $0x3c] sm:$0xe]  ;;  %v13430_v22 = vsel %vm13277_vm7, %v5856_v41, %v5857_v3  ;;  %v5864_v5 = vrot.slane %v15951_v49, 5  ;;  %v1287_v58 = vrot.slane %v12220_v39, 5 }
  0xc0   : > { %11096 = vmatpush3.bf16.msra.mxu1 %v13155_v54  ;;  %v10157_v54 = vrot.slane %v13384_v34, 9  ;;  %v12219_v24 = vld [vmem:[%s12495_s23 + $0x34] sm:$0xf]  ;;  %v1281_v19 = vsel %vm13277_vm7, %v1279_v6, %v1280_v61  ;;  %v10143_v41 = vld [vmem:[%s12495_s23 + $0x78] sm:$0xe]  ;;  %v10158_v61 = vrot.slane %v13417_v56, 9 }
  0xc1   : > { %12046 = vmatprep.subr.msk.bf16.mxu1 %vm737_vm0, %v13370_v28  ;;  %11067 = vmatprep.mubr.msk.bf16.mxu1 %vm688_vm3, %v9636_v23  ;;  %v1284_v11 = vrot.slane %v12219_v24, 5  ;;  %v5863_v23 = vrot.slane %v5861_v50, 4  ;;  %v9637_v26 = vcombine.low %v1278_v25, %v1281_v19  ;;  %v5868_v6 = vrot.slane %v13041_v17, 5 }
  0xc2   : > { %v13443_v3 = vsel %vm13277_vm7, %v10157_v54, %v5861_v50  ;;  %v5871_v54 = vrot.slane %v13048_v9, 5  ;;  %v9620_v39 = vrot.slane %v1208_v60, 9  ;;  %v10144_v60 = vld [vmem:[%s12495_s23 + $0x84] sm:$0xe] }
  0xc3   : > { %v1285_v49 = vsel %vm13277_vm7, %v9619_v40, %v1284_v11  ;;  %v1286_v24 = vrot.slane %v1284_v11, 4  ;;  %v13452_v45 = vsel %vm13277_vm7, %v5863_v23, %v5864_v5  ;;  %v12221_v40 = vld [vmem:[%s12495_s23 + $0x40] sm:$0xf]  ;;  %v15952_v5 = vcombine.low %v13349_v59, %v13362_v4 }
  0xc4   : > { %v10176_v25 = vcombine.low %v13443_v3, %v13452_v45  ;;  %v1291_v11 = vrot.slane %v12221_v40, 5  ;;  %v13469_v9 = vsel %vm13277_vm7, %v10158_v61, %v5868_v6  ;;  %v5870_v45 = vrot.slane %v5868_v6, 4  ;;  %v12222_v3 = vld [vmem:[%s12495_s23 + $0x44] sm:$0x1] }
  0xc5   : > { %v1288_v50 = vsel %vm13277_vm7, %v1286_v24, %v1287_v58  ;;  %11356 = vmatmul.mubr.msk.bf16.gmra.mrb[4].mxu0 %vm688_vm3, %v15952_v5  ;;  %v1294_v58 = vrot.slane %v12222_v3, 5  ;;  %v10159_v4 = vrot.slane %v10143_v41, 9  ;;  %v5878_v61 = vrot.slane %v13078_v35, 5  ;;  %v12224_v5 = vld [vmem:[%s12495_s23 + $0x50] sm:$0x1] }
  0xc6   : > { %v9638_v19 = vcombine.low %v1285_v49, %v1288_v50  ;;  %11359 = vmatprep.mubr.msk.bf16.mxu0 %vm688_vm3, %v10174_v43  ;;  %v1292_v23 = vsel %vm13277_vm7, %v9620_v39, %v1291_v11  ;;  %v1293_v59 = vrot.slane %v1291_v11, 4  ;;  %v1210_v49 = vld [vmem:[%s12495_s23 + $0x54] sm:$0xe]  ;;  %v13481_v24 = vsel %vm13277_vm7, %v5870_v45, %v5871_v54  ;;  %v12223_v43 = vld [vmem:[%s12495_s23 + $0x4c] sm:$0xf] }
  0xc7   : > { %11068 = vmatmul.mubr.msk.bf16.gmra.mrb[4].mxu1 %vm688_vm3, %v9637_v26  ;;  %v5875_v26 = vrot.slane %v13063_v55, 5  ;;  %v9621_v6 = vrot.slane %v1209_v13, 9  ;;  %v1298_v50 = vrot.slane %v12223_v43, 5  ;;  %v10160_v3 = vrot.slane %v10144_v60, 9  ;;  %v12225_v43 = vld [vmem:[%s12495_s23 + $0x58] sm:$0xf] }
  0xc8   : > { %11071 = vmatprep.mubr.msk.bf16.mxu1 %vm688_vm3, %v9638_v19  ;;  %v1295_v41 = vsel %vm13277_vm7, %v1293_v59, %v1294_v58  ;;  %v1301_v19 = vrot.slane %v12224_v5, 5  ;;  %v5882_v58 = vrot.slane %v13088_v1, 5  ;;  %v5885_v59 = vrot.slane %v13101_v15, 5  ;;  %v12226_v15 = vld [vmem:[%s12495_s23 + $0x5c] sm:$0x1] }
  0xc9   : > { %v13491_v40 = vsel %vm13277_vm7, %v10159_v4, %v5875_v26  ;;  %v5877_v11 = vrot.slane %v5875_v26, 4  ;;  %v9639_v54 = vcombine.low %v1292_v23, %v1295_v41  ;;  %v1299_v13 = vsel %vm13277_vm7, %v9621_v6, %v1298_v50  ;;  %v10145_v4 = vld [vmem:[%s12495_s23 + $0x90] sm:$0xe]  ;;  %v1211_v41 = vld [vmem:[%s12495_s23 + $0x60] sm:$0xe] }
  0xca   : > { %v1300_v35 = vrot.slane %v1298_v50, 4  ;;  %v9622_v6 = vrot.slane %v1210_v49, 9  ;;  %v1305_v50 = vrot.slane %v12225_v43, 5  ;;  %v13511_v60 = vsel %vm13277_vm7, %v10160_v3, %v5882_v58  ;;  %v10146_v39 = vld [vmem:[%s12495_s23 + $0x9c] sm:$0xe] }
  0xcb   : > { %v13498_v45 = vsel %vm13277_vm7, %v5877_v11, %v5878_v61  ;;  %v5884_v11 = vrot.slane %v5882_v58, 4  ;;  %v1308_v5 = vrot.slane %v12226_v15, 5  ;;  %v15953_v23 = vcombine.low %v13413_v2, %v13430_v22  ;;  %v1212_v3 = vld [vmem:[%s12495_s23 + $0x6c] sm:$0xe]  ;;  %v12227_v58 = vld [vmem:[%s12495_s23 + $0x64] sm:$0xf] }
  0xcc   : > { %v1302_v26 = vsel %vm13277_vm7, %v1300_v35, %v1301_v19  ;;  %v1306_v49 = vsel %vm13277_vm7, %v9622_v6, %v1305_v50  ;;  %v10161_v35 = vrot.slane %v10145_v4, 9  ;;  %v5889_v19 = vrot.slane %v13109_v62, 5 }
  0xcd   : > { %v9640_v61 = vcombine.low %v1299_v13, %v1302_v26  ;;  %11360 = vmatmul.mubr.msk.bf16.gmra.mrb[8].mxu0 %vm688_vm3, %v15953_v23  ;;  %v1307_v13 = vrot.slane %v1305_v50, 4  ;;  %v13528_v2 = vsel %vm13277_vm7, %v5884_v11, %v5885_v59  ;;  %v5892_v22 = vrot.slane %v13122_v36, 5  ;;  %v12228_v50 = vld [vmem:[%s12495_s23 + $0x68] sm:$0x1] }
  0xce   : > { %11363 = vmatprep.mubr.msk.bf16.mxu0 %vm688_vm3, %v10176_v25  ;;  %v1312_v23 = vrot.slane %v12227_v58, 5  ;;  %v10179_v4 = vcombine.low %v13511_v60, %v13528_v2  ;;  %v13538_v25 = vsel %vm13277_vm7, %v10161_v35, %v5889_v19  ;;  %v5891_v6 = vrot.slane %v5889_v19, 4  ;;  %v1213_v35 = vld [vmem:[%s12495_s23 + $0x78] sm:$0xe]  ;;  %v12229_v58 = vld [vmem:[%s12495_s23 + $0x70] sm:$0xf] }
  0xcf   : > { %11072 = vmatmul.mubr.msk.bf16.gmra.mrb[8].mxu1 %vm688_vm3, %v9639_v54  ;;  %v9623_v54 = vrot.slane %v1211_v41, 9  ;;  %v1309_v26 = vsel %vm13277_vm7, %v1307_v13, %v1308_v5  ;;  %v1315_v41 = vrot.slane %v12228_v50, 5  ;;  %v10162_v15 = vrot.slane %v10146_v39, 9 }
  0xd0   : > { %11075 = vmatprep.mubr.msk.bf16.mxu1 %vm688_vm3, %v9640_v61  ;;  %v9641_v59 = vcombine.low %v1306_v49, %v1309_v26  ;;  %v1314_v43 = vrot.slane %v1312_v23, 4  ;;  %v10147_v61 = vld [vmem:[%s12495_s23 + $0xa8] sm:$0xe]  ;;  %v13546_v11 = vsel %vm13277_vm7, %v5891_v6, %v5892_v22  ;;  %v5896_v5 = vrot.slane %v13133_v0, 5  ;;  %v13559_v22 = vld [vmem:[%s15694_s1 + $0x30] sm:$0xff]  }
  0xd1   : > { %v1313_v36 = vsel %vm13277_vm7, %v9623_v54, %v1312_v23  ;;  %v5899_v13 = vrot.slane %v13144_v29, 5  ;;  %v9624_v54 = vrot.slane %v1212_v3, 9  ;;  %v1319_v23 = vrot.slane %v12229_v58, 5  ;;  %v12230_v6 = vld [vmem:[%s12495_s23 + $0x74] sm:$0x1] }
  0xd2   : > { %v1316_v19 = vsel %vm13277_vm7, %v1314_v43, %v1315_v41  ;;  %v13563_v26 = vsel %vm13277_vm7, %v10162_v15, %v5896_v5  ;;  %v5898_v29 = vrot.slane %v5896_v5, 4  ;;  %v1322_v50 = vrot.slane %v12230_v6, 5  ;;  %v10148_v49 = vld [vmem:[%s12495_s23 + $0xb4] sm:$0xe]  ;;  %v1214_v58 = vld [vmem:[%s12495_s23 + $0x84] sm:$0xe] }
  0xd3   : > { %v9642_v39 = vcombine.low %v1313_v36, %v1316_v19  ;;  %v1320_v3 = vsel %vm13277_vm7, %v9624_v54, %v1319_v23  ;;  %v1321_v43 = vrot.slane %v1319_v23, 4  ;;  %v2168_v41 = vsel %vm737_vm0, %v13370_v28, 0  ;;  %v13576_v15 = vld [vmem:[%s15694_s1 + $0x90] sm:$0xff]   ;;  %v10149_v6 = vld [vmem:[%s12495_s23 + $0xc0] sm:$0xe] }
  0xd4   : > { %v6728_v36 = vsel %vm737_vm0, %v13389_v10, 0  ;;  %v15954_v5 = vcombine.low %v13469_v9, %v13481_v24  ;;  %v13585_v19 = vsel %vm13277_vm7, %v5898_v29, %v5899_v13  ;;  %v10163_v28 = vrot.slane %v10147_v61, 9  ;;  %v12231_v61 = vld [vmem:[%s12495_s23 + $0x7c] sm:$0xf]  ;;  %11098 = vmatpush3.bf16.msra.mxu1 %v2168_v41 }
  0xd5   : > { %v5903_v10 = vrot.slane %v13165_v48, 5  ;;  %v5906_v54 = vrot.slane %v13180_v31, 5  ;;  %v15955_v23 = vcombine.low %v13491_v40, %v13498_v45  ;;  %v10181_v9 = vcombine.low %v13563_v26, %v13585_v19  ;;  %11386 = vmatpush3.bf16.msra.mxu0 %v6728_v36  ;;  %11131 = vmatprep.subr.bf16.mxu1 %v13559_v22 }
  0xd6   : > { %11364 = vmatmul.mubr.msk.bf16.gmra.mrb[12].mxu0 %vm688_vm3, %v15954_v5  ;;  %v1323_v24 = vsel %vm13277_vm7, %v1321_v43, %v1322_v50  ;;  %v1326_v13 = vrot.slane %v12231_v61, 5  ;;  %v5910_v43 = vrot.slane %v13196_v27, 5  ;;  %11419 = vmatprep.subr.bf16.mxu0 %v13576_v15  ;;  %v5913_v36 = vrot.slane %v13206_v20, 5 }
  0xd7   : > { %11076 = vmatmul.mubr.msk.bf16.gmra.mrb[12].mxu1 %vm688_vm3, %v9641_v59  ;;  %11367 = vmatprep.mubr.msk.bf16.mxu0 %vm688_vm3, %v15955_v23  ;;  %v9625_v59 = vrot.slane %v1213_v35, 9  ;;  %v9643_v31 = vcombine.low %v1320_v3, %v1323_v24  ;;  %v13602_v40 = vsel %vm13277_vm7, %v10163_v28, %v5903_v10  ;;  %v5905_v45 = vrot.slane %v5903_v10, 4  ;;  %v1215_v3 = vld [vmem:[%s12495_s23 + $0x90] sm:$0xe]  ;;  %v12233_v10 = vld [vmem:[%s12495_s23 + $0x88] sm:$0xf] }
  0xd8   : > { %11079 = vmatprep.mubr.msk.bf16.mxu1 %vm688_vm3, %v9642_v39  ;;  %v12232_v39 = vld [vmem:[%s12495_s23 + $0x80] sm:$0x1]  ;;  %v1328_v50 = vrot.slane %v1326_v13, 4  ;;  %v10164_v35 = vrot.slane %v10148_v49, 9  ;;  %v9626_v28 = vrot.slane %v1214_v58, 9  ;;  %v1333_v23 = vrot.slane %v12233_v10, 5 }
  0xd9   : > { %v1329_v29 = vrot.slane %v12232_v39, 5  ;;  %v1327_v5 = vsel %vm13277_vm7, %v9625_v59, %v1326_v13  ;;  %v13614_v41 = vsel %vm13277_vm7, %v5905_v45, %v5906_v54  ;;  %v5912_v61 = vrot.slane %v5910_v43, 4  ;;  %v10150_v13 = vld [vmem:[%s12495_s23 + $0xcc] sm:$0xe]  ;;  %v12234_v45 = vld [vmem:[%s12495_s23 + $0x8c] sm:$0x1] }
  0xda   : > { %v13624_v59 = vsel %vm13277_vm7, %v10164_v35, %v5910_v43  ;;  %v1334_v20 = vsel %vm13277_vm7, %v9626_v28, %v1333_v23  ;;  %v1335_v58 = vrot.slane %v1333_v23, 4  ;;  %v1336_v39 = vrot.slane %v12234_v45, 5  ;;  %v1216_v35 = vld [vmem:[%s12495_s23 + $0x9c] sm:$0xe]  ;;  %v10204_v45 = vld [vmem:[%s12495_s23 + $0x20] sm:$0x3] }
  0xdb   : > { %v1330_v24 = vsel %vm13277_vm7, %v1328_v50, %v1329_v29  ;;  %v13632_v10 = vsel %vm13277_vm7, %v5912_v61, %v5913_v36  ;;  %v10165_v49 = vrot.slane %v10149_v6, 9  ;;  %v5917_v29 = vrot.slane %v13217_v33, 5  ;;  %v12235_v36 = vld [vmem:[%s12495_s23 + $0x94] sm:$0xf] }
  0xdc   : > { %v9644_v54 = vcombine.low %v1327_v5, %v1330_v24  ;;  %v5920_v50 = vrot.slane %v13226_v51, 5  ;;  %v10183_v5 = vcombine.low %v13624_v59, %v13632_v10  ;;  %v1337_v43 = vsel %vm13277_vm7, %v1335_v58, %v1336_v39  ;;  %v10206_v10 = vld [vmem:[%s12495_s23 + $0x38] sm:$0x3] }
  0xdd   : > { %v9627_v6 = vrot.slane %v1215_v3, 9  ;;  %v1340_v28 = vrot.slane %v12235_v36, 5  ;;  %v15956_v51 = vcombine.low %v13538_v25, %v13546_v11  ;;  %v9645_v60 = vcombine.low %v1334_v20, %v1337_v43  ;;  %v12237_v20 = vld [vmem:[%s12495_s23 + $0xa0] sm:$0xf]  ;;  %v12238_v36 = vld [vmem:[%s12495_s23 + $0xa4] sm:$0x1] }
  0xde   : > { %11368 = vmatmul.mubr.msk.bf16.gmra.mrb[16].mxu0 %vm688_vm3, %v10179_v4  ;;  %v13654_v2 = vsel %vm13277_vm7, %v10165_v49, %v5917_v29  ;;  %v5919_v4 = vrot.slane %v5917_v29, 4  ;;  %v10166_v61 = vrot.slane %v10150_v13, 9  ;;  %v5924_v25 = vrot.slane %v13235_v37, 5 }
  0xdf   : > { %11080 = vmatmul.mubr.msk.bf16.gmra.mrb[16].mxu1 %vm688_vm3, %v9643_v31  ;;  %11371 = vmatprep.mubr.msk.bf16.mxu0 %vm688_vm3, %v15956_v51  ;;  %v12236_v31 = vld [vmem:[%s12495_s23 + $0x98] sm:$0x1]  ;;  %v1341_v23 = vsel %vm13277_vm7, %v9627_v6, %v1340_v28  ;;  %v1342_v24 = vrot.slane %v1340_v28, 4  ;;  %v9628_v49 = vrot.slane %v1216_v35, 9  ;;  %v1347_v58 = vrot.slane %v12237_v20, 5 }
  0xe0   : > { %11083 = vmatprep.mubr.msk.bf16.mxu1 %vm688_vm3, %v9644_v54  ;;  %v1343_v3 = vrot.slane %v12236_v31, 5  ;;  %v13662_v11 = vsel %vm13277_vm7, %v5919_v4, %v5920_v50  ;;  %v5927_v54 = vrot.slane %v13248_v47, 5  ;;  %v13673_v13 = vsel %vm13277_vm7, %v10166_v61, %v5924_v25  ;;  %v1217_v6 = vld [vmem:[%s12495_s23 + $0xa8] sm:$0xe] }
  0xe1   : > { %v10184_v39 = vcombine.low %v13654_v2, %v13662_v11  ;;  %v5926_v43 = vrot.slane %v5924_v25, 4  ;;  %v1348_v47 = vsel %vm13277_vm7, %v9628_v49, %v1347_v58  ;;  %v1349_v35 = vrot.slane %v1347_v58, 4 }
  0xe2   : > { %v1344_v29 = vsel %vm13277_vm7, %v1342_v24, %v1343_v3  ;;  %v1350_v28 = vrot.slane %v12238_v36, 5  ;;  %v6251_v4 = vshrl.u32 %v13259_v12, 16  ;;  %v15957_v24 = vshrl.u32 %v12841_v57, 16  ;;  %v12240_v36 = vld [vmem:[%s12495_s23 + $0xb0] sm:$0x1] }
  0xe3   : > { %v9646_v50 = vcombine.low %v1341_v23, %v1344_v29  ;;  %v13681_v51 = vsel %vm13277_vm7, %v5926_v43, %v5927_v54  ;;  %v6254_v23 = vshll.u32 %v13259_v12, 16  ;;  %v15958_v49 = vshll.u32 %v12841_v57, 16  ;;  %v12239_v29 = vld [vmem:[%s12495_s23 + $0xac] sm:$0xf] }
  0xe4   : > { %v10185_v31 = vcombine.low %v13673_v13, %v13681_v51  ;;  %v1351_v3 = vsel %vm13277_vm7, %v1349_v35, %v1350_v28  ;;  %v6259_v61 = vrot.slane %v15957_v24, 5  ;;  %v6253_v54 = vrot.slane %v6251_v4, 5  ;;  %v1218_v4 = vld [vmem:[%s12495_s23 + $0xb4] sm:$0xe]  ;;  %v10207_v51 = vld [vmem:[%s12495_s23 + $0x44] sm:$0x3] }
  0xe5   : > { %v9647_v25 = vcombine.low %v1348_v47, %v1351_v3  ;;  %v6260_v20 = vrot.slane %v15958_v49, 6  ;;  %v6265_v58 = vshrl.u32 %v10204_v45, 16  ;;  %v15959_v12 = vcombine.low %v13602_v40, %v13614_v41 }
  0xe6   : > { %11372 = vmatmul.mubr.msk.bf16.gmra.mrb[20].mxu0 %vm688_vm3, %v10181_v9  ;;  %v6256_v26 = vrot.slane %v6254_v23, 6  ;;  %v6268_v19 = vshll.u32 %v10204_v45, 16  ;;  %v9629_v9 = vrot.slane %v1217_v6, 9  ;;  %v1354_v43 = vrot.slane %v12239_v29, 5 }
  0xe7   : > { %11084 = vmatmul.mubr.msk.bf16.gmra.mrb[20].mxu1 %vm688_vm3, %v9645_v60  ;;  %11375 = vmatprep.mubr.msk.bf16.mxu0 %vm688_vm3, %v15959_v12  ;;  %v10205_v60 = vld [vmem:[%s12495_s23 + $0x2c] sm:$0x3]  ;;  %v6261_v47 = vor.u32 %v6260_v20, %v6259_v61  ;;  %v6267_v35 = vrot.slane %v6265_v58, 5  ;;  %v1357_v57 = vrot.slane %v12240_v36, 5  ;;  %v6274_v28 = vshrl.u32 %v13267_v42, 16 }
  0xe8   : > { %11087 = vmatprep.mubr.msk.bf16.mxu1 %vm688_vm3, %v9646_v50  ;;  %v6257_v3 = vor.u32 %v6256_v26, %v6253_v54  ;;  %v6270_v24 = vrot.slane %v6268_v19, 6  ;;  %v1355_v40 = vsel %vm13277_vm7, %v9629_v9, %v1354_v43  ;;  %v1356_v41 = vrot.slane %v1354_v43, 4 }
  0xe9   : > { %v6263_v6 = vrot.slane %v6261_v47, 4  ;;  %v6276_v50 = vrot.slane %v6274_v28, 5  ;;  %v6277_v23 = vshll.u32 %v13267_v42, 16  ;;  %v15962_v61 = vshrl.u32 %v12876_v18, 16 }
  0xea   : > { %v6258_v20 = vrot.slane %v6257_v3, 4  ;;  %v6271_v54 = vor.u32 %v6270_v24, %v6267_v35  ;;  %v1358_v58 = vsel %vm13277_vm7, %v1356_v41, %v1357_v57  ;;  %v15963_v12 = vshll.u32 %v12876_v18, 16 }
  0xeb   : > { %v6282_v49 = vrot.slane %v15962_v61, 5  ;;  %v9648_v19 = vcombine.low %v1355_v40, %v1358_v58  ;;  %v6279_v9 = vrot.slane %v6277_v23, 6  ;;  %v6288_v29 = vshrl.u32 %v10205_v60, 16  ;;  %v12242_v40 = vld [vmem:[%s12495_s23 + $0xbc] sm:$0x1] }
  0xec   : > { %v6283_v26 = vrot.slane %v15963_v12, 6  ;;  %v6291_v43 = vshll.u32 %v10205_v60, 16  ;;  %v6262_v42 = vsel %vm13712_vm10, %v6258_v20, %v6261_v47  ;;  %v6272_v36 = vsel %vm13712_vm10, %v6263_v6, %v6271_v54 }
  0xed   : > { %v9630_v28 = vrot.slane %v1218_v4, 9  ;;  %v10223_v18 = vcombine.low %v6262_v42, %v6272_v36  ;;  %v6280_v57 = vor.u32 %v6279_v9, %v6276_v50  ;;  %v6290_v60 = vrot.slane %v6288_v29, 5  ;;  %v12241_v4 = vld [vmem:[%s12495_s23 + $0xb8] sm:$0xf]  ;;  %v1671_v29 = vld [vmem:[%s12495_s23 + $0x8] sm:$0x3] }
  0xee   : > { %v6284_v35 = vor.u32 %v6283_v26, %v6282_v49  ;;  %11376 = vmatmul.mubr.msk.bf16.gmra.mrb[24].mxu0 %vm688_vm3, %v10183_v5  ;;  %v6293_v3 = vrot.slane %v6291_v43, 6  ;;  %v1361_v24 = vrot.slane %v12241_v4, 5  ;;  %v1364_v59 = vrot.slane %v12242_v40, 5 }
  0xef   : > { %11088 = vmatmul.mubr.msk.bf16.gmra.mrb[24].mxu1 %vm688_vm3, %v9647_v25  ;;  %11379 = vmatprep.mubr.msk.bf16.mxu0 %vm688_vm3, %v10184_v39  ;;  %v6297_v5 = vshrl.u32 %v13272_v46, 16  ;;  %v6281_v25 = vrot.slane %v6280_v57, 4  ;;  %v6300_v6 = vshll.u32 %v13272_v46, 16  ;;  %v15964_v50 = vshrl.u32 %v12920_v8, 16 }
  0xf0   : > { %11091 = vmatprep.mubr.msk.bf16.mxu1 %vm688_vm3, %v9648_v19  ;;  %v6286_v47 = vrot.slane %v6284_v35, 4  ;;  %v6294_v41 = vor.u32 %v6293_v3, %v6290_v60  ;;  %v1362_v11 = vsel %vm13277_vm7, %v9630_v28, %v1361_v24  ;;  %v1363_v39 = vrot.slane %v1361_v24, 4  ;;  %v15966_v60 = vld [vmem:[#allocation6_spill] sm:$0xff]  ;;  %v15967_v3 = vld [vmem:[#allocation7_spill] sm:$0xff] }
  0xf1   : > { %v6305_v2 = vrot.slane %v15964_v50, 5  ;;  %v6299_v23 = vrot.slane %v6297_v5, 5  ;;  %v15965_v61 = vshll.u32 %v12920_v8, 16  ;;  %v6285_v20 = vsel %vm13712_vm10, %v6281_v25, %v6284_v35 }
  0xf2   : > { %v6295_v54 = vsel %vm13712_vm10, %v6286_v47, %v6294_v41  ;;  %v6302_v58 = vrot.slane %v6300_v6, 6  ;;  %v6311_v12 = vshrl.u32 %v10206_v10, 16  ;;  %v1365_v26 = vsel %vm13277_vm7, %v1363_v39, %v1364_v59 }
  0xf3   : > { %v6306_v49 = vrot.slane %v15965_v61, 6  ;;  %v10224_v46 = vcombine.low %v6285_v20, %v6295_v54  ;;  %v6314_v9 = vshll.u32 %v10206_v10, 16  ;;  %v9649_v43 = vcombine.low %v1362_v11, %v1365_v26 }
  0xf4   : > { %v6303_v42 = vor.u32 %v6302_v58, %v6299_v23  ;;  %v6313_v36 = vrot.slane %v6311_v12, 5  ;;  %v1691_v8 = vshrl.u32 %v13287_v53, 16  ;;  %v1694_v35 = vshll.u32 %v13287_v53, 16 }
  0xf5   : > { %v6307_v19 = vor.u32 %v6306_v49, %v6305_v2  ;;  %v6316_v57 = vrot.slane %v6314_v9, 6  ;;  %v1701_v47 = vor.u32 %v15967_v3, %v15966_v60  ;;  %v1705_v40 = vshrl.u32 %v1671_v29, 16 }
  0xf6   : > { %11380 = vmatmul.mubr.msk.bf16.gmra.mrb[28].mxu0 %vm688_vm3, %v10185_v31  ;;  %v6304_v4 = vrot.slane %v6303_v42, 4  ;;  %v1693_v24 = vrot.slane %v1691_v8, 5  ;;  %v1708_v59 = vshll.u32 %v1671_v29, 16  ;;  %v1696_v5 = vrot.slane %v1694_v35, 6 }
  0xf7   : > { %v6309_v28 = vrot.slane %v6307_v19, 4  ;;  %11092 = vmatmul.mubr.msk.bf16.gmra.mrb[28].mxu1 %vm688_vm3, %v9649_v43  ;;  %11387 = vmatprep.mubr.msk.bf16.mxu0 %vm688_vm3, %v10223_v18  ;;  %v6317_v10 = vor.u32 %v6316_v57, %v6313_v36  ;;  %v1703_v53 = vrot.slane %v1701_v47, 4  ;;  %v6320_v25 = vshrl.u32 %v13301_v7, 16  ;;  %v1672_v43 = vld [vmem:[%s12495_s23 + $0x14] sm:$0x3] }
  0xf8   : > { %v6308_v41 = vsel %vm13712_vm10, %v6304_v4, %v6307_v19  ;;  %v1707_v6 = vrot.slane %v1705_v40, 5  ;;  %v1710_v13 = vrot.slane %v1708_v59, 6  ;;  %v6323_v31 = vshll.u32 %v13301_v7, 16  ;;  %v13784_v36 = vld [vmem:[%s15694_s1 + $0x98] ss:$0 sps:$4 sm:$0x33]  }
  0xf9   : > { %v6318_v50 = vsel %vm13712_vm10, %v6309_v28, %v6317_v10  ;;  %v1697_v2 = vor.u32 %v1696_v5, %v1693_v24  ;;  %v6322_v11 = vrot.slane %v6320_v25, 5  ;;  %v15968_v18 = vshrl.u32 %v12937_v38, 16 }
  0xfa   : > { %v10225_v23 = vcombine.low %v6308_v41, %v6318_v50  ;;  %v1711_v61 = vor.u32 %v1710_v13, %v1707_v6  ;;  %v6325_v49 = vrot.slane %v6323_v31, 6  ;;  %v15969_v20 = vshll.u32 %v12937_v38, 16 }
  0xfb   : > { %v6328_v39 = vrot.slane %v15968_v18, 5  ;;  %v1698_v58 = vrot.slane %v1697_v2, 4  ;;  %v6334_v12 = vshrl.u32 %v10207_v51, 16  ;;  %v6337_v26 = vshll.u32 %v10207_v51, 16 }
  0xfc   : > { %v6329_v54 = vrot.slane %v15969_v20, 6  ;;  %v1714_v7 = vshrl.u32 %v13311_v21, 16  ;;  %v1712_v19 = vsel %vm13712_vm10, %v1703_v53, %v1711_v61  ;;  %v6326_v9 = vor.u32 %v6325_v49, %v6322_v11  ;;  %v15972_v61 = vld [vmem:[#allocation11_spill] sm:$0xff] }
  0xfd   : > { %v1717_v42 = vshll.u32 %v13311_v21, 16  ;;  %v1702_v38 = vsel %vm13712_vm10, %v1698_v58, %v1701_v47  ;;  %v6336_v8 = vrot.slane %v6334_v12, 5  ;;  %v6339_v28 = vrot.slane %v6337_v26, 6  ;;  %v1673_v58 = vld [vmem:[%s12495_s23 + $0x20] sm:$0x3] }
  0xfe   : > { %v6330_v29 = vor.u32 %v6329_v54, %v6328_v39  ;;  %v1716_v57 = vrot.slane %v1714_v7, 5  ;;  %11388 = vmatmul.mubr.msk.bf16.vlgmr.msra.gmra.mrb[0].mxu0 %vm688_vm3, %v10224_v46  ;;  %v9671_v35 = vcombine.low %v1702_v38, %v1712_v19  ;;  %v6327_v60 = vrot.slane %v6326_v9, 4  ;;  %v10208_v46 = vld [vmem:[%s12495_s23 + $0x50] sm:$0x3] }
  0xff   : > { %v1719_v4 = vrot.slane %v1717_v42, 6  ;;  %11391 = vmatprep.mubr.msk.bf16.mxu0 %vm688_vm3, %v10225_v23  ;;  %v6340_v21 = vor.u32 %v6339_v28, %v6336_v8  ;;  %v1728_v24 = vshrl.u32 %v1672_v43, 16  ;;  %v1731_v40 = vshll.u32 %v1672_v43, 16  ;;  %11420 = vmatpush3.bf16.msra.mxu0 %v13576_v15  ;;  %v13819_v8 = vld [vmem:[%s15694_s1 + $0x38] ss:$0 sps:$4 sm:$0x33]  }
 0x100   : > { %v6332_v3 = vrot.slane %v6330_v29, 4  ;;  %v6343_v59 = vshrl.u32 %v13314_v32, 16  ;;  %11099 = vmatprep.mubr.msk.bf16.mxu1 %vm688_vm3, %v9671_v35  ;;  %v6331_v47 = vsel %vm13712_vm10, %v6327_v60, %v6330_v29  ;;  %v6346_v5 = vshll.u32 %v13314_v32, 16  ;;  %12055 = vmatprep.subr.msk.bf16.mxu0 %vm737_vm0, %v13784_v36  ;;  %v15974_v28 = vld [vmem:[#allocation10_spill] sm:$0xff] }
 0x101   : > { %v1720_v10 = vor.u32 %v1719_v4, %v1716_v57  ;;  %v15970_v53 = vshrl.u32 %v12958_v14, 16  ;;  %v1730_v41 = vrot.slane %v1728_v24, 5  ;;  %v1733_v6 = vrot.slane %v1731_v40, 6 }
 0x102   : > { %v6341_v15 = vsel %vm13712_vm10, %v6332_v3, %v6340_v21  ;;  %v6345_v13 = vrot.slane %v6343_v59, 5  ;;  %v6348_v50 = vrot.slane %v6346_v5, 6  ;;  %v15971_v2 = vshll.u32 %v12958_v14, 16  ;;  %v10209_v5 = vld [vmem:[%s12495_s23 + $0x5c] sm:$0x3] }
 0x103   : > { %v6351_v25 = vrot.slane %v15970_v53, 5  ;;  %v10226_v51 = vcombine.low %v6331_v47, %v6341_v15  ;;  %v1721_v31 = vrot.slane %v1720_v10, 4  ;;  %v1734_v32 = vor.u32 %v1733_v6, %v1730_v41 }
 0x104   : > { %v6352_v11 = vrot.slane %v15971_v2, 6  ;;  %v6357_v18 = vshrl.u32 %v10208_v46, 16  ;;  %v6360_v39 = vshll.u32 %v10208_v46, 16  ;;  %v1737_v23 = vshrl.u32 %v13329_v16, 16 }
 0x105   : > { %v1725_v49 = vsel %vm13712_vm10, %v1721_v31, %v15972_v61  ;;  %v6349_v20 = vor.u32 %v6348_v50, %v6345_v13  ;;  %v1740_v12 = vshll.u32 %v13329_v16, 16  ;;  %v15973_v26 = vrot.slane %v15972_v61, 4  ;;  %v1674_v61 = vld [vmem:[%s12495_s23 + $0x2c] sm:$0x3] }
 0x106   : > { %v6353_v54 = vor.u32 %v6352_v11, %v6351_v25  ;;  %v6359_v7 = vrot.slane %v6357_v18, 5  ;;  %v6362_v19 = vrot.slane %v6360_v39, 6  ;;  %v1739_v9 = vrot.slane %v1737_v23, 5  ;;  %11392 = vmatmul.mubr.msk.bf16.gmra.mrb[4].mxu0 %vm688_vm3, %v10226_v51 }
 0x107   : > { %v1735_v14 = vsel %vm13712_vm10, %v15973_v26, %v1734_v32  ;;  %v6350_v43 = vrot.slane %v6349_v20, 4  ;;  %v1742_v38 = vrot.slane %v1740_v12, 6  ;;  %v15975_v57 = vshrl.u32 %v15974_v28, 16  ;;  %v15979_v12 = vld [vmem:[#allocation12_spill] sm:$0xff] }
 0x108   : > { %v9672_v29 = vcombine.low %v1725_v49, %v1735_v14  ;;  %v6355_v42 = vrot.slane %v6353_v54, 4  ;;  %v6363_v16 = vor.u32 %v6362_v19, %v6359_v7  ;;  %v15976_v60 = vshll.u32 %v15974_v28, 16 }
 0x109   : > { %v1745_v35 = vrot.slane %v15975_v57, 5  ;;  %v1751_v4 = vshrl.u32 %v1673_v58, 16  ;;  %v6354_v21 = vsel %vm13712_vm10, %v6350_v43, %v6353_v54  ;;  %v1743_v24 = vor.u32 %v1742_v38, %v1739_v9 }
 0x10a   : > { %v1746_v3 = vrot.slane %v15976_v60, 6  ;;  %11100 = vmatmul.mubr.msk.bf16.vlgmr.msra.gmra.mrb[0].mxu1 %vm688_vm3, %v9672_v29  ;;  %v1754_v40 = vshll.u32 %v1673_v58, 16  ;;  %v6366_v59 = vshrl.u32 %v13352_v30, 16  ;;  %v6364_v47 = vsel %vm13712_vm10, %v6355_v42, %v6363_v16 }
 0x10b   : > { %11132 = vmatpush3.bf16.msra.mxu1 %v13559_v22  ;;  %v1753_v46 = vrot.slane %v1751_v4, 5  ;;  %v6369_v53 = vshll.u32 %v13352_v30, 16  ;;  %v10227_v25 = vcombine.low %v6354_v21, %v6364_v47  ;;  %v1744_v15 = vrot.slane %v1743_v24, 4 }
 0x10c   : > { %v1747_v10 = vor.u32 %v1746_v3, %v1745_v35  ;;  %v1756_v41 = vrot.slane %v1754_v40, 6  ;;  %v6368_v6 = vrot.slane %v6366_v59, 5  ;;  %12047 = vmatprep.subr.msk.bf16.mxu1 %vm737_vm0, %v13819_v8  ;;  %v15977_v22 = vshrl.u32 %v12990_v52, 16  ;;  %v10210_v40 = vld [vmem:[%s12495_s23 + $0x68] sm:$0x3] }
 0x10d   : > { %v6371_v51 = vrot.slane %v6369_v53, 6  ;;  %v15978_v50 = vshll.u32 %v12990_v52, 16  ;;  %11395 = vmatprep.mubr.msk.bf16.mxu0 %vm688_vm3, %v10227_v25  ;;  %v6380_v32 = vshrl.u32 %v10209_v5, 16  ;;  %v6383_v18 = vshll.u32 %v10209_v5, 16  ;;  %v15982_v25 = vld [vmem:[#allocation26_spill] sm:$0xff] }
 0x10e   : > { %v1749_v13 = vrot.slane %v1747_v10, 4  ;;  %v6374_v31 = vrot.slane %v15977_v22, 5  ;;  %v1748_v30 = vsel %vm13712_vm10, %v1744_v15, %v1747_v10  ;;  %v1757_v11 = vor.u32 %v1756_v41, %v1753_v46 }
 0x10f   : > { %v6375_v2 = vrot.slane %v15978_v50, 6  ;;  %v6372_v39 = vor.u32 %v6371_v51, %v6368_v6  ;;  %v1760_v49 = vshrl.u32 %v13358_v63, 16  ;;  %v1763_v20 = vshll.u32 %v13358_v63, 16 }
 0x110   : > { %v1758_v54 = vsel %vm13712_vm10, %v1749_v13, %v1757_v11  ;;  %v6382_v52 = vrot.slane %v6380_v32, 5  ;;  %v6385_v58 = vrot.slane %v6383_v18, 6  ;;  %v15980_v26 = vshrl.u32 %v15979_v12, 16 }
 0x111   : > { %v6376_v23 = vor.u32 %v6375_v2, %v6374_v31  ;;  %v9673_v7 = vcombine.low %v1748_v30, %v1758_v54  ;;  %v6373_v19 = vrot.slane %v6372_v39, 4  ;;  %v1762_v29 = vrot.slane %v1760_v49, 5  ;;  %v15985_v30 = vld [vmem:[#allocation5_spill] sm:$0xff]  ;;  %v1675_v49 = vld [vmem:[%s12495_s23 + $0x38] sm:$0x3] }
 0x112   : > { %v1768_v14 = vrot.slane %v15980_v26, 5  ;;  %v6386_v43 = vor.u32 %v6385_v58, %v6382_v52  ;;  %v1765_v42 = vrot.slane %v1763_v20, 6  ;;  %v15981_v38 = vshll.u32 %v15979_v12, 16 }
 0x113   : > { %v6378_v9 = vrot.slane %v6376_v23, 4  ;;  %v1774_v28 = vshrl.u32 %v1674_v61, 16  ;;  %11103 = vmatprep.mubr.msk.bf16.mxu1 %vm688_vm3, %v9673_v7  ;;  %v6377_v63 = vsel %vm13712_vm10, %v6373_v19, %v6376_v23  ;;  %v1777_v57 = vshll.u32 %v1674_v61, 16 }
 0x114   : > { %v1769_v16 = vrot.slane %v15981_v38, 6  ;;  %v6389_v35 = vshrl.u32 %v13384_v34, 16  ;;  %v6392_v60 = vshll.u32 %v13384_v34, 16  ;;  %v1766_v4 = vor.u32 %v1765_v42, %v1762_v29 }
 0x115   : > { %v6387_v3 = vsel %vm13712_vm10, %v6378_v9, %v6386_v43  ;;  %v1776_v24 = vrot.slane %v1774_v28, 5  ;;  %v1779_v47 = vrot.slane %v1777_v57, 6  ;;  %v15983_v15 = vshrl.u32 %v15982_v25, 16  ;;  %v10211_v57 = vld [vmem:[%s12495_s23 + $0x74] sm:$0x3] }
 0x116   : > { %v1770_v21 = vor.u32 %v1769_v16, %v1768_v14  ;;  %v10228_v59 = vcombine.low %v6377_v63, %v6387_v3  ;;  %v6391_v10 = vrot.slane %v6389_v35, 5  ;;  %v6394_v46 = vrot.slane %v6392_v60, 6  ;;  %v15986_v14 = vld [vmem:[#allocation13_spill] sm:$0xff] }
 0x117   : > { %v1767_v5 = vrot.slane %v1766_v4, 4  ;;  %v6397_v41 = vrot.slane %v15983_v15, 5  ;;  %v15984_v6 = vshll.u32 %v15982_v25, 16  ;;  %v1780_v13 = vor.u32 %v1779_v47, %v1776_v24 }
 0x118   : > { %v1772_v53 = vrot.slane %v1770_v21, 4  ;;  %11396 = vmatmul.mubr.msk.bf16.gmra.mrb[8].mxu0 %vm688_vm3, %v10228_v59  ;;  %v6395_v51 = vor.u32 %v6394_v46, %v6391_v10  ;;  %v6403_v22 = vshrl.u32 %v10210_v40, 16  ;;  %v6406_v31 = vshll.u32 %v10210_v40, 16 }
 0x119   : > { %v6398_v34 = vrot.slane %v15984_v6, 6  ;;  %v1771_v50 = vsel %vm13712_vm10, %v1767_v5, %v1770_v21  ;;  %v1783_v11 = vshrl.u32 %v15985_v30, 16  ;;  %v1786_v32 = vshll.u32 %v15985_v30, 16 }
 0x11a   : > { %v1781_v18 = vsel %vm13712_vm10, %v1772_v53, %v1780_v13  ;;  %v6396_v39 = vrot.slane %v6395_v51, 4  ;;  %v6405_v23 = vrot.slane %v6403_v22, 5  ;;  %v6408_v61 = vrot.slane %v6406_v31, 6  ;;  %v12243_v13 = vld [vmem:[%s12495_s23 + $0x3c] sm:$0xe] }
 0x11b   : > { %v6399_v2 = vor.u32 %v6398_v34, %v6397_v41  ;;  %v9674_v20 = vcombine.low %v1771_v50, %v1781_v18  ;;  %v1785_v52 = vrot.slane %v1783_v11, 5  ;;  %v1788_v58 = vrot.slane %v1786_v32, 6  ;;  %v1676_v34 = vld [vmem:[%s12495_s23 + $0x44] sm:$0x3] }
 0x11c   : > { %v6409_v26 = vor.u32 %v6408_v61, %v6405_v23  ;;  %v15987_v7 = vshrl.u32 %v15986_v14, 16  ;;  %v15988_v9 = vshll.u32 %v15986_v14, 16  ;;  %v1797_v42 = vshrl.u32 %v1675_v49, 16 }
 0x11d   : > { %v6401_v54 = vrot.slane %v6399_v2, 4  ;;  %v6400_v12 = vsel %vm13712_vm10, %v6396_v39, %v6399_v2  ;;  %11104 = vmatmul.mubr.msk.bf16.gmra.mrb[4].mxu1 %vm688_vm3, %v9674_v20  ;;  %v1789_v43 = vor.u32 %v1788_v58, %v1785_v52  ;;  %v1800_v38 = vshll.u32 %v1675_v49, 16  ;;  %v15991_v2 = vld [vmem:[#allocation14_spill] sm:$0xff] }
 0x11e   : > { %v1791_v19 = vrot.slane %v15987_v7, 5  ;;  %v1792_v29 = vrot.slane %v15988_v9, 6  ;;  %v6412_v16 = vshrl.u32 %v13417_v56, 16  ;;  %v6415_v35 = vshll.u32 %v13417_v56, 16 }
 0x11f   : > { %v6410_v28 = vsel %vm13712_vm10, %v6401_v54, %v6409_v26  ;;  %v15989_v60 = vshrl.u32 %v13041_v17, 16  ;;  %v1790_v21 = vrot.slane %v1789_v43, 4  ;;  %v1799_v24 = vrot.slane %v1797_v42, 5  ;;  %v12244_v26 = vld [vmem:[%s12495_s23 + $0x78] sm:$0xe] }
 0x120   : > { %v1793_v63 = vor.u32 %v1792_v29, %v1791_v19  ;;  %v10229_v4 = vcombine.low %v6400_v12, %v6410_v28  ;;  %v1802_v40 = vrot.slane %v1800_v38, 6  ;;  %v6414_v47 = vrot.slane %v6412_v16, 5  ;;  %v10212_v42 = vld [vmem:[%s12495_s23 + $0x80] sm:$0x3] }
 0x121   : > { %v6420_v3 = vrot.slane %v15989_v60, 5  ;;  %v6417_v10 = vrot.slane %v6415_v35, 6  ;;  %v15990_v46 = vshll.u32 %v13041_v17, 16  ;;  %v6426_v25 = vshrl.u32 %v10211_v57, 16 }
 0x122   : > { %v1795_v59 = vrot.slane %v1793_v63, 4  ;;  %11399 = vmatprep.mubr.msk.bf16.mxu0 %vm688_vm3, %v10229_v4  ;;  %v1794_v56 = vsel %vm13712_vm10, %v1790_v21, %v1793_v63  ;;  %v1803_v53 = vor.u32 %v1802_v40, %v1799_v24  ;;  %v6429_v15 = vshll.u32 %v10211_v57, 16 }
 0x123   : > { %v6421_v5 = vrot.slane %v15990_v46, 6  ;;  %v6418_v41 = vor.u32 %v6417_v10, %v6414_v47  ;;  %v1806_v51 = vshrl.u32 %v12243_v13, 16  ;;  %v1809_v22 = vshll.u32 %v12243_v13, 16 }
 0x124   : > { %v1804_v31 = vsel %vm13712_vm10, %v1795_v59, %v1803_v53  ;;  %v6428_v17 = vrot.slane %v6426_v25, 5  ;;  %v6431_v50 = vrot.slane %v6429_v15, 6  ;;  %v15992_v30 = vshrl.u32 %v15991_v2, 16 }
 0x125   : > { %v6422_v6 = vor.u32 %v6421_v5, %v6420_v3  ;;  %v9675_v32 = vcombine.low %v1794_v56, %v1804_v31  ;;  %v6419_v18 = vrot.slane %v6418_v41, 4  ;;  %v1808_v23 = vrot.slane %v1806_v51, 5  ;;  %v12245_v5 = vld [vmem:[%s12495_s23 + $0x48] sm:$0xe] }
 0x126   : > { %v1814_v11 = vrot.slane %v15992_v30, 5  ;;  %v6432_v61 = vor.u32 %v6431_v50, %v6428_v17  ;;  %v1811_v49 = vrot.slane %v1809_v22, 6  ;;  %v15993_v20 = vshll.u32 %v15991_v2, 16  ;;  %v15996_v50 = vld [vmem:[#allocation15_spill] sm:$0xff] }
 0x127   : > { %v6424_v39 = vrot.slane %v6422_v6, 4  ;;  %v1820_v52 = vshrl.u32 %v1676_v34, 16  ;;  %11107 = vmatprep.mubr.msk.bf16.mxu1 %vm688_vm3, %v9675_v32  ;;  %v6423_v58 = vsel %vm13712_vm10, %v6419_v18, %v6422_v6  ;;  %v1823_v12 = vshll.u32 %v1676_v34, 16  ;;  %v1677_v6 = vld [vmem:[%s12495_s23 + $0x50] sm:$0x3] }
 0x128   : > { %v1815_v54 = vrot.slane %v15993_v20, 6  ;;  %v6435_v14 = vshrl.u32 %v12244_v26, 16  ;;  %v6438_v7 = vshll.u32 %v12244_v26, 16  ;;  %v1812_v9 = vor.u32 %v1811_v49, %v1808_v23 }
 0x129   : > { %v6433_v19 = vsel %vm13712_vm10, %v6424_v39, %v6432_v61  ;;  %v1822_v43 = vrot.slane %v1820_v52, 5  ;;  %v1825_v16 = vrot.slane %v1823_v12, 6  ;;  %v15994_v60 = vshrl.u32 %v13063_v55, 16  ;;  %v12246_v61 = vld [vmem:[%s12495_s23 + $0x84] sm:$0xe] }
 0x12a   : > { %v1816_v29 = vor.u32 %v1815_v54, %v1814_v11  ;;  %v10230_v38 = vcombine.low %v6423_v58, %v6433_v19  ;;  %v6437_v28 = vrot.slane %v6435_v14, 5  ;;  %v6440_v63 = vrot.slane %v6438_v7, 6  ;;  %v10213_v52 = vld [vmem:[%s12495_s23 + $0x8c] sm:$0x3] }
 0x12b   : > { %v1813_v57 = vrot.slane %v1812_v9, 4  ;;  %v6443_v3 = vrot.slane %v15994_v60, 5  ;;  %v15995_v4 = vshll.u32 %v13063_v55, 16  ;;  %v1826_v24 = vor.u32 %v1825_v16, %v1822_v43 }
 0x12c   : > { %v1818_v35 = vrot.slane %v1816_v29, 4  ;;  %11400 = vmatmul.mubr.msk.bf16.gmra.mrb[12].mxu0 %vm688_vm3, %v10230_v38  ;;  %v6441_v40 = vor.u32 %v6440_v63, %v6437_v28  ;;  %v6449_v59 = vshrl.u32 %v10212_v42, 16  ;;  %v6452_v47 = vshll.u32 %v10212_v42, 16 }
 0x12d   : > { %v6444_v21 = vrot.slane %v15995_v4, 6  ;;  %v1817_v10 = vsel %vm13712_vm10, %v1813_v57, %v1816_v29  ;;  %v1829_v56 = vshrl.u32 %v12245_v5, 16  ;;  %v1832_v53 = vshll.u32 %v12245_v5, 16  ;;  %v1678_v4 = vld [vmem:[%s12495_s23 + $0x5c] sm:$0x3] }
 0x12e   : > { %v1827_v25 = vsel %vm13712_vm10, %v1818_v35, %v1826_v24  ;;  %v6442_v15 = vrot.slane %v6441_v40, 4  ;;  %v6451_v55 = vrot.slane %v6449_v59, 5  ;;  %v6454_v41 = vrot.slane %v6452_v47, 6 }
 0x12f   : > { %v6445_v46 = vor.u32 %v6444_v21, %v6443_v3  ;;  %v9676_v34 = vcombine.low %v1817_v10, %v1827_v25  ;;  %v1831_v51 = vrot.slane %v1829_v56, 5  ;;  %v1834_v22 = vrot.slane %v1832_v53, 6  ;;  %v12247_v21 = vld [vmem:[%s12495_s23 + $0x54] sm:$0xe]  ;;  %v16001_v10 = vld [vmem:[#allocation16_spill] sm:$0xff] }
 0x130   : > { %v6455_v17 = vor.u32 %v6454_v41, %v6451_v55  ;;  %v15997_v2 = vshrl.u32 %v15996_v50, 16  ;;  %v15998_v11 = vshll.u32 %v15996_v50, 16  ;;  %v1843_v39 = vshrl.u32 %v1677_v6, 16 }
 0x131   : > { %v6447_v13 = vrot.slane %v6445_v46, 4  ;;  %v6446_v31 = vsel %vm13712_vm10, %v6442_v15, %v6445_v46  ;;  %11108 = vmatmul.mubr.msk.bf16.gmra.mrb[8].mxu1 %vm688_vm3, %v9676_v34  ;;  %v1835_v18 = vor.u32 %v1834_v22, %v1831_v51  ;;  %v1846_v23 = vshll.u32 %v1677_v6, 16 }
 0x132   : > { %v1837_v30 = vrot.slane %v15997_v2, 5  ;;  %v1838_v32 = vrot.slane %v15998_v11, 6  ;;  %v6458_v49 = vshrl.u32 %v12246_v61, 16  ;;  %v6461_v58 = vshll.u32 %v12246_v61, 16 }
 0x133   : > { %v6456_v20 = vsel %vm13712_vm10, %v6447_v13, %v6455_v17  ;;  %v15999_v12 = vshrl.u32 %v13088_v1, 16  ;;  %v1836_v7 = vrot.slane %v1835_v18, 4  ;;  %v1845_v19 = vrot.slane %v1843_v39, 5  ;;  %v10214_v18 = vld [vmem:[%s12495_s23 + $0x98] sm:$0x3] }
 0x134   : > { %v1839_v54 = vor.u32 %v1838_v32, %v1837_v30  ;;  %v10231_v14 = vcombine.low %v6446_v31, %v6456_v20  ;;  %v1848_v9 = vrot.slane %v1846_v23, 6  ;;  %v6460_v43 = vrot.slane %v6458_v49, 5  ;;  %v12248_v31 = vld [vmem:[%s12495_s23 + $0x90] sm:$0xe] }
 0x135   : > { %v6466_v26 = vrot.slane %v15999_v12, 5  ;;  %v6463_v42 = vrot.slane %v6461_v58, 6  ;;  %v16000_v38 = vshll.u32 %v13088_v1, 16  ;;  %v6472_v57 = vshrl.u32 %v10213_v52, 16 }
 0x136   : > { %v1841_v29 = vrot.slane %v1839_v54, 4  ;;  %11403 = vmatprep.mubr.msk.bf16.mxu0 %vm688_vm3, %v10231_v14  ;;  %v1840_v28 = vsel %vm13712_vm10, %v1836_v7, %v1839_v54  ;;  %v1849_v63 = vor.u32 %v1848_v9, %v1845_v19  ;;  %v6475_v35 = vshll.u32 %v10213_v52, 16 }
 0x137   : > { %v6467_v16 = vrot.slane %v16000_v38, 6  ;;  %v6464_v60 = vor.u32 %v6463_v42, %v6460_v43  ;;  %v1852_v24 = vshrl.u32 %v12247_v21, 16  ;;  %v1855_v40 = vshll.u32 %v12247_v21, 16  ;;  %v12249_v42 = vld [vmem:[%s12495_s23 + $0x60] sm:$0xe] }
 0x138   : > { %v1850_v59 = vsel %vm13712_vm10, %v1841_v29, %v1849_v63  ;;  %v6474_v1 = vrot.slane %v6472_v57, 5  ;;  %v6477_v47 = vrot.slane %v6475_v35, 6  ;;  %v16002_v46 = vshrl.u32 %v16001_v10, 16  ;;  %v1679_v35 = vld [vmem:[%s12495_s23 + $0x68] sm:$0x3] }
 0x139   : > { %v6468_v3 = vor.u32 %v6467_v16, %v6466_v26  ;;  %v9677_v56 = vcombine.low %v1840_v28, %v1850_v59  ;;  %v6465_v53 = vrot.slane %v6464_v60, 4  ;;  %v1854_v15 = vrot.slane %v1852_v24, 5  ;;  %v16006_v59 = vld [vmem:[#allocation17_spill] sm:$0xff] }
 0x13a   : > { %v1860_v5 = vrot.slane %v16002_v46, 5  ;;  %v6478_v55 = vor.u32 %v6477_v47, %v6474_v1  ;;  %v1857_v41 = vrot.slane %v1855_v40, 6  ;;  %v16003_v6 = vshll.u32 %v16001_v10, 16 }
 0x13b   : > { %v6470_v25 = vrot.slane %v6468_v3, 4  ;;  %v1866_v13 = vshrl.u32 %v1678_v4, 16  ;;  %11111 = vmatprep.mubr.msk.bf16.mxu1 %vm688_vm3, %v9677_v56  ;;  %v6469_v51 = vsel %vm13712_vm10, %v6465_v53, %v6468_v3  ;;  %v1869_v22 = vshll.u32 %v1678_v4, 16 }
 0x13c   : > { %v1861_v34 = vrot.slane %v16003_v6, 6  ;;  %v6481_v17 = vshrl.u32 %v12248_v31, 16  ;;  %v6484_v50 = vshll.u32 %v12248_v31, 16  ;;  %v1858_v30 = vor.u32 %v1857_v41, %v1854_v15  ;;  %v10215_v6 = vld [vmem:[%s12495_s23 + $0xa4] sm:$0x3] }
 0x13d   : > { %v6479_v2 = vsel %vm13712_vm10, %v6470_v25, %v6478_v55  ;;  %v1868_v32 = vrot.slane %v1866_v13, 5  ;;  %v1871_v23 = vrot.slane %v1869_v22, 6  ;;  %v16004_v52 = vshrl.u32 %v13109_v62, 16  ;;  %v12250_v25 = vld [vmem:[%s12495_s23 + $0x9c] sm:$0xe] }
 0x13e   : > { %v1862_v11 = vor.u32 %v1861_v34, %v1860_v5  ;;  %v10232_v39 = vcombine.low %v6469_v51, %v6479_v2  ;;  %v6483_v61 = vrot.slane %v6481_v17, 5  ;;  %v6486_v49 = vrot.slane %v6484_v50, 6 }
 0x13f   : > { %v1859_v20 = vrot.slane %v1858_v30, 4  ;;  %v6489_v58 = vrot.slane %v16004_v52, 5  ;;  %v16005_v12 = vshll.u32 %v13109_v62, 16  ;;  %v1872_v14 = vor.u32 %v1871_v23, %v1868_v32  ;;  %v1680_v52 = vld [vmem:[%s12495_s23 + $0x74] sm:$0x3] }
 0x140   : > { %v1864_v54 = vrot.slane %v1862_v11, 4  ;;  %11404 = vmatmul.mubr.msk.bf16.gmra.mrb[16].mxu0 %vm688_vm3, %v10232_v39  ;;  %v6487_v7 = vor.u32 %v6486_v49, %v6483_v61  ;;  %v6495_v19 = vshrl.u32 %v10214_v18, 16  ;;  %v6498_v9 = vshll.u32 %v10214_v18, 16 }
 0x141   : > { %v6490_v26 = vrot.slane %v16005_v12, 6  ;;  %v1863_v29 = vsel %vm13712_vm10, %v1859_v20, %v1862_v11  ;;  %v1875_v38 = vshrl.u32 %v12249_v42, 16  ;;  %v1878_v16 = vshll.u32 %v12249_v42, 16 }
 0x142   : > { %v1873_v28 = vsel %vm13712_vm10, %v1864_v54, %v1872_v14  ;;  %v6488_v63 = vrot.slane %v6487_v7, 4  ;;  %v6497_v62 = vrot.slane %v6495_v19, 5  ;;  %v6500_v57 = vrot.slane %v6498_v9, 6  ;;  %v16011_v19 = vld [vmem:[#allocation18_spill] sm:$0xff] }
 0x143   : > { %v6491_v43 = vor.u32 %v6490_v26, %v6489_v58  ;;  %v9678_v60 = vcombine.low %v1863_v29, %v1873_v28  ;;  %v1877_v4 = vrot.slane %v1875_v38, 5  ;;  %v1880_v21 = vrot.slane %v1878_v16, 6  ;;  %v12251_v58 = vld [vmem:[%s12495_s23 + $0x6c] sm:$0xe]  ;;  %v13988_v28 = vld [vmem:[%s15694_s1 + $0x3c] sm:$0xff]  }
 0x144   : > { %v6501_v40 = vor.u32 %v6500_v57, %v6497_v62  ;;  %v16007_v1 = vshrl.u32 %v16006_v59, 16  ;;  %v16008_v10 = vshll.u32 %v16006_v59, 16  ;;  %v1889_v56 = vshrl.u32 %v1679_v35, 16 }
 0x145   : > { %v6493_v3 = vrot.slane %v6491_v43, 4  ;;  %v6492_v24 = vsel %vm13712_vm10, %v6488_v63, %v6491_v43  ;;  %11112 = vmatmul.mubr.msk.bf16.gmra.mrb[12].mxu1 %vm688_vm3, %v9678_v60  ;;  %v1881_v5 = vor.u32 %v1880_v21, %v1877_v4  ;;  %v1892_v53 = vshll.u32 %v1679_v35, 16  ;;  %v13993_v63 = vld [vmem:[%s15694_s1 + $0x9c] sm:$0xff]  }
 0x146   : > { %v1883_v47 = vrot.slane %v16007_v1, 5  ;;  %v1884_v46 = vrot.slane %v16008_v10, 6  ;;  %v6504_v15 = vshrl.u32 %v12250_v25, 16  ;;  %v6507_v34 = vshll.u32 %v12250_v25, 16 }
 0x147   : > { %v6502_v55 = vsel %vm13712_vm10, %v6493_v3, %v6501_v40  ;;  %v16009_v13 = vshrl.u32 %v13133_v0, 16  ;;  %v1882_v31 = vrot.slane %v1881_v5, 4  ;;  %v1891_v17 = vrot.slane %v1889_v56, 5 }
 0x148   : > { %v1885_v41 = vor.u32 %v1884_v46, %v1883_v47  ;;  %v10233_v22 = vcombine.low %v6492_v24, %v6502_v55  ;;  %v1894_v50 = vrot.slane %v1892_v53, 6  ;;  %v6506_v30 = vrot.slane %v6504_v15, 5  ;;  %v10216_v46 = vld [vmem:[%s12495_s23 + $0xb0] sm:$0x3]  ;;  %v12252_v53 = vld [vmem:[%s12495_s23 + $0xa8] sm:$0xe] }
 0x149   : > { %v6512_v51 = vrot.slane %v16009_v13, 5  ;;  %v6509_v11 = vrot.slane %v6507_v34, 6  ;;  %v16010_v32 = vshll.u32 %v13133_v0, 16  ;;  %v6518_v61 = vshrl.u32 %v10215_v6, 16 }
 0x14a   : > { %v1887_v2 = vrot.slane %v1885_v41, 4  ;;  %11407 = vmatprep.mubr.msk.bf16.mxu0 %vm688_vm3, %v10233_v22  ;;  %v1886_v39 = vsel %vm13712_vm10, %v1882_v31, %v1885_v41  ;;  %v1895_v23 = vor.u32 %v1894_v50, %v1891_v17  ;;  %v6521_v49 = vshll.u32 %v10215_v6, 16 }
 0x14b   : > { %v6513_v18 = vrot.slane %v16010_v32, 6  ;;  %v6510_v20 = vor.u32 %v6509_v11, %v6506_v30  ;;  %v1898_v12 = vshrl.u32 %v12251_v58, 16  ;;  %v1901_v26 = vshll.u32 %v12251_v58, 16  ;;  %v12253_v30 = vld [vmem:[%s12495_s23 + $0x78] sm:$0xe] }
 0x14c   : > { %v1896_v14 = vsel %vm13712_vm10, %v1887_v2, %v1895_v23  ;;  %v6520_v7 = vrot.slane %v6518_v61, 5  ;;  %v6523_v0 = vrot.slane %v6521_v49, 6  ;;  %v16012_v9 = vshrl.u32 %v16011_v19, 16 }
 0x14d   : > { %v6514_v54 = vor.u32 %v6513_v18, %v6512_v51  ;;  %v9679_v43 = vcombine.low %v1886_v39, %v1896_v14  ;;  %v6511_v42 = vrot.slane %v6510_v20, 4  ;;  %v1900_v16 = vrot.slane %v1898_v12, 5  ;;  %v1681_v39 = vld [vmem:[%s12495_s23 + $0x80] sm:$0x3]  ;;  %v16016_v12 = vld [vmem:[#allocation19_spill] sm:$0xff] }
 0x14e   : > { %v1906_v29 = vrot.slane %v16012_v9, 5  ;;  %v6524_v62 = vor.u32 %v6523_v0, %v6520_v7  ;;  %v1903_v57 = vrot.slane %v1901_v26, 6  ;;  %v16013_v35 = vshll.u32 %v16011_v19, 16 }
 0x14f   : > { %v6516_v38 = vrot.slane %v6514_v54, 4  ;;  %v1912_v3 = vshrl.u32 %v1680_v52, 16  ;;  %11115 = vmatprep.mubr.msk.bf16.mxu1 %vm688_vm3, %v9679_v43  ;;  %v6515_v4 = vsel %vm13712_vm10, %v6511_v42, %v6514_v54  ;;  %v1915_v21 = vshll.u32 %v1680_v52, 16  ;;  %v12254_v43 = vld [vmem:[%s12495_s23 + $0xb4] sm:$0xe] }
 0x150   : > { %v1907_v60 = vrot.slane %v16013_v35, 6  ;;  %v2541_v24 = vsel %vm737_vm0, %v13819_v8, 0  ;;  %v7101_v40 = vsel %vm737_vm0, %v13784_v36, 0  ;;  %v1904_v1 = vor.u32 %v1903_v57, %v1900_v16  ;;  %v10217_v57 = vld [vmem:[%s12495_s23 + $0xbc] sm:$0x3] }
 0x151   : > { %v6525_v59 = vsel %vm13712_vm10, %v6516_v38, %v6524_v62  ;;  %v1914_v10 = vrot.slane %v1912_v3, 5  ;;  %11134 = vmatpush3.bf16.msra.mxu1 %v2541_v24  ;;  %11422 = vmatpush3.bf16.msra.mxu0 %v7101_v40  ;;  %v1917_v56 = vrot.slane %v1915_v21, 6  ;;  %v6527_v25 = vshrl.u32 %v12252_v53, 16 }
 0x152   : > { %v1908_v47 = vor.u32 %v1907_v60, %v1906_v29  ;;  %v10234_v5 = vcombine.low %v6515_v4, %v6525_v59  ;;  %v6530_v15 = vshll.u32 %v12252_v53, 16  ;;  %11167 = vmatprep.subr.bf16.mxu1 %v13988_v28  ;;  %11455 = vmatprep.subr.bf16.mxu0 %v13993_v63  ;;  %v1905_v36 = vrot.slane %v1904_v1, 4 }
 0x153   : > { %v16014_v55 = vshrl.u32 %v13165_v48, 16  ;;  %v16015_v6 = vshll.u32 %v13165_v48, 16  ;;  %v1918_v13 = vor.u32 %v1917_v56, %v1914_v10  ;;  %v6529_v51 = vrot.slane %v6527_v25, 5 }
 0x154   : > { %v1910_v8 = vrot.slane %v1908_v47, 4  ;;  %11408 = vmatmul.mubr.msk.bf16.gmra.mrb[20].mxu0 %vm688_vm3, %v10234_v5  ;;  %v6532_v22 = vrot.slane %v6530_v15, 6  ;;  %v6541_v31 = vshrl.u32 %v10216_v46, 16  ;;  %v1909_v17 = vsel %vm13712_vm10, %v1905_v36, %v1908_v47 }
 0x155   : > { %v6535_v41 = vrot.slane %v16014_v55, 5  ;;  %v6536_v34 = vrot.slane %v16015_v6, 6  ;;  %v6544_v2 = vshll.u32 %v10216_v46, 16  ;;  %v1921_v11 = vshrl.u32 %v12253_v30, 16 }
 0x156   : > { %v1919_v32 = vsel %vm13712_vm10, %v1910_v8, %v1918_v13  ;;  %v6533_v18 = vor.u32 %v6532_v22, %v6529_v51  ;;  %v6543_v48 = vrot.slane %v6541_v31, 5  ;;  %v1924_v23 = vshll.u32 %v12253_v30, 16  ;;  %v12255_v8 = vld [vmem:[%s12495_s23 + $0x84] sm:$0xe]  ;;  %v1682_v13 = vld [vmem:[%s12495_s23 + $0x8c] sm:$0x3] }
 0x157   : > { %v6537_v50 = vor.u32 %v6536_v34, %v6535_v41  ;;  %v9680_v61 = vcombine.low %v1909_v17, %v1919_v32  ;;  %v6546_v20 = vrot.slane %v6544_v2, 6  ;;  %v1923_v54 = vrot.slane %v1921_v11, 5  ;;  %v16021_v30 = vld [vmem:[#allocation20_spill] sm:$0xff] }
 0x158   : > { %v6534_v52 = vrot.slane %v6533_v18, 4  ;;  %v1926_v58 = vrot.slane %v1924_v23, 6  ;;  %v16017_v26 = vshrl.u32 %v16016_v12, 16  ;;  %v16018_v7 = vshll.u32 %v16016_v12, 16 }
 0x159   : > { %v6539_v49 = vrot.slane %v6537_v50, 4  ;;  %11116 = vmatmul.mubr.msk.bf16.gmra.mrb[16].mxu1 %vm688_vm3, %v9680_v61  ;;  %v6547_v19 = vor.u32 %v6546_v20, %v6543_v48  ;;  %v1935_v9 = vshrl.u32 %v1681_v39, 16  ;;  %v1938_v29 = vshll.u32 %v1681_v39, 16 }
 0x15a   : > { %v1929_v14 = vrot.slane %v16017_v26, 5  ;;  %v1930_v0 = vrot.slane %v16018_v7, 6  ;;  %v6550_v42 = vshrl.u32 %v12254_v43, 16  ;;  %v6538_v38 = vsel %vm13712_vm10, %v6534_v52, %v6537_v50  ;;  %v10218_v52 = vld [vmem:[%s12495_s23 + $0xc8] sm:$0x3] }
 0x15b   : > { %v1927_v16 = vor.u32 %v1926_v58, %v1923_v54  ;;  %v6553_v35 = vshll.u32 %v12254_v43, 16  ;;  %v6548_v60 = vsel %vm13712_vm10, %v6539_v49, %v6547_v19  ;;  %v1937_v3 = vrot.slane %v1935_v9, 5  ;;  %v12256_v58 = vld [vmem:[%s12495_s23 + $0xc0] sm:$0xe] }
 0x15c   : > { %v1931_v62 = vor.u32 %v1930_v0, %v1929_v14  ;;  %v1940_v4 = vrot.slane %v1938_v29, 6  ;;  %v6552_v21 = vrot.slane %v6550_v42, 5  ;;  %v10235_v24 = vcombine.low %v6538_v38, %v6548_v60 }
 0x15d   : > { %v1928_v40 = vrot.slane %v1927_v16, 4  ;;  %v6555_v1 = vrot.slane %v6553_v35, 6  ;;  %v16019_v10 = vshrl.u32 %v13196_v27, 16  ;;  %v16020_v5 = vshll.u32 %v13196_v27, 16 }
 0x15e   : > { %v1933_v59 = vrot.slane %v1931_v62, 4  ;;  %v1941_v47 = vor.u32 %v1940_v4, %v1937_v3  ;;  %v6564_v53 = vshrl.u32 %v10217_v57, 16  ;;  %11411 = vmatprep.mubr.msk.bf16.mxu0 %vm688_vm3, %v10235_v24  ;;  %v6567_v36 = vshll.u32 %v10217_v57, 16 }
 0x15f   : > { %v6558_v46 = vrot.slane %v16019_v10, 5  ;;  %v6559_v56 = vrot.slane %v16020_v5, 6  ;;  %v1932_v25 = vsel %vm13712_vm10, %v1928_v40, %v1931_v62  ;;  %v6556_v15 = vor.u32 %v6555_v1, %v6552_v21  ;;  %v12257_v21 = vld [vmem:[%s12495_s23 + $0x90] sm:$0xe] }
 0x160   : > { %v1944_v55 = vshrl.u32 %v12255_v8, 16  ;;  %v1942_v41 = vsel %vm13712_vm10, %v1933_v59, %v1941_v47  ;;  %v6566_v34 = vrot.slane %v6564_v53, 5  ;;  %v1947_v51 = vshll.u32 %v12255_v8, 16 }
 0x161   : > { %v6560_v6 = vor.u32 %v6559_v56, %v6558_v46  ;;  %v9681_v27 = vcombine.low %v1932_v25, %v1942_v41  ;;  %v6557_v22 = vrot.slane %v6556_v15, 4  ;;  %v6569_v31 = vrot.slane %v6567_v36, 6  ;;  %v1683_v46 = vld [vmem:[%s12495_s23 + $0x98] sm:$0x3]  ;;  %v16026_v36 = vld [vmem:[#allocation21_spill] sm:$0xff] }
 0x162   : > { %v1946_v17 = vrot.slane %v1944_v55, 5  ;;  %v1949_v2 = vrot.slane %v1947_v51, 6  ;;  %v16022_v11 = vshrl.u32 %v16021_v30, 16  ;;  %v16023_v18 = vshll.u32 %v16021_v30, 16 }
 0x163   : > { %v6562_v50 = vrot.slane %v6560_v6, 4  ;;  %11119 = vmatprep.mubr.msk.bf16.mxu1 %vm688_vm3, %v9681_v27  ;;  %v6561_v39 = vsel %vm13712_vm10, %v6557_v22, %v6560_v6  ;;  %v6570_v23 = vor.u32 %v6569_v31, %v6566_v34  ;;  %v1958_v61 = vshrl.u32 %v1682_v13, 16 }
 0x164   : > { %v1952_v32 = vrot.slane %v16022_v11, 5  ;;  %v1953_v48 = vrot.slane %v16023_v18, 6  ;;  %v1961_v49 = vshll.u32 %v1682_v13, 16  ;;  %v1950_v20 = vor.u32 %v1949_v2, %v1946_v17  ;;  %v12258_v17 = vld [vmem:[%s12495_s23 + $0xcc] sm:$0xe] }
 0x165   : > { %v6573_v12 = vshrl.u32 %v12256_v58, 16  ;;  %v6576_v26 = vshll.u32 %v12256_v58, 16  ;;  %v6571_v14 = vsel %vm13712_vm10, %v6562_v50, %v6570_v23  ;;  %v1960_v7 = vrot.slane %v1958_v61, 5 }
 0x166   : > { %v1954_v54 = vor.u32 %v1953_v48, %v1952_v32  ;;  %v1963_v0 = vrot.slane %v1961_v49, 6  ;;  %v16024_v19 = vshrl.u32 %v13217_v33, 16  ;;  %v10236_v29 = vcombine.low %v6561_v39, %v6571_v14  ;;  %v10219_v48 = vld [vmem:[%s12495_s23 + $0xd4] sm:$0x3] }
 0x167   : > { %v1951_v43 = vrot.slane %v1950_v20, 4  ;;  %v6575_v38 = vrot.slane %v6573_v12, 5  ;;  %v6578_v62 = vrot.slane %v6576_v26, 6  ;;  %v16025_v57 = vshll.u32 %v13217_v33, 16 }
 0x168   : > { %v6581_v9 = vrot.slane %v16024_v19, 5  ;;  %v1956_v42 = vrot.slane %v1954_v54, 4  ;;  %v1964_v16 = vor.u32 %v1963_v0, %v1960_v7  ;;  %v6587_v60 = vshrl.u32 %v10218_v52, 16  ;;  %11412 = vmatmul.mubr.msk.bf16.gmra.mrb[24].mxu0 %vm688_vm3, %v10236_v29  ;;  %v12259_v19 = vld [vmem:[%s12495_s23 + $0x9c] sm:$0xe] }
 0x169   : > { %v6582_v35 = vrot.slane %v16025_v57, 6  ;;  %v1955_v3 = vsel %vm13712_vm10, %v1951_v43, %v1954_v54  ;;  %v6590_v4 = vshll.u32 %v10218_v52, 16  ;;  %v1967_v24 = vshrl.u32 %v12257_v21, 16 }
 0x16a   : > { %v1970_v40 = vshll.u32 %v12257_v21, 16  ;;  %v1965_v59 = vsel %vm13712_vm10, %v1956_v42, %v1964_v16  ;;  %v6579_v1 = vor.u32 %v6578_v62, %v6575_v38  ;;  %v6589_v10 = vrot.slane %v6587_v60, 5  ;;  %v1684_v42 = vld [vmem:[%s12495_s23 + $0xa4] sm:$0x3]  ;;  %v16031_v16 = vld [vmem:[#allocation22_spill] sm:$0xff] }
 0x16b   : > { %v6583_v47 = vor.u32 %v6582_v35, %v6581_v9  ;;  %v9682_v33 = vcombine.low %v1955_v3, %v1965_v59  ;;  %v6592_v5 = vrot.slane %v6590_v4, 6  ;;  %v1969_v56 = vrot.slane %v1967_v24, 5 }
 0x16c   : > { %v1972_v53 = vrot.slane %v1970_v40, 6  ;;  %v6580_v25 = vrot.slane %v6579_v1, 4  ;;  %v16027_v8 = vshrl.u32 %v16026_v36, 16  ;;  %v16028_v41 = vshll.u32 %v16026_v36, 16 }
 0x16d   : > { %v6585_v15 = vrot.slane %v6583_v47, 4  ;;  %11120 = vmatmul.mubr.msk.bf16.gmra.mrb[20].mxu1 %vm688_vm3, %v9682_v33  ;;  %v6593_v34 = vor.u32 %v6592_v5, %v6589_v10  ;;  %v1981_v51 = vshrl.u32 %v1683_v46, 16  ;;  %v1984_v27 = vshll.u32 %v1683_v46, 16 }
 0x16e   : > { %v1975_v55 = vrot.slane %v16027_v8, 5  ;;  %v1976_v6 = vrot.slane %v16028_v41, 6  ;;  %v1973_v13 = vor.u32 %v1972_v53, %v1969_v56  ;;  %v6584_v22 = vsel %vm13712_vm10, %v6580_v25, %v6583_v47  ;;  %v1685_v56 = vld [vmem:[%s12495_s23 + $0xb0] sm:$0x3]  ;;  %v12260_v53 = vld [vmem:[%s12495_s23 + $0xa8] sm:$0xe] }
 0x16f   : > { %v6596_v50 = vshrl.u32 %v12258_v17, 16  ;;  %v6599_v2 = vshll.u32 %v12258_v17, 16  ;;  %v6594_v30 = vsel %vm13712_vm10, %v6585_v15, %v6593_v34  ;;  %v1983_v32 = vrot.slane %v1981_v51, 5  ;;  %v12169_v41 = vld [vmem:[%s12495_s23 + $0x24] sm:$0xff]  }
 0x170   : > { %v1977_v31 = vor.u32 %v1976_v6, %v1975_v55  ;;  %v1974_v11 = vrot.slane %v1973_v13, 4  ;;  %v1986_v18 = vrot.slane %v1984_v27, 6  ;;  %v10237_v39 = vcombine.low %v6584_v22, %v6594_v30  ;;  %v16034_v6 = vld [vmem:[#allocation23_spill] sm:$0xff] }
 0x171   : > { %v6598_v61 = vrot.slane %v6596_v50, 5  ;;  %v6601_v49 = vrot.slane %v6599_v2, 6  ;;  %v16029_v52 = vshrl.u32 %v13235_v37, 16  ;;  %v16030_v12 = vshll.u32 %v13235_v37, 16 }
 0x172   : > { %v1979_v23 = vrot.slane %v1977_v31, 4  ;;  %v1978_v20 = vsel %vm13712_vm10, %v1974_v11, %v1977_v31  ;;  %v1987_v54 = vor.u32 %v1986_v18, %v1983_v32  ;;  %11415 = vmatprep.mubr.msk.bf16.mxu0 %vm688_vm3, %v10237_v39  ;;  %v6610_v7 = vshrl.u32 %v10219_v48, 16 }
 0x173   : > { %v6604_v58 = vrot.slane %v16029_v52, 5  ;;  %v6605_v26 = vrot.slane %v16030_v12, 6  ;;  %v6602_v14 = vor.u32 %v6601_v49, %v6598_v61  ;;  %v6613_v0 = vshll.u32 %v10219_v48, 16  ;;  %v12261_v48 = vld [vmem:[%s12495_s23 + $0xb4] sm:$0xe] }
 0x174   : > { %v1990_v9 = vshrl.u32 %v12259_v19, 16  ;;  %v1988_v29 = vsel %vm13712_vm10, %v1979_v23, %v1987_v54  ;;  %v1993_v38 = vshll.u32 %v12259_v19, 16  ;;  %v16032_v62 = vshrl.u32 %v16031_v16, 16  ;;  %v14110_v61 = vld [vmem:[%s15694_s1 + $0x44] ss:$0 sps:$4 sm:$0x33]  }
 0x175   : > { %v6606_v43 = vor.u32 %v6605_v26, %v6604_v58  ;;  %v9683_v35 = vcombine.low %v1978_v20, %v1988_v29  ;;  %v6603_v37 = vrot.slane %v6602_v14, 4  ;;  %v6612_v60 = vrot.slane %v6610_v7, 5  ;;  %v1686_v58 = vld [vmem:[%s12495_s23 + $0xbc] sm:$0x3] }
 0x176   : > { %v1998_v57 = vrot.slane %v16032_v62, 5  ;;  %v6615_v3 = vrot.slane %v6613_v0, 6  ;;  %v1992_v21 = vrot.slane %v1990_v9, 5  ;;  %v1995_v24 = vrot.slane %v1993_v38, 6  ;;  %v16037_v29 = vld [vmem:[#allocation24_spill] sm:$0xff] }
 0x177   : > { %v6608_v4 = vrot.slane %v6606_v43, 4  ;;  %v16033_v40 = vshll.u32 %v16031_v16, 16  ;;  %11123 = vmatprep.mubr.msk.bf16.mxu1 %vm688_vm3, %v9683_v35  ;;  %v6607_v1 = vsel %vm13712_vm10, %v6603_v37, %v6606_v43  ;;  %v2004_v10 = vshrl.u32 %v1684_v42, 16  ;;  %v12193_v12 = vld [vmem:[%s15694_s1 + $0xa4] ss:$0 sps:$4 sm:$0x33]  }
 0x178   : > { %v6616_v47 = vor.u32 %v6615_v3, %v6612_v60  ;;  %v2007_v46 = vshll.u32 %v1684_v42, 16  ;;  %v1996_v33 = vor.u32 %v1995_v24, %v1992_v21  ;;  %v2013_v25 = vshrl.u32 %v12260_v53, 16  ;;  %v12171_v3 = vld [vmem:[%s12495_s23 + $0x3c] sm:$0xff]  }
 0x179   : > { %v1999_v59 = vrot.slane %v16033_v40, 6  ;;  %v2016_v15 = vshll.u32 %v12260_v53, 16  ;;  %v2006_v8 = vrot.slane %v2004_v10, 5  ;;  %v16035_v34 = vshrl.u32 %v16034_v6, 16 }
 0x17a   : > { %v6617_v36 = vsel %vm13712_vm10, %v6608_v4, %v6616_v47  ;;  %v2009_v55 = vrot.slane %v2007_v46, 6  ;;  %v1997_v27 = vrot.slane %v1996_v33, 4  ;;  %v2015_v31 = vrot.slane %v2013_v25, 5  ;;  %v10326_v4 = vld [vmem:[%s12495_s23 + $0x24] sm:$0xf] }
 0x17b   : > { %v2000_v5 = vor.u32 %v1999_v59, %v1998_v57  ;;  %v2021_v13 = vrot.slane %v16035_v34, 5  ;;  %v10238_v51 = vcombine.low %v6607_v1, %v6617_v36  ;;  %v2018_v50 = vrot.slane %v2016_v15, 6  ;;  %v12170_v57 = vld [vmem:[%s12495_s23 + $0x30] sm:$0xff]   ;;  %v14135_v1 = vld [vmem:[%s12495_s23 + $0x28] sm:$0xf] }
 0x17c   : > { %v2010_v17 = vor.u32 %v2009_v55, %v2006_v8  ;;  %v16036_v2 = vshll.u32 %v16034_v6, 16  ;;  %v2027_v11 = vshrl.u32 %v1685_v56, 16  ;;  %v2030_v18 = vshll.u32 %v1685_v56, 16  ;;  %v10329_v47 = vld [vmem:[%s12495_s23 + $0x30] sm:$0xf] }
 0x17d   : > { %v2002_v22 = vrot.slane %v2000_v5, 4  ;;  %11416 = vmatmul.mubr.msk.bf16.gmra.mrb[28].mxu0 %vm688_vm3, %v10238_v51  ;;  %v2001_v32 = vsel %vm13712_vm10, %v1997_v27, %v2000_v5  ;;  %v2036_v39 = vshrl.u32 %v12261_v48, 16  ;;  %v2039_v23 = vshll.u32 %v12261_v48, 16  ;;  %v10328_v56 = vld [vmem:[%s12495_s23 + $0x2c] sm:$0x1] }
 0x17e   : > { %v2022_v30 = vrot.slane %v16036_v2, 6  ;;  %11423 = vmatprep.mubr.msk.bf16.mxu0 %vm688_vm3, %v12169_v41  ;;  %v2019_v20 = vor.u32 %v2018_v50, %v2015_v31  ;;  %v2029_v52 = vrot.slane %v2027_v11, 5  ;;  %v2032_v14 = vrot.slane %v2030_v18, 6  ;;  %v14147_v34 = vld [vmem:[%s12495_s23 + $0x34] sm:$0xf]  ;;  %v12172_v50 = vld [vmem:[%s12495_s23 + $0xc] sm:$0xff]  }
 0x17f   : > { %v2011_v49 = vsel %vm13712_vm10, %v2002_v22, %v2010_v17  ;;  %v2038_v7 = vrot.slane %v2036_v39, 5  ;;  %v2041_v0 = vrot.slane %v2039_v23, 6  ;;  %v16038_v43 = vshrl.u32 %v16037_v29, 16  ;;  %v10331_v22 = vld [vmem:[%s12495_s23 + $0x38] sm:$0x1] }
 0x180   : > { %v2023_v54 = vor.u32 %v2022_v30, %v2021_v13  ;;  %v9684_v26 = vcombine.low %v2001_v32, %v2011_v49  ;;  %v2020_v19 = vrot.slane %v2019_v20, 4  ;;  %v16039_v38 = vshll.u32 %v16037_v29, 16  ;;  %v10332_v32 = vld [vmem:[%s12495_s23 + $0x3c] sm:$0xf]  ;;  %v14165_v49 = vld [vmem:[%s15694_s1 + $0xa8] sm:$0xff]   ;;  %v12177_v20 = vld [vmem:[%s12495_s23 + $0x54] sm:$0xff]  }
 0x181   : > { %v2044_v42 = vrot.slane %v16038_v43, 5  ;;  %v2033_v62 = vor.u32 %v2032_v14, %v2029_v52  ;;  %v2042_v35 = vor.u32 %v2041_v0, %v2038_v7  ;;  %v2050_v37 = vshrl.u32 %v1686_v58, 16  ;;  %v14173_v7 = vld [vmem:[%s12495_s23 + $0x40] sm:$0xf] }
 0x182   : > { %v2025_v9 = vrot.slane %v2023_v54, 4  ;;  %v2045_v16 = vrot.slane %v16039_v38, 6  ;;  %11124 = vmatmul.mubr.msk.bf16.gmra.mrb[24].mxu1 %vm688_vm3, %v9684_v26  ;;  %v2053_v60 = vshll.u32 %v1686_v58, 16  ;;  %v2024_v21 = vsel %vm13712_vm10, %v2020_v19, %v2023_v54  ;;  %16040 = vst [vmem:[#allocation8_spill] sm:$0xff] %v14173_v7  ;;  %v10334_v38 = vld [vmem:[%s12495_s23 + $0x44] sm:$0x1] }
 0x183   : > { %v14131_v40 = vsel %vm737_vm0, %v14110_v61, 0  ;;  %v7838_v59 = vsel %vm737_vm0, %v12193_v12, 0  ;;  %v2043_v46 = vrot.slane %v2042_v35, 4  ;;  %v2052_v33 = vrot.slane %v2050_v37, 5 }
 0x184   : > { %v2046_v24 = vor.u32 %v2045_v16, %v2044_v42  ;;  %v2034_v10 = vsel %vm13712_vm10, %v2025_v9, %v2033_v62  ;;  %v2055_v5 = vrot.slane %v2053_v60, 6  ;;  %v7345_v15 = vshrl.u32 %v10326_v4, 16  ;;  %v9774_v60 = vld [vmem:[%s12495_s23 + $0xc] sm:$0xf] }
 0x185   : > { %v9685_v53 = vcombine.low %v2024_v21, %v2034_v10  ;;  %v7348_v36 = vshll.u32 %v10326_v4, 16  ;;  %11424 = vmatmul.mubr.msk.bf16.vlgmr.msra.gmra.mrb[0].mxu0 %vm688_vm3, %v12170_v57  ;;  %v15840_v41 = vshll.u32 %v14135_v1, 16  ;;  %v15845_v6 = vshrl.u32 %v14135_v1, 16 }
 0x186   : > { %v2048_v25 = vrot.slane %v2046_v24, 4  ;;  %v2047_v8 = vsel %vm13712_vm10, %v2043_v46, %v2046_v24  ;;  %v2056_v55 = vor.u32 %v2055_v5, %v2052_v33  ;;  %11427 = vmatprep.mubr.msk.bf16.mxu0 %vm688_vm3, %v12171_v3  ;;  %v7347_v13 = vrot.slane %v7345_v15, 4  ;;  %11456 = vmatpush3.bf16.msra.mxu0 %v13993_v63  ;;  %v12174_v63 = vld [vmem:[%s12495_s23 + $0x48] sm:$0xff]   ;;  %v14195_v5 = vld [vmem:[%s12495_s23 + $0x10] sm:$0xf] }
 0x187   : > { %11127 = vmatprep.mubr.msk.bf16.mxu1 %vm688_vm3, %v9685_v53  ;;  %v7350_v51 = vrot.slane %v7348_v36, 5  ;;  %v7364_v27 = vshll.u32 %v10328_v56, 16  ;;  %v7369_v31 = vshrl.u32 %v10329_v47, 16  ;;  %v7356_v2 = vrot.slane %v15840_v41, 5  ;;  %12056 = vmatprep.subr.msk.bf16.mxu0 %vm737_vm0, %v12193_v12  ;;  %16042 = vst [vmem:[#allocation25_spill] sm:$0xff] %v14195_v5  ;;  %v12178_v56 = vld [vmem:[%s12495_s23 + $0x24] sm:$0xff]  }
 0x188   : > { %v2057_v17 = vsel %vm13712_vm10, %v2048_v25, %v2056_v55  ;;  %v7360_v30 = vrot.slane %v15845_v6, 4  ;;  %v7372_v11 = vshll.u32 %v10329_v47, 16  ;;  %v15837_v58 = vshll.u32 %v14147_v34, 16 }
 0x189   : > { %v9686_v18 = vcombine.low %v2047_v8, %v2057_v17  ;;  %v7351_v48 = vor.u32 %v7350_v51, %v7347_v13  ;;  %v7366_v39 = vrot.slane %v7364_v27, 5  ;;  %v7371_v23 = vrot.slane %v7369_v31, 4  ;;  %v10335_v8 = vld [vmem:[%s12495_s23 + $0x48] sm:$0xf]  ;;  %v9776_v27 = vld [vmem:[%s12495_s23 + $0x14] sm:$0x1] }
 0x18a   : > { %v7361_v54 = vor.u32 %v7360_v30, %v7356_v2  ;;  %v7374_v52 = vrot.slane %v7372_v11, 5  ;;  %v15838_v26 = vshrl.u32 %v14147_v34, 16  ;;  %v7388_v14 = vshll.u32 %v10331_v22, 16  ;;  %11458 = vmatpush3.bf16.msra.mxu0 %v7838_v59  ;;  %v12176_v59 = vld [vmem:[%s12495_s23 + $0x18] sm:$0xff]   ;;  %v12179_v31 = vld [vmem:[%s12495_s23 + $0x60] sm:$0xff]  }
 0x18b   : > { %11128 = vmatmul.mubr.msk.bf16.gmra.mrb[28].mxu1 %vm688_vm3, %v9686_v18  ;;  %v7352_v12 = vrot.slane %v7351_v48, 4  ;;  %v7393_v0 = vshrl.u32 %v10332_v32, 16  ;;  %v7396_v19 = vshll.u32 %v10332_v32, 16  ;;  %v7380_v43 = vrot.slane %v15837_v58, 5  ;;  %11491 = vmatprep.subr.bf16.mxu0 %v14165_v49  ;;  %v14212_v11 = vld [vmem:[%s12495_s23 + $0x4c] sm:$0xf] }
 0x18c   : > { %11135 = vmatprep.mubr.msk.bf16.mxu1 %vm688_vm3, %v12172_v50  ;;  %v7362_v9 = vrot.slane %v7361_v54, 4  ;;  %v7375_v29 = vor.u32 %v7374_v52, %v7371_v23  ;;  %v7384_v42 = vrot.slane %v15838_v26, 4  ;;  %v7390_v57 = vrot.slane %v7388_v14, 5  ;;  %16043 = vst [vmem:[#allocation27_spill] sm:$0xff] %v14212_v11  ;;  %v12181_v32 = vld [vmem:[%s12495_s23 + $0x6c] sm:$0xff]  }
 0x18d   : > { %v7357_v62 = vsel %vm12550_vm4, %v7352_v12, %v7356_v2  ;;  %v7395_v35 = vrot.slane %v7393_v0, 4  ;;  %v7398_v37 = vrot.slane %v7396_v19, 5  ;;  %11428 = vmatmul.mubr.msk.bf16.gmra.mrb[4].mxu0 %vm688_vm3, %v12174_v63  ;;  %v15827_v24 = vshll.u32 %v14173_v7, 16  ;;  %v10337_v0 = vld [vmem:[%s12495_s23 + $0x50] sm:$0x1] }
 0x18e   : > { %v7367_v3 = vsel %vm12550_vm4, %v7362_v9, %v7366_v39  ;;  %v7376_v4 = vrot.slane %v7375_v29, 4  ;;  %v7385_v21 = vor.u32 %v7384_v42, %v7380_v43  ;;  %11431 = vmatprep.mubr.msk.bf16.mxu0 %vm688_vm3, %v12177_v20  ;;  %v15828_v46 = vshrl.u32 %v14173_v7, 16  ;;  %v12267_v7 = vld [vmem:[%s12495_s23 + $0x44] sm:$0x1] }
 0x18f   : > { %v14191_v47 = vcombine.low %v7357_v62, %v7367_v3  ;;  %v7399_v10 = vor.u32 %v7398_v37, %v7395_v35  ;;  %v7412_v33 = vshll.u32 %v10334_v38, 16  ;;  %v7404_v15 = vrot.slane %v15827_v24, 5  ;;  %v9777_v38 = vld [vmem:[%s12495_s23 + $0x18] sm:$0xf]  ;;  %v12180_v62 = vld [vmem:[%s12495_s23 + $0x30] sm:$0xff]   ;;  %v16076_v44 = vld [vmem:[#allocation25_spill] sm:$0xff] }
 0x190   : > { %v7381_v53 = vsel %vm12550_vm4, %v7376_v4, %v7380_v43  ;;  %v7386_v25 = vrot.slane %v7385_v21, 4  ;;  %v2785_v36 = vshrl.u32 %v9774_v60, 16  ;;  %v7408_v13 = vrot.slane %v15828_v46, 4  ;;  %v14245_v3 = vld [vmem:[%s12495_s23 + $0x1c] sm:$0xf] }
 0x191   : > { %v7400_v55 = vrot.slane %v7399_v10, 4  ;;  %v7414_v51 = vrot.slane %v7412_v33, 5  ;;  %v2788_v22 = vshll.u32 %v9774_v60, 16  ;;  %v15823_v2 = vshll.u32 %v14195_v5, 16  ;;  %16044 = vst [vmem:[#allocation6_spill] sm:$0xff] %v14245_v3  ;;  %v12182_v4 = vld [vmem:[%s12495_s23 + $0x3c] sm:$0xff]  }
 0x192   : > { %v7391_v17 = vsel %vm12550_vm4, %v7386_v25, %v7390_v57  ;;  %v2787_v50 = vrot.slane %v2785_v36, 4  ;;  %v15826_v30 = vshrl.u32 %v14195_v5, 16  ;;  %v7409_v39 = vor.u32 %v7408_v13, %v7404_v15  ;;  %v9779_v25 = vld [vmem:[%s12495_s23 + $0x20] sm:$0x1] }
 0x193   : > { %11136 = vmatmul.mubr.msk.bf16.vlgmr.msra.gmra.mrb[0].mxu1 %vm688_vm3, %v12176_v59  ;;  %v14216_v18 = vcombine.low %v7381_v53, %v7391_v17  ;;  %v7405_v48 = vsel %vm12550_vm4, %v7400_v55, %v7404_v15  ;;  %v2790_v23 = vrot.slane %v2788_v22, 5  ;;  %v2796_v63 = vrot.slane %v15823_v2, 5  ;;  %v12185_v22 = vld [vmem:[%s12495_s23 + $0x84] sm:$0xff]  }
 0x194   : > { %11168 = vmatpush3.bf16.msra.mxu1 %v13988_v28  ;;  %11139 = vmatprep.mubr.msk.bf16.mxu1 %vm688_vm3, %v12178_v56  ;;  %v2800_v20 = vrot.slane %v15826_v30, 4  ;;  %v2804_v54 = vshll.u32 %v9776_v27, 16  ;;  %v7417_v52 = vshrl.u32 %v10335_v8, 16  ;;  %v7410_v12 = vrot.slane %v7409_v39, 4  ;;  %v14231_v28 = vld [vmem:[%s15694_s1 + $0x48] sm:$0xff]  }
 0x195   : > { %12048 = vmatprep.subr.msk.bf16.mxu1 %vm737_vm0, %v14110_v61  ;;  %v2791_v14 = vor.u32 %v2790_v23, %v2787_v50  ;;  %v7420_v19 = vshll.u32 %v10335_v8, 16  ;;  %v15813_v9 = vshll.u32 %v14212_v11, 16  ;;  %11432 = vmatmul.mubr.msk.bf16.gmra.mrb[8].mxu0 %vm688_vm3, %v12179_v31  ;;  %v15816_v61 = vshrl.u32 %v14212_v11, 16  ;;  %v10338_v27 = vld [vmem:[%s12495_s23 + $0x54] sm:$0xf] }
 0x196   : > { %v2801_v29 = vor.u32 %v2800_v20, %v2796_v63  ;;  %v2806_v43 = vrot.slane %v2804_v54, 5  ;;  %v7419_v42 = vrot.slane %v7417_v52, 4  ;;  %11435 = vmatprep.mubr.msk.bf16.mxu0 %vm688_vm3, %v12181_v32  ;;  %v7415_v57 = vsel %vm12550_vm4, %v7410_v12, %v7414_v51  ;;  %v10340_v12 = vld [vmem:[%s12495_s23 + $0x5c] sm:$0x1]  ;;  %v14895_v11 = vld [vmem:[%s12495_s23 + $0x48] sm:$0xe] }
 0x197   : > { %v2792_v35 = vrot.slane %v2791_v14, 4  ;;  %v7422_v37 = vrot.slane %v7420_v19, 5  ;;  %v7428_v60 = vrot.slane %v15813_v9, 5  ;;  %v14249_v21 = vcombine.low %v7405_v48, %v7415_v57  ;;  %v14267_v48 = vld [vmem:[%s12495_s23 + $0x58] sm:$0xf] }
 0x198   : > { %11170 = vmatpush3.bf16.msra.mxu1 %v14131_v40  ;;  %v2802_v59 = vrot.slane %v2801_v29, 4  ;;  %v7432_v10 = vrot.slane %v15816_v61, 4  ;;  %v7436_v33 = vshll.u32 %v10337_v0, 16  ;;  %v2809_v15 = vshrl.u32 %v9777_v38, 16  ;;  %v12183_v40 = vld [vmem:[%s12495_s23 + $0x78] sm:$0xff]   ;;  %16045 = vst [vmem:[#allocation7_spill] sm:$0xff] %v14267_v48 }
 0x199   : > { %v2797_v56 = vsel %vm12550_vm4, %v2792_v35, %v2796_v63  ;;  %11203 = vmatprep.subr.bf16.mxu1 %v14231_v28  ;;  %v7423_v53 = vor.u32 %v7422_v37, %v7419_v42  ;;  %v2812_v36 = vshll.u32 %v9777_v38, 16  ;;  %v15808_v51 = vshll.u32 %v14245_v3, 16  ;;  %v9780_v38 = vld [vmem:[%s12495_s23 + $0x24] sm:$0xf] }
 0x19a   : > { %v2807_v8 = vsel %vm12550_vm4, %v2802_v59, %v2806_v43  ;;  %v7433_v55 = vor.u32 %v7432_v10, %v7428_v60  ;;  %v7438_v13 = vrot.slane %v7436_v33, 5  ;;  %v2811_v50 = vrot.slane %v2809_v15, 4  ;;  %v12186_v59 = vld [vmem:[%s12495_s23 + $0x54] sm:$0xff]  }
 0x19b   : > { %11140 = vmatmul.mubr.msk.bf16.gmra.mrb[4].mxu1 %vm688_vm3, %v12180_v62  ;;  %v14264_v31 = vcombine.low %v2797_v56, %v2807_v8  ;;  %v7424_v17 = vrot.slane %v7423_v53, 4  ;;  %v2814_v32 = vrot.slane %v2812_v36, 5  ;;  %v2820_v23 = vrot.slane %v15808_v51, 5  ;;  %v12184_v62 = vld [vmem:[%s12495_s23 + $0x48] sm:$0xff]  }
 0x19c   : > { %11143 = vmatprep.mubr.msk.bf16.mxu1 %vm688_vm3, %v12182_v4  ;;  %v7434_v39 = vrot.slane %v7433_v55, 4  ;;  %v15811_v63 = vshrl.u32 %v14245_v3, 16  ;;  %v2828_v20 = vshll.u32 %v9779_v25, 16  ;;  %v7441_v14 = vshrl.u32 %v10338_v27, 16  ;;  %v14288_v4 = vld [vmem:[%s12495_s23 + $0x28] sm:$0xf] }
 0x19d   : > { %v7429_v54 = vsel %vm12550_vm4, %v7424_v17, %v7428_v60  ;;  %v2815_v52 = vor.u32 %v2814_v32, %v2811_v50  ;;  %v7444_v0 = vshll.u32 %v10338_v27, 16  ;;  %11436 = vmatmul.mubr.msk.bf16.gmra.mrb[12].mxu0 %vm688_vm3, %v12183_v40  ;;  %v15806_v42 = vshll.u32 %v14267_v48, 16  ;;  %16046 = vst [vmem:[#allocation11_spill] sm:$0xff] %v14288_v4  ;;  %v9782_v36 = vld [vmem:[%s12495_s23 + $0x2c] sm:$0x1]  ;;  %v12187_v55 = vld [vmem:[%s12495_s23 + $0x90] sm:$0xff]  }
 0x19e   : > { %v7439_v19 = vsel %vm12550_vm4, %v7434_v39, %v7438_v13  ;;  %v2824_v29 = vrot.slane %v15811_v63, 4  ;;  %v2830_v43 = vrot.slane %v2828_v20, 5  ;;  %11439 = vmatprep.mubr.msk.bf16.mxu0 %vm688_vm3, %v12185_v22  ;;  %v7443_v37 = vrot.slane %v7441_v14, 4  ;;  %v12189_v13 = vld [vmem:[%s12495_s23 + $0x9c] sm:$0xff]   ;;  %v14416_v51 = vld [vmem:[%s12495_s23 + $0x4c] sm:$0xf] }
 0x19f   : > { %v14285_v57 = vcombine.low %v7429_v54, %v7439_v19  ;;  %v2816_v35 = vrot.slane %v2815_v52, 4  ;;  %v7446_v60 = vrot.slane %v7444_v0, 5  ;;  %v7452_v33 = vrot.slane %v15806_v42, 5  ;;  %v10341_v54 = vld [vmem:[%s12495_s23 + $0x60] sm:$0xf]  ;;  %16052 = vst [vmem:[#allocation14_spill] sm:$0xff] %v14416_v51 }
 0x1a0   : > { %v2825_v10 = vor.u32 %v2824_v29, %v2820_v23  ;;  %v15807_v56 = vshrl.u32 %v14267_v48, 16  ;;  %v7460_v53 = vshll.u32 %v10340_v12, 16  ;;  %v2833_v40 = vshrl.u32 %v9780_v38, 16  ;;  %v14311_v19 = vld [vmem:[%s12495_s23 + $0x64] sm:$0xf]  ;;  %v12200_v42 = vld [vmem:[%s12495_s23 + $0x9c] sm:$0xff]  }
 0x1a1   : > { %v2821_v25 = vsel %vm12550_vm4, %v2816_v35, %v2820_v23  ;;  %v7447_v15 = vor.u32 %v7446_v60, %v7443_v37  ;;  %v2836_v8 = vshll.u32 %v9780_v38, 16  ;;  %v15801_v50 = vshll.u32 %v14288_v4, 16  ;;  %16047 = vst [vmem:[#allocation10_spill] sm:$0xff] %v14311_v19  ;;  %v10343_v37 = vld [vmem:[%s12495_s23 + $0x68] sm:$0x1] }
 0x1a2   : > { %v2826_v27 = vrot.slane %v2825_v10, 4  ;;  %v7456_v22 = vrot.slane %v15807_v56, 4  ;;  %v7462_v17 = vrot.slane %v7460_v53, 5  ;;  %v2835_v39 = vrot.slane %v2833_v40, 4  ;;  %v12188_v53 = vld [vmem:[%s12495_s23 + $0x60] sm:$0xff]  }
 0x1a3   : > { %11144 = vmatmul.mubr.msk.bf16.gmra.mrb[8].mxu1 %vm688_vm3, %v12184_v62  ;;  %v7448_v32 = vrot.slane %v7447_v15, 4  ;;  %v2838_v23 = vrot.slane %v2836_v8, 5  ;;  %v15802_v20 = vshrl.u32 %v14288_v4, 16  ;;  %v2844_v14 = vrot.slane %v15801_v50, 5  ;;  %v9783_v40 = vld [vmem:[%s12495_s23 + $0x30] sm:$0xf] }
 0x1a4   : > { %11147 = vmatprep.mubr.msk.bf16.mxu1 %vm688_vm3, %v12186_v59  ;;  %v2831_v52 = vsel %vm12550_vm4, %v2826_v27, %v2830_v43  ;;  %v7457_v12 = vor.u32 %v7456_v22, %v7452_v33  ;;  %v2852_v0 = vshll.u32 %v9782_v36, 16  ;;  %v7465_v59 = vshrl.u32 %v10341_v54, 16  ;;  %v12190_v8 = vld [vmem:[%s12495_s23 + $0x6c] sm:$0xff]   ;;  %v14833_v4 = vld [vmem:[%s12495_s23 + $0xb8] sm:$0xf] }
 0x1a5   : > { %v14313_v29 = vcombine.low %v2821_v25, %v2831_v52  ;;  %v7453_v38 = vsel %vm12550_vm4, %v7448_v32, %v7452_v33  ;;  %v2839_v62 = vor.u32 %v2838_v23, %v2835_v39  ;;  %v2848_v35 = vrot.slane %v15802_v20, 4  ;;  %11440 = vmatmul.mubr.msk.bf16.gmra.mrb[16].mxu0 %vm688_vm3, %v12187_v55  ;;  %v14330_v39 = vld [vmem:[%s12495_s23 + $0x34] sm:$0xf]  ;;  %v12199_v50 = vld [vmem:[%s12495_s23 + $0xcc] sm:$0xff]  }
 0x1a6   : > { %v7458_v43 = vrot.slane %v7457_v12, 4  ;;  %v2854_v60 = vrot.slane %v2852_v0, 5  ;;  %v7468_v10 = vshll.u32 %v10341_v54, 16  ;;  %11443 = vmatprep.mubr.msk.bf16.mxu0 %vm688_vm3, %v12189_v13  ;;  %v15798_v33 = vshll.u32 %v14311_v19, 16  ;;  %16048 = vst [vmem:[#allocation12_spill] sm:$0xff] %v14330_v39  ;;  %v12192_v12 = vld [vmem:[%s12495_s23 + $0xa8] sm:$0xff]  }
 0x1a7   : > { %v2840_v25 = vrot.slane %v2839_v62, 4  ;;  %v2849_v15 = vor.u32 %v2848_v35, %v2844_v14  ;;  %v15800_v36 = vshrl.u32 %v14311_v19, 16  ;;  %v7467_v27 = vrot.slane %v7465_v59, 4  ;;  %v9785_v35 = vld [vmem:[%s12495_s23 + $0x38] sm:$0x1] }
 0x1a8   : > { %v7463_v55 = vsel %vm12550_vm4, %v7458_v43, %v7462_v17  ;;  %v7470_v22 = vrot.slane %v7468_v10, 5  ;;  %v7484_v32 = vshll.u32 %v10343_v37, 16  ;;  %v7476_v52 = vrot.slane %v15798_v33, 5  ;;  %v10346_v33 = vld [vmem:[%s12495_s23 + $0x74] sm:$0x1] }
 0x1a9   : > { %v14332_v13 = vcombine.low %v7453_v38, %v7463_v55  ;;  %v2845_v23 = vsel %vm12550_vm4, %v2840_v25, %v2844_v14  ;;  %v2850_v54 = vrot.slane %v2849_v15, 4  ;;  %v7480_v17 = vrot.slane %v15800_v36, 4  ;;  %v12195_v38 = vld [vmem:[%s12495_s23 + $0xb4] sm:$0xff]   ;;  %v10344_v25 = vld [vmem:[%s12495_s23 + $0x6c] sm:$0xf] }
 0x1aa   : > { %v7471_v0 = vor.u32 %v7470_v22, %v7467_v27  ;;  %v7486_v62 = vrot.slane %v7484_v32, 5  ;;  %v2857_v37 = vshrl.u32 %v9783_v40, 16  ;;  %v2860_v14 = vshll.u32 %v9783_v40, 16  ;;  %v14889_v3 = vld [vmem:[%s12495_s23 + $0xc] sm:$0xe] }
 0x1ab   : > { %11148 = vmatmul.mubr.msk.bf16.gmra.mrb[12].mxu1 %vm688_vm3, %v12188_v53  ;;  %v2855_v43 = vsel %vm12550_vm4, %v2850_v54, %v2854_v60  ;;  %v15797_v59 = vshll.u32 %v14330_v39, 16  ;;  %v15799_v10 = vshrl.u32 %v14330_v39, 16  ;;  %v7481_v27 = vor.u32 %v7480_v17, %v7476_v52  ;;  %v14353_v53 = vld [vmem:[%s12495_s23 + $0x70] sm:$0xf] }
 0x1ac   : > { %11151 = vmatprep.mubr.msk.bf16.mxu1 %vm688_vm3, %v12190_v8  ;;  %v14350_v15 = vcombine.low %v2845_v23, %v2855_v43  ;;  %v7472_v55 = vrot.slane %v7471_v0, 4  ;;  %v2859_v22 = vrot.slane %v2857_v37, 4  ;;  %16049 = vst [vmem:[#allocation26_spill] sm:$0xff] %v14353_v53  ;;  %v2862_v32 = vrot.slane %v2860_v14, 5  ;;  %v12194_v8 = vld [vmem:[%s12495_s23 + $0x78] sm:$0xff]  }
 0x1ad   : > { %v2868_v60 = vrot.slane %v15797_v59, 5  ;;  %v2872_v40 = vrot.slane %v15799_v10, 4  ;;  %v2876_v54 = vshll.u32 %v9785_v35, 16  ;;  %11444 = vmatmul.mubr.msk.bf16.gmra.mrb[20].mxu0 %vm688_vm3, %v12192_v12  ;;  %v7482_v0 = vrot.slane %v7481_v27, 4  ;;  %v9786_v10 = vld [vmem:[%s12495_s23 + $0x3c] sm:$0xf] }
 0x1ae   : > { %v7477_v23 = vsel %vm12550_vm4, %v7472_v55, %v7476_v52  ;;  %v7489_v17 = vshrl.u32 %v10344_v25, 16  ;;  %v7492_v37 = vshll.u32 %v10344_v25, 16  ;;  %11447 = vmatprep.mubr.msk.bf16.mxu0 %vm688_vm3, %v12195_v38  ;;  %v2863_v43 = vor.u32 %v2862_v32, %v2859_v22  ;;  %v12196_v12 = vld [vmem:[%s12495_s23 + $0x84] sm:$0xff]   ;;  %v14372_v27 = vld [vmem:[%s12495_s23 + $0x40] sm:$0xf] }
 0x1af   : > { %v2873_v14 = vor.u32 %v2872_v40, %v2868_v60  ;;  %v2878_v59 = vrot.slane %v2876_v54, 5  ;;  %v15803_v35 = vshll.u32 %v14353_v53, 16  ;;  %v7487_v36 = vsel %vm12550_vm4, %v7482_v0, %v7486_v62  ;;  %16050 = vst [vmem:[#allocation5_spill] sm:$0xff] %v14372_v27  ;;  %v12197_v54 = vld [vmem:[%s12495_s23 + $0xc0] sm:$0xff]  }
 0x1b0   : > { %v7491_v52 = vrot.slane %v7489_v17, 4  ;;  %v7494_v55 = vrot.slane %v7492_v37, 5  ;;  %v15804_v25 = vshrl.u32 %v14353_v53, 16  ;;  %v14374_v38 = vcombine.low %v7477_v23, %v7487_v36  ;;  %v9788_v37 = vld [vmem:[%s12495_s23 + $0x44] sm:$0x1] }
 0x1b1   : > { %v2864_v22 = vrot.slane %v2863_v43, 4  ;;  %v2874_v32 = vrot.slane %v2873_v14, 4  ;;  %v7500_v40 = vrot.slane %v15803_v35, 5  ;;  %v7508_v0 = vshll.u32 %v10346_v33, 16 }
 0x1b2   : > { %v7495_v20 = vor.u32 %v7494_v55, %v7491_v52  ;;  %v7504_v62 = vrot.slane %v15804_v25, 4  ;;  %v2881_v17 = vshrl.u32 %v9786_v10, 16  ;;  %v2884_v43 = vshll.u32 %v9786_v10, 16  ;;  %v10347_v52 = vld [vmem:[%s12495_s23 + $0x78] sm:$0xf] }
 0x1b3   : > { %11152 = vmatmul.mubr.msk.bf16.gmra.mrb[16].mxu1 %vm688_vm3, %v12194_v8  ;;  %v2869_v36 = vsel %vm12550_vm4, %v2864_v22, %v2868_v60  ;;  %v2879_v23 = vsel %vm12550_vm4, %v2874_v32, %v2878_v59  ;;  %v15805_v14 = vshll.u32 %v14372_v27, 16  ;;  %v7510_v8 = vrot.slane %v7508_v0, 5  ;;  %v14394_v25 = vld [vmem:[%s12495_s23 + $0x7c] sm:$0xf] }
 0x1b4   : > { %11155 = vmatprep.mubr.msk.bf16.mxu1 %vm688_vm3, %v12196_v12  ;;  %v14391_v55 = vcombine.low %v2869_v36, %v2879_v23  ;;  %v7496_v33 = vrot.slane %v7495_v20, 4  ;;  %v7505_v35 = vor.u32 %v7504_v62, %v7500_v40  ;;  %16051 = vst [vmem:[#allocation13_spill] sm:$0xff] %v14394_v25  ;;  %v2883_v60 = vrot.slane %v2881_v17, 4  ;;  %v10349_v62 = vld [vmem:[%s12495_s23 + $0x80] sm:$0x1]  ;;  %v12198_v36 = vld [vmem:[%s12495_s23 + $0x90] sm:$0xff]  }
 0x1b5   : > { %v2886_v22 = vrot.slane %v2884_v43, 5  ;;  %v2892_v59 = vrot.slane %v15805_v14, 5  ;;  %v15809_v10 = vshrl.u32 %v14372_v27, 16  ;;  %11448 = vmatmul.mubr.msk.bf16.gmra.mrb[24].mxu0 %vm688_vm3, %v12197_v54  ;;  %v2900_v20 = vshll.u32 %v9788_v37, 16  ;;  %v9789_v54 = vld [vmem:[%s12495_s23 + $0x48] sm:$0xf] }
 0x1b6   : > { %v7501_v12 = vsel %vm12550_vm4, %v7496_v33, %v7500_v40  ;;  %v7506_v32 = vrot.slane %v7505_v35, 4  ;;  %v7513_v0 = vshrl.u32 %v10347_v52, 16  ;;  %11451 = vmatprep.mubr.msk.bf16.mxu0 %vm688_vm3, %v12199_v50  ;;  %v7516_v43 = vshll.u32 %v10347_v52, 16  ;;  %v12201_v52 = vld [vmem:[%s12495_s23 + $0xd8] sm:$0xff]  }
 0x1b7   : > { %v2887_v17 = vor.u32 %v2886_v22, %v2883_v60  ;;  %v2896_v23 = vrot.slane %v15809_v10, 4  ;;  %v15810_v14 = vshll.u32 %v14394_v25, 16  ;;  %v2902_v40 = vrot.slane %v2900_v20, 5 }
 0x1b8   : > { %v7511_v35 = vsel %vm12550_vm4, %v7506_v32, %v7510_v8  ;;  %v7515_v37 = vrot.slane %v7513_v0, 4  ;;  %v15812_v33 = vshrl.u32 %v14394_v25, 16  ;;  %v7518_v22 = vrot.slane %v7516_v43, 5 }
 0x1b9   : > { %v14413_v56 = vcombine.low %v7501_v12, %v7511_v35  ;;  %v2888_v50 = vrot.slane %v2887_v17, 4  ;;  %v2897_v60 = vor.u32 %v2896_v23, %v2892_v59  ;;  %v7524_v10 = vrot.slane %v15810_v14, 5  ;;  %v9791_v23 = vld [vmem:[%s12495_s23 + $0x50] sm:$0x1] }
 0x1ba   : > { %v7528_v8 = vrot.slane %v15812_v33, 4  ;;  %v7532_v32 = vshll.u32 %v10349_v62, 16  ;;  %v2905_v20 = vshrl.u32 %v9789_v54, 16  ;;  %v7519_v17 = vor.u32 %v7518_v22, %v7515_v37  ;;  %v10350_v62 = vld [vmem:[%s12495_s23 + $0x84] sm:$0xf] }
 0x1bb   : > { %11156 = vmatmul.mubr.msk.bf16.gmra.mrb[20].mxu1 %vm688_vm3, %v12198_v36  ;;  %v2893_v12 = vsel %vm12550_vm4, %v2888_v50, %v2892_v59  ;;  %v2898_v0 = vrot.slane %v2897_v60, 4  ;;  %v2908_v43 = vshll.u32 %v9789_v54, 16  ;;  %v15814_v33 = vshll.u32 %v14416_v51, 16  ;;  %v14434_v50 = vld [vmem:[%s12495_s23 + $0x88] sm:$0xf] }
 0x1bc   : > { %11159 = vmatprep.mubr.msk.bf16.mxu1 %vm688_vm3, %v12200_v42  ;;  %v7529_v35 = vor.u32 %v7528_v8, %v7524_v10  ;;  %v7534_v14 = vrot.slane %v7532_v32, 5  ;;  %v2907_v63 = vrot.slane %v2905_v20, 4  ;;  %v7520_v9 = vrot.slane %v7519_v17, 4  ;;  %16053 = vst [vmem:[#allocation15_spill] sm:$0xff] %v14434_v50  ;;  %v12202_v8 = vld [vmem:[%s12495_s23 + $0xa8] sm:$0xff]  }
 0x1bd   : > { %v2903_v36 = vsel %vm12550_vm4, %v2898_v0, %v2902_v40  ;;  %v2910_v59 = vrot.slane %v2908_v43, 5  ;;  %v15815_v37 = vshrl.u32 %v14416_v51, 16  ;;  %11452 = vmatmul.mubr.msk.bf16.gmra.mrb[28].mxu0 %vm688_vm3, %v12201_v52  ;;  %v2916_v60 = vrot.slane %v15814_v33, 5  ;;  %v10352_v20 = vld [vmem:[%s12495_s23 + $0x8c] sm:$0x1]  ;;  %v12203_v0 = vld [vmem:[%s12495_s23 + $0xb4] sm:$0xff]  }
 0x1be   : > { %v14437_v42 = vcombine.low %v2893_v12, %v2903_v36  ;;  %v7530_v54 = vrot.slane %v7529_v35, 4  ;;  %v2924_v22 = vshll.u32 %v9791_v23, 16  ;;  %11459 = vmatprep.mubr.msk.bf16.mxu0 %vm688_vm3, %v14191_v47  ;;  %v7525_v40 = vsel %vm12550_vm4, %v7520_v9, %v7524_v10  ;;  %v9792_v47 = vld [vmem:[%s12495_s23 + $0x54] sm:$0xf] }
 0x1bf   : > { %v2911_v32 = vor.u32 %v2910_v59, %v2907_v63  ;;  %v2920_v52 = vrot.slane %v15815_v37, 4  ;;  %v7537_v12 = vshrl.u32 %v10350_v62, 16  ;;  %v7540_v43 = vshll.u32 %v10350_v62, 16  ;;  %v14457_v59 = vld [vmem:[%s12495_s23 + $0x58] sm:$0xf] }
 0x1c0   : > { %v7535_v17 = vsel %vm12550_vm4, %v7530_v54, %v7534_v14  ;;  %v2926_v23 = vrot.slane %v2924_v22, 5  ;;  %v15817_v35 = vshll.u32 %v14434_v50, 16  ;;  %16054 = vst [vmem:[#allocation16_spill] sm:$0xff] %v14457_v59  ;;  %v15818_v61 = vshrl.u32 %v14434_v50, 16  ;;  %v9794_v54 = vld [vmem:[%s12495_s23 + $0x5c] sm:$0x1] }
 0x1c1   : > { %v14454_v36 = vcombine.low %v7525_v40, %v7535_v17  ;;  %v2912_v9 = vrot.slane %v2911_v32, 4  ;;  %v2921_v63 = vor.u32 %v2920_v52, %v2916_v60  ;;  %v7539_v10 = vrot.slane %v7537_v12, 4  ;;  %v10353_v52 = vld [vmem:[%s12495_s23 + $0x90] sm:$0xf] }
 0x1c2   : > { %v7542_v33 = vrot.slane %v7540_v43, 5  ;;  %v7548_v37 = vrot.slane %v15817_v35, 5  ;;  %v7556_v14 = vshll.u32 %v10352_v20, 16  ;;  %v2929_v40 = vshrl.u32 %v9792_v47, 16 }
 0x1c3   : > { %11160 = vmatmul.mubr.msk.bf16.gmra.mrb[24].mxu1 %vm688_vm3, %v12202_v8  ;;  %v2917_v62 = vsel %vm12550_vm4, %v2912_v9, %v2916_v60  ;;  %v2922_v22 = vrot.slane %v2921_v63, 4  ;;  %v2932_v32 = vshll.u32 %v9792_v47, 16  ;;  %v7552_v17 = vrot.slane %v15818_v61, 4  ;;  %v14474_v8 = vld [vmem:[%s15694_s1 + $0xb0] ss:$0 sps:$4 sm:$0x33]  }
 0x1c4   : > { %11163 = vmatprep.mubr.msk.bf16.mxu1 %vm688_vm3, %v12203_v0  ;;  %v7543_v12 = vor.u32 %v7542_v33, %v7539_v10  ;;  %v7558_v43 = vrot.slane %v7556_v14, 5  ;;  %v15819_v20 = vshll.u32 %v14457_v59, 16  ;;  %v2931_v47 = vrot.slane %v2929_v40, 4  ;;  %v14480_v33 = vld [vmem:[%s12495_s23 + $0x94] sm:$0xf]  ;;  %v12204_v61 = vld [vmem:[%s12495_s23 + $0xc0] sm:$0xff]  }
 0x1c5   : > { %v2927_v60 = vsel %vm12550_vm4, %v2922_v22, %v2926_v23  ;;  %v2934_v9 = vrot.slane %v2932_v32, 5  ;;  %v15820_v0 = vshrl.u32 %v14457_v59, 16  ;;  %16055 = vst [vmem:[#allocation17_spill] sm:$0xff] %v14480_v33  ;;  %11460 = vmatmul.mubr.msk.bf16.vlgmr.msra.gmra.mrb[0].mxu0 %vm688_vm3, %v14216_v18  ;;  %v7553_v14 = vor.u32 %v7552_v17, %v7548_v37 }
 0x1c6   : > { %v14484_v63 = vcombine.low %v2917_v62, %v2927_v60  ;;  %v7544_v10 = vrot.slane %v7543_v12, 4  ;;  %v2940_v35 = vrot.slane %v15819_v20, 5  ;;  %11463 = vmatprep.mubr.msk.bf16.mxu0 %vm688_vm3, %v14249_v21  ;;  %11492 = vmatpush3.bf16.msra.mxu0 %v14165_v49  ;;  %v2948_v40 = vshll.u32 %v9794_v54, 16  ;;  %v14497_v12 = vld [vmem:[%s12495_s23 + $0x98] sm:$0x1] }
 0x1c7   : > { %v2935_v23 = vor.u32 %v2934_v9, %v2931_v47  ;;  %v2944_v22 = vrot.slane %v15820_v0, 4  ;;  %v7561_v18 = vshrl.u32 %v10353_v52, 16  ;;  %v7554_v32 = vrot.slane %v7553_v14, 4  ;;  %12057 = vmatprep.subr.msk.bf16.mxu0 %vm737_vm0, %v14474_v8  ;;  %v9795_v54 = vld [vmem:[%s12495_s23 + $0x60] sm:$0xf] }
 0x1c8   : > { %v7549_v62 = vsel %vm12550_vm4, %v7544_v10, %v7548_v37  ;;  %v7564_v17 = vshll.u32 %v10353_v52, 16  ;;  %v15821_v60 = vshll.u32 %v14480_v33, 16  ;;  %v2950_v47 = vrot.slane %v2948_v40, 5  ;;  %v14509_v10 = vld [vmem:[%s12495_s23 + $0x64] sm:$0xf] }
 0x1c9   : > { %v2936_v49 = vrot.slane %v2935_v23, 4  ;;  %v2945_v21 = vor.u32 %v2944_v22, %v2940_v35  ;;  %v7563_v9 = vrot.slane %v7561_v18, 4  ;;  %v7559_v20 = vsel %vm12550_vm4, %v7554_v32, %v7558_v43  ;;  %v14522_v32 = vld [vmem:[%s12495_s23 + $0x68] sm:$0x1] }
 0x1ca   : > { %v7566_v0 = vrot.slane %v7564_v17, 5  ;;  %v7572_v37 = vrot.slane %v15821_v60, 5  ;;  %v15822_v52 = vshrl.u32 %v14480_v33, 16  ;;  %v14512_v14 = vcombine.low %v7549_v62, %v7559_v20 }
 0x1cb   : > { %11164 = vmatmul.mubr.msk.bf16.gmra.mrb[28].mxu1 %vm688_vm3, %v12204_v61  ;;  %v2941_v23 = vsel %vm12550_vm4, %v2936_v49, %v2940_v35  ;;  %v2946_v22 = vrot.slane %v2945_v21, 4  ;;  %v7580_v40 = vshll.u32 %v14497_v12, 16  ;;  %v2953_v17 = vshrl.u32 %v9795_v54, 16  ;;  %v10356_v21 = vld [vmem:[%s12495_s23 + $0x9c] sm:$0xf] }
 0x1cc   : > { %11171 = vmatprep.mubr.msk.bf16.mxu1 %vm688_vm3, %v14264_v31  ;;  %v7567_v43 = vor.u32 %v7566_v0, %v7563_v9  ;;  %v7576_v18 = vrot.slane %v15822_v52, 4  ;;  %v2956_v61 = vshll.u32 %v9795_v54, 16  ;;  %v15824_v62 = vshll.u32 %v14509_v10, 16  ;;  %v14534_v54 = vld [vmem:[%s12495_s23 + $0xa0] sm:$0xf] }
 0x1cd   : > { %v2951_v20 = vsel %vm12550_vm4, %v2946_v22, %v2950_v47  ;;  %v7582_v35 = vrot.slane %v7580_v40, 5  ;;  %v15825_v49 = vshrl.u32 %v14509_v10, 16  ;;  %11464 = vmatmul.mubr.msk.bf16.gmra.mrb[4].mxu0 %vm688_vm3, %v14285_v57  ;;  %v2955_v60 = vrot.slane %v2953_v17, 4  ;;  %v9798_v52 = vld [vmem:[%s12495_s23 + $0x6c] sm:$0xf] }
 0x1ce   : > { %v14531_v31 = vcombine.low %v2941_v23, %v2951_v20  ;;  %v7568_v0 = vrot.slane %v7567_v43, 4  ;;  %v7577_v9 = vor.u32 %v7576_v18, %v7572_v37  ;;  %11467 = vmatprep.mubr.msk.bf16.mxu0 %vm688_vm3, %v14332_v13  ;;  %v2958_v47 = vrot.slane %v2956_v61, 5  ;;  %v14544_v23 = vld [vmem:[%s12495_s23 + $0xa4] sm:$0x1] }
 0x1cf   : > { %v2964_v22 = vrot.slane %v15824_v62, 5  ;;  %v2968_v40 = vrot.slane %v15825_v49, 4  ;;  %v2972_v57 = vshll.u32 %v14522_v32, 16  ;;  %v7585_v17 = vshrl.u32 %v10356_v21, 16 }
 0x1d0   : > { %v7573_v43 = vsel %vm12550_vm4, %v7568_v0, %v7572_v37  ;;  %v7578_v18 = vrot.slane %v7577_v9, 4  ;;  %v7588_v20 = vshll.u32 %v10356_v21, 16  ;;  %v2959_v13 = vor.u32 %v2958_v47, %v2955_v60  ;;  %v14553_v49 = vld [vmem:[%s15694_s1 + $0x50] ss:$0 sps:$4 sm:$0x33]  }
 0x1d1   : > { %v2969_v61 = vor.u32 %v2968_v40, %v2964_v22  ;;  %v2974_v2 = vrot.slane %v2972_v57, 5  ;;  %v15830_v62 = vshll.u32 %v14534_v54, 16  ;;  %v7587_v24 = vrot.slane %v7585_v17, 4  ;;  %v14559_v21 = vld [vmem:[%s12495_s23 + $0x70] sm:$0xf] }
 0x1d2   : > { %v7583_v30 = vsel %vm12550_vm4, %v7578_v18, %v7582_v35  ;;  %v7590_v46 = vrot.slane %v7588_v20, 5  ;;  %v15836_v37 = vshrl.u32 %v14534_v54, 16  ;;  %v2960_v0 = vrot.slane %v2959_v13, 4  ;;  %v14578_v18 = vld [vmem:[%s12495_s23 + $0x74] sm:$0x1] }
 0x1d3   : > { %11172 = vmatmul.mubr.msk.bf16.vlgmr.msra.gmra.mrb[0].mxu1 %vm688_vm3, %v14313_v29  ;;  %v14563_v60 = vcombine.low %v7573_v43, %v7583_v30  ;;  %v2970_v9 = vrot.slane %v2969_v61, 4  ;;  %v7596_v47 = vrot.slane %v15830_v62, 5  ;;  %v7604_v29 = vshll.u32 %v14544_v23, 16 }
 0x1d4   : > { %11204 = vmatpush3.bf16.msra.mxu1 %v14231_v28  ;;  %11175 = vmatprep.mubr.msk.bf16.mxu1 %vm688_vm3, %v14350_v15  ;;  %v7591_v35 = vor.u32 %v7590_v46, %v7587_v24  ;;  %v7600_v40 = vrot.slane %v15836_v37, 4  ;;  %v2977_v30 = vshrl.u32 %v9798_v52, 16  ;;  %v2965_v57 = vsel %vm12550_vm4, %v2960_v0, %v2964_v22  ;;  %v10359_v24 = vld [vmem:[%s12495_s23 + $0xa8] sm:$0xf] }
 0x1d5   : > { %v2975_v43 = vsel %vm12550_vm4, %v2970_v9, %v2974_v2  ;;  %v2980_v28 = vshll.u32 %v9798_v52, 16  ;;  %v15829_v17 = vshll.u32 %v14559_v21, 16  ;;  %12049 = vmatprep.subr.msk.bf16.mxu1 %vm737_vm0, %v14553_v49  ;;  %11468 = vmatmul.mubr.msk.bf16.gmra.mrb[8].mxu0 %vm688_vm3, %v14374_v38  ;;  %v7606_v20 = vrot.slane %v7604_v29, 5  ;;  %v14589_v2 = vld [vmem:[%s12495_s23 + $0xac] sm:$0xf] }
 0x1d6   : > { %v14586_v46 = vcombine.low %v2965_v57, %v2975_v43  ;;  %v7592_v15 = vrot.slane %v7591_v35, 4  ;;  %v7601_v22 = vor.u32 %v7600_v40, %v7596_v47  ;;  %11471 = vmatprep.mubr.msk.bf16.mxu0 %vm688_vm3, %v14413_v56  ;;  %v2979_v52 = vrot.slane %v2977_v30, 4  ;;  %v14600_v40 = vld [vmem:[%s12495_s23 + $0xb0] sm:$0x1] }
 0x1d7   : > { %v2982_v13 = vrot.slane %v2980_v28, 5  ;;  %v2988_v61 = vrot.slane %v15829_v17, 5  ;;  %v15831_v0 = vshrl.u32 %v14559_v21, 16  ;;  %v2996_v35 = vshll.u32 %v14578_v18, 16  ;;  %v9801_v28 = vld [vmem:[%s12495_s23 + $0x78] sm:$0xf] }
 0x1d8   : > { %v7597_v38 = vsel %vm12550_vm4, %v7592_v15, %v7596_v47  ;;  %v7602_v9 = vrot.slane %v7601_v22, 4  ;;  %v7609_v29 = vshrl.u32 %v10359_v24, 16  ;;  %v7612_v30 = vshll.u32 %v10359_v24, 16  ;;  %v14614_v24 = vld [vmem:[%s12495_s23 + $0x7c] sm:$0xf] }
 0x1d9   : > { %v2983_v57 = vor.u32 %v2982_v13, %v2979_v52  ;;  %v2992_v56 = vrot.slane %v15831_v0, 4  ;;  %v15832_v43 = vshll.u32 %v14589_v2, 16  ;;  %v2998_v62 = vrot.slane %v2996_v35, 5 }
 0x1da   : > { %v7607_v17 = vsel %vm12550_vm4, %v7602_v9, %v7606_v20  ;;  %v7611_v47 = vrot.slane %v7609_v29, 4  ;;  %v15833_v15 = vshrl.u32 %v14589_v2, 16  ;;  %v7614_v0 = vrot.slane %v7612_v30, 5 }
 0x1db   : > { %11176 = vmatmul.mubr.msk.bf16.gmra.mrb[4].mxu1 %vm688_vm3, %v14391_v55  ;;  %v14611_v22 = vcombine.low %v7597_v38, %v7607_v17  ;;  %v2984_v52 = vrot.slane %v2983_v57, 4  ;;  %v2993_v13 = vor.u32 %v2992_v56, %v2988_v61  ;;  %v7620_v20 = vrot.slane %v15832_v43, 5  ;;  %v14626_v57 = vld [vmem:[%s12495_s23 + $0x80] sm:$0x1] }
 0x1dc   : > { %11179 = vmatprep.mubr.msk.bf16.mxu1 %vm688_vm3, %v14437_v42  ;;  %v7624_v9 = vrot.slane %v15833_v15, 4  ;;  %v7628_v35 = vshll.u32 %v14600_v40, 16  ;;  %v3001_v29 = vshrl.u32 %v9801_v28, 16  ;;  %v7615_v38 = vor.u32 %v7614_v0, %v7611_v47 }
 0x1dd   : > { %v2989_v55 = vsel %vm12550_vm4, %v2984_v52, %v2988_v61  ;;  %v2994_v17 = vrot.slane %v2993_v13, 4  ;;  %v3004_v56 = vshll.u32 %v9801_v28, 16  ;;  %11472 = vmatmul.mubr.msk.bf16.gmra.mrb[12].mxu0 %vm688_vm3, %v14454_v36  ;;  %v15834_v15 = vshll.u32 %v14614_v24, 16  ;;  %v10362_v52 = vld [vmem:[%s12495_s23 + $0xb4] sm:$0xf] }
 0x1de   : > { %v7625_v42 = vor.u32 %v7624_v9, %v7620_v20  ;;  %v7630_v30 = vrot.slane %v7628_v35, 5  ;;  %v3003_v43 = vrot.slane %v3001_v29, 4  ;;  %11475 = vmatprep.mubr.msk.bf16.mxu0 %vm688_vm3, %v14512_v14  ;;  %v7616_v0 = vrot.slane %v7615_v38, 4  ;;  %v14643_v29 = vld [vmem:[%s12495_s23 + $0xb8] sm:$0xf] }
 0x1df   : > { %v2999_v61 = vsel %vm12550_vm4, %v2994_v17, %v2998_v62  ;;  %v3006_v47 = vrot.slane %v3004_v56, 5  ;;  %v15835_v28 = vshrl.u32 %v14614_v24, 16  ;;  %v3012_v9 = vrot.slane %v15834_v15, 5  ;;  %v14648_v14 = vld [vmem:[%s15694_s1 + $0x54] sm:$0xff]   ;;  %v14657_v56 = vld [vmem:[%s12495_s23 + $0xbc] sm:$0x1] }
 0x1e0   : > { %v14637_v13 = vcombine.low %v2989_v55, %v2999_v61  ;;  %v7626_v36 = vrot.slane %v7625_v42, 4  ;;  %v3020_v35 = vshll.u32 %v14626_v57, 16  ;;  %v7621_v62 = vsel %vm12550_vm4, %v7616_v0, %v7620_v20  ;;  %v14662_v42 = vld [vmem:[%s15694_s1 + $0xb4] sm:$0xff]   ;;  %v9804_v0 = vld [vmem:[%s12495_s23 + $0x84] sm:$0xf] }
 0x1e1   : > { %v3007_v17 = vor.u32 %v3006_v47, %v3003_v43  ;;  %v3016_v55 = vrot.slane %v15835_v28, 4  ;;  %v3759_v38 = vsel %vm737_vm0, %v14553_v49, 0  ;;  %v8319_v43 = vsel %vm737_vm0, %v14474_v8, 0 }
 0x1e2   : > { %v7631_v61 = vsel %vm12550_vm4, %v7626_v36, %v7630_v30  ;;  %v3022_v15 = vrot.slane %v3020_v35, 5  ;;  %11206 = vmatpush3.bf16.msra.mxu1 %v3759_v38  ;;  %v7633_v20 = vshrl.u32 %v10362_v52, 16  ;;  %11494 = vmatpush3.bf16.msra.mxu0 %v8319_v43  ;;  %v7636_v37 = vshll.u32 %v10362_v52, 16  ;;  %v14677_v38 = vld [vmem:[%s12495_s23 + $0x88] sm:$0xf] }
 0x1e3   : > { %11180 = vmatmul.mubr.msk.bf16.gmra.mrb[8].mxu1 %vm688_vm3, %v14484_v63  ;;  %v10388_v49 = vcombine.low %v7621_v62, %v7631_v61  ;;  %v3008_v47 = vrot.slane %v3007_v17, 4  ;;  %v3017_v28 = vor.u32 %v3016_v55, %v3012_v9  ;;  %v15839_v36 = vshll.u32 %v14643_v29, 16  ;;  %11239 = vmatprep.subr.bf16.mxu1 %v14648_v14  ;;  %v14683_v17 = vld [vmem:[%s12495_s23 + $0x8c] sm:$0x1] }
 0x1e4   : > { %11183 = vmatprep.mubr.msk.bf16.mxu1 %vm688_vm3, %v14531_v31  ;;  %v7635_v30 = vrot.slane %v7633_v20, 4  ;;  %v15841_v8 = vshrl.u32 %v14643_v29, 16  ;;  %v7652_v35 = vshll.u32 %v14657_v56, 16  ;;  %v7638_v52 = vrot.slane %v7636_v37, 5  ;;  %11527 = vmatprep.subr.bf16.mxu0 %v14662_v42 }
 0x1e5   : > { %v3013_v63 = vsel %vm12550_vm4, %v3008_v47, %v3012_v9  ;;  %v3018_v62 = vrot.slane %v3017_v28, 4  ;;  %v3025_v31 = vshrl.u32 %v9804_v0, 16  ;;  %11476 = vmatmul.mubr.msk.bf16.gmra.mrb[16].mxu0 %vm688_vm3, %v14563_v60  ;;  %v7644_v55 = vrot.slane %v15839_v36, 5  ;;  %v10365_v9 = vld [vmem:[%s12495_s23 + $0xc0] sm:$0xf] }
 0x1e6   : > { %v7648_v61 = vrot.slane %v15841_v8, 4  ;;  %v7654_v43 = vrot.slane %v7652_v35, 5  ;;  %v3028_v20 = vshll.u32 %v9804_v0, 16  ;;  %11479 = vmatprep.mubr.msk.bf16.mxu0 %vm688_vm3, %v14611_v22  ;;  %v7639_v28 = vor.u32 %v7638_v52, %v7635_v30  ;;  %v14700_v35 = vld [vmem:[%s12495_s23 + $0xc4] sm:$0xf] }
 0x1e7   : > { %v3023_v37 = vsel %vm12550_vm4, %v3018_v62, %v3022_v15  ;;  %v3027_v47 = vrot.slane %v3025_v31, 4  ;;  %v15842_v60 = vshll.u32 %v14677_v38, 16  ;;  %v15843_v41 = vshrl.u32 %v14677_v38, 16  ;;  %v14708_v52 = vld [vmem:[%s12495_s23 + $0xc8] sm:$0x1] }
 0x1e8   : > { %v9834_v58 = vcombine.low %v3013_v63, %v3023_v37  ;;  %v7649_v26 = vor.u32 %v7648_v61, %v7644_v55  ;;  %v3030_v36 = vrot.slane %v3028_v20, 5  ;;  %v7640_v0 = vrot.slane %v7639_v28, 4 }
 0x1e9   : > { %v3036_v22 = vrot.slane %v15842_v60, 5  ;;  %v3044_v8 = vshll.u32 %v14683_v17, 16  ;;  %v7657_v15 = vshrl.u32 %v10365_v9, 16  ;;  %v3040_v63 = vrot.slane %v15843_v41, 4  ;;  %v14721_v41 = vld [vmem:[%s12495_s23 + $0x94] sm:$0xf] }
 0x1ea   : > { %v7650_v62 = vrot.slane %v7649_v26, 4  ;;  %v3031_v30 = vor.u32 %v3030_v36, %v3027_v47  ;;  %v7660_v31 = vshll.u32 %v10365_v9, 16  ;;  %v7645_v61 = vsel %vm12550_vm4, %v7640_v0, %v7644_v55  ;;  %v9807_v26 = vld [vmem:[%s12495_s23 + $0x90] sm:$0xf] }
 0x1eb   : > { %11184 = vmatmul.mubr.msk.bf16.gmra.mrb[12].mxu1 %vm688_vm3, %v14586_v46  ;;  %v3046_v20 = vrot.slane %v3044_v8, 5  ;;  %v7659_v37 = vrot.slane %v7657_v15, 4  ;;  %v15844_v28 = vshll.u32 %v14700_v35, 16  ;;  %v3041_v9 = vor.u32 %v3040_v63, %v3036_v22 }
 0x1ec   : > { %11187 = vmatprep.mubr.msk.bf16.mxu1 %vm688_vm3, %v14637_v13  ;;  %v7655_v36 = vsel %vm12550_vm4, %v7650_v62, %v7654_v43  ;;  %v3032_v47 = vrot.slane %v3031_v30, 4  ;;  %v7662_v60 = vrot.slane %v7660_v31, 5  ;;  %v15848_v55 = vshrl.u32 %v14700_v35, 16  ;;  %v14731_v62 = vld [vmem:[%s12495_s23 + $0x98] sm:$0x1] }
 0x1ed   : > { %v10389_v46 = vcombine.low %v7645_v61, %v7655_v36  ;;  %v7668_v8 = vrot.slane %v15844_v28, 5  ;;  %v7676_v0 = vshll.u32 %v14708_v52, 16  ;;  %11480 = vmatmul.mubr.msk.bf16.gmra.mrb[20].mxu0 %vm688_vm3, %v10388_v49  ;;  %v3042_v43 = vrot.slane %v3041_v9, 4  ;;  %v10368_v28 = vld [vmem:[%s12495_s23 + $0xcc] sm:$0xf] }
 0x1ee   : > { %v3037_v13 = vsel %vm12550_vm4, %v3032_v47, %v3036_v22  ;;  %v7663_v15 = vor.u32 %v7662_v60, %v7659_v37  ;;  %v3049_v30 = vshrl.u32 %v9807_v26, 16  ;;  %v7672_v63 = vrot.slane %v15848_v55, 4  ;;  %v14742_v37 = vld [vmem:[%s12495_s23 + $0xd0] sm:$0xf]  ;;  %v9810_v55 = vld [vmem:[%s12495_s23 + $0x9c] sm:$0xf] }
 0x1ef   : > { %11483 = vmatprep.mubr.msk.bf16.mxu0 %vm688_vm3, %v10389_v46  ;;  %v7678_v31 = vrot.slane %v7676_v0, 5  ;;  %v3052_v61 = vshll.u32 %v9807_v26, 16  ;;  %v15846_v36 = vshll.u32 %v14721_v41, 16  ;;  %v3047_v49 = vsel %vm12550_vm4, %v3042_v43, %v3046_v20 }
 0x1f0   : > { %v7664_v22 = vrot.slane %v7663_v15, 4  ;;  %v3051_v47 = vrot.slane %v3049_v30, 4  ;;  %v15847_v60 = vshrl.u32 %v14721_v41, 16  ;;  %v9835_v9 = vcombine.low %v3037_v13, %v3047_v49 }
 0x1f1   : > { %v7673_v46 = vor.u32 %v7672_v63, %v7668_v8  ;;  %v3054_v6 = vrot.slane %v3052_v61, 5  ;;  %v3060_v0 = vrot.slane %v15846_v36, 5  ;;  %v3068_v43 = vshll.u32 %v14731_v62, 16  ;;  %v14753_v63 = vld [vmem:[%s12495_s23 + $0xd4] sm:$0x1] }
 0x1f2   : > { %v7669_v26 = vsel %vm12550_vm4, %v7664_v22, %v7668_v8  ;;  %v3064_v20 = vrot.slane %v15847_v60, 4  ;;  %v7681_v15 = vshrl.u32 %v10368_v28, 16  ;;  %v7684_v61 = vshll.u32 %v10368_v28, 16  ;;  %v14764_v28 = vld [vmem:[%s12495_s23 + $0xa0] sm:$0xf] }
 0x1f3   : > { %11188 = vmatmul.mubr.msk.bf16.gmra.mrb[16].mxu1 %vm688_vm3, %v9834_v58  ;;  %v7674_v30 = vrot.slane %v7673_v46, 4  ;;  %v3055_v13 = vor.u32 %v3054_v6, %v3051_v47  ;;  %v15851_v49 = vshll.u32 %v14742_v37, 16  ;;  %v3070_v8 = vrot.slane %v3068_v43, 5 }
 0x1f4   : > { %11191 = vmatprep.mubr.msk.bf16.mxu1 %vm688_vm3, %v9835_v9  ;;  %v3065_v36 = vor.u32 %v3064_v20, %v3060_v0  ;;  %v7683_v22 = vrot.slane %v7681_v15, 4  ;;  %v15852_v60 = vshrl.u32 %v14742_v37, 16  ;;  %v7686_v46 = vrot.slane %v7684_v61, 5 }
 0x1f5   : > { %v7679_v58 = vsel %vm12550_vm4, %v7674_v30, %v7678_v31  ;;  %v3056_v33 = vrot.slane %v3055_v13, 4  ;;  %v7692_v6 = vrot.slane %v15851_v49, 5  ;;  %v7700_v43 = vshll.u32 %v14753_v63, 16  ;;  %v14772_v30 = vld [vmem:[%s12495_s23 + $0xa4] sm:$0x1] }
 0x1f6   : > { %v10390_v47 = vcombine.low %v7669_v26, %v7679_v58  ;;  %v3066_v9 = vrot.slane %v3065_v36, 4  ;;  %v7696_v20 = vrot.slane %v15852_v60, 4  ;;  %v7687_v31 = vor.u32 %v7686_v46, %v7683_v22  ;;  %v10371_v60 = vld [vmem:[%s12495_s23 + $0xd8] sm:$0xf] }
 0x1f7   : > { %v3061_v15 = vsel %vm12550_vm4, %v3056_v33, %v3060_v0  ;;  %v3073_v13 = vshrl.u32 %v9810_v55, 16  ;;  %v3076_v61 = vshll.u32 %v9810_v55, 16  ;;  %v7702_v58 = vrot.slane %v7700_v43, 5  ;;  %v14780_v0 = vld [vmem:[%s12495_s23 + $0xdc] sm:$0xf] }
 0x1f8   : > { %11484 = vmatmul.mubr.msk.bf16.gmra.mrb[24].mxu0 %vm688_vm3, %v10390_v47  ;;  %v3071_v26 = vsel %vm12550_vm4, %v3066_v9, %v3070_v8  ;;  %v7697_v36 = vor.u32 %v7696_v20, %v7692_v6  ;;  %v15859_v49 = vshll.u32 %v14764_v28, 16  ;;  %v7688_v50 = vrot.slane %v7687_v31, 4  ;;  %v14790_v20 = vld [vmem:[%s12495_s23 + $0xe0] sm:$0x1] }
 0x1f9   : > { %v9836_v59 = vcombine.low %v3061_v15, %v3071_v26  ;;  %v3075_v51 = vrot.slane %v3073_v13, 4  ;;  %v3078_v33 = vrot.slane %v3076_v61, 5  ;;  %v15863_v46 = vshrl.u32 %v14764_v28, 16 }
 0x1fa   : > { %v7698_v22 = vrot.slane %v7697_v36, 4  ;;  %v3084_v55 = vrot.slane %v15859_v49, 5  ;;  %v3092_v8 = vshll.u32 %v14772_v30, 16  ;;  %v7693_v47 = vsel %vm12550_vm4, %v7688_v50, %v7692_v6  ;;  %v9813_v36 = vld [vmem:[%s12495_s23 + $0xa8] sm:$0xf] }
 0x1fb   : > { %11192 = vmatmul.mubr.msk.bf16.gmra.mrb[20].mxu1 %vm688_vm3, %v9836_v59  ;;  %v3079_v9 = vor.u32 %v3078_v33, %v3075_v51  ;;  %v7705_v43 = vshrl.u32 %v10371_v60, 16  ;;  %v7708_v15 = vshll.u32 %v10371_v60, 16  ;;  %v3088_v13 = vrot.slane %v15863_v46, 4  ;;  %v14799_v51 = vld [vmem:[%s12495_s23 + $0xac] sm:$0xf] }
 0x1fc   : > { %v7703_v31 = vsel %vm12550_vm4, %v7698_v22, %v7702_v58  ;;  %v3094_v61 = vrot.slane %v3092_v8, 5  ;;  %v15862_v26 = vshll.u32 %v14780_v0, 16  ;;  %v15868_v58 = vshrl.u32 %v14780_v0, 16 }
 0x1fd   : > { %v10391_v59 = vcombine.low %v7693_v47, %v7703_v31  ;;  %v3080_v49 = vrot.slane %v3079_v9, 4  ;;  %v7707_v25 = vrot.slane %v7705_v43, 4  ;;  %v7710_v50 = vrot.slane %v7708_v15, 5  ;;  %v14809_v47 = vld [vmem:[%s12495_s23 + $0xb0] sm:$0x1] }
 0x1fe   : > { %v3089_v6 = vor.u32 %v3088_v13, %v3084_v55  ;;  %v7716_v60 = vrot.slane %v15862_v26, 5  ;;  %v7724_v33 = vshll.u32 %v14790_v20, 16  ;;  %v3097_v9 = vshrl.u32 %v9813_v36, 16 }
 0x1ff   : > { %11487 = vmatprep.mubr.msk.bf16.mxu0 %vm688_vm3, %v10391_v59  ;;  %v3085_v22 = vsel %vm12550_vm4, %v3080_v49, %v3084_v55  ;;  %v7711_v8 = vor.u32 %v7710_v50, %v7707_v25  ;;  %v3100_v43 = vshll.u32 %v9813_v36, 16  ;;  %v7720_v31 = vrot.slane %v15868_v58, 4  ;;  %v14816_v49 = vld [vmem:[%s12495_s23 + $0x24] sm:$0xe] }
 0x200   : > { %v3090_v15 = vrot.slane %v3089_v6, 4  ;;  %v7726_v13 = vrot.slane %v7724_v33, 5  ;;  %v15869_v26 = vshll.u32 %v14799_v51, 16  ;;  %v3099_v27 = vrot.slane %v3097_v9, 4  ;;  %v9816_v6 = vld [vmem:[%s12495_s23 + $0xb4] sm:$0xf] }
 0x201   : > { %v7712_v46 = vrot.slane %v7711_v8, 4  ;;  %v3102_v59 = vrot.slane %v3100_v43, 5  ;;  %v15876_v53 = vshrl.u32 %v14799_v51, 16  ;;  %v7721_v55 = vor.u32 %v7720_v31, %v7716_v60  ;;  %v12262_v31 = vld [vmem:[%s12495_s23 + $0x28] sm:$0xf] }
 0x202   : > { %v3095_v25 = vsel %vm12550_vm4, %v3090_v15, %v3094_v61  ;;  %v3108_v36 = vrot.slane %v15869_v26, 5  ;;  %v3116_v50 = vshll.u32 %v14809_v47, 16  ;;  %v10427_v15 = vrot.slane %v14816_v49, 9 }
 0x203   : > { %v9837_v33 = vcombine.low %v3085_v22, %v3095_v25  ;;  %v7717_v8 = vsel %vm12550_vm4, %v7712_v46, %v7716_v60  ;;  %v3103_v9 = vor.u32 %v3102_v59, %v3099_v27  ;;  %v3112_v43 = vrot.slane %v15876_v53, 4  ;;  %v12263_v22 = vld [vmem:[%s12495_s23 + $0x2c] sm:$0x1] }
 0x204   : > { %v7722_v58 = vrot.slane %v7721_v55, 4  ;;  %v3118_v61 = vrot.slane %v3116_v50, 5  ;;  %v8099_v26 = vrot.slane %v12262_v31, 5  ;;  %v8102_v25 = vrot.slane %v12263_v22, 5  ;;  %v14840_v55 = vld [vmem:[%s12495_s23 + $0xbc] sm:$0x1] }
 0x205   : > { %11195 = vmatprep.mubr.msk.bf16.mxu1 %vm688_vm3, %v9837_v33  ;;  %v3104_v39 = vrot.slane %v3103_v9, 4  ;;  %v3113_v19 = vor.u32 %v3112_v43, %v3108_v36  ;;  %v3121_v27 = vshrl.u32 %v9816_v6, 16  ;;  %v3124_v50 = vshll.u32 %v9816_v6, 16  ;;  %v14843_v33 = vld [vmem:[%s12495_s23 + $0x30] sm:$0xe] }
 0x206   : > { %v7727_v46 = vsel %vm12550_vm4, %v7722_v58, %v7726_v13  ;;  %v8100_v60 = vsel %vm13277_vm7, %v10427_v15, %v8099_v26  ;;  %v8101_v59 = vrot.slane %v8099_v26, 4  ;;  %v15879_v13 = vshll.u32 %v14833_v4, 16  ;;  %v9819_v6 = vld [vmem:[%s12495_s23 + $0xc0] sm:$0xf]  ;;  %v14858_v15 = vld [vmem:[%s12495_s23 + $0xc4] sm:$0xf] }
 0x207   : > { %v10392_v9 = vcombine.low %v7717_v8, %v7727_v46  ;;  %v3109_v43 = vsel %vm12550_vm4, %v3104_v39, %v3108_v36  ;;  %v3114_v31 = vrot.slane %v3113_v19, 4  ;;  %v3123_v22 = vrot.slane %v3121_v27, 4 }
 0x208   : > { %v8103_v53 = vsel %vm13277_vm7, %v8101_v59, %v8102_v25  ;;  %v3126_v58 = vrot.slane %v3124_v50, 5  ;;  %v15880_v26 = vshrl.u32 %v14833_v4, 16  ;;  %v3140_v19 = vshll.u32 %v14840_v55, 16 }
 0x209   : > { %11488 = vmatmul.mubr.msk.bf16.gmra.mrb[28].mxu0 %vm688_vm3, %v10392_v9  ;;  %v3119_v8 = vsel %vm12550_vm4, %v3114_v31, %v3118_v61  ;;  %v10446_v39 = vcombine.low %v8100_v60, %v8103_v53  ;;  %v10428_v36 = vrot.slane %v14843_v33, 9  ;;  %v3132_v46 = vrot.slane %v15879_v13, 5  ;;  %v12264_v61 = vld [vmem:[%s12495_s23 + $0x34] sm:$0xf]  ;;  %v12265_v60 = vld [vmem:[%s12495_s23 + $0x38] sm:$0x1] }
 0x20a   : > { %v9838_v25 = vcombine.low %v3109_v43, %v3119_v8  ;;  %v3127_v27 = vor.u32 %v3126_v58, %v3123_v22  ;;  %v3136_v59 = vrot.slane %v15880_v26, 4  ;;  %v3142_v50 = vrot.slane %v3140_v19, 5  ;;  %v14868_v31 = vld [vmem:[%s12495_s23 + $0xc8] sm:$0x1]  ;;  %v14873_v13 = vld [vmem:[%s12495_s23 + $0x3c] sm:$0xe] }
 0x20b   : > { %11495 = vmatprep.mubr.msk.bf16.mxu0 %vm688_vm3, %v10446_v39  ;;  %v8106_v53 = vrot.slane %v12264_v61, 5  ;;  %v8109_v9 = vrot.slane %v12265_v60, 5  ;;  %v3145_v48 = vshrl.u32 %v9819_v6, 16  ;;  %v3148_v58 = vshll.u32 %v9819_v6, 16  ;;  %16056 = vst [vmem:[#allocation18_spill] sm:$0xff] %v14873_v13 }
 0x20c   : > { %11196 = vmatmul.mubr.msk.bf16.gmra.mrb[24].mxu1 %vm688_vm3, %v9838_v25  ;;  %v3128_v43 = vrot.slane %v3127_v27, 4  ;;  %v3137_v22 = vor.u32 %v3136_v59, %v3132_v46  ;;  %v15883_v8 = vshll.u32 %v14858_v15, 16  ;;  %v15886_v60 = vshrl.u32 %v14858_v15, 16 }
 0x20d   : > { %v8107_v39 = vsel %vm13277_vm7, %v10428_v36, %v8106_v53  ;;  %v8108_v19 = vrot.slane %v8106_v53, 4  ;;  %v3147_v61 = vrot.slane %v3145_v48, 4  ;;  %v3150_v59 = vrot.slane %v3148_v58, 5  ;;  %v12266_v58 = vld [vmem:[%s12495_s23 + $0x40] sm:$0xf] }
 0x20e   : > { %v3133_v25 = vsel %vm12550_vm4, %v3128_v43, %v3132_v46  ;;  %v3138_v27 = vrot.slane %v3137_v22, 4  ;;  %v3156_v6 = vrot.slane %v15883_v8, 5  ;;  %v3160_v36 = vrot.slane %v15886_v60, 4 }
 0x20f   : > { %v8110_v26 = vsel %vm13277_vm7, %v8108_v19, %v8109_v9  ;;  %v3164_v48 = vshll.u32 %v14868_v31, 16  ;;  %v10429_v53 = vrot.slane %v14873_v13, 9  ;;  %v3151_v22 = vor.u32 %v3150_v59, %v3147_v61  ;;  %v14900_v9 = vld [vmem:[%s15694_s1 + $0xbc] ss:$0 sps:$4 sm:$0x33]  }
 0x210   : > { %v3143_v46 = vsel %vm12550_vm4, %v3138_v27, %v3142_v50  ;;  %v10447_v43 = vcombine.low %v8107_v39, %v8110_v26  ;;  %v8113_v8 = vrot.slane %v12266_v58, 5  ;;  %v3161_v60 = vor.u32 %v3160_v36, %v3156_v6  ;;  %v12268_v27 = vld [vmem:[%s12495_s23 + $0x10] sm:$0xf]  ;;  %v12269_v36 = vld [vmem:[%s12495_s23 + $0x14] sm:$0x1] }
 0x211   : > { %v9839_v19 = vcombine.low %v3133_v25, %v3143_v46  ;;  %v3166_v5 = vrot.slane %v3164_v48, 5  ;;  %v8116_v13 = vrot.slane %v12267_v7, 5  ;;  %v3152_v26 = vrot.slane %v3151_v22, 4  ;;  %v14912_v46 = vld [vmem:[%s12495_s23 + $0x18] sm:$0xe] }
 0x212   : > { %11496 = vmatmul.mubr.msk.bf16.vlgmr.msra.gmra.mrb[0].mxu0 %vm688_vm3, %v10447_v43  ;;  %v8114_v50 = vsel %vm13277_vm7, %v10429_v53, %v8113_v8  ;;  %v8115_v39 = vrot.slane %v8113_v8, 4  ;;  %v9875_v61 = vrot.slane %v14889_v3, 9  ;;  %v3162_v25 = vrot.slane %v3161_v60, 4  ;;  %16057 = vst [vmem:[#allocation19_spill] sm:$0xff] %v14912_v46  ;;  %v12270_v43 = vld [vmem:[%s12495_s23 + $0x4c] sm:$0xf] }
 0x213   : > { %11199 = vmatprep.mubr.msk.bf16.mxu1 %vm688_vm3, %v9839_v19  ;;  %v3539_v59 = vrot.slane %v12268_v27, 5  ;;  %v3542_v48 = vrot.slane %v12269_v36, 5  ;;  %v10430_v7 = vrot.slane %v14895_v11, 9  ;;  %11528 = vmatpush3.bf16.msra.mxu0 %v14662_v42  ;;  %v3157_v53 = vsel %vm12550_vm4, %v3152_v26, %v3156_v6  ;;  %v12271_v60 = vld [vmem:[%s12495_s23 + $0x50] sm:$0x1] }
 0x214   : > { %v8117_v8 = vsel %vm13277_vm7, %v8115_v39, %v8116_v13  ;;  %v8120_v22 = vrot.slane %v12270_v43, 5  ;;  %v8123_v58 = vrot.slane %v12271_v60, 5  ;;  %v14922_v19 = vld [vmem:[%s12495_s23 + $0x54] sm:$0xe]  ;;  %12058 = vmatprep.subr.msk.bf16.mxu0 %vm737_vm0, %v14900_v9  ;;  %v3167_v42 = vsel %vm12550_vm4, %v3162_v25, %v3166_v5  ;;  %v14934_v60 = vld [vmem:[%s12495_s23 + $0x24] sm:$0xe] }
 0x215   : > { %16058 = vst [vmem:[#allocation20_spill] sm:$0xff] %v14922_v19  ;;  %v10448_v27 = vcombine.low %v8114_v50, %v8117_v8  ;;  %v3540_v6 = vsel %vm13277_vm7, %v9875_v61, %v3539_v59  ;;  %v3541_v26 = vrot.slane %v3539_v59, 4  ;;  %v9840_v13 = vcombine.low %v3157_v53, %v3167_v42  ;;  %16059 = vst [vmem:[#allocation21_spill] sm:$0xff] %v14934_v60  ;;  %v12272_v5 = vld [vmem:[%s12495_s23 + $0x1c] sm:$0xf] }
 0x216   : > { %v8121_v39 = vsel %vm13277_vm7, %v10430_v7, %v8120_v22  ;;  %v8122_v36 = vrot.slane %v8120_v22, 4  ;;  %v9876_v43 = vrot.slane %v14912_v46, 9  ;;  %v3546_v50 = vrot.slane %v12272_v5, 5  ;;  %v12273_v61 = vld [vmem:[%s12495_s23 + $0x20] sm:$0x1] }
 0x217   : > { %11499 = vmatprep.mubr.msk.bf16.mxu0 %vm688_vm3, %v10448_v27  ;;  %v3543_v16 = vsel %vm13277_vm7, %v3541_v26, %v3542_v48  ;;  %v3549_v25 = vrot.slane %v12273_v61, 5  ;;  %v10431_v59 = vrot.slane %v14922_v19, 9  ;;  %11200 = vmatmul.mubr.msk.bf16.gmra.mrb[28].mxu1 %vm688_vm3, %v9840_v13  ;;  %v12274_v8 = vld [vmem:[%s12495_s23 + $0x58] sm:$0xf]  ;;  %v12275_v42 = vld [vmem:[%s12495_s23 + $0x5c] sm:$0x1] }
 0x218   : > { %v9894_v7 = vcombine.low %v3540_v6, %v3543_v16  ;;  %v8124_v53 = vsel %vm13277_vm7, %v8122_v36, %v8123_v58  ;;  %v8127_v22 = vrot.slane %v12274_v8, 5  ;;  %v8130_v27 = vrot.slane %v12275_v42, 5  ;;  %v14948_v48 = vld [vmem:[%s12495_s23 + $0x60] sm:$0xe]  ;;  %v12276_v36 = vld [vmem:[%s12495_s23 + $0x28] sm:$0xf] }
 0x219   : > { %16060 = vst [vmem:[#allocation22_spill] sm:$0xff] %v14948_v48  ;;  %v10449_v26 = vcombine.low %v8121_v39, %v8124_v53  ;;  %v3547_v5 = vsel %vm13277_vm7, %v9876_v43, %v3546_v50  ;;  %v3548_v61 = vrot.slane %v3546_v50, 4  ;;  %v9877_v6 = vrot.slane %v14934_v60, 9  ;;  %v12277_v8 = vld [vmem:[%s12495_s23 + $0x2c] sm:$0x1] }
 0x21a   : > { %11207 = vmatprep.mubr.msk.bf16.mxu1 %vm688_vm3, %v9894_v7  ;;  %v8128_v58 = vsel %vm13277_vm7, %v10431_v59, %v8127_v22  ;;  %v8129_v13 = vrot.slane %v8127_v22, 4  ;;  %v3553_v16 = vrot.slane %v12276_v36, 5  ;;  %v3556_v42 = vrot.slane %v12277_v8, 5  ;;  %v14959_v19 = vld [vmem:[%s12495_s23 + $0x30] sm:$0xe] }
 0x21b   : > { %16061 = vst [vmem:[#allocation23_spill] sm:$0xff] %v14959_v19  ;;  %11500 = vmatmul.mubr.msk.bf16.gmra.mrb[4].mxu0 %vm688_vm3, %v10449_v26  ;;  %v3550_v39 = vsel %vm13277_vm7, %v3548_v61, %v3549_v25  ;;  %v10432_v43 = vrot.slane %v14948_v48, 9  ;;  %v12278_v50 = vld [vmem:[%s12495_s23 + $0x64] sm:$0xf]  ;;  %v12279_v59 = vld [vmem:[%s12495_s23 + $0x68] sm:$0x1] }
 0x21c   : > { %v8134_v7 = vrot.slane %v12278_v50, 5  ;;  %v8137_v53 = vrot.slane %v12279_v59, 5  ;;  %v14968_v22 = vld [vmem:[%s12495_s23 + $0x6c] sm:$0xe]  ;;  %v9895_v36 = vcombine.low %v3547_v5, %v3550_v39  ;;  %v8131_v8 = vsel %vm13277_vm7, %v8129_v13, %v8130_v27  ;;  %v14978_v59 = vld [vmem:[%s12495_s23 + $0x3c] sm:$0xe] }
 0x21d   : > { %16062 = vst [vmem:[#allocation24_spill] sm:$0xff] %v14968_v22  ;;  %v3554_v26 = vsel %vm13277_vm7, %v9877_v6, %v3553_v16  ;;  %v3555_v60 = vrot.slane %v3553_v16, 4  ;;  %v10450_v25 = vcombine.low %v8128_v58, %v8131_v8  ;;  %v9878_v48 = vrot.slane %v14959_v19, 9  ;;  %16063 = vst [vmem:[#allocation9_spill] sm:$0xff] %v14978_v59  ;;  %v12280_v27 = vld [vmem:[%s12495_s23 + $0x34] sm:$0xf] }
 0x21e   : > { %v8135_v61 = vsel %vm13277_vm7, %v10432_v43, %v8134_v7  ;;  %v8136_v50 = vrot.slane %v8134_v7, 4  ;;  %v3560_v13 = vrot.slane %v12280_v27, 5  ;;  %v12281_v39 = vld [vmem:[%s12495_s23 + $0x38] sm:$0x1]  ;;  %v10433_v16 = vrot.slane %v14968_v22, 9 }
 0x21f   : > { %v3557_v5 = vsel %vm13277_vm7, %v3555_v60, %v3556_v42  ;;  %v3563_v6 = vrot.slane %v12281_v39, 5  ;;  %v14988_v58 = vld [vmem:[%s15694_s1 + $0x5c] ss:$0 sps:$4 sm:$0x33]   ;;  %11503 = vmatprep.mubr.msk.bf16.mxu0 %vm688_vm3, %v10450_v25  ;;  %v12282_v8 = vld [vmem:[%s12495_s23 + $0x70] sm:$0xf]  ;;  %11208 = vmatmul.mubr.msk.bf16.vlgmr.msra.gmra.mrb[0].mxu1 %vm688_vm3, %v9895_v36 }
 0x220   : > { %v9896_v43 = vcombine.low %v3554_v26, %v3557_v5  ;;  %v8138_v7 = vsel %vm13277_vm7, %v8136_v50, %v8137_v53  ;;  %v8141_v60 = vrot.slane %v12282_v8, 5  ;;  %v12283_v42 = vld [vmem:[%s12495_s23 + $0x74] sm:$0x1]  ;;  %v14996_v39 = vld [vmem:[%s12495_s23 + $0x78] sm:$0xe]  ;;  %v3561_v25 = vsel %vm13277_vm7, %v9878_v48, %v3560_v13  ;;  %11240 = vmatpush3.bf16.msra.mxu1 %v14648_v14 }
 0x221   : > { %v8144_v27 = vrot.slane %v12283_v42, 5  ;;  %16064 = vst [vmem:[#allocation28_spill] sm:$0xff] %v14996_v39  ;;  %v10451_v22 = vcombine.low %v8135_v61, %v8138_v7  ;;  %v3562_v26 = vrot.slane %v3560_v13, 4  ;;  %v9879_v5 = vrot.slane %v14978_v59, 9  ;;  %v12284_v8 = vld [vmem:[%s12495_s23 + $0x40] sm:$0xf]  ;;  %12050 = vmatprep.subr.msk.bf16.mxu1 %vm737_vm0, %v14988_v58 }
 0x222   : > { %11211 = vmatprep.mubr.msk.bf16.mxu1 %vm688_vm3, %v9896_v43  ;;  %v8142_v53 = vsel %vm13277_vm7, %v10433_v16, %v8141_v60  ;;  %v8143_v50 = vrot.slane %v8141_v60, 4  ;;  %v3567_v36 = vrot.slane %v12284_v8, 5  ;;  %v12285_v42 = vld [vmem:[%s12495_s23 + $0x44] sm:$0x1]  ;;  %v15009_v7 = vld [vmem:[%s12495_s23 + $0x48] sm:$0xe] }
 0x223   : > { %v3570_v61 = vrot.slane %v12285_v42, 5  ;;  %16065 = vst [vmem:[#allocation29_spill] sm:$0xff] %v15009_v7  ;;  %v3564_v48 = vsel %vm13277_vm7, %v3562_v26, %v3563_v6  ;;  %v10434_v13 = vrot.slane %v14996_v39, 9  ;;  %v12286_v59 = vld [vmem:[%s12495_s23 + $0x7c] sm:$0xf]  ;;  %11504 = vmatmul.mubr.msk.bf16.gmra.mrb[8].mxu0 %vm688_vm3, %v10451_v22  ;;  %v9880_v39 = vrot.slane %v15009_v7, 9 }
 0x224   : > { %v8148_v14 = vrot.slane %v12286_v59, 5  ;;  %v12287_v43 = vld [vmem:[%s12495_s23 + $0x80] sm:$0x1]  ;;  %v15017_v16 = vld [vmem:[%s12495_s23 + $0x84] sm:$0xe]  ;;  %v9897_v60 = vcombine.low %v3561_v25, %v3564_v48  ;;  %v8145_v6 = vsel %vm13277_vm7, %v8143_v50, %v8144_v27  ;;  %v3568_v26 = vsel %vm13277_vm7, %v9879_v5, %v3567_v36 }
 0x225   : > { %v8151_v19 = vrot.slane %v12287_v43, 5  ;;  %16066 = vst [vmem:[#allocation30_spill] sm:$0xff] %v15017_v16  ;;  %v3569_v59 = vrot.slane %v3567_v36, 4  ;;  %v10452_v8 = vcombine.low %v8142_v53, %v8145_v6  ;;  %v15030_v46 = vld [vmem:[%s12495_s23 + $0x54] sm:$0xe]  ;;  %v10435_v36 = vrot.slane %v15017_v16, 9 }
 0x226   : > { %v8149_v42 = vsel %vm13277_vm7, %v10434_v13, %v8148_v14  ;;  %v8150_v43 = vrot.slane %v8148_v14, 4  ;;  %v12288_v27 = vld [vmem:[%s12495_s23 + $0x4c] sm:$0xf]  ;;  %v12289_v50 = vld [vmem:[%s12495_s23 + $0x50] sm:$0x1] }
 0x227   : > { %v3571_v22 = vsel %vm13277_vm7, %v3569_v59, %v3570_v61  ;;  %v3574_v25 = vrot.slane %v12288_v27, 5  ;;  %v3577_v5 = vrot.slane %v12289_v50, 5  ;;  %11507 = vmatprep.mubr.msk.bf16.mxu0 %vm688_vm3, %v10452_v8  ;;  %v12290_v13 = vld [vmem:[%s12495_s23 + $0x88] sm:$0xf]  ;;  %v12291_v6 = vld [vmem:[%s12495_s23 + $0x8c] sm:$0x1]  ;;  %11212 = vmatmul.mubr.msk.bf16.gmra.mrb[4].mxu1 %vm688_vm3, %v9897_v60 }
 0x228   : > { %v9898_v53 = vcombine.low %v3568_v26, %v3571_v22  ;;  %v8152_v48 = vsel %vm13277_vm7, %v8150_v43, %v8151_v19  ;;  %v8155_v14 = vrot.slane %v12290_v13, 5  ;;  %v8158_v7 = vrot.slane %v12291_v6, 5  ;;  %v15043_v61 = vld [vmem:[%s12495_s23 + $0x90] sm:$0xe]  ;;  %v12292_v43 = vld [vmem:[%s12495_s23 + $0x58] sm:$0xf] }
 0x229   : > { %16067 = vst [vmem:[#allocation31_spill] sm:$0xff] %v15043_v61  ;;  %v10453_v59 = vcombine.low %v8149_v42, %v8152_v48  ;;  %v3575_v27 = vsel %vm13277_vm7, %v9880_v39, %v3574_v25  ;;  %v3576_v50 = vrot.slane %v3574_v25, 4  ;;  %v9881_v26 = vrot.slane %v15030_v46, 9  ;;  %v12293_v13 = vld [vmem:[%s12495_s23 + $0x5c] sm:$0x1] }
 0x22a   : > { %v8156_v19 = vsel %vm13277_vm7, %v10435_v36, %v8155_v14  ;;  %v8157_v8 = vrot.slane %v8155_v14, 4  ;;  %v3581_v22 = vrot.slane %v12292_v43, 5  ;;  %v3584_v6 = vrot.slane %v12293_v13, 5  ;;  %v15054_v16 = vld [vmem:[%s12495_s23 + $0x60] sm:$0xe]  ;;  %11215 = vmatprep.mubr.msk.bf16.mxu1 %vm688_vm3, %v9898_v53 }
 0x22b   : > { %v3578_v39 = vsel %vm13277_vm7, %v3576_v50, %v3577_v5  ;;  %v10436_v42 = vrot.slane %v15043_v61, 9  ;;  %v12294_v25 = vld [vmem:[%s12495_s23 + $0x94] sm:$0xf]  ;;  %v8165_v48 = vrot.slane %v14497_v12, 5  ;;  %v15063_v36 = vld [vmem:[%s12495_s23 + $0x9c] sm:$0xe]  ;;  %11508 = vmatmul.mubr.msk.bf16.gmra.mrb[12].mxu0 %vm688_vm3, %v10453_v59 }
 0x22c   : > { %v8162_v60 = vrot.slane %v12294_v25, 5  ;;  %v9899_v14 = vcombine.low %v3575_v27, %v3578_v39  ;;  %v8159_v43 = vsel %vm13277_vm7, %v8157_v8, %v8158_v7  ;;  %v3582_v13 = vsel %vm13277_vm7, %v9881_v26, %v3581_v22  ;;  %v9867_v61 = vld [vmem:[%s12495_s23 + $0x6c] sm:$0xe] }
 0x22d   : > { %v3583_v53 = vrot.slane %v3581_v22, 4  ;;  %v10454_v5 = vcombine.low %v8156_v19, %v8159_v43  ;;  %v9882_v12 = vrot.slane %v15054_v16, 9  ;;  %v3588_v7 = vrot.slane %v14509_v10, 5 }
 0x22e   : > { %v8163_v50 = vsel %vm13277_vm7, %v10436_v42, %v8162_v60  ;;  %v8164_v25 = vrot.slane %v8162_v60, 4  ;;  %v3591_v8 = vrot.slane %v14522_v32, 5  ;;  %v10437_v26 = vrot.slane %v15063_v36, 9  ;;  %v10422_v42 = vld [vmem:[%s12495_s23 + $0xa8] sm:$0xe] }
 0x22f   : > { %v3585_v27 = vsel %vm13277_vm7, %v3583_v53, %v3584_v6  ;;  %11511 = vmatprep.mubr.msk.bf16.mxu0 %vm688_vm3, %v10454_v5  ;;  %v8169_v22 = vrot.slane %v14534_v54, 5  ;;  %v8172_v39 = vrot.slane %v14544_v23, 5  ;;  %v3589_v6 = vsel %vm13277_vm7, %v9882_v12, %v3588_v7  ;;  %11216 = vmatmul.mubr.msk.bf16.gmra.mrb[8].mxu1 %vm688_vm3, %v9899_v14  ;;  %v10423_v14 = vld [vmem:[%s12495_s23 + $0xb4] sm:$0xe] }
 0x230   : > { %v9900_v59 = vcombine.low %v3582_v13, %v3585_v27  ;;  %v8166_v19 = vsel %vm13277_vm7, %v8164_v25, %v8165_v48  ;;  %v3590_v43 = vrot.slane %v3588_v7, 4  ;;  %v9883_v32 = vrot.slane %v9867_v61, 9  ;;  %v9868_v25 = vld [vmem:[%s12495_s23 + $0x78] sm:$0xe] }
 0x231   : > { %v10455_v60 = vcombine.low %v8163_v50, %v8166_v19  ;;  %v8170_v53 = vsel %vm13277_vm7, %v10437_v26, %v8169_v22  ;;  %v8171_v5 = vrot.slane %v8169_v22, 4  ;;  %v3595_v13 = vrot.slane %v14559_v21, 5 }
 0x232   : > { %v3598_v48 = vrot.slane %v14578_v18, 5  ;;  %v3592_v23 = vsel %vm13277_vm7, %v3590_v43, %v3591_v8  ;;  %v10438_v50 = vrot.slane %v10422_v42, 9  ;;  %v8176_v12 = vrot.slane %v14589_v2, 5  ;;  %11219 = vmatprep.mubr.msk.bf16.mxu1 %vm688_vm3, %v9900_v59  ;;  %v9869_v43 = vld [vmem:[%s12495_s23 + $0x84] sm:$0xe] }
 0x233   : > { %v8179_v61 = vrot.slane %v14600_v40, 5  ;;  %v9901_v27 = vcombine.low %v3589_v6, %v3592_v23  ;;  %v8173_v7 = vsel %vm13277_vm7, %v8171_v5, %v8172_v39  ;;  %v3596_v18 = vsel %vm13277_vm7, %v9883_v32, %v3595_v13  ;;  %11512 = vmatmul.mubr.msk.bf16.gmra.mrb[16].mxu0 %vm688_vm3, %v10455_v60 }
 0x234   : > { %v3597_v26 = vrot.slane %v3595_v13, 4  ;;  %v10456_v19 = vcombine.low %v8170_v53, %v8173_v7  ;;  %v8177_v8 = vsel %vm13277_vm7, %v10438_v50, %v8176_v12  ;;  %v8178_v22 = vrot.slane %v8176_v12, 4  ;;  %v10424_v13 = vld [vmem:[%s12495_s23 + $0xc0] sm:$0xe]  ;;  %v9870_v7 = vld [vmem:[%s12495_s23 + $0x90] sm:$0xe] }
 0x235   : > { %v9884_v42 = vrot.slane %v9868_v25, 9  ;;  %v3602_v59 = vrot.slane %v14614_v24, 5  ;;  %v3605_v39 = vrot.slane %v14626_v57, 5  ;;  %v4448_v6 = vsel %vm737_vm0, %v14988_v58, 0 }
 0x236   : > { %v3599_v40 = vsel %vm13277_vm7, %v3597_v26, %v3598_v48  ;;  %11515 = vmatprep.mubr.msk.bf16.mxu0 %vm688_vm3, %v10456_v19  ;;  %v8180_v53 = vsel %vm13277_vm7, %v8178_v22, %v8179_v61  ;;  %11242 = vmatpush3.bf16.msra.mxu1 %v4448_v6  ;;  %v9008_v60 = vsel %vm737_vm0, %v14900_v9, 0  ;;  %v10439_v5 = vrot.slane %v10423_v14, 9 }
 0x237   : > { %v9902_v32 = vcombine.low %v3596_v18, %v3599_v40  ;;  %v10457_v48 = vcombine.low %v8177_v8, %v8180_v53  ;;  %v3603_v57 = vsel %vm13277_vm7, %v9884_v42, %v3602_v59  ;;  %v3604_v25 = vrot.slane %v3602_v59, 4  ;;  %11530 = vmatpush3.bf16.msra.mxu0 %v9008_v60  ;;  %11220 = vmatmul.mubr.msk.bf16.gmra.mrb[12].mxu1 %vm688_vm3, %v9901_v27  ;;  %v9871_v60 = vld [vmem:[%s12495_s23 + $0x9c] sm:$0xe] }
 0x238   : > { %v8183_v58 = vrot.slane %v14643_v29, 5  ;;  %v8186_v23 = vrot.slane %v14657_v56, 5  ;;  %v9885_v50 = vrot.slane %v9869_v43, 9  ;;  %v3609_v12 = vrot.slane %v14677_v38, 5 }
 0x239   : > { %v3612_v61 = vrot.slane %v14683_v17, 5  ;;  %v3606_v9 = vsel %vm13277_vm7, %v3604_v25, %v3605_v39  ;;  %v10440_v14 = vrot.slane %v10424_v13, 9  ;;  %v8190_v17 = vrot.slane %v14700_v35, 5  ;;  %11223 = vmatprep.mubr.msk.bf16.mxu1 %vm688_vm3, %v9902_v32  ;;  %v10425_v39 = vld [vmem:[%s12495_s23 + $0xcc] sm:$0xe] }
 0x23a   : > { %v8184_v18 = vsel %vm13277_vm7, %v10439_v5, %v8183_v58  ;;  %v8185_v26 = vrot.slane %v8183_v58, 4  ;;  %v9903_v19 = vcombine.low %v3603_v57, %v3606_v9  ;;  %v3610_v56 = vsel %vm13277_vm7, %v9885_v50, %v3609_v12  ;;  %v10426_v50 = vld [vmem:[%s12495_s23 + $0xd8] sm:$0xe]  ;;  %v9872_v9 = vld [vmem:[%s12495_s23 + $0xa8] sm:$0xe] }
 0x23b   : > { %v3611_v8 = vrot.slane %v3609_v12, 4  ;;  %v8193_v42 = vrot.slane %v14708_v52, 5  ;;  %v9886_v40 = vrot.slane %v9870_v7, 9  ;;  %v3616_v59 = vrot.slane %v14721_v41, 5  ;;  %11516 = vmatmul.mubr.msk.bf16.gmra.mrb[20].mxu0 %vm688_vm3, %v10457_v48 }
 0x23c   : > { %v8187_v22 = vsel %vm13277_vm7, %v8185_v26, %v8186_v23  ;;  %v8191_v43 = vsel %vm13277_vm7, %v10440_v14, %v8190_v17  ;;  %v8192_v53 = vrot.slane %v8190_v17, 4  ;;  %v3619_v13 = vrot.slane %v14731_v62, 5 }
 0x23d   : > { %v10458_v27 = vcombine.low %v8184_v18, %v8187_v22  ;;  %v3613_v6 = vsel %vm13277_vm7, %v3611_v8, %v3612_v61  ;;  %v3617_v52 = vsel %vm13277_vm7, %v9886_v40, %v3616_v59  ;;  %v3618_v5 = vrot.slane %v3616_v59, 4 }
 0x23e   : > { %v9904_v32 = vcombine.low %v3610_v56, %v3613_v6  ;;  %v8194_v57 = vsel %vm13277_vm7, %v8192_v53, %v8193_v42  ;;  %v10441_v25 = vrot.slane %v10425_v39, 9  ;;  %v8197_v58 = vrot.slane %v14742_v37, 5 }
 0x23f   : > { %11519 = vmatprep.mubr.msk.bf16.mxu0 %vm688_vm3, %v10458_v27  ;;  %v8200_v23 = vrot.slane %v14753_v63, 5  ;;  %v10459_v12 = vcombine.low %v8191_v43, %v8194_v57  ;;  %v3620_v48 = vsel %vm13277_vm7, %v3618_v5, %v3619_v13  ;;  %v9887_v61 = vrot.slane %v9871_v60, 9  ;;  %11224 = vmatmul.mubr.msk.bf16.gmra.mrb[16].mxu1 %vm688_vm3, %v9903_v19  ;;  %v10480_v19 = vld [vmem:[%s12495_s23 + $0x2c] sm:$0x3] }
 0x240   : > { %v3623_v7 = vrot.slane %v14764_v28, 5  ;;  %v9905_v62 = vcombine.low %v3617_v52, %v3620_v48  ;;  %v8198_v18 = vsel %vm13277_vm7, %v10441_v25, %v8197_v58  ;;  %v8199_v26 = vrot.slane %v8197_v58, 4  ;;  %11227 = vmatprep.mubr.msk.bf16.mxu1 %vm688_vm3, %v9904_v32  ;;  %v9873_v25 = vld [vmem:[%s12495_s23 + $0xb4] sm:$0xe] }
 0x241   : > { %v3626_v14 = vrot.slane %v14772_v30, 5  ;;  %v10442_v8 = vrot.slane %v10426_v50, 9  ;;  %v8204_v17 = vrot.slane %v14780_v0, 5  ;;  %v8207_v42 = vrot.slane %v14790_v20, 5 }
 0x242   : > { %v3624_v63 = vsel %vm13277_vm7, %v9887_v61, %v3623_v7  ;;  %v3625_v56 = vrot.slane %v3623_v7, 4  ;;  %v8201_v22 = vsel %vm13277_vm7, %v8199_v26, %v8200_v23  ;;  %v9888_v40 = vrot.slane %v9872_v9, 9 }
 0x243   : > { %v3630_v59 = vrot.slane %v14799_v51, 5  ;;  %v10460_v30 = vcombine.low %v8198_v18, %v8201_v22  ;;  %v8205_v27 = vsel %vm13277_vm7, %v10442_v8, %v8204_v17  ;;  %v8206_v6 = vrot.slane %v8204_v17, 4  ;;  %11520 = vmatmul.mubr.msk.bf16.gmra.mrb[24].mxu0 %vm688_vm3, %v10459_v12  ;;  %v10481_v17 = vld [vmem:[%s12495_s23 + $0x38] sm:$0x3] }
 0x244   : > { %v3627_v39 = vsel %vm13277_vm7, %v3625_v56, %v3626_v14  ;;  %v3633_v60 = vrot.slane %v14809_v47, 5  ;;  %v8531_v52 = vshrl.u32 %v14816_v49, 16  ;;  %v8534_v5 = vshll.u32 %v14816_v49, 16 }
 0x245   : > { %v9906_v43 = vcombine.low %v3624_v63, %v3627_v39  ;;  %v15178_v53 = vsel %vm13277_vm7, %v9888_v40, %v3630_v59  ;;  %v3632_v20 = vrot.slane %v3630_v59, 4  ;;  %v8208_v32 = vsel %vm13277_vm7, %v8206_v6, %v8207_v42  ;;  %11523 = vmatprep.mubr.msk.bf16.mxu0 %vm688_vm3, %v10460_v30 }
 0x246   : > { %v16068_v13 = vshrl.u32 %v14135_v1, 16  ;;  %v10461_v58 = vcombine.low %v8205_v27, %v8208_v32  ;;  %v16069_v23 = vshll.u32 %v14135_v1, 16  ;;  %v8545_v12 = vshrl.u32 %v10480_v19, 16  ;;  %v9874_v32 = vld [vmem:[%s12495_s23 + $0xc0] sm:$0xe] }
 0x247   : > { %v3634_v47 = vsel %vm13277_vm7, %v3632_v20, %v3633_v60  ;;  %v8533_v61 = vrot.slane %v8531_v52, 5  ;;  %v8536_v7 = vrot.slane %v8534_v5, 6  ;;  %v8548_v49 = vshll.u32 %v10480_v19, 16  ;;  %11228 = vmatmul.mubr.msk.bf16.gmra.mrb[20].mxu1 %vm688_vm3, %v9905_v62 }
 0x248   : > { %v8539_v57 = vrot.slane %v16068_v13, 5  ;;  %v8540_v50 = vrot.slane %v16069_v23, 6  ;;  %v9907_v48 = vcombine.low %v15178_v53, %v3634_v47  ;;  %v8547_v18 = vrot.slane %v8545_v12, 5  ;;  %11231 = vmatprep.mubr.msk.bf16.mxu1 %vm688_vm3, %v9906_v43 }
 0x249   : > { %v9889_v26 = vrot.slane %v9873_v25, 9  ;;  %v3637_v14 = vrot.slane %v14833_v4, 5  ;;  %v8537_v63 = vor.u32 %v8536_v7, %v8533_v61  ;;  %v8550_v56 = vrot.slane %v8548_v49, 6  ;;  %v10482_v7 = vld [vmem:[%s12495_s23 + $0x44] sm:$0x3]  ;;  %v16072_v49 = vld [vmem:[#allocation18_spill] sm:$0xff] }
 0x24a   : > { %v8541_v9 = vor.u32 %v8540_v50, %v8539_v57  ;;  %v3640_v8 = vrot.slane %v14840_v55, 5  ;;  %v8554_v1 = vshrl.u32 %v14843_v33, 16  ;;  %v8557_v59 = vshll.u32 %v14843_v33, 16 }
 0x24b   : > { %v3638_v42 = vsel %vm13277_vm7, %v9889_v26, %v3637_v14  ;;  %v3639_v40 = vrot.slane %v3637_v14, 4  ;;  %v8538_v30 = vrot.slane %v8537_v63, 4  ;;  %v8551_v39 = vor.u32 %v8550_v56, %v8547_v18  ;;  %11524 = vmatmul.mubr.msk.bf16.gmra.mrb[28].mxu0 %vm688_vm3, %v10461_v58  ;;  %v16073_v56 = vld [vmem:[#allocation8_spill] sm:$0xff] }
 0x24c   : > { %v8543_v22 = vrot.slane %v8541_v9, 4  ;;  %v8556_v27 = vrot.slane %v8554_v1, 5  ;;  %v16070_v55 = vshrl.u32 %v14147_v34, 16  ;;  %v8559_v53 = vrot.slane %v8557_v59, 6 }
 0x24d   : > { %v3641_v19 = vsel %vm13277_vm7, %v3639_v40, %v3640_v8  ;;  %v16071_v62 = vshll.u32 %v14147_v34, 16  ;;  %v8568_v60 = vshrl.u32 %v10481_v17, 16  ;;  %v8542_v33 = vsel %vm13712_vm10, %v8538_v30, %v8541_v9 }
 0x24e   : > { %v8562_v6 = vrot.slane %v16070_v55, 5  ;;  %v8552_v43 = vsel %vm13712_vm10, %v8543_v22, %v8551_v39  ;;  %v9908_v52 = vcombine.low %v3638_v42, %v3641_v19  ;;  %v8571_v5 = vshll.u32 %v10481_v17, 16 }
 0x24f   : > { %v8563_v20 = vrot.slane %v16071_v62, 6  ;;  %v10499_v13 = vcombine.low %v8542_v33, %v8552_v43  ;;  %v8560_v57 = vor.u32 %v8559_v53, %v8556_v27  ;;  %v8570_v47 = vrot.slane %v8568_v60, 5  ;;  %11232 = vmatmul.mubr.msk.bf16.gmra.mrb[24].mxu1 %vm688_vm3, %v9907_v48  ;;  %v9928_v53 = vld [vmem:[%s12495_s23 + $0x14] sm:$0x3] }
 0x250   : > { %v8573_v23 = vrot.slane %v8571_v5, 6  ;;  %v9890_v34 = vrot.slane %v9874_v32, 9  ;;  %v3644_v50 = vrot.slane %v14858_v15, 5  ;;  %v3647_v12 = vrot.slane %v14868_v31, 5  ;;  %11235 = vmatprep.mubr.msk.bf16.mxu1 %vm688_vm3, %v9908_v52 }
 0x251   : > { %v8564_v25 = vor.u32 %v8563_v20, %v8562_v6  ;;  %11531 = vmatprep.mubr.msk.bf16.mxu0 %vm688_vm3, %v10499_v13  ;;  %v8561_v58 = vrot.slane %v8560_v57, 4  ;;  %v8577_v9 = vshrl.u32 %v16072_v49, 16  ;;  %v8580_v18 = vshll.u32 %v16072_v49, 16 }
 0x252   : > { %v8574_v26 = vor.u32 %v8573_v23, %v8570_v47  ;;  %v3645_v14 = vsel %vm13277_vm7, %v9890_v34, %v3644_v50  ;;  %v3646_v63 = vrot.slane %v3644_v50, 4  ;;  %v16074_v8 = vshrl.u32 %v16073_v56, 16 }
 0x253   : > { %v8566_v61 = vrot.slane %v8564_v25, 4  ;;  %v8565_v31 = vsel %vm13712_vm10, %v8561_v58, %v8564_v25  ;;  %v8579_v1 = vrot.slane %v8577_v9, 5  ;;  %v8582_v22 = vrot.slane %v8580_v18, 6  ;;  %v10483_v9 = vld [vmem:[%s12495_s23 + $0x50] sm:$0x3] }
 0x254   : > { %v8585_v17 = vrot.slane %v16074_v8, 5  ;;  %v16075_v42 = vshll.u32 %v16073_v56, 16  ;;  %v3648_v30 = vsel %vm13277_vm7, %v3646_v63, %v3647_v12  ;;  %v8591_v39 = vshrl.u32 %v10482_v7, 16 }
 0x255   : > { %v8575_v59 = vsel %vm13712_vm10, %v8566_v61, %v8574_v26  ;;  %v8594_v27 = vshll.u32 %v10482_v7, 16  ;;  %v9909_v48 = vcombine.low %v3645_v14, %v3648_v30  ;;  %v8583_v6 = vor.u32 %v8582_v22, %v8579_v1 }
 0x256   : > { %v8586_v40 = vrot.slane %v16075_v42, 6  ;;  %v10500_v55 = vcombine.low %v8565_v31, %v8575_v59  ;;  %v8593_v62 = vrot.slane %v8591_v39, 5  ;;  %v3971_v60 = vshrl.u32 %v14889_v3, 16  ;;  %v16079_v31 = vld [vmem:[#allocation27_spill] sm:$0xff] }
 0x257   : > { %v8596_v20 = vrot.slane %v8594_v27, 6  ;;  %v3974_v32 = vshll.u32 %v14889_v3, 16  ;;  %v8584_v33 = vrot.slane %v8583_v6, 4  ;;  %v16077_v52 = vshrl.u32 %v16076_v44, 16  ;;  %11236 = vmatmul.mubr.msk.bf16.gmra.mrb[28].mxu1 %vm688_vm3, %v9909_v48  ;;  %v16082_v39 = vld [vmem:[#allocation19_spill] sm:$0xff] }
 0x258   : > { %v8587_v19 = vor.u32 %v8586_v40, %v8585_v17  ;;  %11532 = vmatmul.mubr.msk.bf16.vlgmr.msra.gmra.mrb[0].mxu0 %vm688_vm3, %v10500_v55  ;;  %v16078_v13 = vshll.u32 %v16076_v44, 16  ;;  %v3973_v47 = vrot.slane %v3971_v60, 5  ;;  %v3985_v34 = vshrl.u32 %v9928_v53, 16 }
 0x259   : > { %v3979_v5 = vrot.slane %v16077_v52, 5  ;;  %v8597_v25 = vor.u32 %v8596_v20, %v8593_v62  ;;  %v3976_v23 = vrot.slane %v3974_v32, 6  ;;  %v3988_v3 = vshll.u32 %v9928_v53, 16 }
 0x25a   : > { %v8589_v43 = vrot.slane %v8587_v19, 4  ;;  %v3980_v57 = vrot.slane %v16078_v13, 6  ;;  %v8588_v50 = vsel %vm13712_vm10, %v8584_v33, %v8587_v19  ;;  %v8600_v58 = vshrl.u32 %v14895_v11, 16  ;;  %v9929_v19 = vld [vmem:[%s12495_s23 + $0x20] sm:$0x3]  ;;  %v16083_v13 = vld [vmem:[#allocation6_spill] sm:$0xff] }
 0x25b   : > { %v3977_v7 = vor.u32 %v3976_v23, %v3973_v47  ;;  %v3987_v49 = vrot.slane %v3985_v34, 5  ;;  %v8603_v18 = vshll.u32 %v14895_v11, 16  ;;  %v3990_v63 = vrot.slane %v3988_v3, 6 }
 0x25c   : > { %v3981_v12 = vor.u32 %v3980_v57, %v3979_v5  ;;  %v8598_v61 = vsel %vm13712_vm10, %v8589_v43, %v8597_v25  ;;  %v8602_v56 = vrot.slane %v8600_v58, 5  ;;  %v16080_v1 = vshrl.u32 %v16079_v31, 16  ;;  %v16086_v58 = vld [vmem:[#allocation20_spill] sm:$0xff] }
 0x25d   : > { %v10501_v26 = vcombine.low %v8588_v50, %v8598_v61  ;;  %v3978_v8 = vrot.slane %v3977_v7, 4  ;;  %v8605_v17 = vrot.slane %v8603_v18, 6  ;;  %v16081_v42 = vshll.u32 %v16079_v31, 16  ;;  %v10484_v18 = vld [vmem:[%s12495_s23 + $0x5c] sm:$0x3] }
 0x25e   : > { %v3983_v14 = vrot.slane %v3981_v12, 4  ;;  %v8608_v22 = vrot.slane %v16080_v1, 5  ;;  %v3991_v59 = vor.u32 %v3990_v63, %v3987_v49  ;;  %v8614_v30 = vshrl.u32 %v10483_v9, 16  ;;  %v16087_v1 = vld [vmem:[#allocation7_spill] sm:$0xff] }
 0x25f   : > { %v8609_v40 = vrot.slane %v16081_v42, 6  ;;  %11535 = vmatprep.mubr.msk.bf16.mxu0 %vm688_vm3, %v10501_v26  ;;  %v8617_v11 = vshll.u32 %v10483_v9, 16  ;;  %v3994_v27 = vshrl.u32 %v16082_v39, 16  ;;  %v3982_v55 = vsel %vm13712_vm10, %v3978_v8, %v3981_v12 }
 0x260   : > { %v8606_v48 = vor.u32 %v8605_v17, %v8602_v56  ;;  %v3997_v53 = vshll.u32 %v16082_v39, 16  ;;  %v3992_v62 = vsel %vm13712_vm10, %v3983_v14, %v3991_v59  ;;  %v8616_v20 = vrot.slane %v8614_v30, 5 }
 0x261   : > { %v8610_v6 = vor.u32 %v8609_v40, %v8608_v22  ;;  %v8619_v60 = vrot.slane %v8617_v11, 6  ;;  %v3996_v32 = vrot.slane %v3994_v27, 5  ;;  %v9947_v33 = vcombine.low %v3982_v55, %v3992_v62 }
 0x262   : > { %v8607_v43 = vrot.slane %v8606_v48, 4  ;;  %v3999_v52 = vrot.slane %v3997_v53, 6  ;;  %v16084_v57 = vshrl.u32 %v16083_v13, 16  ;;  %v16085_v47 = vshll.u32 %v16083_v13, 16 }
 0x263   : > { %v8612_v44 = vrot.slane %v8610_v6, 4  ;;  %v8620_v5 = vor.u32 %v8619_v60, %v8616_v20  ;;  %v4008_v34 = vshrl.u32 %v9929_v19, 16  ;;  %11243 = vmatprep.mubr.msk.bf16.mxu1 %vm688_vm3, %v9947_v33  ;;  %v4011_v3 = vshll.u32 %v9929_v19, 16  ;;  %v16090_v19 = vld [vmem:[#allocation21_spill] sm:$0xff]  ;;  %v16091_v33 = vld [vmem:[#allocation11_spill] sm:$0xff] }
 0x264   : > { %v4002_v25 = vrot.slane %v16084_v57, 5  ;;  %v4003_v23 = vrot.slane %v16085_v47, 6  ;;  %v8611_v50 = vsel %vm13712_vm10, %v8607_v43, %v8610_v6  ;;  %v4000_v12 = vor.u32 %v3999_v52, %v3996_v32  ;;  %v9930_v6 = vld [vmem:[%s12495_s23 + $0x2c] sm:$0x3] }
 0x265   : > { %v8623_v61 = vshrl.u32 %v16086_v58, 16  ;;  %v8621_v7 = vsel %vm13712_vm10, %v8612_v44, %v8620_v5  ;;  %v4010_v9 = vrot.slane %v4008_v34, 5  ;;  %v8626_v26 = vshll.u32 %v16086_v58, 16  ;;  %v16094_v58 = vld [vmem:[#allocation22_spill] sm:$0xff] }
 0x266   : > { %v4004_v49 = vor.u32 %v4003_v23, %v4002_v25  ;;  %v10502_v14 = vcombine.low %v8611_v50, %v8621_v7  ;;  %v4001_v63 = vrot.slane %v4000_v12, 4  ;;  %v4013_v56 = vrot.slane %v4011_v3, 6 }
 0x267   : > { %v8625_v8 = vrot.slane %v8623_v61, 5  ;;  %v8628_v31 = vrot.slane %v8626_v26, 6  ;;  %v16088_v22 = vshrl.u32 %v16087_v1, 16  ;;  %v16089_v40 = vshll.u32 %v16087_v1, 16 }
 0x268   : > { %v4006_v17 = vrot.slane %v4004_v49, 4  ;;  %11536 = vmatmul.mubr.msk.bf16.gmra.mrb[4].mxu0 %vm688_vm3, %v10502_v14  ;;  %v4005_v30 = vsel %vm13712_vm10, %v4001_v63, %v4004_v49  ;;  %v4014_v11 = vor.u32 %v4013_v56, %v4010_v9  ;;  %v8637_v39 = vshrl.u32 %v10484_v18, 16  ;;  %v10485_v14 = vld [vmem:[%s12495_s23 + $0x68] sm:$0x3] }
 0x269   : > { %v8631_v42 = vrot.slane %v16088_v22, 5  ;;  %v8632_v59 = vrot.slane %v16089_v40, 6  ;;  %v8640_v27 = vshll.u32 %v10484_v18, 16  ;;  %v8629_v55 = vor.u32 %v8628_v31, %v8625_v8  ;;  %v16095_v22 = vld [vmem:[#allocation10_spill] sm:$0xff] }
 0x26a   : > { %v4017_v53 = vshrl.u32 %v16090_v19, 16  ;;  %v4020_v62 = vshll.u32 %v16090_v19, 16  ;;  %v4015_v20 = vsel %vm13712_vm10, %v4006_v17, %v4014_v11  ;;  %v8639_v60 = vrot.slane %v8637_v39, 5  ;;  %v16098_v19 = vld [vmem:[#allocation23_spill] sm:$0xff] }
 0x26b   : > { %v8633_v48 = vor.u32 %v8632_v59, %v8631_v42  ;;  %v8642_v32 = vrot.slane %v8640_v27, 6  ;;  %v16092_v43 = vshrl.u32 %v16091_v33, 16  ;;  %v9948_v52 = vcombine.low %v4005_v30, %v4015_v20 }
 0x26c   : > { %v8630_v5 = vrot.slane %v8629_v55, 4  ;;  %v4019_v57 = vrot.slane %v4017_v53, 5  ;;  %v4022_v47 = vrot.slane %v4020_v62, 6  ;;  %v16093_v23 = vshll.u32 %v16091_v33, 16 }
 0x26d   : > { %v4025_v44 = vrot.slane %v16092_v43, 5  ;;  %v8635_v13 = vrot.slane %v8633_v48, 4  ;;  %v8643_v25 = vor.u32 %v8642_v32, %v8639_v60  ;;  %v4031_v50 = vshrl.u32 %v9930_v6, 16  ;;  %11244 = vmatmul.mubr.msk.bf16.vlgmr.msra.gmra.mrb[0].mxu1 %vm688_vm3, %v9948_v52  ;;  %v9931_v43 = vld [vmem:[%s12495_s23 + $0x38] sm:$0x3] }
 0x26e   : > { %v4026_v34 = vrot.slane %v16093_v23, 6  ;;  %v8634_v12 = vsel %vm13712_vm10, %v8630_v5, %v8633_v48  ;;  %v4034_v3 = vshll.u32 %v9930_v6, 16  ;;  %v8646_v61 = vshrl.u32 %v16094_v58, 16 }
 0x26f   : > { %v8649_v7 = vshll.u32 %v16094_v58, 16  ;;  %v8644_v49 = vsel %vm13712_vm10, %v8635_v13, %v8643_v25  ;;  %v4023_v9 = vor.u32 %v4022_v47, %v4019_v57  ;;  %v4033_v26 = vrot.slane %v4031_v50, 5  ;;  %v16099_v47 = vld [vmem:[#allocation12_spill] sm:$0xff] }
 0x270   : > { %v4027_v18 = vor.u32 %v4026_v34, %v4025_v44  ;;  %v10503_v63 = vcombine.low %v8634_v12, %v8644_v49  ;;  %v4036_v56 = vrot.slane %v4034_v3, 6  ;;  %v8648_v8 = vrot.slane %v8646_v61, 5 }
 0x271   : > { %v8651_v17 = vrot.slane %v8649_v7, 6  ;;  %v4024_v31 = vrot.slane %v4023_v9, 4  ;;  %v16096_v42 = vshrl.u32 %v16095_v22, 16  ;;  %v16097_v59 = vshll.u32 %v16095_v22, 16  ;;  %v16102_v7 = vld [vmem:[#allocation24_spill] sm:$0xff] }
 0x272   : > { %v4029_v1 = vrot.slane %v4027_v18, 4  ;;  %11539 = vmatprep.mubr.msk.bf16.mxu0 %vm688_vm3, %v10503_v63  ;;  %v4037_v11 = vor.u32 %v4036_v56, %v4033_v26  ;;  %v8660_v27 = vshrl.u32 %v10485_v14, 16  ;;  %v8663_v55 = vshll.u32 %v10485_v14, 16  ;;  %v10486_v26 = vld [vmem:[%s12495_s23 + $0x74] sm:$0x3]  ;;  %v16103_v63 = vld [vmem:[#allocation26_spill] sm:$0xff] }
 0x273   : > { %v8654_v40 = vrot.slane %v16096_v42, 5  ;;  %v8655_v30 = vrot.slane %v16097_v59, 6  ;;  %v8652_v39 = vor.u32 %v8651_v17, %v8648_v8  ;;  %v4028_v48 = vsel %vm13712_vm10, %v4024_v31, %v4027_v18 }
 0x274   : > { %v4040_v53 = vshrl.u32 %v16098_v19, 16  ;;  %v4043_v62 = vshll.u32 %v16098_v19, 16  ;;  %v4038_v20 = vsel %vm13712_vm10, %v4029_v1, %v4037_v11  ;;  %v8662_v32 = vrot.slane %v8660_v27, 5 }
 0x275   : > { %v8656_v6 = vor.u32 %v8655_v30, %v8654_v40  ;;  %v8653_v60 = vrot.slane %v8652_v39, 4  ;;  %v8665_v33 = vrot.slane %v8663_v55, 6  ;;  %v9949_v44 = vcombine.low %v4028_v48, %v4038_v20 }
 0x276   : > { %v4042_v5 = vrot.slane %v4040_v53, 5  ;;  %v4045_v13 = vrot.slane %v4043_v62, 6  ;;  %v16100_v23 = vshrl.u32 %v16099_v47, 16  ;;  %v16101_v50 = vshll.u32 %v16099_v47, 16  ;;  %v9932_v53 = vld [vmem:[%s12495_s23 + $0x44] sm:$0x3] }
 0x277   : > { %v8658_v52 = vrot.slane %v8656_v6, 4  ;;  %v8657_v57 = vsel %vm13712_vm10, %v8653_v60, %v8656_v6  ;;  %v8666_v25 = vor.u32 %v8665_v33, %v8662_v32  ;;  %11247 = vmatprep.mubr.msk.bf16.mxu1 %vm688_vm3, %v9949_v44  ;;  %v4054_v58 = vshrl.u32 %v9931_v43, 16  ;;  %v16106_v62 = vld [vmem:[#allocation9_spill] sm:$0xff] }
 0x278   : > { %v4048_v34 = vrot.slane %v16100_v23, 5  ;;  %v4049_v12 = vrot.slane %v16101_v50, 6  ;;  %v4046_v3 = vor.u32 %v4045_v13, %v4042_v5  ;;  %v4057_v61 = vshll.u32 %v9931_v43, 16  ;;  %v16107_v44 = vld [vmem:[#allocation5_spill] sm:$0xff] }
 0x279   : > { %v8669_v49 = vshrl.u32 %v16102_v7, 16  ;;  %v8667_v9 = vsel %vm13712_vm10, %v8658_v52, %v8666_v25  ;;  %v8672_v14 = vshll.u32 %v16102_v7, 16  ;;  %v16104_v56 = vshrl.u32 %v16103_v63, 16  ;;  %v16110_v7 = vld [vmem:[#allocation28_spill] sm:$0xff] }
 0x27a   : > { %v4050_v18 = vor.u32 %v4049_v12, %v4048_v34  ;;  %v10504_v17 = vcombine.low %v8657_v57, %v8667_v9  ;;  %v4047_v31 = vrot.slane %v4046_v3, 4  ;;  %v4056_v1 = vrot.slane %v4054_v58, 5 }
 0x27b   : > { %v8677_v8 = vrot.slane %v16104_v56, 5  ;;  %v4059_v22 = vrot.slane %v4057_v61, 6  ;;  %v8671_v40 = vrot.slane %v8669_v49, 5  ;;  %v8674_v59 = vrot.slane %v8672_v14, 6  ;;  %v10487_v56 = vld [vmem:[%s12495_s23 + $0x80] sm:$0x3] }
 0x27c   : > { %v4052_v42 = vrot.slane %v4050_v18, 4  ;;  %v16105_v30 = vshll.u32 %v16103_v63, 16  ;;  %11540 = vmatmul.mubr.msk.bf16.gmra.mrb[8].mxu0 %vm688_vm3, %v10504_v17  ;;  %v4051_v39 = vsel %vm13712_vm10, %v4047_v31, %v4050_v18  ;;  %v8683_v55 = vshrl.u32 %v10486_v26, 16 }
 0x27d   : > { %v4060_v27 = vor.u32 %v4059_v22, %v4056_v1  ;;  %v8686_v48 = vshll.u32 %v10486_v26, 16  ;;  %v8675_v6 = vor.u32 %v8674_v59, %v8671_v40  ;;  %v4063_v20 = vshrl.u32 %v16106_v62, 16  ;;  %v16111_v40 = vld [vmem:[#allocation13_spill] sm:$0xff] }
 0x27e   : > { %v8678_v11 = vrot.slane %v16105_v30, 6  ;;  %v4066_v60 = vshll.u32 %v16106_v62, 16  ;;  %v8685_v33 = vrot.slane %v8683_v55, 5  ;;  %v16108_v52 = vshrl.u32 %v16107_v44, 16  ;;  %v16114_v62 = vld [vmem:[#allocation29_spill] sm:$0xff] }
 0x27f   : > { %v4061_v32 = vsel %vm13712_vm10, %v4052_v42, %v4060_v27  ;;  %v8688_v43 = vrot.slane %v8686_v48, 6  ;;  %v8676_v57 = vrot.slane %v8675_v6, 4  ;;  %v4065_v47 = vrot.slane %v4063_v20, 5 }
 0x280   : > { %v8679_v19 = vor.u32 %v8678_v11, %v8677_v8  ;;  %v4071_v5 = vrot.slane %v16108_v52, 5  ;;  %v9950_v13 = vcombine.low %v4051_v39, %v4061_v32  ;;  %v4068_v34 = vrot.slane %v4066_v60, 6  ;;  %v9933_v52 = vld [vmem:[%s12495_s23 + $0x50] sm:$0x3] }
 0x281   : > { %v8689_v23 = vor.u32 %v8688_v43, %v8685_v33  ;;  %v16109_v50 = vshll.u32 %v16107_v44, 16  ;;  %v4077_v3 = vshrl.u32 %v9932_v53, 16  ;;  %v4080_v61 = vshll.u32 %v9932_v53, 16 }
 0x282   : > { %v8681_v25 = vrot.slane %v8679_v19, 4  ;;  %11248 = vmatmul.mubr.msk.bf16.gmra.mrb[4].mxu1 %vm688_vm3, %v9950_v13  ;;  %v8680_v58 = vsel %vm13712_vm10, %v8676_v57, %v8679_v19  ;;  %v8692_v49 = vshrl.u32 %v16110_v7, 16  ;;  %v8695_v9 = vshll.u32 %v16110_v7, 16 }
 0x283   : > { %v4072_v12 = vrot.slane %v16109_v50, 6  ;;  %v4069_v26 = vor.u32 %v4068_v34, %v4065_v47  ;;  %v4079_v63 = vrot.slane %v4077_v3, 5  ;;  %v4082_v17 = vrot.slane %v4080_v61, 6  ;;  %v16115_v34 = vld [vmem:[#allocation14_spill] sm:$0xff] }
 0x284   : > { %v8690_v18 = vsel %vm13712_vm10, %v8681_v25, %v8689_v23  ;;  %v8694_v31 = vrot.slane %v8692_v49, 5  ;;  %v8697_v1 = vrot.slane %v8695_v9, 6  ;;  %v16112_v59 = vshrl.u32 %v16111_v40, 16  ;;  %v16118_v9 = vld [vmem:[#allocation30_spill] sm:$0xff] }
 0x285   : > { %v4073_v14 = vor.u32 %v4072_v12, %v4071_v5  ;;  %v10505_v8 = vcombine.low %v8680_v58, %v8690_v18  ;;  %v4070_v22 = vrot.slane %v4069_v26, 4  ;;  %v16113_v11 = vshll.u32 %v16111_v40, 16 }
 0x286   : > { %v8700_v30 = vrot.slane %v16112_v59, 5  ;;  %v4083_v27 = vor.u32 %v4082_v17, %v4079_v63  ;;  %v8698_v55 = vor.u32 %v8697_v1, %v8694_v31  ;;  %v8706_v48 = vshrl.u32 %v10487_v56, 16  ;;  %v10488_v63 = vld [vmem:[%s12495_s23 + $0x8c] sm:$0x3] }
 0x287   : > { %v4075_v42 = vrot.slane %v4073_v14, 4  ;;  %v8701_v39 = vrot.slane %v16113_v11, 6  ;;  %11543 = vmatprep.mubr.msk.bf16.mxu0 %vm688_vm3, %v10505_v8  ;;  %v8709_v6 = vshll.u32 %v10487_v56, 16  ;;  %v4074_v19 = vsel %vm13712_vm10, %v4070_v22, %v4073_v14  ;;  %v16119_v8 = vld [vmem:[#allocation15_spill] sm:$0xff] }
 0x288   : > { %v4086_v20 = vshrl.u32 %v16114_v62, 16  ;;  %v4089_v60 = vshll.u32 %v16114_v62, 16  ;;  %v8699_v33 = vrot.slane %v8698_v55, 4  ;;  %v8708_v43 = vrot.slane %v8706_v48, 5 }
 0x289   : > { %v8702_v53 = vor.u32 %v8701_v39, %v8700_v30  ;;  %v4084_v32 = vsel %vm13712_vm10, %v4075_v42, %v4083_v27  ;;  %v8711_v44 = vrot.slane %v8709_v6, 6  ;;  %v16116_v50 = vshrl.u32 %v16115_v34, 16 }
 0x28a   : > { %v9951_v5 = vcombine.low %v4074_v19, %v4084_v32  ;;  %v4088_v57 = vrot.slane %v4086_v20, 5  ;;  %v4091_v25 = vrot.slane %v4089_v60, 6  ;;  %v16117_v3 = vshll.u32 %v16115_v34, 16  ;;  %v9934_v20 = vld [vmem:[%s12495_s23 + $0x5c] sm:$0x3] }
 0x28b   : > { %v8704_v13 = vrot.slane %v8702_v53, 4  ;;  %v8703_v47 = vsel %vm13712_vm10, %v8699_v33, %v8702_v53  ;;  %v8712_v23 = vor.u32 %v8711_v44, %v8708_v43  ;;  %v4094_v12 = vrot.slane %v16116_v50, 5 }
 0x28c   : > { %v4095_v58 = vrot.slane %v16117_v3, 6  ;;  %11251 = vmatprep.mubr.msk.bf16.mxu1 %vm688_vm3, %v9951_v5  ;;  %v4092_v61 = vor.u32 %v4091_v25, %v4088_v57  ;;  %v4100_v7 = vshrl.u32 %v9933_v52, 16  ;;  %v4103_v49 = vshll.u32 %v9933_v52, 16  ;;  %v16122_v52 = vld [vmem:[#allocation16_spill] sm:$0xff] }
 0x28d   : > { %v8715_v18 = vshrl.u32 %v16118_v9, 16  ;;  %v8713_v26 = vsel %vm13712_vm10, %v8704_v13, %v8712_v23  ;;  %v8718_v56 = vshll.u32 %v16118_v9, 16  ;;  %v16120_v17 = vshrl.u32 %v16119_v8, 16 }
 0x28e   : > { %v4096_v14 = vor.u32 %v4095_v58, %v4094_v12  ;;  %v10506_v1 = vcombine.low %v8703_v47, %v8713_v26  ;;  %v4093_v22 = vrot.slane %v4092_v61, 4  ;;  %v4102_v42 = vrot.slane %v4100_v7, 5  ;;  %v16125_v7 = vld [vmem:[#allocation31_spill] sm:$0xff] }
 0x28f   : > { %v8723_v31 = vrot.slane %v16120_v17, 5  ;;  %v4105_v40 = vrot.slane %v4103_v49, 6  ;;  %v8717_v30 = vrot.slane %v8715_v18, 5  ;;  %v8720_v11 = vrot.slane %v8718_v56, 6  ;;  %v10489_v56 = vld [vmem:[%s12495_s23 + $0x98] sm:$0x3] }
 0x290   : > { %v4098_v59 = vrot.slane %v4096_v14, 4  ;;  %v16121_v39 = vshll.u32 %v16119_v8, 16  ;;  %11544 = vmatmul.mubr.msk.bf16.gmra.mrb[12].mxu0 %vm688_vm3, %v10506_v1  ;;  %v4097_v55 = vsel %vm13712_vm10, %v4093_v22, %v4096_v14  ;;  %v8729_v6 = vshrl.u32 %v10488_v63, 16 }
 0x291   : > { %v4106_v48 = vor.u32 %v4105_v40, %v4102_v42  ;;  %v8732_v19 = vshll.u32 %v10488_v63, 16  ;;  %v8721_v53 = vor.u32 %v8720_v11, %v8717_v30  ;;  %v4109_v60 = vshrl.u32 %v15030_v46, 16  ;;  %v16126_v40 = vld [vmem:[#allocation17_spill] sm:$0xff] }
 0x292   : > { %v8724_v27 = vrot.slane %v16121_v39, 6  ;;  %v4112_v32 = vshll.u32 %v15030_v46, 16  ;;  %v8731_v43 = vrot.slane %v8729_v6, 5  ;;  %v16123_v5 = vshrl.u32 %v16122_v52, 16 }
 0x293   : > { %v4107_v33 = vsel %vm13712_vm10, %v4098_v59, %v4106_v48  ;;  %v8734_v44 = vrot.slane %v8732_v19, 6  ;;  %v8722_v25 = vrot.slane %v8721_v53, 4  ;;  %v4111_v23 = vrot.slane %v4109_v60, 5 }
 0x294   : > { %v8725_v62 = vor.u32 %v8724_v27, %v8723_v31  ;;  %v4117_v13 = vrot.slane %v16123_v5, 5  ;;  %v9952_v57 = vcombine.low %v4097_v55, %v4107_v33  ;;  %v4114_v50 = vrot.slane %v4112_v32, 6 }
 0x295   : > { %v8735_v34 = vor.u32 %v8734_v44, %v8731_v43  ;;  %v16124_v12 = vshll.u32 %v16122_v52, 16  ;;  %v4123_v58 = vshrl.u32 %v9934_v20, 16  ;;  %v4126_v61 = vshll.u32 %v9934_v20, 16  ;;  %v9935_v44 = vld [vmem:[%s12495_s23 + $0x68] sm:$0x3] }
 0x296   : > { %v8727_v47 = vrot.slane %v8725_v62, 4  ;;  %11252 = vmatmul.mubr.msk.bf16.gmra.mrb[8].mxu1 %vm688_vm3, %v9952_v57  ;;  %v8726_v46 = vsel %vm13712_vm10, %v8722_v25, %v8725_v62  ;;  %v8738_v49 = vshrl.u32 %v16125_v7, 16  ;;  %v8741_v9 = vshll.u32 %v16125_v7, 16 }
 0x297   : > { %v4118_v3 = vrot.slane %v16124_v12, 6  ;;  %v4115_v26 = vor.u32 %v4114_v50, %v4111_v23  ;;  %v4125_v63 = vrot.slane %v4123_v58, 5  ;;  %v4128_v17 = vrot.slane %v4126_v61, 6 }
 0x298   : > { %v8736_v18 = vsel %vm13712_vm10, %v8727_v47, %v8735_v34  ;;  %v8740_v31 = vrot.slane %v8738_v49, 5  ;;  %v8743_v1 = vrot.slane %v8741_v9, 6  ;;  %v16127_v59 = vshrl.u32 %v16126_v40, 16  ;;  %v10490_v49 = vld [vmem:[%s12495_s23 + $0xa4] sm:$0x3] }
 0x299   : > { %v4119_v14 = vor.u32 %v4118_v3, %v4117_v13  ;;  %v10507_v8 = vcombine.low %v8726_v46, %v8736_v18  ;;  %v4116_v22 = vrot.slane %v4115_v26, 4  ;;  %v16128_v11 = vshll.u32 %v16126_v40, 16 }
 0x29a   : > { %v8746_v30 = vrot.slane %v16127_v59, 5  ;;  %v4129_v27 = vor.u32 %v4128_v17, %v4125_v63  ;;  %v8744_v55 = vor.u32 %v8743_v1, %v8740_v31  ;;  %v8752_v48 = vshrl.u32 %v10489_v56, 16 }
 0x29b   : > { %v4121_v42 = vrot.slane %v4119_v14, 4  ;;  %v8747_v39 = vrot.slane %v16128_v11, 6  ;;  %11547 = vmatprep.mubr.msk.bf16.mxu0 %vm688_vm3, %v10507_v8  ;;  %v8755_v6 = vshll.u32 %v10489_v56, 16  ;;  %v4120_v19 = vsel %vm13712_vm10, %v4116_v22, %v4119_v14 }
 0x29c   : > { %v4132_v62 = vshrl.u32 %v15054_v16, 16  ;;  %v4135_v20 = vshll.u32 %v15054_v16, 16  ;;  %v8745_v32 = vrot.slane %v8744_v55, 4  ;;  %v8754_v33 = vrot.slane %v8752_v48, 5 }
 0x29d   : > { %v8748_v53 = vor.u32 %v8747_v39, %v8746_v30  ;;  %v4130_v60 = vsel %vm13712_vm10, %v4121_v42, %v4129_v27  ;;  %v8757_v43 = vrot.slane %v8755_v6, 6  ;;  %v16129_v23 = vshrl.u32 %v14509_v10, 16  ;;  %v9936_v39 = vld [vmem:[%s12495_s23 + $0x74] sm:$0x3]  ;;  %v12295_v27 = vld [vmem:[%s12495_s23 + $0x6c] sm:$0xe] }
 0x29e   : > { %v9953_v52 = vcombine.low %v4120_v19, %v4130_v60  ;;  %v4134_v13 = vrot.slane %v4132_v62, 5  ;;  %v4137_v57 = vrot.slane %v4135_v20, 6  ;;  %v16130_v16 = vshll.u32 %v14509_v10, 16 }
 0x29f   : > { %v8750_v5 = vrot.slane %v8748_v53, 4  ;;  %v8749_v25 = vsel %vm13712_vm10, %v8745_v32, %v8748_v53  ;;  %v8758_v47 = vor.u32 %v8757_v43, %v8754_v33  ;;  %v4140_v34 = vrot.slane %v16129_v23, 5 }
 0x2a0   : > { %v4141_v50 = vrot.slane %v16130_v16, 6  ;;  %11255 = vmatprep.mubr.msk.bf16.mxu1 %vm688_vm3, %v9953_v52  ;;  %v4138_v12 = vor.u32 %v4137_v57, %v4134_v13  ;;  %v4146_v3 = vshrl.u32 %v9935_v44, 16  ;;  %v4149_v58 = vshll.u32 %v9935_v44, 16 }
 0x2a1   : > { %v8761_v46 = vshrl.u32 %v15063_v36, 16  ;;  %v8759_v61 = vsel %vm13712_vm10, %v8750_v5, %v8758_v47  ;;  %v8764_v9 = vshll.u32 %v15063_v36, 16  ;;  %v16131_v18 = vshrl.u32 %v14534_v54, 16  ;;  %v12296_v47 = vld [vmem:[%s12495_s23 + $0xa8] sm:$0xe] }
 0x2a2   : > { %v4142_v7 = vor.u32 %v4141_v50, %v4140_v34  ;;  %v10508_v10 = vcombine.low %v8749_v25, %v8759_v61  ;;  %v4139_v14 = vrot.slane %v4138_v12, 4  ;;  %v4148_v63 = vrot.slane %v4146_v3, 5 }
 0x2a3   : > { %v8769_v26 = vrot.slane %v16131_v18, 5  ;;  %v4151_v56 = vrot.slane %v4149_v58, 6  ;;  %v8763_v17 = vrot.slane %v8761_v46, 5  ;;  %v8766_v31 = vrot.slane %v8764_v9, 6  ;;  %v10491_v58 = vld [vmem:[%s12495_s23 + $0xb0] sm:$0x3] }
 0x2a4   : > { %v4144_v8 = vrot.slane %v4142_v7, 4  ;;  %v16132_v1 = vshll.u32 %v14534_v54, 16  ;;  %11548 = vmatmul.mubr.msk.bf16.gmra.mrb[16].mxu0 %vm688_vm3, %v10508_v10  ;;  %v4143_v36 = vsel %vm13712_vm10, %v4139_v14, %v4142_v7  ;;  %v8775_v40 = vshrl.u32 %v10490_v49, 16 }
 0x2a5   : > { %v4152_v42 = vor.u32 %v4151_v56, %v4148_v63  ;;  %v8778_v59 = vshll.u32 %v10490_v49, 16  ;;  %v8767_v30 = vor.u32 %v8766_v31, %v8763_v17  ;;  %v4155_v55 = vshrl.u32 %v12295_v27, 16 }
 0x2a6   : > { %v8770_v22 = vrot.slane %v16132_v1, 6  ;;  %v4158_v48 = vshll.u32 %v12295_v27, 16  ;;  %v8777_v54 = vrot.slane %v8775_v40, 5  ;;  %v16133_v53 = vshrl.u32 %v14559_v21, 16 }
 0x2a7   : > { %v4153_v6 = vsel %vm13712_vm10, %v4144_v8, %v4152_v42  ;;  %v8780_v19 = vrot.slane %v8778_v59, 6  ;;  %v8768_v60 = vrot.slane %v8767_v30, 4  ;;  %v4157_v33 = vrot.slane %v4155_v55, 5 }
 0x2a8   : > { %v8771_v11 = vor.u32 %v8770_v22, %v8769_v26  ;;  %v4163_v62 = vrot.slane %v16133_v53, 5  ;;  %v9954_v20 = vcombine.low %v4143_v36, %v4153_v6  ;;  %v4160_v44 = vrot.slane %v4158_v48, 6  ;;  %v12297_v22 = vld [vmem:[%s12495_s23 + $0x78] sm:$0xe] }
 0x2a9   : > { %v8781_v43 = vor.u32 %v8780_v19, %v8777_v54  ;;  %v16134_v52 = vshll.u32 %v14559_v21, 16  ;;  %v4169_v13 = vshrl.u32 %v9936_v39, 16  ;;  %v4172_v25 = vshll.u32 %v9936_v39, 16 }
 0x2aa   : > { %v8773_v32 = vrot.slane %v8771_v11, 4  ;;  %11256 = vmatmul.mubr.msk.bf16.gmra.mrb[12].mxu1 %vm688_vm3, %v9954_v20  ;;  %v8772_v57 = vsel %vm13712_vm10, %v8768_v60, %v8771_v11  ;;  %v8784_v23 = vshrl.u32 %v12296_v47, 16  ;;  %v8787_v34 = vshll.u32 %v12296_v47, 16  ;;  %v9937_v11 = vld [vmem:[%s12495_s23 + $0x80] sm:$0x3] }
 0x2ab   : > { %v4164_v5 = vrot.slane %v16134_v52, 6  ;;  %v4161_v50 = vor.u32 %v4160_v44, %v4157_v33  ;;  %v4171_v3 = vrot.slane %v4169_v13, 5  ;;  %v4174_v46 = vrot.slane %v4172_v25, 6  ;;  %v10492_v13 = vld [vmem:[%s12495_s23 + $0xbc] sm:$0x3] }
 0x2ac   : > { %v8782_v16 = vsel %vm13712_vm10, %v8773_v32, %v8781_v43  ;;  %v8786_v61 = vrot.slane %v8784_v23, 5  ;;  %v8789_v7 = vrot.slane %v8787_v34, 6  ;;  %v16135_v18 = vshrl.u32 %v14589_v2, 16  ;;  %v12298_v43 = vld [vmem:[%s12495_s23 + $0xb4] sm:$0xe] }
 0x2ad   : > { %v4165_v12 = vor.u32 %v4164_v5, %v4163_v62  ;;  %v10509_v21 = vcombine.low %v8772_v57, %v8782_v16  ;;  %v4162_v49 = vrot.slane %v4161_v50, 4  ;;  %v16136_v10 = vshll.u32 %v14589_v2, 16 }
 0x2ae   : > { %v8792_v26 = vrot.slane %v16135_v18, 5  ;;  %v4175_v63 = vor.u32 %v4174_v46, %v4171_v3  ;;  %v8790_v56 = vor.u32 %v8789_v7, %v8786_v61  ;;  %v8798_v8 = vshrl.u32 %v10491_v58, 16 }
 0x2af   : > { %v4167_v9 = vrot.slane %v4165_v12, 4  ;;  %v8793_v14 = vrot.slane %v16136_v10, 6  ;;  %11551 = vmatprep.mubr.msk.bf16.mxu0 %vm688_vm3, %v10509_v21  ;;  %v8801_v17 = vshll.u32 %v10491_v58, 16  ;;  %v4166_v31 = vsel %vm13712_vm10, %v4162_v49, %v4165_v12  ;;  %v12299_v10 = vld [vmem:[%s12495_s23 + $0x84] sm:$0xe] }
 0x2b0   : > { %v4178_v36 = vshrl.u32 %v12297_v22, 16  ;;  %v4181_v42 = vshll.u32 %v12297_v22, 16  ;;  %v8791_v59 = vrot.slane %v8790_v56, 4  ;;  %v8800_v2 = vrot.slane %v8798_v8, 5 }
 0x2b1   : > { %v8794_v1 = vor.u32 %v8793_v14, %v8792_v26  ;;  %v4176_v40 = vsel %vm13712_vm10, %v4167_v9, %v4175_v63  ;;  %v8803_v30 = vrot.slane %v8801_v17, 6  ;;  %v16137_v19 = vshrl.u32 %v14614_v24, 16  ;;  %v9938_v26 = vld [vmem:[%s12495_s23 + $0x8c] sm:$0x3] }
 0x2b2   : > { %v9955_v39 = vcombine.low %v4166_v31, %v4176_v40  ;;  %v4180_v55 = vrot.slane %v4178_v36, 5  ;;  %v4183_v48 = vrot.slane %v4181_v42, 6  ;;  %v16138_v62 = vshll.u32 %v14614_v24, 16 }
 0x2b3   : > { %v8796_v27 = vrot.slane %v8794_v1, 4  ;;  %v8795_v6 = vsel %vm13712_vm10, %v8791_v59, %v8794_v1  ;;  %v8804_v54 = vor.u32 %v8803_v30, %v8800_v2  ;;  %v4186_v53 = vrot.slane %v16137_v19, 5 }
 0x2b4   : > { %v4187_v20 = vrot.slane %v16138_v62, 6  ;;  %11259 = vmatprep.mubr.msk.bf16.mxu1 %vm688_vm3, %v9955_v39  ;;  %v4184_v60 = vor.u32 %v4183_v48, %v4180_v55  ;;  %v4192_v32 = vshrl.u32 %v9937_v11, 16  ;;  %v4195_v33 = vshll.u32 %v9937_v11, 16  ;;  %v12300_v55 = vld [vmem:[%s12495_s23 + $0xc0] sm:$0xe] }
 0x2b5   : > { %v8807_v44 = vshrl.u32 %v12298_v43, 16  ;;  %v8805_v52 = vsel %vm13712_vm10, %v8796_v27, %v8804_v54  ;;  %v8810_v57 = vshll.u32 %v12298_v43, 16  ;;  %v16139_v25 = vshrl.u32 %v14643_v29, 16 }
 0x2b6   : > { %v4188_v5 = vor.u32 %v4187_v20, %v4186_v53  ;;  %v10510_v23 = vcombine.low %v8795_v6, %v8805_v52  ;;  %v4185_v24 = vrot.slane %v4184_v60, 4  ;;  %v4194_v34 = vrot.slane %v4192_v32, 5  ;;  %v10493_v20 = vld [vmem:[%s12495_s23 + $0xc8] sm:$0x3] }
 0x2b7   : > { %v8815_v47 = vrot.slane %v16139_v25, 5  ;;  %v4197_v16 = vrot.slane %v4195_v33, 6  ;;  %v8809_v12 = vrot.slane %v8807_v44, 5  ;;  %v8812_v3 = vrot.slane %v8810_v57, 6 }
 0x2b8   : > { %v4190_v50 = vrot.slane %v4188_v5, 4  ;;  %v16140_v58 = vshll.u32 %v14643_v29, 16  ;;  %11552 = vmatmul.mubr.msk.bf16.gmra.mrb[20].mxu0 %vm688_vm3, %v10510_v23  ;;  %v4189_v46 = vsel %vm13712_vm10, %v4185_v24, %v4188_v5  ;;  %v8821_v7 = vshrl.u32 %v10492_v13, 16 }
 0x2b9   : > { %v4198_v61 = vor.u32 %v4197_v16, %v4194_v34  ;;  %v8824_v49 = vshll.u32 %v10492_v13, 16  ;;  %v8813_v9 = vor.u32 %v8812_v3, %v8809_v12  ;;  %v4201_v14 = vshrl.u32 %v12299_v10, 16 }
 0x2ba   : > { %v8816_v21 = vrot.slane %v16140_v58, 6  ;;  %v4204_v63 = vshll.u32 %v12299_v10, 16  ;;  %v8823_v29 = vrot.slane %v8821_v7, 5  ;;  %v16141_v17 = vshrl.u32 %v14677_v38, 16 }
 0x2bb   : > { %v4199_v56 = vsel %vm13712_vm10, %v4190_v50, %v4198_v61  ;;  %v8826_v8 = vrot.slane %v8824_v49, 6  ;;  %v8814_v22 = vrot.slane %v8813_v9, 4  ;;  %v4203_v42 = vrot.slane %v4201_v14, 5  ;;  %v12301_v50 = vld [vmem:[%s12495_s23 + $0x90] sm:$0xe] }
 0x2bc   : > { %v8817_v18 = vor.u32 %v8816_v21, %v8815_v47  ;;  %v4209_v31 = vrot.slane %v16141_v17, 5  ;;  %v9956_v1 = vcombine.low %v4189_v46, %v4199_v56  ;;  %v4206_v59 = vrot.slane %v4204_v63, 6  ;;  %v9939_v61 = vld [vmem:[%s12495_s23 + $0x98] sm:$0x3] }
 0x2bd   : > { %v8827_v40 = vor.u32 %v8826_v8, %v8823_v29  ;;  %v16142_v2 = vshll.u32 %v14677_v38, 16  ;;  %v4215_v11 = vshrl.u32 %v9938_v26, 16  ;;  %v4218_v27 = vshll.u32 %v9938_v26, 16 }
 0x2be   : > { %v8819_v36 = vrot.slane %v8817_v18, 4  ;;  %11260 = vmatmul.mubr.msk.bf16.gmra.mrb[16].mxu1 %vm688_vm3, %v9956_v1  ;;  %v8818_v39 = vsel %vm13712_vm10, %v8814_v22, %v8817_v18  ;;  %v8830_v48 = vshrl.u32 %v12300_v55, 16  ;;  %v8833_v6 = vshll.u32 %v12300_v55, 16  ;;  %v12302_v1 = vld [vmem:[%s12495_s23 + $0xcc] sm:$0xe] }
 0x2bf   : > { %v4210_v30 = vrot.slane %v16142_v2, 6  ;;  %v4207_v19 = vor.u32 %v4206_v59, %v4203_v42  ;;  %v4217_v62 = vrot.slane %v4215_v11, 5  ;;  %v4220_v60 = vrot.slane %v4218_v27, 6 }
 0x2c0   : > { %v8828_v54 = vsel %vm13712_vm10, %v8819_v36, %v8827_v40  ;;  %v8832_v32 = vrot.slane %v8830_v48, 5  ;;  %v8835_v33 = vrot.slane %v8833_v6, 6  ;;  %v16143_v52 = vshrl.u32 %v14700_v35, 16  ;;  %v10494_v40 = vld [vmem:[%s12495_s23 + $0xd4] sm:$0x3] }
 0x2c1   : > { %v4211_v53 = vor.u32 %v4210_v30, %v4209_v31  ;;  %v10511_v38 = vcombine.low %v8818_v39, %v8828_v54  ;;  %v4208_v43 = vrot.slane %v4207_v19, 4  ;;  %v16144_v13 = vshll.u32 %v14700_v35, 16 }
 0x2c2   : > { %v8838_v5 = vrot.slane %v16143_v52, 5  ;;  %v4221_v25 = vor.u32 %v4220_v60, %v4217_v62  ;;  %v8836_v47 = vor.u32 %v8835_v33, %v8832_v32  ;;  %v8844_v23 = vshrl.u32 %v10493_v20, 16  ;;  %v9940_v33 = vld [vmem:[%s12495_s23 + $0xa4] sm:$0x3] }
 0x2c3   : > { %v4213_v44 = vrot.slane %v4211_v53, 4  ;;  %v8839_v57 = vrot.slane %v16144_v13, 6  ;;  %11555 = vmatprep.mubr.msk.bf16.mxu0 %vm688_vm3, %v10511_v38  ;;  %v8847_v24 = vshll.u32 %v10493_v20, 16  ;;  %v4212_v34 = vsel %vm13712_vm10, %v4208_v43, %v4211_v53  ;;  %v12303_v43 = vld [vmem:[%s12495_s23 + $0x9c] sm:$0xe] }
 0x2c4   : > { %v4224_v12 = vshrl.u32 %v12301_v50, 16  ;;  %v4227_v3 = vshll.u32 %v12301_v50, 16  ;;  %v8837_v21 = vrot.slane %v8836_v47, 4  ;;  %v8846_v35 = vrot.slane %v8844_v23, 5 }
 0x2c5   : > { %v8840_v16 = vor.u32 %v8839_v57, %v8838_v5  ;;  %v4222_v58 = vsel %vm13712_vm10, %v4213_v44, %v4221_v25  ;;  %v8849_v46 = vrot.slane %v8847_v24, 6  ;;  %v16145_v14 = vshrl.u32 %v14721_v41, 16 }
 0x2c6   : > { %v9957_v7 = vcombine.low %v4212_v34, %v4222_v58  ;;  %v4226_v9 = vrot.slane %v4224_v12, 5  ;;  %v4229_v18 = vrot.slane %v4227_v3, 6  ;;  %v16146_v56 = vshll.u32 %v14721_v41, 16 }
 0x2c7   : > { %v8842_v49 = vrot.slane %v8840_v16, 4  ;;  %v8841_v26 = vsel %vm13712_vm10, %v8837_v21, %v8840_v16  ;;  %v8850_v10 = vor.u32 %v8849_v46, %v8846_v35  ;;  %v4232_v63 = vrot.slane %v16145_v14, 5  ;;  %v12304_v46 = vld [vmem:[%s12495_s23 + $0xd8] sm:$0xe] }
 0x2c8   : > { %v4233_v29 = vrot.slane %v16146_v56, 6  ;;  %11263 = vmatprep.mubr.msk.bf16.mxu1 %vm688_vm3, %v9957_v7  ;;  %v4230_v8 = vor.u32 %v4229_v18, %v4226_v9  ;;  %v4238_v17 = vshrl.u32 %v9939_v61, 16  ;;  %v4241_v31 = vshll.u32 %v9939_v61, 16 }
 0x2c9   : > { %v8853_v22 = vshrl.u32 %v12302_v1, 16  ;;  %v8851_v36 = vsel %vm13712_vm10, %v8842_v49, %v8850_v10  ;;  %v8856_v59 = vshll.u32 %v12302_v1, 16  ;;  %v16147_v2 = vshrl.u32 %v14742_v37, 16  ;;  %v10495_v10 = vld [vmem:[%s12495_s23 + $0xe0] sm:$0x3] }
 0x2ca   : > { %v4234_v42 = vor.u32 %v4233_v29, %v4232_v63  ;;  %v10512_v11 = vcombine.low %v8841_v26, %v8851_v36  ;;  %v4231_v41 = vrot.slane %v4230_v8, 4  ;;  %v4240_v39 = vrot.slane %v4238_v17, 5 }
 0x2cb   : > { %v8861_v30 = vrot.slane %v16147_v2, 5  ;;  %v4243_v27 = vrot.slane %v4241_v31, 6  ;;  %v8855_v48 = vrot.slane %v8853_v22, 5  ;;  %v8858_v6 = vrot.slane %v8856_v59, 6 }
 0x2cc   : > { %v4236_v55 = vrot.slane %v4234_v42, 4  ;;  %v16148_v54 = vshll.u32 %v14742_v37, 16  ;;  %11556 = vmatmul.mubr.msk.bf16.gmra.mrb[24].mxu0 %vm688_vm3, %v10512_v11  ;;  %v4235_v53 = vsel %vm13712_vm10, %v4231_v41, %v4234_v42  ;;  %v8867_v20 = vshrl.u32 %v10494_v40, 16  ;;  %v12305_v11 = vld [vmem:[%s12495_s23 + $0xa8] sm:$0xe] }
 0x2cd   : > { %v4244_v62 = vor.u32 %v4243_v27, %v4240_v39  ;;  %v8870_v38 = vshll.u32 %v10494_v40, 16  ;;  %v8859_v60 = vor.u32 %v8858_v6, %v8855_v48  ;;  %v4247_v44 = vshrl.u32 %v12303_v43, 16  ;;  %v9941_v6 = vld [vmem:[%s12495_s23 + $0xb0] sm:$0x3] }
 0x2ce   : > { %v8862_v19 = vrot.slane %v16148_v54, 6  ;;  %v4250_v52 = vshll.u32 %v12303_v43, 16  ;;  %v8869_v37 = vrot.slane %v8867_v20, 5  ;;  %v16149_v57 = vshrl.u32 %v14764_v28, 16 }
 0x2cf   : > { %v4245_v5 = vsel %vm13712_vm10, %v4236_v55, %v4244_v62  ;;  %v8872_v13 = vrot.slane %v8870_v38, 6  ;;  %v8860_v23 = vrot.slane %v8859_v60, 4  ;;  %v4249_v34 = vrot.slane %v4247_v44, 5 }
 0x2d0   : > { %v8863_v32 = vor.u32 %v8862_v19, %v8861_v30  ;;  %v4255_v25 = vrot.slane %v16149_v57, 5  ;;  %v9958_v47 = vcombine.low %v4235_v53, %v4245_v5  ;;  %v4252_v50 = vrot.slane %v4250_v52, 6 }
 0x2d1   : > { %v8873_v16 = vor.u32 %v8872_v13, %v8869_v37  ;;  %v16150_v12 = vshll.u32 %v14764_v28, 16  ;;  %v4261_v58 = vshrl.u32 %v9940_v33, 16  ;;  %v4264_v35 = vshll.u32 %v9940_v33, 16  ;;  %v12306_v37 = vld [vmem:[%s12495_s23 + $0xb4] sm:$0xe] }
 0x2d2   : > { %v8865_v24 = vrot.slane %v8863_v32, 4  ;;  %11264 = vmatmul.mubr.msk.bf16.gmra.mrb[20].mxu1 %vm688_vm3, %v9958_v47  ;;  %v8864_v21 = vsel %vm13712_vm10, %v8860_v23, %v8863_v32  ;;  %v8876_v61 = vshrl.u32 %v12304_v46, 16  ;;  %v8879_v7 = vshll.u32 %v12304_v46, 16  ;;  %v9942_v47 = vld [vmem:[%s12495_s23 + $0xbc] sm:$0x3] }
 0x2d3   : > { %v4256_v3 = vrot.slane %v16150_v12, 6  ;;  %v4253_v9 = vor.u32 %v4252_v50, %v4249_v34  ;;  %v4263_v26 = vrot.slane %v4261_v58, 5  ;;  %v4266_v14 = vrot.slane %v4264_v35, 6 }
 0x2d4   : > { %v8874_v49 = vsel %vm13712_vm10, %v8865_v24, %v8873_v16  ;;  %v8878_v63 = vrot.slane %v8876_v61, 5  ;;  %v8881_v56 = vrot.slane %v8879_v7, 6  ;;  %v16151_v17 = vshrl.u32 %v14780_v0, 16 }
 0x2d5   : > { %v4257_v18 = vor.u32 %v4256_v3, %v4255_v25  ;;  %v10513_v28 = vcombine.low %v8864_v21, %v8874_v49  ;;  %v4254_v29 = vrot.slane %v4253_v9, 4  ;;  %v16152_v1 = vshll.u32 %v14780_v0, 16 }
 0x2d6   : > { %v8884_v31 = vrot.slane %v16151_v17, 5  ;;  %v4267_v36 = vor.u32 %v4266_v14, %v4263_v26  ;;  %v8882_v42 = vor.u32 %v8881_v56, %v8878_v63  ;;  %v8890_v40 = vshrl.u32 %v10495_v10, 16 }
 0x2d7   : > { %v4259_v8 = vrot.slane %v4257_v18, 4  ;;  %v8885_v22 = vrot.slane %v16152_v1, 6  ;;  %11559 = vmatprep.mubr.msk.bf16.mxu0 %vm688_vm3, %v10513_v28  ;;  %v8893_v59 = vshll.u32 %v10495_v10, 16  ;;  %v4258_v2 = vsel %vm13712_vm10, %v4254_v29, %v4257_v18  ;;  %v9943_v10 = vld [vmem:[%s12495_s23 + $0xc8] sm:$0x3] }
 0x2d8   : > { %v4270_v41 = vshrl.u32 %v12305_v11, 16  ;;  %v4273_v39 = vshll.u32 %v12305_v11, 16  ;;  %v8883_v55 = vrot.slane %v8882_v42, 4  ;;  %v8892_v0 = vrot.slane %v8890_v40, 5  ;;  %v12307_v28 = vld [vmem:[%s12495_s23 + $0xc0] sm:$0xe] }
 0x2d9   : > { %v8886_v30 = vor.u32 %v8885_v22, %v8884_v31  ;;  %v4268_v27 = vsel %vm13712_vm10, %v4259_v8, %v4267_v36  ;;  %v8895_v48 = vrot.slane %v8893_v59, 6  ;;  %v16153_v60 = vshrl.u32 %v14799_v51, 16 }
 0x2da   : > { %v9959_v54 = vcombine.low %v4258_v2, %v4268_v27  ;;  %v4272_v53 = vrot.slane %v4270_v41, 5  ;;  %v4275_v62 = vrot.slane %v4273_v39, 6  ;;  %v16154_v33 = vshll.u32 %v14799_v51, 16 }
 0x2db   : > { %v8888_v19 = vrot.slane %v8886_v30, 4  ;;  %v8887_v20 = vsel %vm13712_vm10, %v8883_v55, %v8886_v30  ;;  %v8896_v38 = vor.u32 %v8895_v48, %v8892_v0  ;;  %v4278_v32 = vrot.slane %v16153_v60, 5 }
 0x2dc   : > { %v4279_v43 = vrot.slane %v16154_v33, 6  ;;  %11267 = vmatprep.mubr.msk.bf16.mxu1 %vm688_vm3, %v9959_v54  ;;  %v4276_v44 = vor.u32 %v4275_v62, %v4272_v53  ;;  %v4284_v52 = vshrl.u32 %v9941_v6, 16  ;;  %v4287_v5 = vshll.u32 %v9941_v6, 16 }
 0x2dd   : > { %v4293_v13 = vshrl.u32 %v12306_v37, 16  ;;  %v8897_v57 = vsel %vm13712_vm10, %v8888_v19, %v8896_v38  ;;  %v4296_v23 = vshll.u32 %v12306_v37, 16  ;;  %v16155_v24 = vshrl.u32 %v14833_v4, 16 }
 0x2de   : > { %v4280_v25 = vor.u32 %v4279_v43, %v4278_v32  ;;  %v10514_v16 = vcombine.low %v8887_v20, %v8897_v57  ;;  %v4277_v51 = vrot.slane %v4276_v44, 4  ;;  %v4286_v50 = vrot.slane %v4284_v52, 5 }
 0x2df   : > { %v4301_v34 = vrot.slane %v16155_v24, 5  ;;  %v4289_v12 = vrot.slane %v4287_v5, 6  ;;  %v4295_v58 = vrot.slane %v4293_v13, 5  ;;  %v4298_v21 = vrot.slane %v4296_v23, 6  ;;  %v15581_v13 = vld [vmem:[%s15695_s2] ss:$0 sm:$0xff] }
 0x2e0   : > { %v4282_v3 = vrot.slane %v4280_v25, 4  ;;  %v16156_v35 = vshll.u32 %v14833_v4, 16  ;;  %11560 = vmatmul.mubr.msk.bf16.gmra.mrb[28].mxu0 %vm688_vm3, %v10514_v16  ;;  %v4281_v61 = vsel %vm13712_vm10, %v4277_v51, %v4280_v25  ;;  %v4307_v49 = vshrl.u32 %v9942_v47, 16 }
 0x2e1   : > { %v4290_v7 = vor.u32 %v4289_v12, %v4286_v50  ;;  %v4310_v9 = vshll.u32 %v9942_v47, 16  ;;  %v4299_v18 = vor.u32 %v4298_v21, %v4295_v58  ;;  %v4316_v14 = vshrl.u32 %v12307_v28, 16 }
 0x2e2   : > { %v4302_v46 = vrot.slane %v16156_v35, 6  ;;  %v4319_v63 = vshll.u32 %v12307_v28, 16  ;;  %v4309_v29 = vrot.slane %v4307_v49, 5  ;;  %v16157_v8 = vshrl.u32 %v14858_v15, 16 }
 0x2e3   : > { %v4291_v56 = vsel %vm13712_vm10, %v4282_v3, %v4290_v7  ;;  %v4312_v4 = vrot.slane %v4310_v9, 6  ;;  %v4300_v1 = vrot.slane %v4299_v18, 4  ;;  %v4318_v36 = vrot.slane %v4316_v14, 5 }
 0x2e4   : > { %v4303_v26 = vor.u32 %v4302_v46, %v4301_v34  ;;  %v4324_v17 = vrot.slane %v16157_v8, 5  ;;  %v9960_v31 = vcombine.low %v4281_v61, %v4291_v56  ;;  %v4321_v40 = vrot.slane %v4319_v63, 6 }
 0x2e5   : > { %v4313_v42 = vor.u32 %v4312_v4, %v4309_v29  ;;  %v16158_v59 = vshll.u32 %v14858_v15, 16  ;;  %v4330_v30 = vshrl.u32 %v9943_v10, 16  ;;  %v4333_v41 = vshll.u32 %v9943_v10, 16 }
 0x2e6   : > { %v4305_v22 = vrot.slane %v4303_v26, 4  ;;  %11268 = vmatmul.mubr.msk.bf16.gmra.mrb[24].mxu1 %vm688_vm3, %v9960_v31  ;;  %v4304_v11 = vsel %vm13712_vm10, %v4300_v1, %v4303_v26  ;;  %v4322_v27 = vor.u32 %v4321_v40, %v4318_v36 }
 0x2e7   : > { %v4325_v2 = vrot.slane %v16158_v59, 6  ;;  %v4332_v0 = vrot.slane %v4330_v30, 5  ;;  %v4335_v6 = vrot.slane %v4333_v41, 6 }
 0x2e8   : > { %v4314_v39 = vsel %vm13712_vm10, %v4305_v22, %v4313_v42  ;;  %v4323_v54 = vrot.slane %v4322_v27, 4 }
 0x2e9   : > { %v4326_v55 = vor.u32 %v4325_v2, %v4324_v17  ;;  %v9961_v48 = vcombine.low %v4304_v11, %v4314_v39  ;;  %v4336_v15 = vor.u32 %v4335_v6, %v4332_v0 }
 0x2eb   : > { %v4328_v19 = vrot.slane %v4326_v55, 4  ;;  %11271 = vmatprep.mubr.msk.bf16.mxu1 %vm688_vm3, %v9961_v48  ;;  %v4327_v53 = vsel %vm13712_vm10, %v4323_v54, %v4326_v55 }
 0x2ed   : > { %v4337_v62 = vsel %vm13712_vm10, %v4328_v19, %v4336_v15 }
 0x2ee   : > { %v9962_v20 = vcombine.low %v4327_v53, %v4337_v62 }
 0x2f0   : > { %11272 = vmatmul.mubr.msk.bf16.gmra.mrb[28].mxu1 %vm688_vm3, %v9962_v20 }
 0x32b   : > { %v11533_v38 = vpop.f32.mrb[0].mxu0 }
 0x32c   : > { %v9044_v60 = vpop.f32.mrb[1].mxu0 }
 0x32d   : > { %v11534_v32 = vpop.f32.mrb[2].mxu0 }
 0x32e   : > { %v9047_v33 = vpop.f32.mrb[3].mxu0 }
 0x33b   : > { %v11537_v43 = vpop.f32.mrb[4].mxu0 }
 0x33c   : > { %v9060_v44 = vpop.f32.mrb[5].mxu0 }
 0x33d   : > { %v11538_v52 = vpop.f32.mrb[6].mxu0 }
 0x33e   : > { %v9063_v5 = vpop.f32.mrb[7].mxu0 }
 0x340   : > { %v11245_v37 = vpop.f32.mrb[0].mxu1 }
 0x341   : > { %v11563_v45 = vadd.f32 %v11533_v38, %v11245_v37  ;;  %v4484_v57 = vpop.f32.mrb[1].mxu1 }
 0x342   : > { %v11564_v25 = vadd.f32 %v9044_v60, %v4484_v57  ;;  %v11246_v47 = vpop.f32.mrb[2].mxu1 }
 0x343   : > { %v9212_v23 = vadd.f32 %v11563_v45, %v15581_v13  ;;  %v11565_v24 = vadd.f32 %v11534_v32, %v11246_v47  ;;  %v4487_v34 = vpop.f32.mrb[3].mxu1 }
 0x344   : > { %v9210_v16 = vadd.f32 %v11564_v25, %v15581_v13  ;;  %v11566_v51 = vadd.f32 %v9047_v33, %v4487_v34 }
 0x345   : > { %v9213_v50 = vadd.f32 %v11565_v24, %v15581_v13  ;;  %v9244_v3 = vmax.f32 %v9212_v23, 0.0 }
 0x346   : > { %v9211_v12 = vadd.f32 %v11566_v51, %v15581_v13  ;;  %v9242_v21 = vmax.f32 %v9210_v16, 0.0 }
 0x347   : > { %v9245_v58 = vmax.f32 %v9213_v50, 0.0 }
 0x348   : > { %v9243_v35 = vmax.f32 %v9211_v12, 0.0 }
 0x349   : > { %v10612_v46 = vpack.c.bf16 %v9245_v58, %v9244_v3 }
 0x34a   : > { %v10607_v61 = vpack.c.bf16 %v9243_v35, %v9242_v21 }
 0x34b   : > { %10684 = vst [vmem:[%s15590_s6 + $0x8] sm:$0xff] %v10612_v46  }
 0x34c   : > { %10608 = vst [vmem:[%s15590_s6] sm:$0xff] %v10607_v61  }
 0x34f   : > { %v11541_v7 = vpop.f32.mrb[8].mxu0 }
 0x350   : > { %v9076_v49 = vpop.f32.mrb[9].mxu0 }
 0x351   : > { %v11542_v9 = vpop.f32.mrb[10].mxu0 }
 0x352   : > { %v9079_v18 = vpop.f32.mrb[11].mxu0 }
 0x355   : > { %v11249_v26 = vpop.f32.mrb[4].mxu1 }
 0x356   : > { %v11567_v10 = vadd.f32 %v11537_v43, %v11249_v26  ;;  %v4500_v28 = vpop.f32.mrb[5].mxu1 }
 0x357   : > { %v11568_v14 = vadd.f32 %v9060_v44, %v4500_v28  ;;  %v11250_v63 = vpop.f32.mrb[6].mxu1 }
 0x358   : > { %v9216_v56 = vadd.f32 %v11567_v10, %v15581_v13  ;;  %v11569_v29 = vadd.f32 %v11538_v52, %v11250_v63  ;;  %v4503_v4 = vpop.f32.mrb[7].mxu1 }
 0x359   : > { %v9214_v8 = vadd.f32 %v11568_v14, %v15581_v13  ;;  %v11570_v17 = vadd.f32 %v9063_v5, %v4503_v4 }
 0x35a   : > { %v9217_v31 = vadd.f32 %v11569_v29, %v15581_v13  ;;  %v9248_v22 = vmax.f32 %v9216_v56, 0.0 }
 0x35b   : > { %v9215_v1 = vadd.f32 %v11570_v17, %v15581_v13  ;;  %v9246_v42 = vmax.f32 %v9214_v8, 0.0 }
 0x35c   : > { %v9249_v36 = vmax.f32 %v9217_v31, 0.0 }
 0x35d   : > { %v9247_v40 = vmax.f32 %v9215_v1, 0.0 }
 0x35e   : > { %v10622_v59 = vpack.c.bf16 %v9249_v36, %v9248_v22 }
 0x35f   : > { %v10617_v2 = vpack.c.bf16 %v9247_v40, %v9246_v42 }
 0x360   : > { %10686 = vst [vmem:[%s15590_s6 + $0x18] sm:$0xff] %v10622_v59  }
 0x361   : > { %10685 = vst [vmem:[%s15590_s6 + $0x10] sm:$0xff] %v10617_v2  }
 0x363   : > { %v11545_v30 = vpop.f32.mrb[12].mxu0 }
 0x364   : > { %v9092_v11 = vpop.f32.mrb[13].mxu0 }
 0x365   : > { %v11546_v41 = vpop.f32.mrb[14].mxu0 }
 0x366   : > { %v9095_v39 = vpop.f32.mrb[15].mxu0 }
 0x369   : > { %v11253_v27 = vpop.f32.mrb[8].mxu1 }
 0x36a   : > { %v11571_v55 = vadd.f32 %v11541_v7, %v11253_v27  ;;  %v4516_v0 = vpop.f32.mrb[9].mxu1 }
 0x36b   : > { %v11572_v48 = vadd.f32 %v9076_v49, %v4516_v0  ;;  %v11254_v6 = vpop.f32.mrb[10].mxu1 }
 0x36c   : > { %v9220_v54 = vadd.f32 %v11571_v55, %v15581_v13  ;;  %v11573_v19 = vadd.f32 %v11542_v9, %v11254_v6  ;;  %v4519_v15 = vpop.f32.mrb[11].mxu1 }
 0x36d   : > { %v9218_v53 = vadd.f32 %v11572_v48, %v15581_v13  ;;  %v11574_v62 = vadd.f32 %v9079_v18, %v4519_v15 }
 0x36e   : > { %v9221_v20 = vadd.f32 %v11573_v19, %v15581_v13  ;;  %v9252_v60 = vmax.f32 %v9220_v54, 0.0 }
 0x36f   : > { %v9219_v38 = vadd.f32 %v11574_v62, %v15581_v13  ;;  %v9250_v33 = vmax.f32 %v9218_v53, 0.0 }
 0x370   : > { %v9253_v32 = vmax.f32 %v9221_v20, 0.0 }
 0x371   : > { %v9251_v43 = vmax.f32 %v9219_v38, 0.0 }
 0x372   : > { %v10632_v44 = vpack.c.bf16 %v9253_v32, %v9252_v60 }
 0x373   : > { %v10627_v52 = vpack.c.bf16 %v9251_v43, %v9250_v33 }
 0x374   : > { %10688 = vst [vmem:[%s15590_s6 + $0x28] sm:$0xff] %v10632_v44  }
 0x375   : > { %10687 = vst [vmem:[%s15590_s6 + $0x20] sm:$0xff] %v10627_v52  }
 0x377   : > { %v11549_v5 = vpop.f32.mrb[16].mxu0 }
 0x378   : > { %v9108_v37 = vpop.f32.mrb[17].mxu0 }
 0x379   : > { %v11550_v45 = vpop.f32.mrb[18].mxu0 }
 0x37a   : > { %v9111_v57 = vpop.f32.mrb[19].mxu0 }
 0x37d   : > { %v11257_v25 = vpop.f32.mrb[12].mxu1 }
 0x37e   : > { %v11575_v47 = vadd.f32 %v11545_v30, %v11257_v25  ;;  %v4532_v23 = vpop.f32.mrb[13].mxu1 }
 0x37f   : > { %v11576_v24 = vadd.f32 %v9092_v11, %v4532_v23  ;;  %v11258_v34 = vpop.f32.mrb[14].mxu1 }
 0x380   : > { %v9224_v16 = vadd.f32 %v11575_v47, %v15581_v13  ;;  %v11577_v51 = vadd.f32 %v11546_v41, %v11258_v34  ;;  %v4535_v50 = vpop.f32.mrb[15].mxu1 }
 0x381   : > { %v9222_v12 = vadd.f32 %v11576_v24, %v15581_v13  ;;  %v11578_v3 = vadd.f32 %v9095_v39, %v4535_v50 }
 0x382   : > { %v9225_v58 = vadd.f32 %v11577_v51, %v15581_v13  ;;  %v9256_v35 = vmax.f32 %v9224_v16, 0.0 }
 0x383   : > { %v9223_v21 = vadd.f32 %v11578_v3, %v15581_v13  ;;  %v9254_v61 = vmax.f32 %v9222_v12, 0.0 }
 0x384   : > { %v9257_v46 = vmax.f32 %v9225_v58, 0.0 }
 0x385   : > { %v9255_v7 = vmax.f32 %v9223_v21, 0.0 }
 0x386   : > { %v10642_v49 = vpack.c.bf16 %v9257_v46, %v9256_v35 }
 0x387   : > { %v10637_v9 = vpack.c.bf16 %v9255_v7, %v9254_v61 }
 0x388   : > { %10690 = vst [vmem:[%s15590_s6 + $0x38] sm:$0xff] %v10642_v49  }
 0x389   : > { %10689 = vst [vmem:[%s15590_s6 + $0x30] sm:$0xff] %v10637_v9  }
 0x38b   : > { %v11553_v18 = vpop.f32.mrb[20].mxu0 }
 0x38c   : > { %v9124_v26 = vpop.f32.mrb[21].mxu0 }
 0x38d   : > { %v11554_v10 = vpop.f32.mrb[22].mxu0 }
 0x38e   : > { %v9127_v28 = vpop.f32.mrb[23].mxu0 }
 0x391   : > { %v11261_v14 = vpop.f32.mrb[16].mxu1 }
 0x392   : > { %v11579_v63 = vadd.f32 %v11549_v5, %v11261_v14  ;;  %v4548_v56 = vpop.f32.mrb[17].mxu1 }
 0x393   : > { %v11580_v29 = vadd.f32 %v9108_v37, %v4548_v56  ;;  %v11262_v4 = vpop.f32.mrb[18].mxu1 }
 0x394   : > { %v9228_v8 = vadd.f32 %v11579_v63, %v15581_v13  ;;  %v11581_v17 = vadd.f32 %v11550_v45, %v11262_v4  ;;  %v4551_v31 = vpop.f32.mrb[19].mxu1 }
 0x395   : > { %v9226_v1 = vadd.f32 %v11580_v29, %v15581_v13  ;;  %v11582_v22 = vadd.f32 %v9111_v57, %v4551_v31 }
 0x396   : > { %v9229_v36 = vadd.f32 %v11581_v17, %v15581_v13  ;;  %v9260_v40 = vmax.f32 %v9228_v8, 0.0 }
 0x397   : > { %v9227_v42 = vadd.f32 %v11582_v22, %v15581_v13  ;;  %v9258_v2 = vmax.f32 %v9226_v1, 0.0 }
 0x398   : > { %v9261_v59 = vmax.f32 %v9229_v36, 0.0 }
 0x399   : > { %v9259_v30 = vmax.f32 %v9227_v42, 0.0 }
 0x39a   : > { %v10652_v11 = vpack.c.bf16 %v9261_v59, %v9260_v40 }
 0x39b   : > { %v10647_v41 = vpack.c.bf16 %v9259_v30, %v9258_v2 }
 0x39c   : > { %10692 = vst [vmem:[%s15590_s6 + $0x48] sm:$0xff] %v10652_v11  }
 0x39d   : > { %10691 = vst [vmem:[%s15590_s6 + $0x40] sm:$0xff] %v10647_v41  }
 0x39f   : > { %v11557_v39 = vpop.f32.mrb[24].mxu0 }
 0x3a0   : > { %v9140_v27 = vpop.f32.mrb[25].mxu0 }
 0x3a1   : > { %v11558_v55 = vpop.f32.mrb[26].mxu0 }
 0x3a2   : > { %v9143_v0 = vpop.f32.mrb[27].mxu0 }
 0x3a5   : > { %v11265_v48 = vpop.f32.mrb[20].mxu1 }
 0x3a6   : > { %v11583_v6 = vadd.f32 %v11553_v18, %v11265_v48  ;;  %v4564_v54 = vpop.f32.mrb[21].mxu1 }
 0x3a7   : > { %v11584_v19 = vadd.f32 %v9124_v26, %v4564_v54  ;;  %v11266_v15 = vpop.f32.mrb[22].mxu1 }
 0x3a8   : > { %v9232_v53 = vadd.f32 %v11583_v6, %v15581_v13  ;;  %v11585_v62 = vadd.f32 %v11554_v10, %v11266_v15  ;;  %v4567_v20 = vpop.f32.mrb[23].mxu1 }
 0x3a9   : > { %v9230_v38 = vadd.f32 %v11584_v19, %v15581_v13  ;;  %v11586_v60 = vadd.f32 %v9127_v28, %v4567_v20 }
 0x3aa   : > { %v9233_v32 = vadd.f32 %v11585_v62, %v15581_v13  ;;  %v9264_v43 = vmax.f32 %v9232_v53, 0.0 }
 0x3ab   : > { %v9231_v33 = vadd.f32 %v11586_v60, %v15581_v13  ;;  %v9262_v52 = vmax.f32 %v9230_v38, 0.0 }
 0x3ac   : > { %v9265_v44 = vmax.f32 %v9233_v32, 0.0 }
 0x3ad   : > { %v9263_v5 = vmax.f32 %v9231_v33, 0.0 }
 0x3ae   : > { %v10662_v37 = vpack.c.bf16 %v9265_v44, %v9264_v43 }
 0x3af   : > { %v10657_v45 = vpack.c.bf16 %v9263_v5, %v9262_v52 }
 0x3b0   : > { %10694 = vst [vmem:[%s15590_s6 + $0x58] sm:$0xff] %v10662_v37  }
 0x3b1   : > { %10693 = vst [vmem:[%s15590_s6 + $0x50] sm:$0xff] %v10657_v45  }
 0x3b3   : > { %v11561_v57 = vpop.f32.mrb[28].mxu0 }
 0x3b4   : > { %v9156_v25 = vpop.f32.mrb[29].mxu0 }
 0x3b5   : > { %v11562_v47 = vpop.f32.mrb[30].mxu0 }
 0x3b6   : > { %v9159_v23 = vpop.f32.mrb[31].mxu0 }
 0x3b9   : > { %v11269_v24 = vpop.f32.mrb[24].mxu1 }
 0x3ba   : > { %v11587_v34 = vadd.f32 %v11557_v39, %v11269_v24  ;;  %v4580_v16 = vpop.f32.mrb[25].mxu1 }
 0x3bb   : > { %v11588_v51 = vadd.f32 %v9140_v27, %v4580_v16  ;;  %v11270_v50 = vpop.f32.mrb[26].mxu1 }
 0x3bc   : > { %v9236_v12 = vadd.f32 %v11587_v34, %v15581_v13  ;;  %v11589_v3 = vadd.f32 %v11558_v55, %v11270_v50  ;;  %v4583_v58 = vpop.f32.mrb[27].mxu1 }
 0x3bd   : > { %v9234_v21 = vadd.f32 %v11588_v51, %v15581_v13  ;;  %v11590_v35 = vadd.f32 %v9143_v0, %v4583_v58 }
 0x3be   : > { %v9237_v46 = vadd.f32 %v11589_v3, %v15581_v13  ;;  %v9268_v7 = vmax.f32 %v9236_v12, 0.0 }
 0x3bf   : > { %v9235_v61 = vadd.f32 %v11590_v35, %v15581_v13  ;;  %v9266_v9 = vmax.f32 %v9234_v21, 0.0 }
 0x3c0   : > { %v9269_v49 = vmax.f32 %v9237_v46, 0.0 }
 0x3c1   : > { %v9267_v18 = vmax.f32 %v9235_v61, 0.0 }
 0x3c2   : > { %v10672_v26 = vpack.c.bf16 %v9269_v49, %v9268_v7 }
 0x3c3   : > { %v11273_v10 = vpop.f32.mrb[28].mxu1  ;;  %v10667_v28 = vpack.c.bf16 %v9267_v18, %v9266_v9 }
 0x3c4   : > { %v11591_v14 = vadd.f32 %v11561_v57, %v11273_v10  ;;  %v4596_v63 = vpop.f32.mrb[29].mxu1  ;;  %10696 = vst [vmem:[%s15590_s6 + $0x68] sm:$0xff] %v10672_v26  }
 0x3c5   : > { %v11592_v56 = vadd.f32 %v9156_v25, %v4596_v63  ;;  %v11274_v29 = vpop.f32.mrb[30].mxu1  ;;  %10695 = vst [vmem:[%s15590_s6 + $0x60] sm:$0xff] %v10667_v28  }
 0x3c6   : > { %v9240_v4 = vadd.f32 %v11591_v14, %v15581_v13  ;;  %v11593_v8 = vadd.f32 %v11562_v47, %v11274_v29  ;;  %v4599_v17 = vpop.f32.mrb[31].mxu1 }
 0x3c7   : > { %v9238_v31 = vadd.f32 %v11592_v56, %v15581_v13  ;;  %v11594_v1 = vadd.f32 %v9159_v23, %v4599_v17 }
 0x3c8   : > { %v9241_v22 = vadd.f32 %v11593_v8, %v15581_v13  ;;  %v9272_v42 = vmax.f32 %v9240_v4, 0.0 }
 0x3c9   : > { %v9239_v36 = vadd.f32 %v11594_v1, %v15581_v13  ;;  %v9270_v59 = vmax.f32 %v9238_v31, 0.0 }
 0x3ca   : > { %v9273_v40 = vmax.f32 %v9241_v22, 0.0 }
 0x3cb   : > { %v9271_v2 = vmax.f32 %v9239_v36, 0.0 }
 0x3cc   : > { %v10682_v30 = vpack.c.bf16 %v9273_v40, %v9272_v42 }
 0x3cd   : > { %v10677_v11 = vpack.c.bf16 %v9271_v2, %v9270_v59 }
 0x3ce   : > { %10698 = vst [vmem:[%s15590_s6 + $0x78] sm:$0xff] %v10682_v30  }
 0x3cf   : > { %10697 = vst [vmem:[%s15590_s6 + $0x70] sm:$0xff] %v10677_v11  }
 0x3d0   : > { %12321 = shalt.err (!%p12318_p5)
}
 0x3d1   : > { %s12322_s27 = scalar_lea.hbm %s15639_s11, 2048  ;;  %s12326_s23 = scalar_lea.hbm %s15696_s3, 4096 }
 0x3d2   : > { %p12323_p6 = scmp.ne.s32.totalorder %s15639_s11, %s12322_s27  ;;  %p12327_p10 = scmp.lt.u32.totalorder %s15639_s11, %s15696_s3 }
 0x3d3   : > { %p12328_p11 = scmp.lt.u32.totalorder %s12326_s23, %s12322_s27  ;;  %p12330_p13 = scmp.lt.u32.totalorder %s12322_s27, %s15639_s11 }
 0x3d4   : > { %p12324_p7 = pnand %p12323_p6, %p12451_p4 }
 0x3d5   : > { %p12329_p12 = por %p12328_p11, %p12327_p10 }
 0x3d6   : > { %p12325_p9 = pneg %p12324_p7 }
 0x3d7   : > { %p12331_p0 = por %p12330_p13, %p12329_p12 }
 0x3d9   : > { %p12332_p1 = pnand %p12331_p0, %p12325_p9 }
 0x3db   : > { %12335 = shalt.err (!%p12332_p1)
}
 0x3dc   : > { %s12389_s5 = smov 64   ;;  %s12390_s6 = smov 4  }
 0x3dd   : > { %12060 = dma.vmem_to_hbm [thread:$0]  (%p12451_p4), %s15641_s8, 2048, %s15639_s11, %s15647_s15, %s12389_s5, %s12389_s5, %s12390_s6  }
 0x3de PF: > { %p12066_p2 = scmp.ge.s32.totalorder %s12386_s17, 2  ;;  %s9465_s7 = sand.u32 1, %s12366_s12  }
 0x3df   : > { %s9466_s9 = scalar_lea.sflag [#allocation3], %s9465_s7 }
 0x3e0   : > { %p12063_p3 = pnand %p12066_p2, %p12458_p8 }
 0x3e2   : > { %12361 = dma.done.wait (!%p12063_p3), %s9466_s9, 2048  }
 0x3e3   : > { %12363 = vsyncadd (!%p12063_p3), %s9466_s9, 4294965248  ;;  %s16_s17 = sadd.s32 1, %s12386_s17   ;;  %s16159_s12 = smov %s12370_s13 }
 0x3e4   : > { %p13_p5 = scmp.ge.s32.totalorder %s16_s17, 4   ;;  %s16160_s13 = smov %s12374_s14 }
 0x3e5   : > { %s16161_s14 = smov %s12464_s25  ;;  %s16162_s15 = smov %s12382_s16 }
 0x3e6   : > { %s16163_s16 = smov %s16165_s20  ;;  %15 = sbr.rel (!%p13_p5) target bundleno = 4 (0x4), region = 86 }
 0x3ed   :  { %9471 = vsyncpa [#allocation3], 1 }
 0x3ee   :  { %9473 = vsyncpa [#allocation3 + $0x1], 1 }

</bundles_post_ra>
